<compile_context>
chip_gen: v6e
topology: v6e:2x2x1
jax: 0.10.0
libtpu: 0.0.40
codegen_flags: <defaults>
</compile_context>

<pallas_src>
import functools

import jax
import jax.numpy as jnp
from jax.experimental import pallas as pl
from jax.experimental.pallas import tpu as pltpu


# ---------------------------------------------------------------------------
# Pallas kernel: one grid step = B_TILE whole images, everything in VMEM.
# All tensors are flat (rows, channels) slabs, rows = B_TILE*H*W in
# row-major (image, h, w) order.
# ---------------------------------------------------------------------------
def _inception_c_kernel(x_ref, w1x1_ref, b1x1_ref, w3_ref, b3_ref,
                        w4a_ref, b4a_ref, w4b_ref, b4b_ref, w4t_ref, b4t_ref,
                        out_ref, *, W, HW, b1, b2, b3n1, F3, F4):
    rows = x_ref.shape[0]
    od = out_ref.dtype
    f32, bf16 = jnp.float32, jnp.bfloat16

    # Boundary masks: computed once per grid step as (rows, 1) vectors and
    # reused by every rolled tap (hoisted out of the per-roll hot path).
    r = jax.lax.broadcasted_iota(jnp.int32, (rows, 1), 0)
    w_pos = r % W
    h_pos = r % HW
    m_w_lo = w_pos >= 1          # rows with a valid left  neighbour (w-1)
    m_w_hi = w_pos < (W - 1)     # rows with a valid right neighbour (w+1)
    m_h_lo = h_pos >= W          # rows with a valid upper neighbour (h-1)
    m_h_hi = h_pos < (HW - W)    # rows with a valid lower neighbour (h+1)

    def shift(y, amount, mask):
        # z[r] = y[r - amount]; rows without a valid neighbour are zeroed.
        # Also suppresses cross-image contamination (rows % HW == 0 holds).
        z = pltpu.roll(y, amount % rows, axis=0)     # XLU
        return jnp.where(mask, z, 0.0)               # VPU select, (rows,1) bcast

    x = x_ref[...]                                   # (rows, Cin) bf16
    bias = b1x1_ref[...]                             # (1, stem) f32

    # All four 1x1 convs on x fused into one wide MXU matmul.
    y = jnp.dot(x, w1x1_ref[...], preferred_element_type=f32)

    s3 = b1 + b2                  # offsets inside the fused-stem slab y
    s4 = s3 + b3n1
    o31 = b1 + b2                 # output-channel offsets
    o32 = o31 + F3
    o41 = o32 + F3
    o42 = o41 + F4
    o_end = o42 + F4

    # ---- branch1: 1x1 conv then AvgPool2d(3,1,1) (linear ops commute -> pool
    # the narrow conv result); bias added after the pool (padding adds 0).
    s = y[:, :b1]
    row = shift(s, 1, m_w_lo) + s + shift(s, -1, m_w_hi)
    pooled = shift(row, W, m_h_lo) + row + shift(row, -W, m_h_hi)
    out_ref[:, 0:b1] = (pooled * (1.0 / 9.0) + bias[:, :b1]).astype(od)

    # ---- branch2: plain 1x1 conv.
    out_ref[:, b1:o31] = (y[:, b1:s3] + bias[:, b1:s3]).astype(od)

    # ---- branch3: 1x1 stem, then a 1x3 and a 3x1 conv sharing the stem.
    # w3_ref[k] = [w_1x3[k] | w_3x1[k]] packed along Cout -> one matmul/tap.
    t3 = (y[:, s3:s4] + bias[:, s3:s4]).astype(bf16)
    y0 = jnp.dot(t3, w3_ref[0], preferred_element_type=f32)
    y1 = jnp.dot(t3, w3_ref[1], preferred_element_type=f32)
    y2 = jnp.dot(t3, w3_ref[2], preferred_element_type=f32)
    b3v = b3_ref[...]
    out_ref[:, o31:o32] = (shift(y0[:, :F3], 1, m_w_lo) + y1[:, :F3]
                           + shift(y2[:, :F3], -1, m_w_hi)
                           + b3v[:, :F3]).astype(od)
    out_ref[:, o32:o41] = (shift(y0[:, F3:], W, m_h_lo) + y1[:, F3:]
                           + shift(y2[:, F3:], -W, m_h_hi)
                           + b3v[:, F3:]).astype(od)

    # ---- branch4: 1x1 stem -> 1x3 conv -> 3x1 conv -> paired 1x3/3x1 tail.
    t4 = (y[:, s4:] + bias[:, s4:]).astype(bf16)

    # 1x3 conv, kernel (1,3), pad (0,1).
    u0 = jnp.dot(t4, w4a_ref[0], preferred_element_type=f32)
    u1 = jnp.dot(t4, w4a_ref[1], preferred_element_type=f32)
    u2 = jnp.dot(t4, w4a_ref[2], preferred_element_type=f32)
    u = (shift(u0, 1, m_w_lo) + u1 + shift(u2, -1, m_w_hi)
         + b4a_ref[...]).astype(bf16)

    # 3x1 conv, kernel (3,1), pad (1,0).
    v0 = jnp.dot(u, w4b_ref[0], preferred_element_type=f32)
    v1 = jnp.dot(u, w4b_ref[1], preferred_element_type=f32)
    v2 = jnp.dot(u, w4b_ref[2], preferred_element_type=f32)
    v = (shift(v0, W, m_h_lo) + v1 + shift(v2, -W, m_h_hi)
         + b4b_ref[...]).astype(bf16)

    # Tail: paired 1x3 / 3x1 convs on v, weights packed along Cout.
    z0 = jnp.dot(v, w4t_ref[0], preferred_element_type=f32)
    z1 = jnp.dot(v, w4t_ref[1], preferred_element_type=f32)
    z2 = jnp.dot(v, w4t_ref[2], preferred_element_type=f32)
    b4t = b4t_ref[...]
    out_ref[:, o41:o42] = (shift(z0[:, :F4], 1, m_w_lo) + z1[:, :F4]
                           + shift(z2[:, :F4], -1, m_w_hi)
                           + b4t[:, :F4]).astype(od)
    out_ref[:, o42:o_end] = (shift(z0[:, F4:], W, m_h_lo) + z1[:, F4:]
                             + shift(z2[:, F4:], -W, m_h_hi)
                             + b4t[:, F4:]).astype(od)


# ---------------------------------------------------------------------------
# Wrapper (NCHW in / NCHW out like the PyTorch module; NHWC path available)
# ---------------------------------------------------------------------------
def inception_c_forward(x, params, *, b_tile=None, out_dtype=jnp.float32,
                        data_format="NCHW"):
    (w_b1, b_b1, w_b2, b_b2, w_b31, b_b31, w_b3h, b_b3h, w_b3v, b_b3v,
     w_b41, b_b41, w_b4h1, b_b4h1, w_b4v1, b_b4v1,
     w_b4h2, b_b4h2, w_b4v2, b_b4v2) = params

    if data_format == "NCHW":
        N, Cin, H, W = x.shape
        x_nhwc = jnp.transpose(x, (0, 2, 3, 1))
    elif data_format == "NHWC":
        N, H, W, Cin = x.shape
        x_nhwc = x
    else:
        raise ValueError(f"unsupported data_format: {data_format}")
    HW = H * W

    b1, b2 = w_b1.shape[-1], w_b2.shape[-1]
    b3n1, F3 = w_b31.shape[-1], w_b3h.shape[-1]
    b4n1, b4n1x3 = w_b41.shape[-1], w_b4h1.shape[-1]
    b4n3x1, F4 = w_b4v1.shape[-1], w_b4h2.shape[-1]
    c_out = b1 + b2 + 2 * F3 + 2 * F4

    bf16, f32 = jnp.bfloat16, jnp.float32

    # Host-side packing: fuse the four 1x1 convs along Cout, and the paired
    # 1x3/3x1 convs that share an input.  Weights bf16, biases f32.
    w_1x1 = jnp.concatenate([w_b1, w_b2, w_b31, w_b41], axis=-1).astype(bf16)
    b_1x1 = jnp.concatenate([b_b1, b_b2, b_b31, b_b41], axis=-1).astype(f32)
    w_3 = jnp.concatenate([w_b3h, w_b3v], axis=-1).astype(bf16)
    b_3 = jnp.concatenate([b_b3h, b_b3v], axis=-1).astype(f32)
    w_4a, b_4a = w_b4h1.astype(bf16), b_b4h1.astype(f32)
    w_4b, b_4b = w_b4v1.astype(bf16), b_b4v1.astype(f32)
    w_4t = jnp.concatenate([w_b4h2, w_b4v2], axis=-1).astype(bf16)
    b_4t = jnp.concatenate([b_b4h2, b_b4v2], axis=-1).astype(f32)
    weights = [w_1x1, b_1x1, w_3, b_3, w_4a, b_4a, w_4b, b_4b, w_4t, b_4t]

    # Flat channels-last slab: rows = N*H*W, lanes = channels.
    x_flat = x_nhwc.reshape(N * HW, Cin).astype(bf16)

    # Batch-tile so one grid step feeds ~512 MXU rows, while keeping >= 2 grid
    # steps when the batch allows it (both TensorCores on dual-core chips get
    # work and the block pipeline has something to overlap).
    if b_tile is None:
        b_tile = 1
        target_rows = 512
        while (b_tile * HW < target_rows
               and N % (2 * b_tile) == 0
               and N // (2 * b_tile) >= 2):
            b_tile *= 2
    assert N % b_tile == 0, "batch must be divisible by b_tile"
    rows = b_tile * HW
    # Cross-image roll masking relies on every block holding whole images.
    assert rows % HW == 0
    grid = (N // b_tile,)

    kernel = functools.partial(
        _inception_c_kernel, W=W, HW=HW,
        b1=b1, b2=b2, b3n1=b3n1, F3=F3, F4=F4)

    in_specs = [pl.BlockSpec((rows, Cin), lambda n: (n, 0))]
    # Weights/biases never change across the grid: single-buffer them so the
    # packed weights cost 1x (not 2x) VMEM.
    for p in weights:
        in_specs.append(pl.BlockSpec(p.shape,
                                     lambda n, _nd=p.ndim: (0,) * _nd,
                                     pipeline_mode=pl.Buffered(1)))

    # VMEM budget: resident weights (1x) + double-buffered activation blocks
    # + in-kernel f32 intermediates (fused-1x1 slab + live conv temps).
    out_itemsize = jnp.dtype(out_dtype).itemsize
    wbytes = sum(int(p.size) * p.dtype.itemsize for p in weights)
    io_bytes = 2 * rows * Cin * 2 + 2 * rows * c_out * out_itemsize
    stem = b1 + b2 + b3n1 + b4n1
    widest = max(2 * F3, 2 * F4, b4n1x3, b4n3x1)
    interm = rows * 4 * (stem + 3 * widest)
    needed = wbytes + io_bytes + interm + (2 << 20)

    cp = dict(dimension_semantics=("parallel",))
    # Raise the scoped-VMEM limit whenever the footprint may exceed v5e's
    # 16 MiB default; cap at 5/8 of physical VMEM to leave headroom for
    # spills and compiler scratch (~40 MiB on v7x, ~80 MiB on v5e/v6e).
    if needed > (12 << 20):
        try:
            phys = int(pltpu.get_tpu_info().vmem_capacity_bytes)
        except Exception:
            phys = 64 << 20
        cp["vmem_limit_bytes"] = int(min(max(needed, 32 << 20), (phys * 5) // 8))

    out = pl.pallas_call(
        kernel,
        out_shape=jax.ShapeDtypeStruct((N * HW, c_out), out_dtype),
        grid=grid,
        in_specs=in_specs,
        out_specs=pl.BlockSpec((rows, c_out), lambda n: (n, 0)),
        compiler_params=pltpu.CompilerParams(**cp),
    )(x_flat, *weights)

    out = out.reshape(N, H, W, c_out)
    if data_format == "NCHW":
        out = jnp.transpose(out, (0, 3, 1, 2))
    return out


# ---------------------------------------------------------------------------
# Deterministic synthetic parameters (PyTorch-module-style flat list)
# ---------------------------------------------------------------------------
def init_params(key, in_channels, b1, b2, b3_n1, b3_n1x3_3x1,
                b4_n1, b4_n1x3, b4_n3x1, b4_n1x3_3x1):
    shapes = [
        ((in_channels, b1), (1, b1)),
        ((in_channels, b2), (1, b2)),
        ((in_channels, b3_n1), (1, b3_n1)),
        ((3, b3_n1, b3_n1x3_3x1), (1, b3_n1x3_3x1)),
        ((3, b3_n1, b3_n1x3_3x1), (1, b3_n1x3_3x1)),
        ((in_channels, b4_n1), (1, b4_n1)),
        ((3, b4_n1, b4_n1x3), (1, b4_n1x3)),
        ((3, b4_n1x3, b4_n3x1), (1, b4_n3x1)),
        ((3, b4_n3x1, b4_n1x3_3x1), (1, b4_n1x3_3x1)),
        ((3, b4_n3x1, b4_n1x3_3x1), (1, b4_n1x3_3x1)),
    ]
    keys = jax.random.split(key, 2 * len(shapes))
    params = []
    for i, (ws, bs) in enumerate(shapes):
        params.append(0.1 * jax.random.normal(keys[2 * i], ws, jnp.float32))
        params.append(0.1 * jax.random.normal(keys[2 * i + 1], bs, jnp.float32))
    return params


# ---------------------------------------------------------------------------
# Pure-JAX f32 reference (module semantics) for correctness check
# ---------------------------------------------------------------------------
def _ref_forward(x_nchw, params):
    x = jnp.transpose(x_nchw, (0, 2, 3, 1)).astype(jnp.float32)
    dn = ('NHWC', 'HWIO', 'NHWC')

    def conv(inp, w, b, axis=None):
        if w.ndim == 2:
            wf = w[None, None]                 # (1,1,in,out)
        elif axis == 'w':
            wf = w[None]                       # (1,3,in,out)
        else:
            wf = w[:, None]                    # (3,1,in,out)
        y = jax.lax.conv_general_dilated(inp, wf, (1, 1), 'SAME',
                                         dimension_numbers=dn)
        return y + b.reshape(1, 1, 1, -1)

    # AvgPool2d(3,1,1) with count_include_pad=True (PyTorch default).
    pooled = jax.lax.reduce_window(x, 0.0, jax.lax.add,
                                   (1, 3, 3, 1), (1, 1, 1, 1), 'SAME') / 9.0
    p = params
    out1 = conv(pooled, p[0], p[1])
    out2 = conv(x, p[2], p[3])
    t3 = conv(x, p[4], p[5])
    out3_1 = conv(t3, p[6], p[7], 'w')
    out3_2 = conv(t3, p[8], p[9], 'h')
    t4 = conv(x, p[10], p[11])
    t4 = conv(t4, p[12], p[13], 'w')
    t4 = conv(t4, p[14], p[15], 'h')
    out4_1 = conv(t4, p[16], p[17], 'w')
    out4_2 = conv(t4, p[18], p[19], 'h')
    out = jnp.concatenate([out1, out2, out3_1, out3_2, out4_1, out4_2], -1)
    return jnp.transpose(out, (0, 3, 1, 2))


if __name__ == "__main__":
    key = jax.random.PRNGKey(0)
    kx, kp = jax.random.split(key)

    # Small shapes consistent with the module (production Inception-C would be
    # Cin=1536, H=W=8, branch widths 256-512; the kernel handles both).
    N, Cin, H, W = 2, 8, 16, 16
    b1 = b2 = b3_n1 = b3_f = b4_n1 = b4_n1x3 = b4_n3x1 = b4_f = 8

    x = jax.random.normal(kx, (N, Cin, H, W), jnp.float32)
    params = init_params(kp, Cin, b1, b2, b3_n1, b3_f,
                         b4_n1, b4_n1x3, b4_n3x1, b4_f)

    out = jax.block_until_ready(inception_c_forward(x, params))
    assert out.shape == (N, b1 + b2 + 2 * b3_f + 2 * b4_f, H, W)

    ref = _ref_forward(x, params)
    # bf16 weights/activations with f32 accumulation -> loosened tolerance
    # (calibrated for small Cin; recalibrate, not debug, at production Cin).
    max_err = float(jnp.max(jnp.abs(out - ref)))
    assert max_err < 5e-2, f"mismatch vs reference: {max_err}"

    print("KERNEL_OK")
</pallas_src>

<mosaic_0001>
module attributes {stable_mosaic.version = 11 : i64} {
  func.func @_inception_c_kernel(%arg0: i32, %arg1: memref<256x8xbf16, #tpu.memory_space<vmem>>, %arg2: memref<8x32xbf16, #tpu.memory_space<vmem>>, %arg3: memref<1x32xf32, #tpu.memory_space<vmem>>, %arg4: memref<3x8x16xbf16, #tpu.memory_space<vmem>>, %arg5: memref<1x16xf32, #tpu.memory_space<vmem>>, %arg6: memref<3x8x8xbf16, #tpu.memory_space<vmem>>, %arg7: memref<1x8xf32, #tpu.memory_space<vmem>>, %arg8: memref<3x8x8xbf16, #tpu.memory_space<vmem>>, %arg9: memref<1x8xf32, #tpu.memory_space<vmem>>, %arg10: memref<3x8x16xbf16, #tpu.memory_space<vmem>>, %arg11: memref<1x16xf32, #tpu.memory_space<vmem>>, %arg12: memref<256x48xf32, #tpu.memory_space<vmem>>) attributes {dimension_semantics = [#tpu.dimension_semantics<parallel>], iteration_bounds = array<i64: 2>, scalar_prefetch = 0 : i64, scratch_operands = 0 : i64, tpu.core_type = #tpu.core_type<tc>, window_params = [{transform_indices = @transform_0, window_bounds = array<i64: 256, 8>}, {pipeline_mode = #tpu.pipeline_mode<synchronous>, transform_indices = @transform_1, window_bounds = array<i64: 8, 32>}, {pipeline_mode = #tpu.pipeline_mode<synchronous>, transform_indices = @transform_2, window_bounds = array<i64: 1, 32>}, {pipeline_mode = #tpu.pipeline_mode<synchronous>, transform_indices = @transform_3, window_bounds = array<i64: 3, 8, 16>}, {pipeline_mode = #tpu.pipeline_mode<synchronous>, transform_indices = @transform_4, window_bounds = array<i64: 1, 16>}, {pipeline_mode = #tpu.pipeline_mode<synchronous>, transform_indices = @transform_5, window_bounds = array<i64: 3, 8, 8>}, {pipeline_mode = #tpu.pipeline_mode<synchronous>, transform_indices = @transform_6, window_bounds = array<i64: 1, 8>}, {pipeline_mode = #tpu.pipeline_mode<synchronous>, transform_indices = @transform_7, window_bounds = array<i64: 3, 8, 8>}, {pipeline_mode = #tpu.pipeline_mode<synchronous>, transform_indices = @transform_8, window_bounds = array<i64: 1, 8>}, {pipeline_mode = #tpu.pipeline_mode<synchronous>, transform_indices = @transform_9, window_bounds = array<i64: 3, 8, 16>}, {pipeline_mode = #tpu.pipeline_mode<synchronous>, transform_indices = @transform_10, window_bounds = array<i64: 1, 16>}, {transform_indices = @transform_11, window_bounds = array<i64: 256, 48>}]} {
    %0 = tpu.iota {dimensions = array<i32: 0>} : vector<256x1xi32>
    %c16_i32 = arith.constant 16 : i32
    %c0_i32 = arith.constant 0 : i32
    %1 = arith.cmpi eq, %c16_i32, %c0_i32 : i32
    %c1_i32 = arith.constant 1 : i32
    %2 = arith.select %1, %c1_i32, %c16_i32 : i32
    %3 = vector.broadcast %2 : i32 to vector<256x1xi32>
    %4 = arith.remsi %0, %3 : vector<256x1xi32>
    %c0_i32_0 = arith.constant 0 : i32
    %5 = vector.broadcast %c0_i32_0 : i32 to vector<256x1xi32>
    %6 = arith.cmpi ne, %4, %5 : vector<256x1xi32>
    %c0_i32_1 = arith.constant 0 : i32
    %7 = vector.broadcast %c0_i32_1 : i32 to vector<256x1xi32>
    %8 = arith.cmpi slt, %4, %7 : vector<256x1xi32>
    %c0_i32_2 = arith.constant 0 : i32
    %9 = arith.cmpi slt, %2, %c0_i32_2 : i32
    %10 = vector.broadcast %9 : i1 to vector<256x1xi1>
    %11 = vector.broadcast %10 : vector<256x1xi1> to vector<256x1xi1>
    %12 = arith.xori %8, %11 : vector<256x1xi1>
    %13 = arith.andi %12, %6 : vector<256x1xi1>
    %14 = vector.broadcast %2 : i32 to vector<256x1xi32>
    %15 = arith.addi %4, %14 : vector<256x1xi32>
    %16 = arith.select %13, %15, %4 : vector<256x1xi1>, vector<256x1xi32>
    %c256_i32 = arith.constant 256 : i32
    %c0_i32_3 = arith.constant 0 : i32
    %17 = arith.cmpi eq, %c256_i32, %c0_i32_3 : i32
    %c1_i32_4 = arith.constant 1 : i32
    %18 = arith.select %17, %c1_i32_4, %c256_i32 : i32
    %19 = vector.broadcast %18 : i32 to vector<256x1xi32>
    %20 = arith.remsi %0, %19 : vector<256x1xi32>
    %c0_i32_5 = arith.constant 0 : i32
    %21 = vector.broadcast %c0_i32_5 : i32 to vector<256x1xi32>
    %22 = arith.cmpi ne, %20, %21 : vector<256x1xi32>
    %c0_i32_6 = arith.constant 0 : i32
    %23 = vector.broadcast %c0_i32_6 : i32 to vector<256x1xi32>
    %24 = arith.cmpi slt, %20, %23 : vector<256x1xi32>
    %c0_i32_7 = arith.constant 0 : i32
    %25 = arith.cmpi slt, %18, %c0_i32_7 : i32
    %26 = vector.broadcast %25 : i1 to vector<256x1xi1>
    %27 = vector.broadcast %26 : vector<256x1xi1> to vector<256x1xi1>
    %28 = arith.xori %24, %27 : vector<256x1xi1>
    %29 = arith.andi %28, %22 : vector<256x1xi1>
    %30 = vector.broadcast %18 : i32 to vector<256x1xi32>
    %31 = arith.addi %20, %30 : vector<256x1xi32>
    %32 = arith.select %29, %31, %20 : vector<256x1xi1>, vector<256x1xi32>
    %c1_i32_8 = arith.constant 1 : i32
    %33 = vector.broadcast %c1_i32_8 : i32 to vector<256x1xi32>
    %34 = arith.cmpi sge, %16, %33 : vector<256x1xi32>
    %c15_i32 = arith.constant 15 : i32
    %35 = vector.broadcast %c15_i32 : i32 to vector<256x1xi32>
    %36 = arith.cmpi slt, %16, %35 : vector<256x1xi32>
    %c16_i32_9 = arith.constant 16 : i32
    %37 = vector.broadcast %c16_i32_9 : i32 to vector<256x1xi32>
    %38 = arith.cmpi sge, %32, %37 : vector<256x1xi32>
    %c240_i32 = arith.constant 240 : i32
    %39 = vector.broadcast %c240_i32 : i32 to vector<256x1xi32>
    %40 = arith.cmpi slt, %32, %39 : vector<256x1xi32>
    %c0 = arith.constant 0 : index
    %c0_10 = arith.constant 0 : index
    %41 = vector.load %arg1[%c0, %c0_10] : memref<256x8xbf16, #tpu.memory_space<vmem>>, vector<256x8xbf16>
    %c0_11 = arith.constant 0 : index
    %c0_12 = arith.constant 0 : index
    %42 = vector.load %arg3[%c0_11, %c0_12] : memref<1x32xf32, #tpu.memory_space<vmem>>, vector<1x32xf32>
    %c0_13 = arith.constant 0 : index
    %c0_14 = arith.constant 0 : index
    %43 = vector.load %arg2[%c0_13, %c0_14] : memref<8x32xbf16, #tpu.memory_space<vmem>>, vector<8x32xbf16>
    %cst = arith.constant dense<0.000000e+00> : vector<256x32xf32>
    %44 = tpu.matmul %41, %43, %cst {dimension_numbers = #tpu.dot_dimension_numbers<[1], [0], [0], [1], [0, 0, 1, 1], [], []>} : vector<256x8xbf16>, vector<8x32xbf16>, vector<256x32xf32> -> vector<256x32xf32>
    %45 = vector.extract_strided_slice %44 {offsets = [0, 0], sizes = [256, 8], strides = [1, 1]} : vector<256x32xf32> to vector<256x8xf32>
    %c1_i32_15 = arith.constant 1 : i32
    %46 = tpu.dynamic_rotate %45 by %c1_i32_15 dim 0 : vector<256x8xf32>, i32 -> vector<256x8xf32>
    %cst_16 = arith.constant 0.000000e+00 : f32
    %47 = vector.shape_cast %34 : vector<256x1xi1> to vector<256x1xi1>
    %48 = vector.broadcast %47 : vector<256x1xi1> to vector<256x8xi1>
    %49 = vector.broadcast %cst_16 : f32 to vector<256x8xf32>
    %50 = arith.select %48, %46, %49 : vector<256x8xi1>, vector<256x8xf32>
    %51 = arith.addf %50, %45 : vector<256x8xf32>
    %c255_i32 = arith.constant 255 : i32
    %52 = tpu.dynamic_rotate %45 by %c255_i32 dim 0 : vector<256x8xf32>, i32 -> vector<256x8xf32>
    %cst_17 = arith.constant 0.000000e+00 : f32
    %53 = vector.shape_cast %36 : vector<256x1xi1> to vector<256x1xi1>
    %54 = vector.broadcast %53 : vector<256x1xi1> to vector<256x8xi1>
    %55 = vector.broadcast %cst_17 : f32 to vector<256x8xf32>
    %56 = arith.select %54, %52, %55 : vector<256x8xi1>, vector<256x8xf32>
    %57 = arith.addf %51, %56 : vector<256x8xf32>
    %c16_i32_18 = arith.constant 16 : i32
    %58 = tpu.dynamic_rotate %57 by %c16_i32_18 dim 0 : vector<256x8xf32>, i32 -> vector<256x8xf32>
    %cst_19 = arith.constant 0.000000e+00 : f32
    %59 = vector.shape_cast %38 : vector<256x1xi1> to vector<256x1xi1>
    %60 = vector.broadcast %59 : vector<256x1xi1> to vector<256x8xi1>
    %61 = vector.broadcast %cst_19 : f32 to vector<256x8xf32>
    %62 = arith.select %60, %58, %61 : vector<256x8xi1>, vector<256x8xf32>
    %63 = arith.addf %62, %57 : vector<256x8xf32>
    %c240_i32_20 = arith.constant 240 : i32
    %64 = tpu.dynamic_rotate %57 by %c240_i32_20 dim 0 : vector<256x8xf32>, i32 -> vector<256x8xf32>
    %cst_21 = arith.constant 0.000000e+00 : f32
    %65 = vector.shape_cast %40 : vector<256x1xi1> to vector<256x1xi1>
    %66 = vector.broadcast %65 : vector<256x1xi1> to vector<256x8xi1>
    %67 = vector.broadcast %cst_21 : f32 to vector<256x8xf32>
    %68 = arith.select %66, %64, %67 : vector<256x8xi1>, vector<256x8xf32>
    %69 = arith.addf %63, %68 : vector<256x8xf32>
    %cst_22 = arith.constant 0.111111112 : f32
    %70 = vector.broadcast %cst_22 : f32 to vector<256x8xf32>
    %71 = arith.mulf %69, %70 : vector<256x8xf32>
    %72 = vector.extract_strided_slice %42 {offsets = [0, 0], sizes = [1, 8], strides = [1, 1]} : vector<1x32xf32> to vector<1x8xf32>
    %73 = vector.broadcast %72 : vector<1x8xf32> to vector<256x8xf32>
    %74 = arith.addf %71, %73 : vector<256x8xf32>
    %c0_23 = arith.constant 0 : index
    %c0_24 = arith.constant 0 : index
    %75 = vector.load %arg12[%c0_23, %c0_24] : memref<256x48xf32, #tpu.memory_space<vmem>>, vector<256x8xf32>
    tpu.vector_store %arg12[%c0_23, %c0_24], %74 {strides = array<i32>} : memref<256x48xf32, #tpu.memory_space<vmem>>, vector<256x8xf32>,
    %76 = vector.extract_strided_slice %44 {offsets = [0, 8], sizes = [256, 8], strides = [1, 1]} : vector<256x32xf32> to vector<256x8xf32>
    %77 = vector.extract_strided_slice %42 {offsets = [0, 8], sizes = [1, 8], strides = [1, 1]} : vector<1x32xf32> to vector<1x8xf32>
    %78 = vector.broadcast %77 : vector<1x8xf32> to vector<256x8xf32>
    %79 = arith.addf %76, %78 : vector<256x8xf32>
    %c0_25 = arith.constant 0 : index
    %c8 = arith.constant 8 : index
    %80 = vector.load %arg12[%c0_25, %c8] : memref<256x48xf32, #tpu.memory_space<vmem>>, vector<256x8xf32>
    tpu.vector_store %arg12[%c0_25, %c8], %79 {strides = array<i32>} : memref<256x48xf32, #tpu.memory_space<vmem>>, vector<256x8xf32>,
    %81 = vector.extract_strided_slice %44 {offsets = [0, 16], sizes = [256, 8], strides = [1, 1]} : vector<256x32xf32> to vector<256x8xf32>
    %82 = vector.extract_strided_slice %42 {offsets = [0, 16], sizes = [1, 8], strides = [1, 1]} : vector<1x32xf32> to vector<1x8xf32>
    %83 = vector.broadcast %82 : vector<1x8xf32> to vector<256x8xf32>
    %84 = arith.addf %81, %83 : vector<256x8xf32>
    %85 = arith.truncf %84 : vector<256x8xf32> to vector<256x8xbf16>
    %c0_26 = arith.constant 0 : index
    %c0_27 = arith.constant 0 : index
    %c0_28 = arith.constant 0 : index
    %86 = vector.load %arg4[%c0_26, %c0_27, %c0_28] : memref<3x8x16xbf16, #tpu.memory_space<vmem>>, vector<1x8x16xbf16>
    %87 = vector.shape_cast %86 : vector<1x8x16xbf16> to vector<8x16xbf16>
    %cst_29 = arith.constant dense<0.000000e+00> : vector<256x16xf32>
    %88 = tpu.matmul %85, %87, %cst_29 {dimension_numbers = #tpu.dot_dimension_numbers<[1], [0], [0], [1], [0, 0, 1, 1], [], []>} : vector<256x8xbf16>, vector<8x16xbf16>, vector<256x16xf32> -> vector<256x16xf32>
    %c1 = arith.constant 1 : index
    %c0_30 = arith.constant 0 : index
    %c0_31 = arith.constant 0 : index
    %89 = vector.load %arg4[%c1, %c0_30, %c0_31] : memref<3x8x16xbf16, #tpu.memory_space<vmem>>, vector<1x8x16xbf16>
    %90 = vector.shape_cast %89 : vector<1x8x16xbf16> to vector<8x16xbf16>
    %cst_32 = arith.constant dense<0.000000e+00> : vector<256x16xf32>
    %91 = tpu.matmul %85, %90, %cst_32 {dimension_numbers = #tpu.dot_dimension_numbers<[1], [0], [0], [1], [0, 0, 1, 1], [], []>} : vector<256x8xbf16>, vector<8x16xbf16>, vector<256x16xf32> -> vector<256x16xf32>
    %c2 = arith.constant 2 : index
    %c0_33 = arith.constant 0 : index
    %c0_34 = arith.constant 0 : index
    %92 = vector.load %arg4[%c2, %c0_33, %c0_34] : memref<3x8x16xbf16, #tpu.memory_space<vmem>>, vector<1x8x16xbf16>
    %93 = vector.shape_cast %92 : vector<1x8x16xbf16> to vector<8x16xbf16>
    %cst_35 = arith.constant dense<0.000000e+00> : vector<256x16xf32>
    %94 = tpu.matmul %85, %93, %cst_35 {dimension_numbers = #tpu.dot_dimension_numbers<[1], [0], [0], [1], [0, 0, 1, 1], [], []>} : vector<256x8xbf16>, vector<8x16xbf16>, vector<256x16xf32> -> vector<256x16xf32>
    %c0_36 = arith.constant 0 : index
    %c0_37 = arith.constant 0 : index
    %95 = vector.load %arg5[%c0_36, %c0_37] : memref<1x16xf32, #tpu.memory_space<vmem>>, vector<1x16xf32>
    %96 = vector.extract_strided_slice %88 {offsets = [0, 0], sizes = [256, 8], strides = [1, 1]} : vector<256x16xf32> to vector<256x8xf32>
    %c1_i32_38 = arith.constant 1 : i32
    %97 = tpu.dynamic_rotate %96 by %c1_i32_38 dim 0 : vector<256x8xf32>, i32 -> vector<256x8xf32>
    %cst_39 = arith.constant 0.000000e+00 : f32
    %98 = vector.shape_cast %34 : vector<256x1xi1> to vector<256x1xi1>
    %99 = vector.broadcast %98 : vector<256x1xi1> to vector<256x8xi1>
    %100 = vector.broadcast %cst_39 : f32 to vector<256x8xf32>
    %101 = arith.select %99, %97, %100 : vector<256x8xi1>, vector<256x8xf32>
    %102 = vector.extract_strided_slice %91 {offsets = [0, 0], sizes = [256, 8], strides = [1, 1]} : vector<256x16xf32> to vector<256x8xf32>
    %103 = arith.addf %101, %102 : vector<256x8xf32>
    %104 = vector.extract_strided_slice %94 {offsets = [0, 0], sizes = [256, 8], strides = [1, 1]} : vector<256x16xf32> to vector<256x8xf32>
    %c255_i32_40 = arith.constant 255 : i32
    %105 = tpu.dynamic_rotate %104 by %c255_i32_40 dim 0 : vector<256x8xf32>, i32 -> vector<256x8xf32>
    %cst_41 = arith.constant 0.000000e+00 : f32
    %106 = vector.shape_cast %36 : vector<256x1xi1> to vector<256x1xi1>
    %107 = vector.broadcast %106 : vector<256x1xi1> to vector<256x8xi1>
    %108 = vector.broadcast %cst_41 : f32 to vector<256x8xf32>
    %109 = arith.select %107, %105, %108 : vector<256x8xi1>, vector<256x8xf32>
    %110 = arith.addf %103, %109 : vector<256x8xf32>
    %111 = vector.extract_strided_slice %95 {offsets = [0, 0], sizes = [1, 8], strides = [1, 1]} : vector<1x16xf32> to vector<1x8xf32>
    %112 = vector.broadcast %111 : vector<1x8xf32> to vector<256x8xf32>
    %113 = arith.addf %110, %112 : vector<256x8xf32>
    %c0_42 = arith.constant 0 : index
    %c16 = arith.constant 16 : index
    %114 = vector.load %arg12[%c0_42, %c16] : memref<256x48xf32, #tpu.memory_space<vmem>>, vector<256x8xf32>
    tpu.vector_store %arg12[%c0_42, %c16], %113 {strides = array<i32>} : memref<256x48xf32, #tpu.memory_space<vmem>>, vector<256x8xf32>,
    %115 = vector.extract_strided_slice %88 {offsets = [0, 8], sizes = [256, 8], strides = [1, 1]} : vector<256x16xf32> to vector<256x8xf32>
    %c16_i32_43 = arith.constant 16 : i32
    %116 = tpu.dynamic_rotate %115 by %c16_i32_43 dim 0 : vector<256x8xf32>, i32 -> vector<256x8xf32>
    %cst_44 = arith.constant 0.000000e+00 : f32
    %117 = vector.shape_cast %38 : vector<256x1xi1> to vector<256x1xi1>
    %118 = vector.broadcast %117 : vector<256x1xi1> to vector<256x8xi1>
    %119 = vector.broadcast %cst_44 : f32 to vector<256x8xf32>
    %120 = arith.select %118, %116, %119 : vector<256x8xi1>, vector<256x8xf32>
    %121 = vector.extract_strided_slice %91 {offsets = [0, 8], sizes = [256, 8], strides = [1, 1]} : vector<256x16xf32> to vector<256x8xf32>
    %122 = arith.addf %120, %121 : vector<256x8xf32>
    %123 = vector.extract_strided_slice %94 {offsets = [0, 8], sizes = [256, 8], strides = [1, 1]} : vector<256x16xf32> to vector<256x8xf32>
    %c240_i32_45 = arith.constant 240 : i32
    %124 = tpu.dynamic_rotate %123 by %c240_i32_45 dim 0 : vector<256x8xf32>, i32 -> vector<256x8xf32>
    %cst_46 = arith.constant 0.000000e+00 : f32
    %125 = vector.shape_cast %40 : vector<256x1xi1> to vector<256x1xi1>
    %126 = vector.broadcast %125 : vector<256x1xi1> to vector<256x8xi1>
    %127 = vector.broadcast %cst_46 : f32 to vector<256x8xf32>
    %128 = arith.select %126, %124, %127 : vector<256x8xi1>, vector<256x8xf32>
    %129 = arith.addf %122, %128 : vector<256x8xf32>
    %130 = vector.extract_strided_slice %95 {offsets = [0, 8], sizes = [1, 8], strides = [1, 1]} : vector<1x16xf32> to vector<1x8xf32>
    %131 = vector.broadcast %130 : vector<1x8xf32> to vector<256x8xf32>
    %132 = arith.addf %129, %131 : vector<256x8xf32>
    %c0_47 = arith.constant 0 : index
    %c24 = arith.constant 24 : index
    %133 = vector.load %arg12[%c0_47, %c24] : memref<256x48xf32, #tpu.memory_space<vmem>>, vector<256x8xf32>
    tpu.vector_store %arg12[%c0_47, %c24], %132 {strides = array<i32>} : memref<256x48xf32, #tpu.memory_space<vmem>>, vector<256x8xf32>,
    %134 = vector.extract_strided_slice %44 {offsets = [0, 24], sizes = [256, 8], strides = [1, 1]} : vector<256x32xf32> to vector<256x8xf32>
    %135 = vector.extract_strided_slice %42 {offsets = [0, 24], sizes = [1, 8], strides = [1, 1]} : vector<1x32xf32> to vector<1x8xf32>
    %136 = vector.broadcast %135 : vector<1x8xf32> to vector<256x8xf32>
    %137 = arith.addf %134, %136 : vector<256x8xf32>
    %138 = arith.truncf %137 : vector<256x8xf32> to vector<256x8xbf16>
    %c0_48 = arith.constant 0 : index
    %c0_49 = arith.constant 0 : index
    %c0_50 = arith.constant 0 : index
    %139 = vector.load %arg6[%c0_48, %c0_49, %c0_50] : memref<3x8x8xbf16, #tpu.memory_space<vmem>>, vector<1x8x8xbf16>
    %140 = vector.shape_cast %139 : vector<1x8x8xbf16> to vector<8x8xbf16>
    %cst_51 = arith.constant dense<0.000000e+00> : vector<256x8xf32>
    %141 = tpu.matmul %138, %140, %cst_51 {dimension_numbers = #tpu.dot_dimension_numbers<[1], [0], [0], [1], [0, 0, 1, 1], [], []>} : vector<256x8xbf16>, vector<8x8xbf16>, vector<256x8xf32> -> vector<256x8xf32>
    %c1_52 = arith.constant 1 : index
    %c0_53 = arith.constant 0 : index
    %c0_54 = arith.constant 0 : index
    %142 = vector.load %arg6[%c1_52, %c0_53, %c0_54] : memref<3x8x8xbf16, #tpu.memory_space<vmem>>, vector<1x8x8xbf16>
    %143 = vector.shape_cast %142 : vector<1x8x8xbf16> to vector<8x8xbf16>
    %cst_55 = arith.constant dense<0.000000e+00> : vector<256x8xf32>
    %144 = tpu.matmul %138, %143, %cst_55 {dimension_numbers = #tpu.dot_dimension_numbers<[1], [0], [0], [1], [0, 0, 1, 1], [], []>} : vector<256x8xbf16>, vector<8x8xbf16>, vector<256x8xf32> -> vector<256x8xf32>
    %c2_56 = arith.constant 2 : index
    %c0_57 = arith.constant 0 : index
    %c0_58 = arith.constant 0 : index
    %145 = vector.load %arg6[%c2_56, %c0_57, %c0_58] : memref<3x8x8xbf16, #tpu.memory_space<vmem>>, vector<1x8x8xbf16>
    %146 = vector.shape_cast %145 : vector<1x8x8xbf16> to vector<8x8xbf16>
    %cst_59 = arith.constant dense<0.000000e+00> : vector<256x8xf32>
    %147 = tpu.matmul %138, %146, %cst_59 {dimension_numbers = #tpu.dot_dimension_numbers<[1], [0], [0], [1], [0, 0, 1, 1], [], []>} : vector<256x8xbf16>, vector<8x8xbf16>, vector<256x8xf32> -> vector<256x8xf32>
    %c1_i32_60 = arith.constant 1 : i32
    %148 = tpu.dynamic_rotate %141 by %c1_i32_60 dim 0 : vector<256x8xf32>, i32 -> vector<256x8xf32>
    %cst_61 = arith.constant 0.000000e+00 : f32
    %149 = vector.shape_cast %34 : vector<256x1xi1> to vector<256x1xi1>
    %150 = vector.broadcast %149 : vector<256x1xi1> to vector<256x8xi1>
    %151 = vector.broadcast %cst_61 : f32 to vector<256x8xf32>
    %152 = arith.select %150, %148, %151 : vector<256x8xi1>, vector<256x8xf32>
    %153 = arith.addf %152, %144 : vector<256x8xf32>
    %c255_i32_62 = arith.constant 255 : i32
    %154 = tpu.dynamic_rotate %147 by %c255_i32_62 dim 0 : vector<256x8xf32>, i32 -> vector<256x8xf32>
    %cst_63 = arith.constant 0.000000e+00 : f32
    %155 = vector.shape_cast %36 : vector<256x1xi1> to vector<256x1xi1>
    %156 = vector.broadcast %155 : vector<256x1xi1> to vector<256x8xi1>
    %157 = vector.broadcast %cst_63 : f32 to vector<256x8xf32>
    %158 = arith.select %156, %154, %157 : vector<256x8xi1>, vector<256x8xf32>
    %159 = arith.addf %153, %158 : vector<256x8xf32>
    %c0_64 = arith.constant 0 : index
    %c0_65 = arith.constant 0 : index
    %160 = vector.load %arg7[%c0_64, %c0_65] : memref<1x8xf32, #tpu.memory_space<vmem>>, vector<1x8xf32>
    %161 = vector.broadcast %160 : vector<1x8xf32> to vector<256x8xf32>
    %162 = arith.addf %159, %161 : vector<256x8xf32>
    %163 = arith.truncf %162 : vector<256x8xf32> to vector<256x8xbf16>
    %c0_66 = arith.constant 0 : index
    %c0_67 = arith.constant 0 : index
    %c0_68 = arith.constant 0 : index
    %164 = vector.load %arg8[%c0_66, %c0_67, %c0_68] : memref<3x8x8xbf16, #tpu.memory_space<vmem>>, vector<1x8x8xbf16>
    %165 = vector.shape_cast %164 : vector<1x8x8xbf16> to vector<8x8xbf16>
    %cst_69 = arith.constant dense<0.000000e+00> : vector<256x8xf32>
    %166 = tpu.matmul %163, %165, %cst_69 {dimension_numbers = #tpu.dot_dimension_numbers<[1], [0], [0], [1], [0, 0, 1, 1], [], []>} : vector<256x8xbf16>, vector<8x8xbf16>, vector<256x8xf32> -> vector<256x8xf32>
    %c1_70 = arith.constant 1 : index
    %c0_71 = arith.constant 0 : index
    %c0_72 = arith.constant 0 : index
    %167 = vector.load %arg8[%c1_70, %c0_71, %c0_72] : memref<3x8x8xbf16, #tpu.memory_space<vmem>>, vector<1x8x8xbf16>
    %168 = vector.shape_cast %167 : vector<1x8x8xbf16> to vector<8x8xbf16>
    %cst_73 = arith.constant dense<0.000000e+00> : vector<256x8xf32>
    %169 = tpu.matmul %163, %168, %cst_73 {dimension_numbers = #tpu.dot_dimension_numbers<[1], [0], [0], [1], [0, 0, 1, 1], [], []>} : vector<256x8xbf16>, vector<8x8xbf16>, vector<256x8xf32> -> vector<256x8xf32>
    %c2_74 = arith.constant 2 : index
    %c0_75 = arith.constant 0 : index
    %c0_76 = arith.constant 0 : index
    %170 = vector.load %arg8[%c2_74, %c0_75, %c0_76] : memref<3x8x8xbf16, #tpu.memory_space<vmem>>, vector<1x8x8xbf16>
    %171 = vector.shape_cast %170 : vector<1x8x8xbf16> to vector<8x8xbf16>
    %cst_77 = arith.constant dense<0.000000e+00> : vector<256x8xf32>
    %172 = tpu.matmul %163, %171, %cst_77 {dimension_numbers = #tpu.dot_dimension_numbers<[1], [0], [0], [1], [0, 0, 1, 1], [], []>} : vector<256x8xbf16>, vector<8x8xbf16>, vector<256x8xf32> -> vector<256x8xf32>
    %c16_i32_78 = arith.constant 16 : i32
    %173 = tpu.dynamic_rotate %166 by %c16_i32_78 dim 0 : vector<256x8xf32>, i32 -> vector<256x8xf32>
    %cst_79 = arith.constant 0.000000e+00 : f32
    %174 = vector.shape_cast %38 : vector<256x1xi1> to vector<256x1xi1>
    %175 = vector.broadcast %174 : vector<256x1xi1> to vector<256x8xi1>
    %176 = vector.broadcast %cst_79 : f32 to vector<256x8xf32>
    %177 = arith.select %175, %173, %176 : vector<256x8xi1>, vector<256x8xf32>
    %178 = arith.addf %177, %169 : vector<256x8xf32>
    %c240_i32_80 = arith.constant 240 : i32
    %179 = tpu.dynamic_rotate %172 by %c240_i32_80 dim 0 : vector<256x8xf32>, i32 -> vector<256x8xf32>
    %cst_81 = arith.constant 0.000000e+00 : f32
    %180 = vector.shape_cast %40 : vector<256x1xi1> to vector<256x1xi1>
    %181 = vector.broadcast %180 : vector<256x1xi1> to vector<256x8xi1>
    %182 = vector.broadcast %cst_81 : f32 to vector<256x8xf32>
    %183 = arith.select %181, %179, %182 : vector<256x8xi1>, vector<256x8xf32>
    %184 = arith.addf %178, %183 : vector<256x8xf32>
    %c0_82 = arith.constant 0 : index
    %c0_83 = arith.constant 0 : index
    %185 = vector.load %arg9[%c0_82, %c0_83] : memref<1x8xf32, #tpu.memory_space<vmem>>, vector<1x8xf32>
    %186 = vector.broadcast %185 : vector<1x8xf32> to vector<256x8xf32>
    %187 = arith.addf %184, %186 : vector<256x8xf32>
    %188 = arith.truncf %187 : vector<256x8xf32> to vector<256x8xbf16>
    %c0_84 = arith.constant 0 : index
    %c0_85 = arith.constant 0 : index
    %c0_86 = arith.constant 0 : index
    %189 = vector.load %arg10[%c0_84, %c0_85, %c0_86] : memref<3x8x16xbf16, #tpu.memory_space<vmem>>, vector<1x8x16xbf16>
    %190 = vector.shape_cast %189 : vector<1x8x16xbf16> to vector<8x16xbf16>
    %cst_87 = arith.constant dense<0.000000e+00> : vector<256x16xf32>
    %191 = tpu.matmul %188, %190, %cst_87 {dimension_numbers = #tpu.dot_dimension_numbers<[1], [0], [0], [1], [0, 0, 1, 1], [], []>} : vector<256x8xbf16>, vector<8x16xbf16>, vector<256x16xf32> -> vector<256x16xf32>
    %c1_88 = arith.constant 1 : index
    %c0_89 = arith.constant 0 : index
    %c0_90 = arith.constant 0 : index
    %192 = vector.load %arg10[%c1_88, %c0_89, %c0_90] : memref<3x8x16xbf16, #tpu.memory_space<vmem>>, vector<1x8x16xbf16>
    %193 = vector.shape_cast %192 : vector<1x8x16xbf16> to vector<8x16xbf16>
    %cst_91 = arith.constant dense<0.000000e+00> : vector<256x16xf32>
    %194 = tpu.matmul %188, %193, %cst_91 {dimension_numbers = #tpu.dot_dimension_numbers<[1], [0], [0], [1], [0, 0, 1, 1], [], []>} : vector<256x8xbf16>, vector<8x16xbf16>, vector<256x16xf32> -> vector<256x16xf32>
    %c2_92 = arith.constant 2 : index
    %c0_93 = arith.constant 0 : index
    %c0_94 = arith.constant 0 : index
    %195 = vector.load %arg10[%c2_92, %c0_93, %c0_94] : memref<3x8x16xbf16, #tpu.memory_space<vmem>>, vector<1x8x16xbf16>
    %196 = vector.shape_cast %195 : vector<1x8x16xbf16> to vector<8x16xbf16>
    %cst_95 = arith.constant dense<0.000000e+00> : vector<256x16xf32>
    %197 = tpu.matmul %188, %196, %cst_95 {dimension_numbers = #tpu.dot_dimension_numbers<[1], [0], [0], [1], [0, 0, 1, 1], [], []>} : vector<256x8xbf16>, vector<8x16xbf16>, vector<256x16xf32> -> vector<256x16xf32>
    %c0_96 = arith.constant 0 : index
    %c0_97 = arith.constant 0 : index
    %198 = vector.load %arg11[%c0_96, %c0_97] : memref<1x16xf32, #tpu.memory_space<vmem>>, vector<1x16xf32>
    %199 = vector.extract_strided_slice %191 {offsets = [0, 0], sizes = [256, 8], strides = [1, 1]} : vector<256x16xf32> to vector<256x8xf32>
    %c1_i32_98 = arith.constant 1 : i32
    %200 = tpu.dynamic_rotate %199 by %c1_i32_98 dim 0 : vector<256x8xf32>, i32 -> vector<256x8xf32>
    %cst_99 = arith.constant 0.000000e+00 : f32
    %201 = vector.shape_cast %34 : vector<256x1xi1> to vector<256x1xi1>
    %202 = vector.broadcast %201 : vector<256x1xi1> to vector<256x8xi1>
    %203 = vector.broadcast %cst_99 : f32 to vector<256x8xf32>
    %204 = arith.select %202, %200, %203 : vector<256x8xi1>, vector<256x8xf32>
    %205 = vector.extract_strided_slice %194 {offsets = [0, 0], sizes = [256, 8], strides = [1, 1]} : vector<256x16xf32> to vector<256x8xf32>
    %206 = arith.addf %204, %205 : vector<256x8xf32>
    %207 = vector.extract_strided_slice %197 {offsets = [0, 0], sizes = [256, 8], strides = [1, 1]} : vector<256x16xf32> to vector<256x8xf32>
    %c255_i32_100 = arith.constant 255 : i32
    %208 = tpu.dynamic_rotate %207 by %c255_i32_100 dim 0 : vector<256x8xf32>, i32 -> vector<256x8xf32>
    %cst_101 = arith.constant 0.000000e+00 : f32
    %209 = vector.shape_cast %36 : vector<256x1xi1> to vector<256x1xi1>
    %210 = vector.broadcast %209 : vector<256x1xi1> to vector<256x8xi1>
    %211 = vector.broadcast %cst_101 : f32 to vector<256x8xf32>
    %212 = arith.select %210, %208, %211 : vector<256x8xi1>, vector<256x8xf32>
    %213 = arith.addf %206, %212 : vector<256x8xf32>
    %214 = vector.extract_strided_slice %198 {offsets = [0, 0], sizes = [1, 8], strides = [1, 1]} : vector<1x16xf32> to vector<1x8xf32>
    %215 = vector.broadcast %214 : vector<1x8xf32> to vector<256x8xf32>
    %216 = arith.addf %213, %215 : vector<256x8xf32>
    %c0_102 = arith.constant 0 : index
    %c32 = arith.constant 32 : index
    %217 = vector.load %arg12[%c0_102, %c32] : memref<256x48xf32, #tpu.memory_space<vmem>>, vector<256x8xf32>
    tpu.vector_store %arg12[%c0_102, %c32], %216 {strides = array<i32>} : memref<256x48xf32, #tpu.memory_space<vmem>>, vector<256x8xf32>,
    %218 = vector.extract_strided_slice %191 {offsets = [0, 8], sizes = [256, 8], strides = [1, 1]} : vector<256x16xf32> to vector<256x8xf32>
    %c16_i32_103 = arith.constant 16 : i32
    %219 = tpu.dynamic_rotate %218 by %c16_i32_103 dim 0 : vector<256x8xf32>, i32 -> vector<256x8xf32>
    %cst_104 = arith.constant 0.000000e+00 : f32
    %220 = vector.shape_cast %38 : vector<256x1xi1> to vector<256x1xi1>
    %221 = vector.broadcast %220 : vector<256x1xi1> to vector<256x8xi1>
    %222 = vector.broadcast %cst_104 : f32 to vector<256x8xf32>
    %223 = arith.select %221, %219, %222 : vector<256x8xi1>, vector<256x8xf32>
    %224 = vector.extract_strided_slice %194 {offsets = [0, 8], sizes = [256, 8], strides = [1, 1]} : vector<256x16xf32> to vector<256x8xf32>
    %225 = arith.addf %223, %224 : vector<256x8xf32>
    %226 = vector.extract_strided_slice %197 {offsets = [0, 8], sizes = [256, 8], strides = [1, 1]} : vector<256x16xf32> to vector<256x8xf32>
    %c240_i32_105 = arith.constant 240 : i32
    %227 = tpu.dynamic_rotate %226 by %c240_i32_105 dim 0 : vector<256x8xf32>, i32 -> vector<256x8xf32>
    %cst_106 = arith.constant 0.000000e+00 : f32
    %228 = vector.shape_cast %40 : vector<256x1xi1> to vector<256x1xi1>
    %229 = vector.broadcast %228 : vector<256x1xi1> to vector<256x8xi1>
    %230 = vector.broadcast %cst_106 : f32 to vector<256x8xf32>
    %231 = arith.select %229, %227, %230 : vector<256x8xi1>, vector<256x8xf32>
    %232 = arith.addf %225, %231 : vector<256x8xf32>
    %233 = vector.extract_strided_slice %198 {offsets = [0, 8], sizes = [1, 8], strides = [1, 1]} : vector<1x16xf32> to vector<1x8xf32>
    %234 = vector.broadcast %233 : vector<1x8xf32> to vector<256x8xf32>
    %235 = arith.addf %232, %234 : vector<256x8xf32>
    %c0_107 = arith.constant 0 : index
    %c40 = arith.constant 40 : index
    %236 = vector.load %arg12[%c0_107, %c40] : memref<256x48xf32, #tpu.memory_space<vmem>>, vector<256x8xf32>
    tpu.vector_store %arg12[%c0_107, %c40], %235 {strides = array<i32>} : memref<256x48xf32, #tpu.memory_space<vmem>>, vector<256x8xf32>,
    return
  }
  func.func @transform_0(%arg0: i32) -> (i32, i32) {
    %c0_i32 = arith.constant 0 : i32
    %c0_i32_0 = arith.constant 0 : i32
    return %arg0, %c0_i32 : i32, i32
  }
  func.func @transform_1(%arg0: i32) -> (i32, i32) {
    %c0_i32 = arith.constant 0 : i32
    %c0_i32_0 = arith.constant 0 : i32
    %c0_i32_1 = arith.constant 0 : i32
    return %c0_i32, %c0_i32_0 : i32, i32
  }
  func.func @transform_2(%arg0: i32) -> (i32, i32) {
    %c0_i32 = arith.constant 0 : i32
    %c0_i32_0 = arith.constant 0 : i32
    %c0_i32_1 = arith.constant 0 : i32
    return %c0_i32, %c0_i32_0 : i32, i32
  }
  func.func @transform_3(%arg0: i32) -> (i32, i32, i32) {
    %c0_i32 = arith.constant 0 : i32
    %c0_i32_0 = arith.constant 0 : i32
    %c0_i32_1 = arith.constant 0 : i32
    %c0_i32_2 = arith.constant 0 : i32
    return %c0_i32, %c0_i32_0, %c0_i32_1 : i32, i32, i32
  }
  func.func @transform_4(%arg0: i32) -> (i32, i32) {
    %c0_i32 = arith.constant 0 : i32
    %c0_i32_0 = arith.constant 0 : i32
    %c0_i32_1 = arith.constant 0 : i32
    return %c0_i32, %c0_i32_0 : i32, i32
  }
  func.func @transform_5(%arg0: i32) -> (i32, i32, i32) {
    %c0_i32 = arith.constant 0 : i32
    %c0_i32_0 = arith.constant 0 : i32
    %c0_i32_1 = arith.constant 0 : i32
    %c0_i32_2 = arith.constant 0 : i32
    return %c0_i32, %c0_i32_0, %c0_i32_1 : i32, i32, i32
  }
  func.func @transform_6(%arg0: i32) -> (i32, i32) {
    %c0_i32 = arith.constant 0 : i32
    %c0_i32_0 = arith.constant 0 : i32
    %c0_i32_1 = arith.constant 0 : i32
    return %c0_i32, %c0_i32_0 : i32, i32
  }
  func.func @transform_7(%arg0: i32) -> (i32, i32, i32) {
    %c0_i32 = arith.constant 0 : i32
    %c0_i32_0 = arith.constant 0 : i32
    %c0_i32_1 = arith.constant 0 : i32
    %c0_i32_2 = arith.constant 0 : i32
    return %c0_i32, %c0_i32_0, %c0_i32_1 : i32, i32, i32
  }
  func.func @transform_8(%arg0: i32) -> (i32, i32) {
    %c0_i32 = arith.constant 0 : i32
    %c0_i32_0 = arith.constant 0 : i32
    %c0_i32_1 = arith.constant 0 : i32
    return %c0_i32, %c0_i32_0 : i32, i32
  }
  func.func @transform_9(%arg0: i32) -> (i32, i32, i32) {
    %c0_i32 = arith.constant 0 : i32
    %c0_i32_0 = arith.constant 0 : i32
    %c0_i32_1 = arith.constant 0 : i32
    %c0_i32_2 = arith.constant 0 : i32
    return %c0_i32, %c0_i32_0, %c0_i32_1 : i32, i32, i32
  }
  func.func @transform_10(%arg0: i32) -> (i32, i32) {
    %c0_i32 = arith.constant 0 : i32
    %c0_i32_0 = arith.constant 0 : i32
    %c0_i32_1 = arith.constant 0 : i32
    return %c0_i32, %c0_i32_0 : i32, i32
  }
  func.func @transform_11(%arg0: i32) -> (i32, i32) {
    %c0_i32 = arith.constant 0 : i32
    %c0_i32_0 = arith.constant 0 : i32
    return %arg0, %c0_i32 : i32, i32
  }
}

</mosaic_0001>

<bundles_post_ra>
// kernel: tpu_custom_call.1
= control target key start
LH: loop header
LB: loop body
LE: loop exit
PB: predicated region body
PF: predicated region fallthrough
CT: control target
= control target key end

     0   :  { %s8649_s17 = smov 0   ;;  %s13732_s0 = inlined_call_operand.vmem [shape: bf16[512,8], index: 0, kind: input, shape index: {}]   ;;  %s13733_s1 = inlined_call_operand.vmem [shape: bf16[8,32], index: 1, kind: input, shape index: {}]   ;;  %s13734_s2 = inlined_call_operand.vmem [shape: f32[1,32], index: 2, kind: input, shape index: {}]   ;;  %s13735_s3 = inlined_call_operand.vmem [shape: bf16[3,8,16], index: 3, kind: input, shape index: {}]   ;;  %s13736_s4 = inlined_call_operand.vmem [shape: f32[1,16], index: 4, kind: input, shape index: {}]   ;;  %s13737_s5 = inlined_call_operand.vmem [shape: bf16[3,8,8], index: 5, kind: input, shape index: {}]   ;;  %s13738_s6 = inlined_call_operand.vmem [shape: f32[1,8], index: 6, kind: input, shape index: {}]   ;;  %s13739_s7 = inlined_call_operand.vmem [shape: bf16[3,8,8], index: 7, kind: input, shape index: {}]   ;;  %s13740_s8 = inlined_call_operand.vmem [shape: f32[1,8], index: 8, kind: input, shape index: {}]   ;;  %s13741_s9 = inlined_call_operand.vmem [shape: bf16[3,8,16], index: 9, kind: input, shape index: {}]   ;;  %s13742_s10 = inlined_call_operand.vmem [shape: f32[1,16], index: 10, kind: input, shape index: {}]   ;;  %s13743_s11 = inlined_call_operand.vmem [shape: f32[512,48], index: 11, kind: output, shape index: {}]  }
   0x1 LB: > { %s7611_s18 = sadd.s32 4294967295, %s8580_s17   ;;  %p7615_p0 = scmp.ge.s32.totalorder %s8580_s17, 1  ;;  %s8580_s17 = sphi %s8649_s17, %s21_s17  }
   0x2   : > { %p338_p1 = scmp.lt.s32.totalorder %s8580_s17, 3 }
   0x4   : > { %p339_p2 = pnand %p7615_p0, %p338_p1 }
   0x6   : > { %342 = sbr.rel (%p339_p2) target bundleno = 1699 (0x6a3), region = 64 }
   0xb   : > { %v1353_v0 = vld [vmem:[%s13733_s1] sm:$0xf]  ;;  %vm13809_vm0 = vcmask 1043456   ;;  %s7616_s21 = sshll.u32 %s7611_s18, 5  ;;  %vm13810_vm1 = vcmask 64512   ;;  %v391_v22 = vlaneseq  ;;  %s8582_s18 = smov 112  }
   0xc   : > { %8524 = vmatprep.subr.msk.bf16.mxu0 %vm13809_vm0, %v1353_v0  ;;  %8525 = vmatprep.subr.msk.bf16.mxu1 %vm13809_vm0, %v1353_v0  ;;  %v1485_v1 = vsel %vm13809_vm0, %v1353_v0, 0  ;;  %p379_p3 = scmp.lt.s32.totalorder %s7616_s21, 63  ;;  %v7669_v18 = vld [vmem:[%s13735_s3 + $0x4] sm:$0xf]  ;;  %v2473_v19 = vld [vmem:[%s13735_s3] sm:$0xf] }
   0xd   : > { %8081 = vmatpush3.bf16.msra.mxu0 %v1485_v1  ;;  %8523 = vmatpush3.bf16.msra.mxu1 %v1485_v1  ;;  %v2737_v20 = vsel %vm13809_vm0, %v7669_v18, 0  ;;  %v2571_v21 = vsel %vm13809_vm0, %v2473_v19, 0  ;;  %v8713_v23 = vshrl.u32 %v391_v22, 7  ;;  %s8583_s19 = smov 104   ;;  %s8584_s15 = smov 120  }
   0xe   : > { %s15374_s21 = smov (!%p379_p3, %s7616_s21), 63  ;;  %8527 = vmatprep.subr.msk.bf16.mxu0 %vm13809_vm0, %v7669_v18  ;;  %8526 = vmatprep.subr.msk.bf16.mxu1 %vm13809_vm0, %v2473_v19  ;;  %s8585_s28 = smov 16  }
   0xf   : > { %s7617_s22 = sshll.u32 %s15374_s21, 2  ;;  %14068 = vst [vmem:[#allocation2_spill] sm:$0xff] %v8713_v23  ;;  %v393_v24 = vadd.s32 8, %v8713_v23  ;;  %v8717_v25 = vadd.s32 40, %v8713_v23  ;;  %v8720_v26 = vadd.s32 32, %v8713_v23  ;;  %v8723_v27 = vadd.s32 72, %v8713_v23 }
  0x10   : > { %s8669_s25 = scalar_lea.vmem %s13732_s0, %s7617_s22  ;;  %v8726_v28 = vadd.s32 120, %v8713_v23  ;;  %v8729_v29 = vadd.s32 248, %v8713_v23  ;;  %v8732_v30 = vadd.s32 104, %v8713_v23  ;;  %v8735_v31 = vadd.s32 64, %v8713_v23  ;;  %s7619_s20 = sshll.u32 %s15374_s21, 3 }
  0x11   : > { %v8553_v2 = vld [vmem:[%s8669_s25] sm:$0xff]   ;;  %v8555_v4 = vld [vmem:[%s8669_s25 + $0x8] sm:$0xff]   ;;  %v8557_v6 = vld [vmem:[%s8669_s25 + $0x10] sm:$0xff]   ;;  %v8738_v32 = vadd.s32 24, %v8713_v23  ;;  %v8741_v33 = vadd.s32 16, %v8713_v23  ;;  %v8744_v34 = vadd.s32 96, %v8713_v23  ;;  %s9909_s23 = scalar_lea.vmem %s13743_s11, %s7619_s20 }
  0x12   : > { %v8554_v3 = vld [vmem:[%s8669_s25 + $0x40] sm:$0xff]   ;;  %8082 = vmatprep.mubr.msk.bf16.mxu0 %vm13810_vm1, %v8553_v2  ;;  %v8556_v5 = vld [vmem:[%s8669_s25 + $0x48] sm:$0xff]   ;;  %v8558_v7 = vld [vmem:[%s8669_s25 + $0x50] sm:$0xff]   ;;  %v8747_v35 = vadd.s32 56, %v8713_v23  ;;  %v8750_v36 = vadd.s32 136, %v8713_v23  ;;  %v435_v37 = vand.u32 15, %v393_v24 }
  0x13   : > { %8098 = vmatprep.mubr.msk.bf16.mxu1 %vm13810_vm1, %v8554_v3  ;;  %8083 = vmatmul.mubr.msk.bf16.vlgmr.msra.gmra.mxu0 %vm13810_vm1, %v8555_v4  ;;  %v8559_v8 = vld [vmem:[%s8669_s25 + $0x18] sm:$0xff]   ;;  %v8561_v10 = vld [vmem:[%s8669_s25 + $0x20] sm:$0xff]   ;;  %v8563_v12 = vld [vmem:[%s8669_s25 + $0x28] sm:$0xff]   ;;  %14069 = vst [vmem:[#allocation3_spill] sm:$0xff] %v8741_v33  ;;  %v8755_v40 = vadd.s32 152, %v8713_v23  ;;  %v8761_v44 = vadd.s32 128, %v8713_v23 }
  0x14   : > { %8099 = vmatmul.mubr.msk.bf16.vlgmr.msra.gmra.mxu1 %vm13810_vm1, %v8556_v5  ;;  %8086 = vmatprep.mubr.msk.bf16.mxu0 %vm13810_vm1, %v8557_v6  ;;  %v8560_v9 = vld [vmem:[%s8669_s25 + $0x58] sm:$0xff]   ;;  %v8562_v11 = vld [vmem:[%s8669_s25 + $0x60] sm:$0xff]   ;;  %v8564_v13 = vld [vmem:[%s8669_s25 + $0x68] sm:$0xff]   ;;  %v8769_v50 = vadd.s32 160, %v8713_v23  ;;  %v8774_v53 = vadd.s32 192, %v8713_v23  ;;  %v8778_v55 = vadd.s32 168, %v8713_v23 }
  0x15   : > { %8102 = vmatprep.mubr.msk.bf16.mxu1 %vm13810_vm1, %v8558_v7  ;;  %v8565_v14 = vld [vmem:[%s8669_s25 + $0x30] sm:$0xff]   ;;  %v8567_v16 = vld [vmem:[%s8669_s25 + $0x38] sm:$0xff]   ;;  %8149 = vmatpush3.bf16.msra.mxu0 %v2737_v20  ;;  %v8781_v56 = vadd.s32 48, %v8713_v23  ;;  %v8785_v58 = vadd.s32 88, %v8713_v23  ;;  %v8788_v59 = vadd.s32 184, %v8713_v23  ;;  %v8791_v60 = vadd.s32 216, %v8713_v23 }
  0x16   : > { %v8566_v15 = vld [vmem:[%s8669_s25 + $0x70] sm:$0xff]   ;;  %v8568_v17 = vld [vmem:[%s8669_s25 + $0x78] sm:$0xff]   ;;  %8115 = vmatpush3.bf16.msra.mxu1 %v2571_v21  ;;  %vm13822_vm2 = vcmp.lt.s32.totalorder %v8713_v23, 1  ;;  %v8795_v61 = vadd.s32 224, %v8713_v23  ;;  %v8798_v62 = vadd.s32 200, %v8713_v23  ;;  %v8801_v63 = vadd.s32 232, %v8713_v23 }
  0x17   : > { %14070 = vst [vmem:[#allocation4_spill] sm:$0xff] %v8781_v56  ;;  %14071 = vst [vmem:[#allocation5_spill] sm:$0xff] %v8791_v60  ;;  %v8804_v0 = vadd.s32 80, %v8713_v23  ;;  %vm13823_vm3 = vcmp.lt.s32.totalorder %v8713_v23, 7  ;;  %v8809_v2 = vadd.s32 112, %v8713_v23  ;;  %v8812_v3 = vadd.s32 144, %v8713_v23 }
  0x18   : > { %14072 = vst [vmem:[#allocation6_spill] sm:$0xff] %v8798_v62  ;;  %14073 = vst [vmem:[#allocation7_spill] sm:$0xff] %v8801_v63  ;;  %v8815_v4 = vadd.s32 176, %v8713_v23  ;;  %vm8817_vm4 = vcmp.lt.s32.totalorder %v435_v37, 15  ;;  %v14078_v5 = vmov 0  ;;  %s8586_s20 = smov 24  }
  0x19   : > { %14074 = vst [vmem:[#allocation8_spill] sm:$0xff] %v8804_v0  ;;  %14075 = vst [vmem:[#allocation9_spill] sm:$0xff] %v8809_v2  ;;  %v14079_v5 = vsel %vm8817_vm4, 4294967295, %v14078_v5 }
  0x1a   : > { %14076 = vst [vmem:[#allocation10_spill] sm:$0xff] %v8812_v3  ;;  %14077 = vst [vmem:[#allocation11_spill] sm:$0xff] %v8815_v4 }
  0x1b   : > { %8087 = vmatmul.mubr.msk.bf16.gmra.mxu0 %vm13810_vm1, %v8559_v8  ;;  %14080 = vst [vmem:[#allocation12_spill] sm:$0xff] %v14079_v5  ;;  %v8824_v8 = vadd.s32 208, %v8713_v23 }
  0x1c   : > { %8103 = vmatmul.mubr.msk.bf16.gmra.mxu1 %vm13810_vm1, %v8560_v9  ;;  %8090 = vmatprep.mubr.msk.bf16.mxu0 %vm13810_vm1, %v8561_v10  ;;  %v8827_v9 = vadd.s32 240, %v8713_v23 }
  0x1d   : > { %8106 = vmatprep.mubr.msk.bf16.mxu1 %vm13810_vm1, %v8562_v11  ;;  %14081 = vst [vmem:[#allocation13_spill] sm:$0xff] %v8824_v8  ;;  %v4230_v11 = vld [vmem:[%s13737_s5] sm:$0xf] }
  0x1e   : > { %14082 = vst [vmem:[#allocation14_spill] sm:$0xff] %v8827_v9  ;;  %8529 = vmatprep.subr.msk.bf16.mxu0 %vm13809_vm0, %v4230_v11 }
  0x23   : > { %8091 = vmatmul.mubr.msk.bf16.gmra.mxu0 %vm13810_vm1, %v8563_v12 }
  0x24   : > { %8107 = vmatmul.mubr.msk.bf16.gmra.mxu1 %vm13810_vm1, %v8564_v13  ;;  %8094 = vmatprep.mubr.msk.bf16.mxu0 %vm13810_vm1, %v8565_v14 }
  0x25   : > { %8110 = vmatprep.mubr.msk.bf16.mxu1 %vm13810_vm1, %v8566_v15  ;;  %v8838_v15 = vld [vmem:[%s13734_s2] ss:$0 sm:$0xff] }
  0x2b   : > { %8095 = vmatmul.mubr.msk.bf16.gmra.mxu0 %vm13810_vm1, %v8567_v16 }
  0x2c   : > { %8111 = vmatmul.mubr.msk.bf16.gmra.mxu1 %vm13810_vm1, %v8568_v17 }
  0xd3   : > { %v8829_v10 = vpop.f32.mrf.mxu0 }
  0xd4   : > { %14083 = vst [vmem:[#allocation15_spill] sm:$0xff] %v8829_v10  ;;  %v8840_v16 = vpop.f32.mrf.mxu1  ;;  %v13745_v48 = vrot.slane %v8829_v10, 7  ;;  %v1843_v13 = vrot.slane %v8829_v10, 1  ;;  %v8860_v18 = vadd.f32 %v8829_v10, %v8838_v15 }
  0xd5   : > { %14084 = vst [vmem:[#allocation16_spill] sm:$0xff] %v8840_v16  ;;  %v8846_v21 = vpop.f32.mrf.mxu0  ;;  %v13744_v24 = vrot.slane %v8840_v16, 7  ;;  %v1859_v37 = vrot.slane %v8840_v16, 1  ;;  %v8866_v14 = vadd.f32 %v8840_v16, %v8838_v15 }
  0xd6   : > { %v8854_v12 = vpop.f32.mrf.mxu1  ;;  %14085 = vst [vmem:[#allocation17_spill] sm:$0xff] %v8860_v18  ;;  %v13753_v7 = vrot.slane %v8846_v21, 7  ;;  %v8886_v1 = vadd.f32 %v8838_v15, %v8846_v21 }
  0xd7   : > { %14086 = vst [vmem:[#allocation18_spill] sm:$0xff] %v8866_v14  ;;  %v8868_v22 = vpop.f32.mrf.mxu0  ;;  %v8891_v57 = vadd.f32 %v8838_v15, %v8854_v12  ;;  %v14096_v9 = vrot.slane %v8854_v12, 7 }
  0xd8   : > { %v1651_v20 = vrot.slane %v8868_v22, 7  ;;  %v1844_v54 = vrot.slane %v8868_v22, 1  ;;  %v8874_v52 = vpop.f32.mrf.mxu1  ;;  %14088 = vst [vmem:[#allocation20_spill] sm:$0xff] %v8886_v1  ;;  %v8895_v49 = vadd.f32 %v8868_v22, %v8838_v15 }
  0xd9   : > { %v1667_v17 = vrot.slane %v8874_v52, 7  ;;  %v8882_v6 = vpop.f32.mrf.mxu0  ;;  %14089 = vst [vmem:[#allocation21_spill] sm:$0xff] %v8891_v57  ;;  %v1860_v42 = vrot.slane %v8874_v52, 1  ;;  %v8919_v38 = vadd.f32 %v8874_v52, %v8838_v15 }
  0xda   : > { %14087 = vst [vmem:[#allocation19_spill] sm:$0xff] %v8882_v6  ;;  %14090 = vst [vmem:[#allocation22_spill] sm:$0xff] %v8895_v49  ;;  %v13752_v46 = vrot.slane %v8882_v6, 7  ;;  %v1842_v39 = vrot.slane %v8882_v6, 1  ;;  %v8899_v45 = vpop.f32.mrf.mxu1  ;;  %v1709_v43 = vsel %vm13822_vm2, %v13745_v48, %v1651_v20  ;;  %v8915_v19 = vsel %vm13823_vm3, %v1843_v13, %v1844_v54 }
  0xdb   : > { %v1693_v11 = vsel %vm13822_vm2, %v13744_v24, %v1667_v17  ;;  %v8911_v47 = vpop.f32.mrf.mxu0  ;;  %14092 = vst [vmem:[#allocation24_spill] sm:$0xff] %v8915_v19  ;;  %14093 = vst [vmem:[#allocation25_spill] sm:$0xff] %v8919_v38  ;;  %v14095_v16 = vrot.slane %v8899_v45, 7  ;;  %v1858_v10 = vrot.slane %v8899_v45, 1  ;;  %v8957_v5 = vsel %vm13823_vm3, %v1859_v37, %v1860_v42 }
  0xdc   : > { %14091 = vst [vmem:[#allocation23_spill] sm:$0xff] %v8911_v47  ;;  %v1711_v24 = vsel %vm13822_vm2, %v13753_v7, %v13752_v46  ;;  %v1903_v48 = vsel %vm13823_vm3, %v1842_v39, %v1843_v13  ;;  %v8929_v51 = vpop.f32.mrf.mxu1  ;;  %v14098_v13 = vand.u32 15, %v8717_v25  ;;  %v14099_v7 = vmov 0  ;;  %14104 = vst [vmem:[#allocation31_spill] sm:$0xff] %v8957_v5 }
  0xdd   : > { %14094 = vst [vmem:[#allocation26_spill] sm:$0xff] %v8929_v51  ;;  %v1810_v41 = vadd.f32 %v1711_v24, %v8882_v6  ;;  %v1971_v19 = vsel %vm8817_vm4, %v1903_v48, 0.0  ;;  %v1695_v8 = vsel %vm13822_vm2, %v14096_v9, %v14095_v16  ;;  %v8941_v46 = vpop.f32.mrf.mxu0  ;;  %v8950_v24 = vadd.f32 %v8868_v22, %v1709_v43 }
  0xde   : > { %14097 = vst [vmem:[#allocation27_spill] sm:$0xff] %v8941_v46  ;;  %vm8945_vm5 = vcmp.lt.s32.totalorder %v14098_v13, 15  ;;  %v8953_v48 = vadd.f32 %v8874_v52, %v1693_v11  ;;  %v14105_v9 = vrot.slane %v8846_v21, 1  ;;  %v8965_v25 = vpop.f32.mrf.mxu1  ;;  %v8968_v13 = vadd.f32 %v1695_v8, %v8899_v45 }
  0xdf   : > { %v14100_v7 = vsel %vm8945_vm5, 4294967295, %v14099_v7  ;;  %14102 = vst [vmem:[#allocation29_spill] sm:$0xff] %v8950_v24  ;;  %14107 = vst [vmem:[#allocation33_spill] sm:$0xff] %v8965_v25  ;;  %v1847_v52 = vrot.slane %v8911_v47, 1  ;;  %v8974_v22 = vadd.f32 %v8911_v47, %v8838_v15  ;;  %v8976_v11 = vpop.f32.mrf.mxu0  ;;  %v8978_v5 = vadd.f32 %v1971_v19, %v1810_v41 }
  0xe0   : > { %14101 = vst [vmem:[#allocation28_spill] sm:$0xff] %v14100_v7  ;;  %14103 = vst [vmem:[#allocation30_spill] sm:$0xff] %v8953_v48  ;;  %v8963_v16 = vsel %vm13823_vm3, %v14105_v9, %v1842_v39  ;;  %v8982_v39 = vsel %vm13823_vm3, %v1858_v10, %v1859_v37  ;;  %v1652_v9 = vrot.slane %v8941_v46, 7  ;;  %v1845_v8 = vrot.slane %v8941_v46, 1 }
  0xe1   : > { %14106 = vst [vmem:[#allocation32_spill] sm:$0xff] %v8963_v16  ;;  %14108 = vst [vmem:[#allocation34_spill] sm:$0xff] %v8968_v13  ;;  %v8986_v16 = vpop.f32.mrf.mxu1  ;;  %v14112_v43 = vrot.slane %v8854_v12, 1  ;;  %v1861_v41 = vrot.slane %v8965_v25, 1  ;;  %v8998_v19 = vadd.f32 %v8838_v15, %v8882_v6  ;;  %v9000_v37 = vpop.f32.mrf.mxu0  ;;  %v1668_v4 = vrot.slane %v8965_v25, 7 }
  0xe2   : > { %14109 = vst [vmem:[#allocation35_spill] sm:$0xff] %v8974_v22  ;;  %14110 = vst [vmem:[#allocation36_spill] sm:$0xff] %v8978_v5  ;;  %v1863_v5 = vrot.slane %v8929_v51, 1  ;;  %v9013_v13 = vsel %vm13822_vm2, %v1651_v20, %v1652_v9  ;;  %v9017_v6 = vadd.f32 %v8838_v15, %v8965_v25  ;;  %v1848_v24 = vrot.slane %v8976_v11, 1 }
  0xe3   : > { %14111 = vst [vmem:[#allocation37_spill] sm:$0xff] %v8982_v39  ;;  %v8992_v48 = vsel %vm13823_vm3, %v14112_v43, %v1858_v10  ;;  %14114 = vst [vmem:[#allocation39_spill] sm:$0xff] %v8998_v19  ;;  %v9005_v39 = vadd.f32 %v8929_v51, %v8838_v15  ;;  %v9009_v43 = vpop.f32.mrf.mxu1  ;;  %v9024_v3 = vpop.f32.mrf.mxu0  ;;  %v9028_v10 = vsel %vm13823_vm3, %v1844_v54, %v1845_v8  ;;  %v14123_v2 = vrot.slane %v8976_v11, 7  ;;  %v9046_v54 = vld [vmem:[%s13735_s3 + $0x8] sm:$0xf] }
  0xe4   : > { %14113 = vst [vmem:[#allocation38_spill] sm:$0xff] %v8992_v48  ;;  %14115 = vst [vmem:[#allocation40_spill] sm:$0xff] %v9000_v37  ;;  %v9021_v48 = vpack.c.bf16 %v8998_v19, %v8886_v1  ;;  %v9032_v20 = vsel %vm13822_vm2, %v1667_v17, %v1668_v4  ;;  %v14124_v25 = vrot.slane %v8911_v47, 7  ;;  %v1671_v19 = vrot.slane %v8986_v16, 7  ;;  %8528 = vmatprep.subr.msk.bf16.mxu1 %vm13809_vm0, %v9046_v54 }
  0xe5   : > { %14116 = vst [vmem:[#allocation41_spill] sm:$0xff] %v9005_v39  ;;  %14117 = vst [vmem:[#allocation42_spill] sm:$0xff] %v9013_v13  ;;  %v9041_v0 = vpop.f32.mrf.mxu1  ;;  %v9050_v17 = vsel %vm13823_vm3, %v1860_v42, %v1861_v41  ;;  %v1864_v47 = vrot.slane %v8986_v16, 1  ;;  %v14130_v42 = vrot.slane %v8929_v51, 7  ;;  %v14134_v63 = vrot.slane %v9000_v37, 7 }
  0xe6   : > { %14118 = vst [vmem:[#allocation43_spill] sm:$0xff] %v9017_v6  ;;  %14119 = vst [vmem:[#allocation44_spill] sm:$0xff] %v9021_v48  ;;  %v1705_v1 = vsel %vm13822_vm2, %v14124_v25, %v14123_v2  ;;  %2490 = vrot.lane.b32.xlu0 %v9021_v48, %s8582_s18  ;;  %v1846_v25 = vrot.slane %v9000_v37, 1  ;;  %v1862_v2 = vrot.slane %v9009_v43, 1  ;;  %v9090_v13 = vadd.f32 %v8986_v16, %v8838_v15 }
  0xe7   : > { %14120 = vst [vmem:[#allocation45_spill] sm:$0xff] %v9024_v3  ;;  %14121 = vst [vmem:[#allocation46_spill] sm:$0xff] %v9028_v10  ;;  %v9057_v10 = vpop.f32.mrf.mxu0  ;;  %v1689_v48 = vsel %vm13822_vm2, %v14130_v42, %v1671_v19  ;;  %v9071_v56 = vpop.f32.mrf.mxu1  ;;  %v9074_v33 = vadd.f32 %v8976_v11, %v1705_v1  ;;  %v1707_v51 = vsel %vm13822_vm2, %v1652_v9, %v14134_v63  ;;  %v14141_v7 = vand.u32 15, %v8723_v27 }
  0xe8   : > { %14122 = vst [vmem:[#allocation47_spill] sm:$0xff] %v9032_v20  ;;  %14125 = vst [vmem:[#allocation48_spill] sm:$0xff] %v9041_v0  ;;  %v9063_v20 = vadd.f32 %v8976_v11, %v8838_v15  ;;  %v1899_v42 = vsel %vm13823_vm3, %v1846_v25, %v1847_v52  ;;  %v1814_v1 = vadd.f32 %v1707_v51, %v9000_v37 }
  0xe9   : > { %14126 = vst [vmem:[#allocation49_spill] sm:$0xff] %v9046_v54  ;;  %14127 = vst [vmem:[#allocation50_spill] sm:$0xff] %v9050_v17  ;;  %v9078_v54 = vsel %vm13823_vm3, %v1847_v52, %v1848_v24  ;;  %v9086_v17 = vpop.f32.mrf.mxu0  ;;  %v9099_v63 = vpop.f32.mrf.mxu1  ;;  %v9102_v52 = vadd.f32 %v8986_v16, %v1689_v48  ;;  %v9106_v9 = vsel %vm13823_vm3, %v1863_v5, %v1864_v47  ;;  %vm9118_vm6 = vcmp.lt.s32.totalorder %v14141_v7, 15 }
  0xea   : > { %14128 = vst [vmem:[#allocation51_spill] sm:$0xff] %v9057_v10  ;;  %14129 = vst [vmem:[#allocation52_spill] sm:$0xff] %v9063_v20  ;;  %v9110_v51 = vsel %vm13823_vm3, %v1845_v8, %v1846_v25  ;;  %v9127_v16 = vsel %vm13823_vm3, %v1862_v2, %v1863_v5  ;;  %v9131_v8 = vsel %vm13823_vm3, %v1861_v41, %v1862_v2  ;;  %v1656_v7 = vrot.slane %v9057_v10, 7 }
  0xeb   : > { %14131 = vst [vmem:[#allocation53_spill] sm:$0xff] %v9071_v56  ;;  %14132 = vst [vmem:[#allocation54_spill] sm:$0xff] %v9074_v33  ;;  %v1975_v33 = vsel %vm8945_vm5, %v1899_v42, 0.0  ;;  %v9114_v42 = vpack.c.bf16 %v8895_v49, %v8860_v18  ;;  %v9134_v25 = vpop.f32.mrf.mxu0  ;;  %v1849_v5 = vrot.slane %v9057_v10, 1  ;;  %v9145_v49 = vadd.f32 %v9024_v3, %v8838_v15 }
  0xec   : > { %14133 = vst [vmem:[#allocation55_spill] sm:$0xff] %v9078_v54  ;;  %14135 = vst [vmem:[#allocation56_spill] sm:$0xff] %v9090_v13  ;;  %v14136_v54 = vrot.slane %v9009_v43, 7  ;;  %v9136_v27 = vadd.f32 %v1975_v33, %v1814_v1  ;;  %v1672_v2 = vrot.slane %v9071_v56, 7  ;;  %v1865_v33 = vrot.slane %v9071_v56, 1  ;;  %v9150_v1 = vpop.f32.mrf.mxu1 }
  0xed   : > { %14137 = vst [vmem:[#allocation57_spill] sm:$0xff] %v9102_v52  ;;  %14138 = vst [vmem:[#allocation58_spill] sm:$0xff] %v9106_v9  ;;  %2492 = vrot.lane.b32.xlu0 %v9114_v42, %s8582_s18  ;;  %v9155_v18 = vadd.f32 %v9041_v0, %v8838_v15  ;;  %v9159_v9 = vadd.f32 %v8838_v15, %v8941_v46  ;;  %v9167_v41 = vadd.f32 %v8838_v15, %v9057_v10 }
  0xee   : > { %v1691_v6 = vsel %vm13822_vm2, %v1668_v4, %v14136_v54  ;;  %14139 = vst [vmem:[#allocation59_spill] sm:$0xff] %v9110_v51  ;;  %14140 = vst [vmem:[#allocation60_spill] sm:$0xff] %v9114_v42  ;;  %v14142_v4 = vmov 0  ;;  %v1867_v54 = vrot.slane %v9041_v0, 1  ;;  %v9163_v42 = vadd.f32 %v8838_v15, %v9000_v37 }
  0xef   : > { %v14143_v4 = vsel %vm9118_vm6, 4294967295, %v14142_v4  ;;  %v9123_v48 = vadd.f32 %v1691_v6, %v9009_v43  ;;  %14146 = vst [vmem:[#allocation63_spill] sm:$0xff] %v9127_v16  ;;  %14147 = vst [vmem:[#allocation64_spill] sm:$0xff] %v9131_v8  ;;  %v1851_v6 = vrot.slane %v9024_v3, 1  ;;  %v9171_v52 = vadd.f32 %v8838_v15, %v9071_v56 }
  0xf0   : > { %14144 = vst [vmem:[#allocation61_spill] sm:$0xff] %v14143_v4  ;;  %14148 = vst [vmem:[#allocation65_spill] sm:$0xff] %v9134_v25  ;;  %v1852_v16 = vrot.slane %v9086_v17, 1  ;;  %v14157_v8 = vrot.slane %v8976_v11, 7  ;;  %v9185_v51 = vsel %vm13823_vm3, %v1848_v24, %v1849_v5  ;;  %v9189_v56 = vpack.c.bf16 %v9163_v42, %v9159_v9 }
  0xf1   : > { %14145 = vst [vmem:[#allocation62_spill] sm:$0xff] %v9123_v48  ;;  %14149 = vst [vmem:[#allocation66_spill] sm:$0xff] %v9136_v27  ;;  %v1659_v48 = vrot.slane %v9086_v17, 7  ;;  %v9175_v27 = vpop.f32.mrf.mxu0  ;;  %v9194_v10 = vsel %vm13822_vm2, %v1671_v19, %v1672_v2  ;;  %v9198_v11 = vsel %vm13823_vm3, %v1864_v47, %v1865_v33  ;;  %v14166_v24 = vrot.slane %v9041_v0, 7 }
  0xf2   : > { %14150 = vst [vmem:[#allocation67_spill] sm:$0xff] %v9145_v49  ;;  %14151 = vst [vmem:[#allocation68_spill] sm:$0xff] %v9155_v18  ;;  %v9181_v37 = vsel %vm13822_vm2, %v14157_v8, %v1656_v7  ;;  %v9202_v8 = vadd.f32 %v9086_v17, %v8838_v15  ;;  %2494 = vrot.lane.b32.xlu1 %v9189_v56, %s8582_s18  ;;  %v9215_v47 = vsel %vm13823_vm3, %v1851_v6, %v1852_v16 }
  0xf3   : > { %14152 = vst [vmem:[#allocation69_spill] sm:$0xff] %v9159_v9  ;;  %14153 = vst [vmem:[#allocation70_spill] sm:$0xff] %v9163_v42  ;;  %v14164_v42 = vrot.slane %v9024_v3, 7  ;;  %v1868_v9 = vrot.slane %v9099_v63, 1  ;;  %v1866_v46 = vrot.slane %v9150_v1, 1  ;;  %v9240_v60 = vpack.c.bf16 %v9063_v20, %v8974_v22 }
  0xf4   : > { %14154 = vst [vmem:[#allocation71_spill] sm:$0xff] %v9167_v41  ;;  %14155 = vst [vmem:[#allocation72_spill] sm:$0xff] %v9171_v52  ;;  %v1675_v52 = vrot.slane %v9099_v63, 7  ;;  %v14172_v62 = vrot.slane %v9150_v1, 7  ;;  %v14173_v20 = vand.u32 15, %v8726_v28  ;;  %v14174_v22 = vmov 0 }
  0xf5   : > { %14156 = vst [vmem:[#allocation73_spill] sm:$0xff] %v9175_v27  ;;  %14158 = vst [vmem:[#allocation74_spill] sm:$0xff] %v9181_v37  ;;  %v1701_v19 = vsel %vm13822_vm2, %v14164_v42, %v1659_v48  ;;  %v9229_v37 = vpop.f32.mrf.mxu0  ;;  %v9278_v28 = vsel %vm13823_vm3, %v1866_v46, %v1867_v54 }
  0xf6   : > { %14159 = vst [vmem:[#allocation75_spill] sm:$0xff] %v9185_v51  ;;  %14160 = vst [vmem:[#allocation76_spill] sm:$0xff] %v9189_v56  ;;  %v9205_v51 = vpop.f32.mrf.mxu1  ;;  %v14167_v56 = vrot.slane %v9134_v25, 7  ;;  %vm9259_vm7 = vcmp.lt.s32.totalorder %v14173_v20, 15  ;;  %v9282_v20 = vsel %vm13823_vm3, %v1865_v33, %v1866_v46  ;;  %2496 = vrot.lane.b32.xlu1 %v9240_v60, %s8582_s18  ;;  %v1660_v33 = vrot.slane %v9229_v37, 7 }
  0xf7   : > { %14161 = vst [vmem:[#allocation77_spill] sm:$0xff] %v9194_v10  ;;  %14162 = vst [vmem:[#allocation78_spill] sm:$0xff] %v9198_v11  ;;  %v1850_v11 = vrot.slane %v9134_v25, 1  ;;  %v1685_v10 = vsel %vm13822_vm2, %v14166_v24, %v1675_v52  ;;  %v14175_v22 = vsel %vm9259_vm7, 4294967295, %v14174_v22  ;;  %v9314_v46 = vadd.f32 %v8838_v15, %v9134_v25 }
  0xf8   : > { %14163 = vst [vmem:[#allocation79_spill] sm:$0xff] %v9202_v8  ;;  %14165 = vst [vmem:[#allocation80_spill] sm:$0xff] %v9215_v47  ;;  %v1703_v3 = vsel %vm13822_vm2, %v1656_v7, %v14167_v56  ;;  %v9233_v47 = vadd.f32 %v9099_v63, %v8838_v15  ;;  %v9243_v56 = vadd.f32 %v9086_v17, %v1701_v19  ;;  %v14177_v17 = vand.u32 15, %v8729_v29 }
  0xf9   : > { %v1818_v0 = vadd.f32 %v1703_v3, %v9134_v25  ;;  %v1895_v24 = vsel %vm13823_vm3, %v1850_v11, %v1851_v6  ;;  %14169 = vst [vmem:[#allocation82_spill] sm:$0xff] %v9240_v60  ;;  %v9247_v7 = vsel %vm13823_vm3, %v1867_v54, %v1868_v9  ;;  %v1687_v3 = vsel %vm13822_vm2, %v1672_v2, %v14172_v62  ;;  %v9255_v6 = vpop.f32.mrf.mxu1  ;;  %v8097_v2 = vpop.f32.mrf.mxu0 }
  0xfa   : > { %14168 = vst [vmem:[#allocation81_spill] sm:$0xff] %v9233_v47  ;;  %14170 = vst [vmem:[#allocation83_spill] sm:$0xff] %v9243_v56  ;;  %v1979_v42 = vsel %vm9118_vm6, %v1895_v24, 0.0  ;;  %vm9265_vm8 = vcmp.lt.s32.totalorder %v14177_v17, 15  ;;  %v14178_v19 = vmov 0  ;;  %v9270_v24 = vadd.f32 %v9099_v63, %v1685_v10 }
  0xfb   : > { %14171 = vst [vmem:[#allocation84_spill] sm:$0xff] %v9247_v7  ;;  %14176 = vst [vmem:[#allocation85_spill] sm:$0xff] %v14175_v22  ;;  %v14179_v19 = vsel %vm9265_vm8, 4294967295, %v14178_v19  ;;  %v9274_v62 = vsel %vm13823_vm3, %v1849_v5, %v1850_v11  ;;  %v9286_v29 = vadd.f32 %v1979_v42, %v1818_v0  ;;  %v9289_v10 = vadd.f32 %v1687_v3, %v9150_v1  ;;  %v8113_v4 = vpop.f32.mrf.mxu1 }
  0xfc   : > { %14180 = vst [vmem:[#allocation86_spill] sm:$0xff] %v14179_v19  ;;  %14181 = vst [vmem:[#allocation87_spill] sm:$0xff] %v9270_v24  ;;  %v1855_v5 = vrot.slane %v9175_v27, 1  ;;  %v9295_v54 = vadd.f32 %v9175_v27, %v8838_v15  ;;  %v14187_v0 = vand.u32 15, %v8732_v30  ;;  %v14188_v42 = vmov 0 }
  0xfd   : > { %14182 = vst [vmem:[#allocation88_spill] sm:$0xff] %v9278_v28  ;;  %14183 = vst [vmem:[#allocation89_spill] sm:$0xff] %v9282_v20  ;;  %v9310_v63 = vpack.c.bf16 %v9202_v8, %v9145_v49  ;;  %v9318_v30 = vadd.f32 %v9205_v51, %v8838_v15  ;;  %v1676_v3 = vrot.slane %v9255_v6, 7  ;;  %v1663_v17 = vrot.slane %v8097_v2, 7  ;;  %v9349_v28 = vpop.f32.mrf.mxu0 }
  0xfe   : > { %14184 = vst [vmem:[#allocation90_spill] sm:$0xff] %v9286_v29  ;;  %14185 = vst [vmem:[#allocation91_spill] sm:$0xff] %v9289_v10  ;;  %vm9302_vm9 = vcmp.lt.s32.totalorder %v14187_v0, 15  ;;  %v9322_v0 = vadd.f32 %v8838_v15, %v9229_v37  ;;  %v9327_v11 = vsel %vm13822_vm2, %v1659_v48, %v1660_v33  ;;  %v9331_v8 = vadd.f32 %v8838_v15, %v9255_v6 }
  0xff   : > { %14186 = vst [vmem:[#allocation92_spill] sm:$0xff] %v9295_v54  ;;  %v14189_v42 = vsel %vm9302_vm9, 4294967295, %v14188_v42  ;;  %14191 = vst [vmem:[#allocation94_spill] sm:$0xff] %v9310_v63  ;;  %2500 = vrot.lane.b32.xlu1 %v9310_v63, %s8582_s18  ;;  %v9337_v49 = vpack.c.bf16 %v9314_v46, %v9167_v41  ;;  %v1856_v29 = vrot.slane %v8097_v2, 1  ;;  %v14197_v7 = vrot.slane %v9229_v37, 1 }
 0x100   : > { %14190 = vst [vmem:[#allocation93_spill] sm:$0xff] %v14189_v42  ;;  %14192 = vst [vmem:[#allocation95_spill] sm:$0xff] %v9314_v46  ;;  %v14199_v48 = vrot.slane %v9175_v27, 7  ;;  %v1679_v25 = vrot.slane %v8113_v4, 7  ;;  %v1872_v10 = vrot.slane %v8113_v4, 1  ;;  %v9353_v46 = vsel %vm13822_vm2, %v1675_v52, %v1676_v3  ;;  %v9370_v27 = vpop.f32.mrf.mxu1 }
 0x101   : > { %14193 = vst [vmem:[#allocation96_spill] sm:$0xff] %v9318_v30  ;;  %14194 = vst [vmem:[#allocation97_spill] sm:$0xff] %v9322_v0  ;;  %v9343_v60 = vsel %vm13823_vm3, %v1852_v16, %v14197_v7  ;;  %v14200_v41 = vrot.slane %v9255_v6, 1  ;;  %2498 = vrot.lane.b32.xlu0 %v9337_v49, %s8582_s18  ;;  %v14202_v16 = vrot.slane %v8854_v12, 1  ;;  %v14204_v52 = vand.u32 15, %v8720_v26 }
 0x102   : > { %14195 = vst [vmem:[#allocation98_spill] sm:$0xff] %v9331_v8  ;;  %14196 = vst [vmem:[#allocation99_spill] sm:$0xff] %v9337_v49  ;;  %v1697_v24 = vsel %vm13822_vm2, %v14199_v48, %v1663_v17  ;;  %v9368_v48 = vadd.f32 %v8097_v2, %v8838_v15  ;;  %v14205_v56 = vmov 0  ;;  %v14212_v49 = vand.u32 15, %v8744_v34 }
 0x103   : > { %14198 = vst [vmem:[#allocation100_spill] sm:$0xff] %v9343_v60  ;;  %v9359_v63 = vsel %vm13823_vm3, %v1868_v9, %v14200_v41  ;;  %v1889_v7 = vsel %vm13823_vm3, %v1856_v29, %v14202_v16  ;;  %vm9374_vm10 = vcmp.ge.s32.totalorder %v14204_v52, 1  ;;  %v14208_v9 = vand.u32 15, %v8735_v31 }
 0x104   : > { %14201 = vst [vmem:[#allocation101_spill] sm:$0xff] %v9359_v63  ;;  %14203 = vst [vmem:[#allocation102_spill] sm:$0xff] %v9368_v48  ;;  %v14206_v56 = vsel %vm9374_vm10, 4294967295, %v14205_v56  ;;  %v14209_v41 = vmov 0  ;;  %vm9386_vm12 = vcmp.ge.s32.totalorder %v14212_v49, 1  ;;  %v14213_v16 = vmov 0 }
 0x105   : > { %14207 = vst [vmem:[#allocation103_spill] sm:$0xff] %v14206_v56  ;;  %vm9380_vm11 = vcmp.ge.s32.totalorder %v14208_v9, 1  ;;  %v14214_v16 = vsel %vm9386_vm12, 4294967295, %v14213_v16  ;;  %v14216_v63 = vrot.slane %v8854_v12, 7  ;;  %v1824_v52 = vadd.f32 %v8097_v2, %v1697_v24 }
 0x106   : > { %v14210_v41 = vsel %vm9380_vm11, 4294967295, %v14209_v41  ;;  %14215 = vst [vmem:[#allocation105_spill] sm:$0xff] %v14214_v16  ;;  %v9398_v31 = vsel %vm13823_vm3, %v1855_v5, %v1856_v29  ;;  %v14218_v9 = vrot.slane %v9205_v51, 7  ;;  %v14219_v49 = vand.u32 15, %v8761_v44  ;;  %v14307_v16 = vld [vmem:[#allocation27_spill] sm:$0xff] }
 0x107   : > { %14211 = vst [vmem:[#allocation104_spill] sm:$0xff] %v14210_v41  ;;  %v9394_v26 = vsel %vm13822_vm2, %v1663_v17, %v14216_v63  ;;  %14217 = vst [vmem:[#allocation106_spill] sm:$0xff] %v9398_v31  ;;  %v14220_v20 = vmov 0  ;;  %v14223_v63 = vrot.slane %v8846_v21, 1  ;;  %v9415_v29 = vadd.f32 %v8113_v4, %v8838_v15  ;;  %v14308_v41 = vld [vmem:[#allocation51_spill] sm:$0xff] }
 0x108   : > { %v1681_v34 = vsel %vm13822_vm2, %v14218_v9, %v1679_v25  ;;  %vm9406_vm13 = vcmp.ge.s32.totalorder %v14219_v49, 1  ;;  %v13813_v2 = vrot.slane %v9349_v28, 7  ;;  %v14225_v17 = vand.u32 15, %v8769_v50 }
 0x109   : > { %v14221_v20 = vsel %vm9406_vm13, 4294967295, %v14220_v20  ;;  %v1840_v60 = vadd.f32 %v8113_v4, %v1681_v34  ;;  %v1905_v24 = vsel %vm13823_vm3, %v1872_v10, %v14223_v63  ;;  %14224 = vst [vmem:[#allocation108_spill] sm:$0xff] %v9415_v29  ;;  %v14226_v9 = vmov 0 }
 0x10a   : > { %14222 = vst [vmem:[#allocation107_spill] sm:$0xff] %v14221_v20  ;;  %vm9420_vm14 = vcmp.ge.s32.totalorder %v14225_v17, 1  ;;  %v14229_v44 = vand.u32 15, %v8774_v53  ;;  %v14230_v34 = vmov 0  ;;  %v14233_v49 = vand.u32 15, %v8795_v61  ;;  %v14329_v20 = vld [vmem:[#allocation53_spill] sm:$0xff] }
 0x10b   : > { %v14227_v9 = vsel %vm9420_vm14, 4294967295, %v14226_v9  ;;  %v14234_v63 = vmov 0  ;;  %v1985_v4 = vsel %vm9259_vm7, %v1889_v7, 0.0  ;;  %v2001_v50 = vsel %vm9265_vm8, %v1905_v24, 0.0 }
 0x10c   : > { %14228 = vst [vmem:[#allocation109_spill] sm:$0xff] %v14227_v9  ;;  %vm9426_vm15 = vcmp.ge.s32.totalorder %v14229_v44, 1  ;;  %vm9432_vm0 = vcmp.ge.s32.totalorder %v14233_v49, 1  ;;  %v1854_v17 = vrot.slane %v9349_v28, 1  ;;  %v1699_v44 = vsel %vm13822_vm2, %v1660_v33, %v13813_v2 }
 0x10d   : > { %v14231_v34 = vsel %vm9426_vm15, 4294967295, %v14230_v34  ;;  %v14235_v63 = vsel %vm9432_vm0, 4294967295, %v14234_v63  ;;  %v1870_v61 = vrot.slane %v9370_v27, 1  ;;  %v9449_v49 = vpack.c.bf16 %v9368_v48, %v9295_v54 }
 0x10e   : > { %14232 = vst [vmem:[#allocation110_spill] sm:$0xff] %v14231_v34  ;;  %14236 = vst [vmem:[#allocation111_spill] sm:$0xff] %v14235_v63  ;;  %v9453_v7 = vadd.f32 %v8838_v15, %v9349_v28  ;;  %v14238_v24 = vand.u32 15, %v8738_v32  ;;  %v14239_v22 = vmov 0  ;;  %v14242_v53 = vrot.slane %v8846_v21, 7 }
 0x10f   : > { %v1822_v2 = vadd.f32 %v1699_v44, %v9349_v28  ;;  %v1891_v19 = vsel %vm13823_vm3, %v1854_v17, %v1855_v5  ;;  %v14243_v48 = vrot.slane %v9370_v27, 7  ;;  %v14245_v54 = vmov 0  ;;  %2504 = vrot.lane.b32.xlu1 %v9449_v49, %s8582_s18 }
 0x110   : > { %14237 = vst [vmem:[#allocation112_spill] sm:$0xff] %v9453_v7  ;;  %vm9457_vm1 = vcmp.lt.s32.totalorder %v14238_v24, 15  ;;  %v9465_v33 = vsel %vm13822_vm2, %v1679_v25, %v14242_v53  ;;  %v14244_v24 = vand.u32 15, %v8747_v35  ;;  %v14248_v31 = vand.u32 15, %v8785_v58 }
 0x111   : > { %v14240_v22 = vsel %vm9457_vm1, 4294967295, %v14239_v22  ;;  %v1683_v32 = vsel %vm13822_vm2, %v1676_v3, %v14243_v48  ;;  %v14249_v25 = vmov 0  ;;  %v9486_v53 = vadd.f32 %v1985_v4, %v1824_v52 }
 0x112   : > { %14241 = vst [vmem:[#allocation113_spill] sm:$0xff] %v14240_v22  ;;  %vm9476_vm7 = vcmp.lt.s32.totalorder %v14244_v24, 15  ;;  %vm9482_vm8 = vcmp.lt.s32.totalorder %v14248_v31, 15  ;;  %v14252_v5 = vrot.slane %v9205_v51, 1  ;;  %v9494_v3 = vadd.f32 %v2001_v50, %v1840_v60 }
 0x113   : > { %v14246_v54 = vsel %vm9476_vm7, 4294967295, %v14245_v54  ;;  %v14250_v25 = vsel %vm9482_vm8, 4294967295, %v14249_v25  ;;  %v1983_v35 = vsel %vm9302_vm9, %v1891_v19, 0.0  ;;  %v9504_v48 = vpack.c.bf16 %v9453_v7, %v9322_v0 }
 0x114   : > { %14247 = vst [vmem:[#allocation114_spill] sm:$0xff] %v14246_v54  ;;  %14251 = vst [vmem:[#allocation115_spill] sm:$0xff] %v14250_v25  ;;  %v9492_v44 = vsel %vm13823_vm3, %v14252_v5, %v1872_v10  ;;  %v9500_v58 = vadd.f32 %v1983_v35, %v1822_v2  ;;  %v9508_v52 = vpack.c.bf16 %v8919_v38, %v8866_v14  ;;  %v14255_v10 = vand.u32 15, %v8750_v36  ;;  %v14290_v38 = vld [vmem:[#allocation43_spill] sm:$0xff]  ;;  %v14358_v54 = vld [vmem:[#allocation88_spill] sm:$0xff] }
 0x115   : > { %14253 = vst [vmem:[#allocation116_spill] sm:$0xff] %v9494_v3  ;;  %v9512_v60 = vadd.f32 %v8838_v15, %v8899_v45  ;;  %v14256_v19 = vmov 0  ;;  %v14259_v31 = vand.u32 15, %v8755_v40  ;;  %v14260_v2 = vmov 0  ;;  %2502 = vrot.lane.b32.xlu0 %v9504_v48, %s8582_s18  ;;  %v14291_v3 = vld [vmem:[#allocation42_spill] sm:$0xff]  ;;  %v14353_v25 = vld [vmem:[#allocation63_spill] sm:$0xff] }
 0x116   : > { %vm9516_vm2 = vcmp.lt.s32.totalorder %v14255_v10, 15  ;;  %v14263_v4 = vrot.slane %v9229_v37, 1  ;;  %vm14264_vm9 = vcmp.lt.s32.totalorder %v8713_v23, 7  ;;  %v9531_v24 = vadd.f32 %v1683_v32, %v9370_v27  ;;  %2508 = vrot.lane.b32.xlu1 %v9508_v52, %s8582_s18 }
 0x117   : > { %14254 = vst [vmem:[#allocation117_spill] sm:$0xff] %v9512_v60  ;;  %v14257_v19 = vsel %vm9516_vm2, 4294967295, %v14256_v19  ;;  %vm9522_vm3 = vcmp.lt.s32.totalorder %v14259_v31, 15  ;;  %v14265_v36 = vmov %v14252_v5  ;;  %vm14266_vm4 = vmmov %vm14264_vm9  ;;  %v9541_v40 = vadd.f32 %v8838_v15, %v9009_v43 }
 0x118   : > { %14258 = vst [vmem:[#allocation118_spill] sm:$0xff] %v14257_v19  ;;  %v14261_v2 = vsel %vm9522_vm3, 4294967295, %v14260_v2  ;;  %v1892_v50 = vsel %vm14264_vm9, %v14263_v4, %v1854_v17  ;;  %v9537_v5 = vsel %vm14266_vm4, %v1870_v61, %v14265_v36  ;;  %v14268_v35 = vand.u32 15, %v8778_v55  ;;  %v14356_v19 = vld [vmem:[#allocation30_spill] sm:$0xff] }
 0x119   : > { %14262 = vst [vmem:[#allocation119_spill] sm:$0xff] %v14261_v2  ;;  %14267 = vst [vmem:[#allocation120_spill] sm:$0xff] %v9541_v40  ;;  %v14269_v10 = vmov 0  ;;  %v14272_v17 = vand.u32 15, %v8788_v59  ;;  %v14273_v32 = vmov 0  ;;  %v14276_v31 = vrot.slane %v9255_v6, 1 }
 0x11a   : > { %vm9545_vm6 = vcmp.lt.s32.totalorder %v14268_v35, 15  ;;  %v9563_v55 = vpack.c.bf16 %v9512_v60, %v8891_v57  ;;  %v9567_v36 = vpack.c.bf16 %v9090_v13, %v9005_v39  ;;  %v9571_v59 = vpack.c.bf16 %v9233_v47, %v9155_v18  ;;  %v14277_v35 = vld [vmem:[#allocation6_spill] sm:$0xff] }
 0x11b   : > { %v14270_v10 = vsel %vm9545_vm6, 4294967295, %v14269_v10  ;;  %vm9551_vm9 = vcmp.lt.s32.totalorder %v14272_v17, 15  ;;  %v1876_v4 = vsel %vm14266_vm4, %v14276_v31, %v1870_v61  ;;  %v14278_v17 = vand.u32 15, %v14277_v35 }
 0x11c   : > { %14271 = vst [vmem:[#allocation121_spill] sm:$0xff] %v14270_v10  ;;  %v14274_v32 = vsel %vm9551_vm9, 4294967295, %v14273_v32  ;;  %v14279_v42 = vmov 0  ;;  %v9581_v61 = vadd.f32 %v9486_v53, %v9500_v58  ;;  %v9587_v31 = vadd.f32 %v8838_v15, %v9150_v1  ;;  %2506 = vrot.lane.b32.xlu0 %v9563_v55, %s8582_s18  ;;  %2512 = vrot.lane.b32.xlu1 %v9567_v36, %s8582_s18 }
 0x11d   : > { %14275 = vst [vmem:[#allocation122_spill] sm:$0xff] %v14274_v32  ;;  %vm9575_vm5 = vcmp.lt.s32.totalorder %v14278_v17, 15  ;;  %v9591_v47 = vpack.c.bf16 %v9415_v29, %v9318_v30  ;;  %v9595_v35 = vadd.f32 %v8838_v15, %v9370_v27  ;;  %v14285_v17 = vld [vmem:[#allocation5_spill] sm:$0xff]  ;;  %v14287_v13 = vmov 0  ;;  %v14292_v29 = vld [vmem:[#allocation74_spill] sm:$0xff] }
 0x11e   : > { %v14280_v42 = vsel %vm9575_vm5, 4294967295, %v14279_v42  ;;  %14282 = vst [vmem:[#allocation123_spill] sm:$0xff] %v9587_v31  ;;  %v14286_v18 = vand.u32 15, %v14285_v17  ;;  %v9605_v39 = vpack.c.bf16 %v9541_v40, %v14290_v38  ;;  %v1781_v60 = vsel %vm9374_vm10, %v14291_v3, 0.0  ;;  %v14298_v40 = vld [vmem:[#allocation3_spill] sm:$0xff] }
 0x11f   : > { %14281 = vst [vmem:[#allocation6_spill] sm:$0xff] %v14280_v42  ;;  %14283 = vst [vmem:[#allocation124_spill] sm:$0xff] %v9591_v47  ;;  %v1785_v30 = vsel %vm9380_vm11, %v14292_v29, 0.0  ;;  %v1789_v17 = vsel %vm9386_vm12, %v9327_v11, 0.0  ;;  %v14295_v7 = vmov 0  ;;  %v14299_v38 = vand.u32 15, %v14298_v40 }
 0x120   : > { %14284 = vst [vmem:[#allocation125_spill] sm:$0xff] %v9595_v35  ;;  %vm9599_vm4 = vcmp.lt.s32.totalorder %v14286_v18, 15  ;;  %v14293_v18 = vld [vmem:[#allocation7_spill] sm:$0xff]  ;;  %v14300_v57 = vmov 0  ;;  %v14303_v3 = vand.u32 15, %v8713_v23  ;;  %v14304_v29 = vmov 0  ;;  %2510 = vrot.lane.b32.xlu0 %v9605_v39, %s8582_s18  ;;  %2516 = vrot.lane.b32.xlu1 %v9571_v59, %s8582_s18 }
 0x121   : > { %v14288_v13 = vsel %vm9599_vm4, 4294967295, %v14287_v13  ;;  %v14294_v14 = vand.u32 15, %v14293_v18  ;;  %vm9624_vm4 = vcmp.ge.s32.totalorder %v14299_v38, 1  ;;  %v1813_v11 = vadd.f32 %v1781_v60, %v14307_v16  ;;  %v14309_v38 = vld [vmem:[#allocation4_spill] sm:$0xff]  ;;  %v14314_v16 = vld [vmem:[#allocation47_spill] sm:$0xff] }
 0x122   : > { %14289 = vst [vmem:[#allocation5_spill] sm:$0xff] %v14288_v13  ;;  %v14301_v57 = vsel %vm9624_vm4, 4294967295, %v14300_v57  ;;  %vm9630_vm10 = vcmp.ge.s32.totalorder %v14303_v3, 1  ;;  %v1817_v18 = vadd.f32 %v1785_v30, %v14308_v41  ;;  %v1793_v40 = vsel %vm9406_vm13, %v9394_v26, 0.0  ;;  %v14316_v26 = vld [vmem:[#allocation8_spill] sm:$0xff] }
 0x123   : > { %vm9618_vm5 = vcmp.lt.s32.totalorder %v14294_v14, 15  ;;  %14302 = vst [vmem:[#allocation74_spill] sm:$0xff] %v14301_v57  ;;  %v14305_v29 = vsel %vm9630_vm10, 4294967295, %v14304_v29  ;;  %v1821_v14 = vadd.f32 %v1789_v17, %v9229_v37  ;;  %v14310_v56 = vand.u32 15, %v14309_v38  ;;  %v14315_v37 = vld [vmem:[#allocation77_spill] sm:$0xff] }
 0x124   : > { %v14296_v7 = vsel %vm9618_vm5, 4294967295, %v14295_v7  ;;  %14306 = vst [vmem:[#allocation7_spill] sm:$0xff] %v14305_v29  ;;  %v14311_v0 = vmov 0  ;;  %v1825_v3 = vadd.f32 %v1793_v40, %v8854_v12  ;;  %v1797_v30 = vsel %vm9420_vm14, %v14314_v16, 0.0  ;;  %v14321_v12 = vld [vmem:[#allocation72_spill] sm:$0xff]  ;;  %v14322_v16 = vld [vmem:[#allocation59_spill] sm:$0xff]  ;;  %2520 = vrot.lane.b32.xlu1 %v9591_v47, %s8582_s18 }
 0x125   : > { %14297 = vst [vmem:[#allocation42_spill] sm:$0xff] %v14296_v7  ;;  %vm9642_vm12 = vcmp.ge.s32.totalorder %v14310_v56, 1  ;;  %v1801_v41 = vsel %vm9426_vm15, %v14315_v37, 0.0  ;;  %v1805_v56 = vsel %vm9432_vm0, %v9353_v46, 0.0  ;;  %v14317_v60 = vand.u32 15, %v14316_v26  ;;  %v14323_v46 = vld [vmem:[#allocation33_spill] sm:$0xff] }
 0x126   : > { %v14312_v0 = vsel %vm9642_vm12, 4294967295, %v14311_v0  ;;  %v14318_v17 = vmov 0  ;;  %v9668_v40 = vpack.c.bf16 %v9587_v31, %v14321_v12  ;;  %v9672_v38 = vpack.c.bf16 %v9595_v35, %v9331_v8  ;;  %v14330_v35 = vld [vmem:[#allocation46_spill] sm:$0xff]  ;;  %v14374_v7 = vld [vmem:[#allocation45_spill] sm:$0xff] }
 0x127   : > { %14313 = vst [vmem:[#allocation3_spill] sm:$0xff] %v14312_v0  ;;  %vm9660_vm13 = vcmp.ge.s32.totalorder %v14317_v60, 1  ;;  %v9675_v37 = vadd.f32 %v14322_v16, %v1813_v11  ;;  %v1829_v26 = vadd.f32 %v1797_v30, %v14323_v46  ;;  %v14324_v60 = vld [vmem:[#allocation9_spill] sm:$0xff]  ;;  %v14326_v34 = vmov 0  ;;  %v14331_v16 = vld [vmem:[#allocation10_spill] sm:$0xff] }
 0x128   : > { %v14319_v17 = vsel %vm9660_vm13, 4294967295, %v14318_v17  ;;  %v14325_v63 = vand.u32 15, %v14324_v60  ;;  %v9685_v9 = vadd.f32 %v9274_v62, %v1817_v18  ;;  %v1833_v31 = vadd.f32 %v1801_v41, %v14329_v20  ;;  %v14336_v46 = vld [vmem:[#allocation29_spill] sm:$0xff]  ;;  %v14337_v62 = vld [vmem:[#allocation75_spill] sm:$0xff]  ;;  %v14338_v18 = vld [vmem:[#allocation100_spill] sm:$0xff]  ;;  %2514 = vrot.lane.b32.xlu0 %v9668_v40, %s8582_s18 }
 0x129   : > { %14320 = vst [vmem:[#allocation27_spill] sm:$0xff] %v14319_v17  ;;  %v1837_v12 = vadd.f32 %v1805_v56, %v9255_v6  ;;  %v1973_v11 = vsel %vm9457_vm1, %v14330_v35, 0.0  ;;  %v14332_v8 = vand.u32 15, %v14331_v16  ;;  %v14333_v30 = vmov 0  ;;  %v14339_v35 = vld [vmem:[#allocation38_spill] sm:$0xff]  ;;  %v14340_v41 = vld [vmem:[#allocation64_spill] sm:$0xff] }
 0x12a   : > { %vm9680_vm0 = vcmp.ge.s32.totalorder %v14325_v63, 1  ;;  %v9698_v63 = vadd.f32 %v1892_v50, %v1821_v14  ;;  %v2005_v60 = vadd.f32 %v1973_v11, %v14336_v46  ;;  %v1977_v20 = vsel %vm9476_vm7, %v14337_v62, 0.0  ;;  %v14341_v50 = vld [vmem:[#allocation89_spill] sm:$0xff]  ;;  %v14342_v16 = vld [vmem:[#allocation11_spill] sm:$0xff]  ;;  %v14400_v0 = vld [vmem:[#allocation26_spill] sm:$0xff] }
 0x12b   : > { %v14327_v34 = vsel %vm9680_vm0, 4294967295, %v14326_v34  ;;  %vm9694_vm15 = vcmp.ge.s32.totalorder %v14332_v8, 1  ;;  %v1981_v6 = vsel %vm9482_vm8, %v14338_v18, 0.0  ;;  %v9710_v8 = vadd.f32 %v14339_v35, %v1825_v3  ;;  %v14347_v18 = vld [vmem:[#allocation54_spill] sm:$0xff]  ;;  %v14348_v35 = vld [vmem:[#allocation83_spill] sm:$0xff]  ;;  %v14376_v57 = vld [vmem:[#allocation65_spill] sm:$0xff] }
 0x12c   : > { %14328 = vst [vmem:[#allocation51_spill] sm:$0xff] %v14327_v34  ;;  %v14334_v30 = vsel %vm9694_vm15, 4294967295, %v14333_v30  ;;  %v9713_v56 = vadd.f32 %v14340_v41, %v1829_v26  ;;  %v9716_v14 = vadd.f32 %v14341_v50, %v1833_v31  ;;  %v9718_v11 = vadd.f32 %v1876_v4, %v1837_v12  ;;  %v14349_v41 = vld [vmem:[#allocation37_spill] sm:$0xff]  ;;  %v14350_v31 = vld [vmem:[#allocation50_spill] sm:$0xff]  ;;  %v14351_v50 = vld [vmem:[#allocation36_spill] sm:$0xff]  ;;  %2518 = vrot.lane.b32.xlu0 %v9672_v38, %s8582_s18 }
 0x12d   : > { %14335 = vst [vmem:[#allocation4_spill] sm:$0xff] %v14334_v30  ;;  %v14343_v46 = vand.u32 15, %v14342_v16  ;;  %v14344_v62 = vmov 0  ;;  %v9729_v3 = vadd.f32 %v1977_v20, %v14347_v18  ;;  %v9732_v26 = vadd.f32 %v1981_v6, %v14348_v35  ;;  %v14354_v6 = vld [vmem:[#allocation78_spill] sm:$0xff]  ;;  %v14379_v29 = vld [vmem:[#allocation13_spill] sm:$0xff] }
 0x12e   : > { %v1987_v4 = vsel %vm9516_vm2, %v14349_v41, 0.0  ;;  %v1989_v12 = vsel %vm9522_vm3, %v14350_v31, 0.0  ;;  %v9741_v16 = vadd.f32 %v2005_v60, %v14351_v50  ;;  %v1991_v20 = vsel %vm9545_vm6, %v14353_v25, 0.0  ;;  %v14355_v35 = vld [vmem:[#allocation34_spill] sm:$0xff]  ;;  %v14360_v25 = vld [vmem:[#allocation57_spill] sm:$0xff] }
 0x12f   : > { %vm9722_vm1 = vcmp.ge.s32.totalorder %v14343_v46, 1  ;;  %v14352_v46 = vld [vmem:[#allocation66_spill] sm:$0xff]  ;;  %v1993_v18 = vsel %vm9551_vm9, %v14354_v6, 0.0  ;;  %v9753_v41 = vadd.f32 %v1987_v4, %v14355_v35  ;;  %v9756_v2 = vadd.f32 %v1989_v12, %v14356_v19  ;;  %v14361_v6 = vld [vmem:[#allocation91_spill] sm:$0xff]  ;;  %v14363_v4 = vld [vmem:[#allocation101_spill] sm:$0xff] }
 0x130   : > { %v14345_v62 = vsel %vm9722_vm1, 4294967295, %v14344_v62  ;;  %v9744_v22 = vadd.f32 %v14352_v46, %v2005_v60  ;;  %v14357_v31 = vld [vmem:[#allocation62_spill] sm:$0xff]  ;;  %vm14359_vm3 = vnez %v14280_v42  ;;  %v9767_v10 = vadd.f32 %v1993_v18, %v14360_v25  ;;  %v14365_v12 = vld [vmem:[#allocation15_spill] sm:$0xff] }
 0x131   : > { %14346 = vst [vmem:[#allocation47_spill] sm:$0xff] %v14345_v62  ;;  %v9759_v50 = vadd.f32 %v1991_v20, %v14357_v31  ;;  %v1995_v60 = vsel %vm14359_vm3, %v14358_v54, 0.0  ;;  %vm14364_vm9 = vnez %v14288_v13  ;;  %v14366_v20 = vrot.slane %v14365_v12, 7  ;;  %v14367_v35 = vld [vmem:[#allocation19_spill] sm:$0xff] }
 0x132   : > { %v9770_v32 = vadd.f32 %v1995_v60, %v14361_v6  ;;  %v1997_v19 = vsel %vm14364_vm9, %v14363_v4, 0.0  ;;  %v14368_v31 = vrot.slane %v14367_v35, 7  ;;  %vm14369_vm6 = vcmp.lt.s32.totalorder %v8713_v23, 1  ;;  %v14370_v6 = vld [vmem:[#allocation23_spill] sm:$0xff]  ;;  %v14372_v35 = vld [vmem:[#allocation40_spill] sm:$0xff] }
 0x133   : > { %v1999_v18 = vsel %vm9618_vm5, %v9537_v5, 0.0  ;;  %v1777_v25 = vsel %vm9630_vm10, %v9465_v33, 0.0  ;;  %v14371_v4 = vrot.slane %v14370_v6, 7  ;;  %v14373_v13 = vrot.slane %v14372_v35, 7  ;;  %vm14378_vm5 = vmmov %vm14369_vm6 }
 0x134   : > { %14362 = vst [vmem:[#allocation77_spill] sm:$0xff] %v9770_v32  ;;  %v1710_v54 = vsel %vm14369_vm6, %v14368_v31, %v14366_v20  ;;  %v1809_v42 = vadd.f32 %v1777_v25, %v8846_v21  ;;  %v14377_v47 = vrot.slane %v14376_v57, 7  ;;  %v14380_v32 = vand.u32 15, %v14379_v29  ;;  %v14389_v25 = vld [vmem:[#allocation73_spill] sm:$0xff]  ;;  %v14392_v29 = vld [vmem:[#allocation16_spill] sm:$0xff]  ;;  %vm14395_vm3 = vmmov %vm14378_vm5 }
 0x135   : > { %v1779_v60 = vsel %vm9624_vm4, %v1710_v54, 0.0  ;;  %v1706_v20 = vsel %vm14369_vm6, %v14373_v13, %v14371_v4  ;;  %v14375_v54 = vrot.slane %v14374_v7, 7  ;;  %v14381_v35 = vmov 0  ;;  %v14384_v13 = vld [vmem:[#allocation14_spill] sm:$0xff] }
 0x136   : > { %v1811_v31 = vadd.f32 %v14365_v12, %v1779_v60  ;;  %v1783_v5 = vsel %vm9642_vm12, %v1706_v20, 0.0  ;;  %vm9809_vm9 = vcmp.ge.s32.totalorder %v14380_v32, 1  ;;  %v14385_v12 = vand.u32 15, %v14384_v13 }
 0x137   : > { %v1702_v33 = vsel %vm14378_vm5, %v14377_v47, %v14375_v54  ;;  %v14382_v35 = vsel %vm9809_vm9, 4294967295, %v14381_v35  ;;  %v14386_v21 = vmov 0  ;;  %v1815_v60 = vadd.f32 %v14370_v6, %v1783_v5  ;;  %v14396_v6 = vld [vmem:[#allocation24_spill] sm:$0xff] }
 0x138   : > { %14383 = vst [vmem:[#allocation8_spill] sm:$0xff] %v14382_v35  ;;  %vm9815_vm6 = vcmp.ge.s32.totalorder %v14385_v12, 1  ;;  %v1787_v57 = vsel %vm9660_vm13, %v1702_v33, 0.0  ;;  %v14390_v4 = vrot.slane %v14389_v25, 7  ;;  %v14391_v47 = vrot.slane %v9349_v28, 7  ;;  %v14397_v33 = vld [vmem:[#allocation32_spill] sm:$0xff] }
 0x139   : > { %v14387_v21 = vsel %vm9815_vm6, 4294967295, %v14386_v21  ;;  %v14393_v20 = vrot.slane %v14392_v29, 7  ;;  %v14394_v54 = vrot.slane %v8899_v45, 7  ;;  %v2004_v5 = vadd.f32 %v14396_v6, %v1811_v31  ;;  %v14399_v45 = vld [vmem:[#allocation55_spill] sm:$0xff]  ;;  %v14403_v6 = vld [vmem:[#allocation80_spill] sm:$0xff] }
 0x13a   : > { %14388 = vst [vmem:[#allocation59_spill] sm:$0xff] %v14387_v21  ;;  %v1698_v32 = vsel %vm14378_vm5, %v14391_v47, %v14390_v4  ;;  %v2002_v12 = vadd.f32 %v14397_v33, %v1809_v42  ;;  %v1819_v17 = vadd.f32 %v14374_v7, %v1787_v57  ;;  %v14398_v4 = vld [vmem:[#allocation60_spill] sm:$0xff]  ;;  %v2008_v47 = vadd.f32 %v14399_v45, %v1815_v60  ;;  %v14404_v60 = vld [vmem:[#allocation87_spill] sm:$0xff]  ;;  %vm14414_vm5 = vmmov %vm14395_vm3 }
 0x13b   : > { %v1694_v13 = vsel %vm14395_vm3, %v14394_v54, %v14393_v20  ;;  %v1791_v28 = vsel %vm9680_vm0, %v1698_v32, 0.0  ;;  %4233 = vrot.lane.b32.xlu1 %v14398_v4, %s8583_s19  ;;  %v14401_v31 = vrot.slane %v14400_v0, 7  ;;  %v14402_v42 = vrot.slane %v9009_v43, 7 }
 0x13c   : > { %v1823_v20 = vadd.f32 %v14389_v25, %v1791_v28  ;;  %v1795_v54 = vsel %vm9694_vm15, %v1694_v13, 0.0  ;;  %v2134_v57 = vadd.f32 %v9675_v37, %v2004_v5  ;;  %v2132_v32 = vadd.f32 %v2004_v5, %v2002_v12  ;;  %v14405_v13 = vld [vmem:[#allocation106_spill] sm:$0xff] }
 0x13d   : > { %v1690_v7 = vsel %vm14395_vm3, %v14402_v42, %v14401_v31  ;;  %v2012_v33 = vadd.f32 %v14403_v6, %v1819_v17  ;;  %v1827_v4 = vadd.f32 %v14392_v29, %v1795_v54  ;;  %v9857_v45 = vadd.f32 %v1997_v19, %v14404_v60  ;;  %v14406_v31 = vld [vmem:[#allocation44_spill] sm:$0xff]  ;;  %v14407_v12 = vld [vmem:[#allocation82_spill] sm:$0xff] }
 0x13e   : > { %v2138_v25 = vadd.f32 %v9685_v9, %v2008_v47  ;;  %v2016_v28 = vadd.f32 %v14405_v13, %v1823_v20  ;;  %v1799_v43 = vsel %vm9722_vm1, %v1690_v7, 0.0  ;;  %4231 = vrot.lane.b32.xlu0 %v14406_v31, %s8583_s19  ;;  %v9866_v5 = vadd.f32 %v1999_v18, %v9531_v24  ;;  %v14408_v18 = vld [vmem:[#allocation31_spill] sm:$0xff]  ;;  %v14409_v13 = vld [vmem:[#allocation48_spill] sm:$0xff] }
 0x13f   : > { %v2260_v17 = vadd.f32 %v2132_v32, %v9675_v37  ;;  %v2136_v19 = vadd.f32 %v2008_v47, %v9675_v37  ;;  %v2262_v29 = vadd.f32 %v2134_v57, %v2008_v47  ;;  %4237 = vrot.lane.b32.xlu1 %v14407_v12, %s8583_s19  ;;  %v2290_v20 = vmul.f32 0.11111111, %v2132_v32 }
 0x140   : > { %v2142_v54 = vadd.f32 %v9698_v63, %v2012_v33  ;;  %v2266_v42 = vadd.f32 %v2138_v25, %v2012_v33  ;;  %v2146_v7 = vadd.f32 %v9710_v8, %v2016_v28  ;;  %v9875_v6 = vadd.f32 %v2012_v33, %v9685_v9 }
 0x141   : > { %v9878_v24 = vadd.f32 %v2016_v28, %v9698_v63  ;;  %v2020_v60 = vadd.f32 %v14408_v18, %v1827_v4  ;;  %v1831_v37 = vadd.f32 %v14400_v0, %v1799_v43  ;;  %v2292_v47 = vmul.f32 0.11111111, %v2260_v17  ;;  %v14415_v4 = vld [vmem:[#allocation76_spill] sm:$0xff]  ;;  %v14416_v17 = vld [vmem:[#allocation58_spill] sm:$0xff] }
 0x142   : > { %v2270_v57 = vadd.f32 %v2142_v54, %v2016_v28  ;;  %v14410_v32 = vrot.slane %v14409_v13, 7  ;;  %v14411_v31 = vrot.slane %v9150_v1, 7  ;;  %v14412_v33 = vrot.slane %v9205_v51, 7  ;;  %4235 = vrot.lane.b32.xlu0 %v14415_v4, %s8583_s19  ;;  %v14417_v1 = vld [vmem:[#allocation94_spill] sm:$0xff] }
 0x143   : > { %v14413_v12 = vrot.slane %v9370_v27, 7  ;;  %v2294_v0 = vmul.f32 0.11111111, %v2262_v29  ;;  %v2150_v28 = vadd.f32 %v9713_v56, %v2020_v60  ;;  %v2274_v43 = vadd.f32 %v2146_v7, %v2020_v60  ;;  %4241 = vrot.lane.b32.xlu1 %v14417_v1, %s8583_s19 }
 0x144   : > { %v1686_v25 = vsel %vm14395_vm3, %v14411_v31, %v14410_v32  ;;  %v2024_v54 = vadd.f32 %v14416_v17, %v1831_v37  ;;  %v2298_v18 = vmul.f32 0.11111111, %v2266_v42  ;;  %v2291_v31 = vmul.f32 0.11111111, %v9741_v16 }
 0x145   : > { %v1682_v62 = vsel %vm14414_vm5, %v14413_v12, %v14412_v33  ;;  %v1803_v32 = vsel %vm9809_vm9, %v1686_v25, 0.0  ;;  %v9911_v29 = vmul.f32 0.11111111, %v2270_v57  ;;  %v9914_v7 = vadd.f32 %v2020_v60, %v9710_v8  ;;  %v14418_v57 = vld [vmem:[#allocation99_spill] sm:$0xff] }
 0x146   : > { %v1807_v27 = vsel %vm9815_vm6, %v1682_v62, 0.0  ;;  %v2154_v42 = vadd.f32 %v9716_v14, %v2024_v54  ;;  %v2278_v37 = vadd.f32 %v2150_v28, %v2024_v54  ;;  %v1835_v25 = vadd.f32 %v14409_v13, %v1803_v32  ;;  %4239 = vrot.lane.b32.xlu0 %v14418_v57, %s8583_s19  ;;  %v14419_v13 = vld [vmem:[#allocation84_spill] sm:$0xff] }
 0x147   : > { %v1839_v62 = vadd.f32 %v9205_v51, %v1807_v27  ;;  %v2329_v33 = vadd.f32 %v8838_v15, %v2291_v31  ;;  %v2330_v12 = vadd.f32 %v8838_v15, %v2292_v47  ;;  %v9923_v60 = vmul.f32 0.11111111, %v2274_v43  ;;  %4245 = vrot.lane.b32.xlu1 %v9449_v49, %s8583_s19  ;;  %v14424_v49 = vld [vmem:[#allocation17_spill] sm:$0xff]  ;;  %v14427_v27 = vld [vmem:[#allocation20_spill] sm:$0xff] }
 0x148   : > { %v2328_v4 = vadd.f32 %v8838_v15, %v2290_v20  ;;  %v2261_v28 = vadd.f32 %v9741_v16, %v14352_v46  ;;  %v2263_v51 = vadd.f32 %v9744_v22, %v9729_v3  ;;  %v2028_v17 = vadd.f32 %v14419_v13, %v1835_v25  ;;  %v14422_v22 = vld [vmem:[#allocation39_spill] sm:$0xff]  ;;  %v14431_v25 = vld [vmem:[#allocation90_spill] sm:$0xff] }
 0x149   : > { %v2032_v47 = vadd.f32 %v9492_v44, %v1839_v62  ;;  %vm14420_vm5 = vcmask 64512   ;;  %v2264_v20 = vadd.f32 %v2136_v19, %v9685_v9  ;;  %v2332_v16 = vadd.f32 %v8838_v15, %v2294_v0 }
 0x14a   : > { %2361 = vst.msk [vmem:[%s9909_s23 + $0x8] sm:$0xff] %vm14420_vm5, %v2329_v33  ;;  %vm14421_vm3 = vmmov %vm14420_vm5  ;;  %v9941_v43 = vadd.f32 %v2024_v54, %v9713_v56  ;;  %vm14423_vm2 = vcmask 130112   ;;  %v2293_v44 = vmul.f32 0.11111111, %v2261_v28  ;;  %v2295_v1 = vmul.f32 0.11111111, %v2263_v51  ;;  %4243 = vrot.lane.b32.xlu0 %v9504_v48, %s8583_s19 }
 0x14b   : > { %2362 = vst.msk [vmem:[%s9909_s23 + $0x10] sm:$0xff] %vm14421_vm3, %v2330_v12  ;;  %vm14425_vm10 = vmmov %vm14423_vm2  ;;  %v2137_v32 = vadd.f32 %v9729_v3, %v14352_v46  ;;  %v9953_v9 = vmul.f32 0.11111111, %v2278_v37  ;;  %v2282_v19 = vadd.f32 %v2154_v42, %v2028_v17  ;;  %v2158_v0 = vadd.f32 %v9718_v11, %v2028_v17  ;;  %v14429_v42 = vld [vmem:[#allocation69_spill] sm:$0xff]  ;;  %4249 = vrot.lane.b32.xlu1 %v9508_v52, %s8583_s19 }
 0x14c   : > { %2426 = vst.msk [vmem:[%s9909_s23 + $0x8] sm:$0xff] %vm14423_vm2, %v14422_v22  ;;  %vm14426_vm8 = vmmov %vm14421_vm3  ;;  %v2160_v54 = vadd.f32 %v2032_v47, %v9718_v11  ;;  %v2331_v31 = vadd.f32 %v8838_v15, %v2293_v44  ;;  %v2333_v46 = vadd.f32 %v8838_v15, %v2295_v1  ;;  %v2296_v37 = vmul.f32 0.11111111, %v2264_v20  ;;  %v14440_v44 = vld [vmem:[#allocation71_spill] sm:$0xff] }
 0x14d   : > { %2427 = vst.msk [vmem:[%s9909_s23 + $0x10] sm:$0xff] %vm14425_vm10, %v14424_v49  ;;  %vm14428_vm10 = vmmov %vm14421_vm3  ;;  %v2265_v62 = vadd.f32 %v2137_v32, %v14431_v25  ;;  %v9973_v33 = vadd.f32 %v2028_v17, %v9716_v14  ;;  %v9975_v12 = vmul.f32 0.11111111, %v2282_v19  ;;  %v2286_v48 = vadd.f32 %v2158_v0, %v2032_v47  ;;  %v14434_v47 = vld [vmem:[#allocation70_spill] sm:$0xff]  ;;  %v14438_v49 = vld [vmem:[#allocation35_spill] sm:$0xff] }
 0x14e   : > { %2360 = vst.msk [vmem:[%s9909_s23] sm:$0xff] %vm14426_vm8, %v2328_v4  ;;  %vm14430_vm8 = vmmov %vm14423_vm2  ;;  %v2139_v57 = vadd.f32 %v14431_v25, %v9729_v3  ;;  %v2334_v4 = vadd.f32 %v8838_v15, %v2296_v37  ;;  %v2268_v52 = vadd.f32 %v9875_v6, %v9698_v63  ;;  %v2336_v51 = vadd.f32 %v8838_v15, %v2298_v18  ;;  %v14433_v3 = vld [vmem:[#allocation22_spill] sm:$0xff]  ;;  %v14442_v0 = vld [vmem:[#allocation52_spill] sm:$0xff] }
 0x14f   : > { %2425 = vst.msk [vmem:[%s9909_s23] sm:$0xff] %vm14423_vm2, %v14427_v27  ;;  %vm14432_vm5 = vmmov %vm14421_vm3  ;;  %v2297_v28 = vmul.f32 0.11111111, %v2265_v62  ;;  %v9987_v13 = vmul.f32 0.11111111, %v2286_v48  ;;  %v2141_v63 = vadd.f32 %v9732_v26, %v14431_v25  ;;  %4247 = vrot.lane.b32.xlu0 %v9563_v55, %s8583_s19  ;;  %v2272_v22 = vadd.f32 %v9878_v24, %v9710_v8  ;;  %4253 = vrot.lane.b32.xlu1 %v9567_v36, %s8583_s19 }
 0x150   : > { %2364 = vst.msk [vmem:[%s9909_s23 + $0x20] sm:$0xff] %vm14428_vm10, %v2332_v16  ;;  %v9989_v17 = vmul.f32 0.11111111, %v2160_v54  ;;  %vm14435_vm10 = vmmov %vm14423_vm2  ;;  %v2267_v20 = vadd.f32 %v2139_v57, %v9732_v26  ;;  %v2300_v18 = vmul.f32 0.11111111, %v2268_v52  ;;  %v2143_v16 = vadd.f32 %v9500_v58, %v9732_v26  ;;  %v14458_v52 = vld [vmem:[#allocation79_spill] sm:$0xff] }
 0x151   : > { %2429 = vst.msk [vmem:[%s9909_s23 + $0x20] sm:$0xff] %vm14430_vm8, %v14429_v42  ;;  %vm14436_vm8 = vmmov %vm14421_vm3  ;;  %v2335_v6 = vadd.f32 %v8838_v15, %v2297_v28  ;;  %v2269_v1 = vadd.f32 %v2141_v63, %v9500_v58  ;;  %v2340_v26 = vadd.f32 %v8838_v15, %v9911_v29  ;;  %v2273_v8 = vadd.f32 %v9581_v61, %v9753_v41  ;;  %v14456_v28 = vld [vmem:[#allocation21_spill] sm:$0xff]  ;;  %v14465_v63 = vld [vmem:[#allocation112_spill] sm:$0xff] }
 0x152   : > { %2363 = vst.msk [vmem:[%s9909_s23 + $0x18] sm:$0xff] %vm14432_vm5, %v2331_v31  ;;  %vm14437_vm5 = vmmov %vm14421_vm3  ;;  %v2299_v55 = vmul.f32 0.11111111, %v2267_v20  ;;  %v2338_v36 = vadd.f32 %v8838_v15, %v2300_v18  ;;  %v2271_v24 = vadd.f32 %v2143_v16, %v9486_v53  ;;  %v2304_v32 = vmul.f32 0.11111111, %v2272_v22  ;;  %v14445_v31 = vld [vmem:[#allocation97_spill] sm:$0xff] }
 0x153   : > { %2365 = vst.msk [vmem:[%s9909_s23 + $0x28] sm:$0xff] %vm14421_vm3, %v2333_v46  ;;  %vm14439_vm3 = vmmov %vm14423_vm2  ;;  %v2147_v19 = vadd.f32 %v9753_v41, %v9486_v53  ;;  %v2301_v29 = vmul.f32 0.11111111, %v2269_v1  ;;  %v2305_v61 = vmul.f32 0.11111111, %v2273_v8  ;;  %v2276_v54 = vadd.f32 %v9914_v7, %v9713_v56  ;;  %4251 = vrot.lane.b32.xlu0 %v9605_v39, %s8583_s19  ;;  %4257 = vrot.lane.b32.xlu1 %v9571_v59, %s8583_s19  ;;  %v14447_v39 = vld [vmem:[#allocation67_spill] sm:$0xff] }
 0x154   : > { %2428 = vst.msk [vmem:[%s9909_s23 + $0x18] sm:$0xff] %vm14423_vm2, %v14433_v3  ;;  %v2337_v58 = vadd.f32 %v8838_v15, %v2299_v55  ;;  %v2303_v53 = vmul.f32 0.11111111, %v2271_v24  ;;  %v2342_v27 = vadd.f32 %v8838_v15, %v2304_v32  ;;  %v2344_v37 = vadd.f32 %v8838_v15, %v9923_v60  ;;  %v14449_v60 = vld [vmem:[#allocation95_spill] sm:$0xff]  ;;  %v14470_v22 = vld [vmem:[#allocation18_spill] sm:$0xff] }
 0x155   : > { %2430 = vst.msk [vmem:[%s9909_s23 + $0x28] sm:$0xff] %vm14435_vm10, %v14434_v47  ;;  %vm14441_vm10 = vmmov %vm14437_vm5  ;;  %v2275_v46 = vadd.f32 %v2147_v19, %v9756_v2  ;;  %v2339_v56 = vadd.f32 %v8838_v15, %v2301_v29  ;;  %v2343_v7 = vadd.f32 %v8838_v15, %v2305_v61  ;;  %v2308_v42 = vmul.f32 0.11111111, %v2276_v54  ;;  %v14476_v19 = vld [vmem:[#allocation72_spill] sm:$0xff] }
 0x156   : > { %2366 = vst.msk [vmem:[%s9909_s23 + $0x30] sm:$0xff] %vm14436_vm8, %v2334_v4  ;;  %vm14443_vm8 = vmmov %vm14423_vm2  ;;  %v2149_v25 = vadd.f32 %v9756_v2, %v9753_v41  ;;  %v2341_v59 = vadd.f32 %v8838_v15, %v2303_v53  ;;  %v2151_v48 = vadd.f32 %v9759_v50, %v9756_v2  ;;  %v2280_v57 = vadd.f32 %v9941_v43, %v9716_v14  ;;  %v14453_v41 = vld [vmem:[#allocation92_spill] sm:$0xff] }
 0x157   : > { %2368 = vst.msk [vmem:[%s9909_s23 + $0x40] sm:$0xff] %vm14437_vm5, %v2336_v51  ;;  %2372 = vst.msk [vmem:[%s9909_s23 + $0x60] sm:$0xff] %vm14437_vm5, %v2340_v26  ;;  %v2307_v62 = vmul.f32 0.11111111, %v2275_v46  ;;  %v2346_v4 = vadd.f32 %v8838_v15, %v2308_v42  ;;  %v2348_v14 = vadd.f32 %v8838_v15, %v9953_v9  ;;  %v2153_v43 = vadd.f32 %v9767_v10, %v9759_v50  ;;  %v14461_v51 = vld [vmem:[#allocation102_spill] sm:$0xff] }
 0x158   : > { %2431 = vst.msk [vmem:[%s9909_s23 + $0x30] sm:$0xff] %vm14439_vm3, %v14438_v49  ;;  %vm14444_vm3 = vmmov %vm14437_vm5  ;;  %v2277_v2 = vadd.f32 %v2149_v25, %v9759_v50  ;;  %4255 = vrot.lane.b32.xlu0 %v9668_v40, %s8583_s19  ;;  %v2279_v9 = vadd.f32 %v2151_v48, %v9767_v10  ;;  %v2312_v47 = vmul.f32 0.11111111, %v2280_v57  ;;  %v14463_v50 = vld [vmem:[#allocation77_spill] sm:$0xff]  ;;  %v14464_v40 = vld [vmem:[#allocation124_spill] sm:$0xff]  ;;  %v2284_v18 = vadd.f32 %v9973_v33, %v9718_v11 }
 0x159   : > { %2433 = vst.msk [vmem:[%s9909_s23 + $0x40] sm:$0xff] %vm14423_vm2, %v14440_v44  ;;  %2437 = vst.msk [vmem:[%s9909_s23 + $0x60] sm:$0xff] %vm14423_vm2, %v14445_v31  ;;  %v2345_v3 = vadd.f32 %v8838_v15, %v2307_v62  ;;  %v2155_v20 = vadd.f32 %v14463_v50, %v9767_v10  ;;  %4261 = vrot.lane.b32.xlu1 %v14464_v40, %s8583_s19  ;;  %v2281_v15 = vadd.f32 %v2153_v43, %v14463_v50  ;;  %v8569_v10 = vld [vmem:[%s13734_s2] ss:$0 sm:$0xff]  ;;  %v14472_v44 = vld [vmem:[#allocation43_spill] sm:$0xff] }
 0x15a   : > { %2367 = vst.msk [vmem:[%s9909_s23 + $0x38] sm:$0xff] %vm14441_vm10, %v2335_v6  ;;  %vm14446_vm10 = vmmov %vm14444_vm3  ;;  %v2309_v6 = vmul.f32 0.11111111, %v2277_v2  ;;  %v2352_v16 = vadd.f32 %v8569_v10, %v9975_v12  ;;  %v2311_v49 = vmul.f32 0.11111111, %v2279_v9  ;;  %v2350_v55 = vadd.f32 %v8569_v10, %v2312_v47  ;;  %v14473_v12 = vld [vmem:[#allocation117_spill] sm:$0xff] }
 0x15b   : > { %2432 = vst.msk [vmem:[%s9909_s23 + $0x38] sm:$0xff] %vm14443_vm8, %v14442_v0  ;;  %vm14448_vm8 = vmmov %vm14423_vm2  ;;  %v2283_v11 = vadd.f32 %v2155_v20, %v9857_v45  ;;  %v2157_v33 = vadd.f32 %v9857_v45, %v14463_v50  ;;  %v2313_v26 = vmul.f32 0.11111111, %v2281_v15  ;;  %v2316_v8 = vmul.f32 0.11111111, %v2284_v18  ;;  %v14494_v25 = vld [vmem:[#allocation98_spill] sm:$0xff] }
 0x15c   : > { %2370 = vst.msk [vmem:[%s9909_s23 + $0x50] sm:$0xff] %vm14444_vm3, %v2338_v36  ;;  %vm14450_vm5 = vmmov %vm14423_vm2  ;;  %v2347_v1 = vadd.f32 %v8569_v10, %v2309_v6  ;;  %v2358_v36 = vadd.f32 %v8569_v10, %v9989_v17  ;;  %4259 = vrot.lane.b32.xlu0 %v9672_v38, %s8583_s19  ;;  %v2349_v24 = vadd.f32 %v8569_v10, %v2311_v49  ;;  %v14480_v17 = vld [vmem:[#allocation41_spill] sm:$0xff]  ;;  %v14501_v48 = vld [vmem:[#allocation108_spill] sm:$0xff] }
 0x15d   : > { %2369 = vst.msk [vmem:[%s9909_s23 + $0x48] sm:$0xff] %vm14446_vm10, %v2337_v58  ;;  %vm14451_vm2 = vmmov %vm14444_vm3  ;;  %v2315_v32 = vmul.f32 0.11111111, %v2283_v11  ;;  %v2285_v0 = vadd.f32 %v2157_v33, %v9866_v5  ;;  %v14478_v58 = vld [vmem:[#allocation116_spill] sm:$0xff]  ;;  %v2351_v38 = vadd.f32 %v8569_v10, %v2313_v26  ;;  %v2354_v61 = vadd.f32 %v8569_v10, %v2316_v8  ;;  %v14499_v62 = vld [vmem:[#allocation81_spill] sm:$0xff] }
 0x15e   : > { %2435 = vst.msk [vmem:[%s9909_s23 + $0x50] sm:$0xff] %vm14448_vm8, %v14447_v39  ;;  %vm14452_vm10 = vmmov %vm14451_vm2  ;;  %v2161_v29 = vadd.f32 %v14478_v58, %v9866_v5  ;;  %v2356_v54 = vadd.f32 %v8569_v10, %v9987_v13  ;;  %v2159_v53 = vadd.f32 %v9866_v5, %v9857_v45  ;;  %v14489_v5 = vld [vmem:[#allocation56_spill] sm:$0xff]  ;;  %v10251_v11 = vld [vmem:[%s13736_s4] ss:$0 sm:$0xff] }
 0x15f   : > { %2434 = vst.msk [vmem:[%s9909_s23 + $0x48] sm:$0xff] %vm14450_vm5, %v14449_v60  ;;  %vm14454_vm8 = vmmov %vm14450_vm5  ;;  %v2353_v31 = vadd.f32 %v8569_v10, %v2315_v32  ;;  %v2317_v46 = vmul.f32 0.11111111, %v2285_v0  ;;  %v14492_v13 = vld [vmem:[#allocation68_spill] sm:$0xff]  ;;  %v14495_v60 = vld [vmem:[#allocation123_spill] sm:$0xff] }
 0x160   : > { %2374 = vst.msk [vmem:[%s9909_s23 + $0x70] sm:$0xff] %vm14444_vm3, %v2342_v27  ;;  %vm14455_vm5 = vmmov %vm14451_vm2  ;;  %v14481_v27 = vld [vmem:[#allocation25_spill] sm:$0xff]  ;;  %v2321_v39 = vmul.f32 0.11111111, %v2161_v29  ;;  %v2287_v45 = vadd.f32 %v2159_v53, %v14478_v58  ;;  %4034 = vrot.lane.b32.xlu0 %v10251_v11, %s8584_s15 }
 0x161   : > { %2376 = vst.msk [vmem:[%s9909_s23 + $0x80] sm:$0xff] %vm14451_vm2, %v2344_v37  ;;  %vm14457_vm3 = vmmov %vm14454_vm8  ;;  %v14484_v37 = vld [vmem:[#allocation96_spill] sm:$0xff] }
 0x162   : > { %2371 = vst.msk [vmem:[%s9909_s23 + $0x58] sm:$0xff] %vm14452_vm10, %v2339_v56  ;;  %vm14459_vm2 = vmmov %vm14457_vm3  ;;  %v14486_v56 = vld [vmem:[#allocation120_spill] sm:$0xff]  ;;  %v2359_v42 = vadd.f32 %v8569_v10, %v2321_v39 }
 0x163   : > { %2439 = vst.msk [vmem:[%s9909_s23 + $0x70] sm:$0xff] %vm14454_vm8, %v14453_v41  ;;  %vm14460_vm10 = vmmov %vm14455_vm5  ;;  %v14504_v41 = vld [vmem:[#allocation125_spill] sm:$0xff] }
 0x164   : > { %2375 = vst.msk [vmem:[%s9909_s23 + $0x78] sm:$0xff] %vm14455_vm5, %v2343_v7  ;;  %vm14462_vm8 = vmmov %vm14459_vm2  ;;  %v2355_v7 = vadd.f32 %v8569_v10, %v2317_v46  ;;  %v2495_v9 = vpop.permute.xlu1 %2494 }
 0x165   : > { %2441 = vst.msk [vmem:[%s9909_s23 + $0x80] sm:$0xff] %vm14457_vm3, %v14456_v28  ;;  %vm14466_vm5 = vmmov %vm14459_vm2  ;;  %v8570_v28 = vld [vmem:[%s13737_s5] sm:$0xf] }
 0x166   : > { %2436 = vst.msk [vmem:[%s9909_s23 + $0x58] sm:$0xff] %vm14459_vm2, %v14458_v52  ;;  %vm14467_vm3 = vmmov %vm14460_vm10 }
 0x167   : > { %2373 = vst.msk [vmem:[%s9909_s23 + $0x68] sm:$0xff] %vm14460_vm10, %v2341_v59  ;;  %vm14468_vm2 = vmmov %vm14467_vm3  ;;  %v2319_v59 = vmul.f32 0.11111111, %v2287_v45 }
 0x168   : > { %2440 = vst.msk [vmem:[%s9909_s23 + $0x78] sm:$0xff] %vm14462_vm8, %v14461_v51  ;;  %vm14469_vm10 = vmmov %vm14468_vm2  ;;  %v7737_v51 = vld [vmem:[%s13737_s5 + $0x8] sm:$0xf]  ;;  %v2497_v47 = vpop.permute.xlu1 %2496 }
 0x169   : > { %2438 = vst.msk [vmem:[%s9909_s23 + $0x68] sm:$0xff] %vm14466_vm5, %v14465_v63  ;;  %vm14471_vm8 = vmmov %vm14466_vm5  ;;  %v2357_v57 = vadd.f32 %v8569_v10, %v2319_v59 }
 0x16a   : > { %2378 = vst.msk [vmem:[%s9909_s23 + $0x90] sm:$0xff] %vm14467_vm3, %v2346_v4  ;;  %vm14474_vm3 = vmmov %vm14466_vm5  ;;  %v2491_v4 = vpop.permute.xlu0 %2490 }
 0x16b   : > { %2380 = vst.msk [vmem:[%s9909_s23 + $0xa0] sm:$0xff] %vm14468_vm2, %v2348_v14  ;;  %2384 = vst.msk [vmem:[%s9909_s23 + $0xc0] sm:$0xff] %vm14468_vm2, %v2352_v16  ;;  %v14509_v14 = vld [vmem:[#allocation49_spill] sm:$0xff] }
 0x16c   : > { %2377 = vst.msk [vmem:[%s9909_s23 + $0x88] sm:$0xff] %vm14469_vm10, %v2345_v3  ;;  %vm14475_vm10 = vmmov %vm14468_vm2  ;;  %v7720_v3 = vld [vmem:[%s13737_s5 + $0x4] sm:$0xf] }
 0x16d   : > { %2443 = vst.msk [vmem:[%s9909_s23 + $0x90] sm:$0xff] %vm14471_vm8, %v14470_v22  ;;  %vm14477_vm8 = vmmov %vm14474_vm3 }
 0x16e   : > { %2445 = vst.msk [vmem:[%s9909_s23 + $0xa0] sm:$0xff] %vm14466_vm5, %v14472_v44  ;;  %vm14479_vm5 = vmmov %vm14468_vm2  ;;  %v2493_v52 = vpop.permute.xlu0 %2492 }
 0x16f   : > { %2442 = vst.msk [vmem:[%s9909_s23 + $0x88] sm:$0xff] %vm14474_vm3, %v14473_v12  ;;  %vm14488_vm7 = vmmov %vm14468_vm2  ;;  %v7856_v12 = vld [vmem:[%s13742_s10] ss:$0 sm:$0xff] }
 0x170   : > { %2382 = vst.msk [vmem:[%s9909_s23 + $0xb0] sm:$0xff] %vm14475_vm10, %v2350_v55  ;;  %vm14482_vm10 = vmmov %vm14474_vm3  ;;  %7359 = vrot.lane.b32.xlu1 %v7856_v12, %s8584_s15 }
 0x171   : > { %2449 = vst.msk [vmem:[%s9909_s23 + $0xc0] sm:$0xff] %vm14477_vm8, %v14476_v19  ;;  %vm14483_vm8 = vmmov %vm14468_vm2  ;;  %v2501_v20 = vpop.permute.xlu1 %2500 }
 0x172   : > { %2379 = vst.msk [vmem:[%s9909_s23 + $0x98] sm:$0xff] %vm14479_vm5, %v2347_v1  ;;  %vm14485_vm5 = vmmov %vm14474_vm3 }
 0x173   : > { %2447 = vst.msk [vmem:[%s9909_s23 + $0xb0] sm:$0xff] %vm14474_vm3, %v14480_v17  ;;  %vm14493_vm6 = vmmov %vm14474_vm3  ;;  %v2499_v50 = vpop.permute.xlu0 %2498 }
 0x174   : > { %2390 = vst.msk [vmem:[%s9909_s23 + $0xf0] sm:$0xff] %vm14468_vm2, %v2358_v36  ;;  %2383 = vst.msk [vmem:[%s9909_s23 + $0xb8] sm:$0xff] %vm14468_vm2, %v2351_v38 }
 0x175   : > { %2444 = vst.msk [vmem:[%s9909_s23 + $0x98] sm:$0xff] %vm14482_vm10, %v14481_v27  ;;  %vm14487_vm10 = vmmov %vm14468_vm2 }
 0x176   : > { %2381 = vst.msk [vmem:[%s9909_s23 + $0xa8] sm:$0xff] %vm14483_vm8, %v2349_v24  ;;  %vm14490_vm8 = vmmov %vm14474_vm3 }
 0x177   : > { %2455 = vst.msk [vmem:[%s9909_s23 + $0xf0] sm:$0xff] %vm14485_vm5, %v14484_v37  ;;  %vm14491_vm5 = vmmov %vm14468_vm2 }
 0x178   : > { %2446 = vst.msk [vmem:[%s9909_s23 + $0xa8] sm:$0xff] %vm14474_vm3, %v14486_v56  ;;  %vm14496_vm2 = vmmov %vm14474_vm3 }
 0x179   : > { %2386 = vst.msk [vmem:[%s9909_s23 + $0xd0] sm:$0xff] %vm14487_vm10, %v2354_v61  ;;  %vm14498_vm10 = vmmov %vm14491_vm5 }
 0x17a   : > { %2388 = vst.msk [vmem:[%s9909_s23 + $0xe0] sm:$0xff] %vm14488_vm7, %v2356_v54  ;;  %vm14497_vm7 = vmmov %vm14491_vm5 }
 0x17b   : > { %2448 = vst.msk [vmem:[%s9909_s23 + $0xb8] sm:$0xff] %vm14490_vm8, %v14489_v5  ;;  %vm14500_vm8 = vmmov %vm14496_vm2 }
 0x17c   : > { %2385 = vst.msk [vmem:[%s9909_s23 + $0xc8] sm:$0xff] %vm14491_vm5, %v2353_v31  ;;  %vm14502_vm5 = vmmov %vm14496_vm2  ;;  %v5118_v31 = vld [vmem:[%s13739_s7] sm:$0xf] }
 0x17d   : > { %2451 = vst.msk [vmem:[%s9909_s23 + $0xd0] sm:$0xff] %vm14493_vm6, %v14492_v13  ;;  %vm14503_vm6 = vmmov %vm14497_vm7 }
 0x17e   : > { %2453 = vst.msk [vmem:[%s9909_s23 + $0xe0] sm:$0xff] %vm14474_vm3, %v14494_v25  ;;  %vm14505_vm9 = vmmov %vm14496_vm2 }
 0x17f   : > { %2450 = vst.msk [vmem:[%s9909_s23 + $0xc8] sm:$0xff] %vm14496_vm2, %v14495_v60  ;;  %vm14506_vm3 = vmmov %vm14503_vm6 }
 0x180   : > { %2387 = vst.msk [vmem:[%s9909_s23 + $0xd8] sm:$0xff] %vm14497_vm7, %v2355_v7  ;;  %8116 = vmatprep.mubr.msk.bf16.mxu1 %vm14506_vm3, %v2491_v4  ;;  %vm14507_vm2 = vmmov %vm14506_vm3  ;;  %vm14508_vm7 = vcmask 1043456  }
 0x181   : > { %2391 = vst.msk [vmem:[%s9909_s23 + $0xf8] sm:$0xff] %vm14498_vm10, %v2359_v42  ;;  %8150 = vmatprep.mubr.msk.bf16.mxu0 %vm14507_vm2, %v2491_v4  ;;  %v4312_v2 = vsel %vm14508_vm7, %v8570_v28, 0  ;;  %vm14510_vm10 = vmmov %vm14508_vm7  ;;  %v2505_v63 = vpop.permute.xlu1 %2504 }
 0x182   : > { %2452 = vst.msk [vmem:[%s9909_s23 + $0xd8] sm:$0xff] %vm14500_vm8, %v14499_v62  ;;  %v2903_v43 = vsel %vm14510_vm10, %v14509_v14, 0  ;;  %vm14512_vm8 = vmmov %vm14507_vm2 }
 0x183   : > { %2456 = vst.msk [vmem:[%s9909_s23 + $0xf8] sm:$0xff] %vm14502_vm5, %v14501_v48  ;;  %8151 = vmatmul.mubr.msk.bf16.vlgmr.msra.gmra.mxu0 %vm14512_vm8, %v2493_v52  ;;  %vm14513_vm5 = vmmov %vm14508_vm7 }
 0x184   : > { %2389 = vst.msk [vmem:[%s9909_s23 + $0xe8] sm:$0xff] %vm14503_vm6, %v2357_v57  ;;  %8217 = vmatpush3.bf16.msra.mxu0 %v4312_v2  ;;  %vm14514_vm6 = vmmov %vm14513_vm5  ;;  %8154 = vmatprep.mubr.msk.bf16.mxu0 %vm14507_vm2, %v2495_v9 }
 0x185   : > { %2454 = vst.msk [vmem:[%s9909_s23 + $0xe8] sm:$0xff] %vm14505_vm9, %v14504_v41  ;;  %vm14511_vm9 = vmmov %vm14507_vm2  ;;  %8531 = vmatprep.subr.msk.bf16.mxu0 %vm14513_vm5, %v7737_v51 }
 0x186   : > { %8117 = vmatmul.mubr.msk.bf16.vlgmr.msra.gmra.mxu1 %vm14511_vm9, %v2493_v52  ;;  %vm14515_vm3 = vmmov %vm14507_vm2  ;;  %14540 = vst [vmem:[#allocation33_spill] sm:$0xff] %v10251_v11 }
 0x187   : > { %8183 = vmatpush3.bf16.msra.mxu1 %v2903_v43  ;;  %8120 = vmatprep.mubr.msk.bf16.mxu1 %vm14515_vm3, %v2495_v9  ;;  %vm14516_vm7 = vmmov %vm14507_vm2  ;;  %v2503_v40 = vpop.permute.xlu0 %2502 }
 0x188   : > { %8530 = vmatprep.subr.msk.bf16.mxu1 %vm14514_vm6, %v7720_v3  ;;  %vm14517_vm10 = vmmov %vm14507_vm2  ;;  %v2509_v15 = vpop.permute.xlu1 %2508 }
 0x189   : > { %vm14518_vm9 = vmmov %vm14507_vm2 }
 0x18a   : > { %vm14519_vm8 = vmmov %vm14507_vm2 }
 0x18b   : > { %8155 = vmatmul.mubr.msk.bf16.gmra.mxu0 %vm14517_vm10, %v2497_v47  ;;  %vm14520_vm1 = vmmov %vm14507_vm2 }
 0x18c   : > { %8158 = vmatprep.mubr.msk.bf16.mxu0 %vm14519_vm8, %v2499_v50  ;;  %vm14521_vm5 = vmmov %vm14520_vm1 }
 0x18d   : > { %vm14522_vm6 = vmmov %vm14520_vm1 }
 0x18e   : > { %8121 = vmatmul.mubr.msk.bf16.gmra.mxu1 %vm14516_vm7, %v2497_v47  ;;  %vm14523_vm3 = vmmov %vm14520_vm1  ;;  %v2507_v6 = vpop.permute.xlu0 %2506  ;;  %v2513_v10 = vpop.permute.xlu1 %2512 }
 0x18f   : > { %8124 = vmatprep.mubr.msk.bf16.mxu1 %vm14518_vm9, %v2499_v50  ;;  %vm14524_vm2 = vmmov %vm14520_vm1 }
 0x190   : > { %vm14525_vm7 = vmmov %vm14520_vm1 }
 0x191   : > { %vm14526_vm10 = vmmov %vm14520_vm1 }
 0x192   : > { %vm14527_vm9 = vmmov %vm14520_vm1  ;;  %v2511_v18 = vpop.permute.xlu0 %2510  ;;  %v2517_v22 = vpop.permute.xlu1 %2516 }
 0x193   : > { %8159 = vmatmul.mubr.msk.bf16.gmra.mxu0 %vm14521_vm5, %v2501_v20  ;;  %vm14528_vm8 = vmmov %vm14520_vm1 }
 0x194   : > { %8162 = vmatprep.mubr.msk.bf16.mxu0 %vm14523_vm3, %v2503_v40  ;;  %vm14529_vm5 = vmmov %vm14520_vm1 }
 0x195   : > { %vm14531_vm3 = vmmov %vm14520_vm1 }
 0x196   : > { %8125 = vmatmul.mubr.msk.bf16.gmra.mxu1 %vm14520_vm1, %v2501_v20  ;;  %v2521_v55 = vpop.permute.xlu1 %2520  ;;  %vm14574_vm14 = vmmov %vm14520_vm1 }
 0x197   : > { %8128 = vmatprep.mubr.msk.bf16.mxu1 %vm14522_vm6, %v2503_v40  ;;  %vm14530_vm6 = vmmov %vm14520_vm1 }
 0x198   : > { %vm14578_vm15 = vmmov %vm14520_vm1 }
 0x19a   : > { %v2515_v16 = vpop.permute.xlu0 %2514 }
 0x19b   : > { %8163 = vmatmul.mubr.msk.bf16.gmra.mxu0 %vm14525_vm7, %v2505_v63  ;;  %vm14533_vm7 = vmmov %vm14520_vm1 }
 0x19c   : > { %8166 = vmatprep.mubr.msk.bf16.mxu0 %vm14527_vm9, %v2507_v6  ;;  %vm14535_vm9 = vmmov %vm14520_vm1 }
 0x19e   : > { %8129 = vmatmul.mubr.msk.bf16.gmra.mxu1 %vm14524_vm2, %v2505_v63  ;;  %vm14532_vm2 = vmmov %vm14520_vm1  ;;  %v2519_v49 = vpop.permute.xlu0 %2518 }
 0x19f   : > { %8132 = vmatprep.mubr.msk.bf16.mxu1 %vm14526_vm10, %v2507_v6  ;;  %vm14534_vm10 = vmmov %vm14520_vm1 }
 0x1a3   : > { %8167 = vmatmul.mubr.msk.bf16.gmra.mxu0 %vm14528_vm8, %v2509_v15  ;;  %vm14536_vm8 = vmmov %vm14520_vm1 }
 0x1a4   : > { %8170 = vmatprep.mubr.msk.bf16.mxu0 %vm14530_vm6, %v2511_v18  ;;  %vm14538_vm6 = vmmov %vm14520_vm1 }
 0x1a6   : > { %8133 = vmatmul.mubr.msk.bf16.gmra.mxu1 %vm14520_vm1, %v2509_v15 }
 0x1a7   : > { %8136 = vmatprep.mubr.msk.bf16.mxu1 %vm14529_vm5, %v2511_v18  ;;  %vm14537_vm5 = vmmov %vm14520_vm1 }
 0x1ab   : > { %8171 = vmatmul.mubr.msk.bf16.gmra.mxu0 %vm14532_vm2, %v2513_v10  ;;  %vm14541_vm2 = vmmov %vm14520_vm1 }
 0x1ac   : > { %8174 = vmatprep.mubr.msk.bf16.mxu0 %vm14534_vm10, %v2515_v16  ;;  %vm14543_vm10 = vcmask 1043456  }
 0x1ad   : > { %v4644_v33 = vsel %vm14543_vm10, %v7737_v51, 0  ;;  %v4234_v1 = vpop.permute.xlu1 %4233 }
 0x1ae   : > { %8137 = vmatmul.mubr.msk.bf16.gmra.mxu1 %vm14531_vm3, %v2513_v10  ;;  %vm14539_vm3 = vmmov %vm14520_vm1 }
 0x1af   : > { %8140 = vmatprep.mubr.msk.bf16.mxu1 %vm14533_vm7, %v2515_v16  ;;  %vm14542_vm7 = vmmov %vm14520_vm1 }
 0x1b0   : > { %v4232_v44 = vpop.permute.xlu0 %4231 }
 0x1b1   : > { %v4238_v36 = vpop.permute.xlu1 %4237 }
 0x1b3   : > { %8175 = vmatmul.mubr.msk.bf16.gmra.mxu0 %vm14520_vm1, %v2517_v22 }
 0x1b4   : > { %8178 = vmatprep.mubr.msk.bf16.mxu0 %vm14537_vm5, %v2519_v49  ;;  %v4236_v8 = vpop.permute.xlu0 %4235  ;;  %vm14546_vm5 = vmmov %vm14520_vm1 }
 0x1b5   : > { %v4242_v32 = vpop.permute.xlu1 %4241 }
 0x1b6   : > { %8141 = vmatmul.mubr.msk.bf16.gmra.mxu1 %vm14535_vm9, %v2517_v22  ;;  %vm14544_vm9 = vmmov %vm14543_vm10 }
 0x1b7   : > { %8144 = vmatprep.mubr.msk.bf16.mxu1 %vm14536_vm8, %v2519_v49  ;;  %v4478_v26 = vsel %vm14544_vm9, %v7720_v3, 0  ;;  %vm14545_vm8 = vmmov %vm14520_vm1 }
 0x1b8   : > { %v4240_v24 = vpop.permute.xlu0 %4239  ;;  %vm14551_vm10 = vmmov %vm14520_vm1 }
 0x1b9   : > { %vm14552_vm9 = vmmov %vm14520_vm1  ;;  %v4246_v0 = vpop.permute.xlu1 %4245 }
 0x1bb   : > { %8179 = vmatmul.mubr.msk.bf16.gmra.mxu0 %vm14539_vm3, %v2521_v55  ;;  %vm14548_vm3 = vmmov %vm14520_vm1 }
 0x1bc   : > { %8218 = vmatprep.mubr.msk.bf16.mxu0 %vm14542_vm7, %v4232_v44  ;;  %vm14550_vm7 = vmmov %vm14520_vm1  ;;  %v4244_v19 = vpop.permute.xlu0 %4243 }
 0x1bd   : > { %v4250_v29 = vpop.permute.xlu1 %4249 }
 0x1be   : > { %8145 = vmatmul.mubr.msk.bf16.gmra.mxu1 %vm14538_vm6, %v2521_v55  ;;  %vm14547_vm6 = vmmov %vm14520_vm1 }
 0x1bf   : > { %8184 = vmatprep.mubr.msk.bf16.mxu1 %vm14541_vm2, %v2491_v4  ;;  %vm14549_vm2 = vmmov %vm14520_vm1 }
 0x1c1   : > { %v4248_v58 = vpop.permute.xlu0 %4247  ;;  %v4254_v38 = vpop.permute.xlu1 %4253 }
 0x1c3   : > { %8219 = vmatmul.mubr.msk.bf16.vlgmr.msra.gmra.mxu0 %vm14545_vm8, %v4234_v1  ;;  %vm14553_vm8 = vmmov %vm14520_vm1 }
 0x1c4   : > { %8285 = vmatpush3.bf16.msra.mxu0 %v4644_v33  ;;  %8222 = vmatprep.mubr.msk.bf16.mxu0 %vm14547_vm6, %v4236_v8  ;;  %vm14555_vm6 = vmmov %vm14520_vm1 }
 0x1c5   : > { %v4252_v17 = vpop.permute.xlu0 %4251  ;;  %v4258_v54 = vpop.permute.xlu1 %4257 }
 0x1c6   : > { %8185 = vmatmul.mubr.msk.bf16.vlgmr.msra.gmra.mxu1 %vm14520_vm1, %v2493_v52 }
 0x1c7   : > { %8188 = vmatprep.mubr.msk.bf16.mxu1 %vm14546_vm5, %v2495_v9  ;;  %8251 = vmatpush3.bf16.msra.mxu1 %v4478_v26  ;;  %vm14554_vm5 = vmmov %vm14520_vm1 }
 0x1ca   : > { %v4256_v61 = vpop.permute.xlu0 %4255 }
 0x1cb   : > { %8223 = vmatmul.mubr.msk.bf16.gmra.mxu0 %vm14549_vm2, %v4238_v36  ;;  %vm14557_vm2 = vmmov %vm14520_vm1  ;;  %v4262_v27 = vpop.permute.xlu1 %4261 }
 0x1cc   : > { %8226 = vmatprep.mubr.msk.bf16.mxu0 %vm14551_vm10, %v4240_v24  ;;  %vm14559_vm10 = vmmov %vm14520_vm1 }
 0x1ce   : > { %8189 = vmatmul.mubr.msk.bf16.gmra.mxu1 %vm14548_vm3, %v2497_v47  ;;  %vm14556_vm3 = vmmov %vm14520_vm1  ;;  %v4260_v53 = vpop.permute.xlu0 %4259 }
 0x1cf   : > { %8192 = vmatprep.mubr.msk.bf16.mxu1 %vm14550_vm7, %v2499_v50  ;;  %vm14558_vm7 = vmmov %vm14520_vm1 }
 0x1d3   : > { %8227 = vmatmul.mubr.msk.bf16.gmra.mxu0 %vm14520_vm1, %v4242_v32 }
 0x1d4   : > { %8230 = vmatprep.mubr.msk.bf16.mxu0 %vm14554_vm5, %v4244_v19  ;;  %vm14562_vm5 = vmmov %vm14520_vm1 }
 0x1d6   : > { %8193 = vmatmul.mubr.msk.bf16.gmra.mxu1 %vm14552_vm9, %v2501_v20  ;;  %vm14560_vm9 = vmmov %vm14520_vm1 }
 0x1d7   : > { %8196 = vmatprep.mubr.msk.bf16.mxu1 %vm14553_vm8, %v2503_v40  ;;  %vm14561_vm8 = vmmov %vm14520_vm1  ;;  %v14609_v40 = vld [vmem:[#allocation103_spill] sm:$0xff] }
 0x1db   : > { %8231 = vmatmul.mubr.msk.bf16.gmra.mxu0 %vm14556_vm3, %v4246_v0  ;;  %vm14564_vm3 = vmmov %vm14520_vm1 }
 0x1dc   : > { %8234 = vmatprep.mubr.msk.bf16.mxu0 %vm14558_vm7, %v4248_v58  ;;  %vm14566_vm7 = vmmov %vm14520_vm1 }
 0x1de   : > { %8197 = vmatmul.mubr.msk.bf16.gmra.mxu1 %vm14555_vm6, %v2505_v63  ;;  %vm14563_vm6 = vmmov %vm14520_vm1 }
 0x1df   : > { %8200 = vmatprep.mubr.msk.bf16.mxu1 %vm14557_vm2, %v2507_v6  ;;  %vm14565_vm2 = vmmov %vm14520_vm1 }
 0x1e3   : > { %8235 = vmatmul.mubr.msk.bf16.gmra.mxu0 %vm14560_vm9, %v4250_v29  ;;  %vm14568_vm9 = vmmov %vm14520_vm1 }
 0x1e4   : > { %8238 = vmatprep.mubr.msk.bf16.mxu0 %vm14561_vm8, %v4252_v17  ;;  %vm14569_vm8 = vmmov %vm14520_vm1 }
 0x1e6   : > { %8201 = vmatmul.mubr.msk.bf16.gmra.mxu1 %vm14559_vm10, %v2509_v15  ;;  %vm14567_vm10 = vmmov %vm14520_vm1 }
 0x1e7   : > { %8204 = vmatprep.mubr.msk.bf16.mxu1 %vm14520_vm1, %v2511_v18 }
 0x1eb   : > { %8239 = vmatmul.mubr.msk.bf16.gmra.mxu0 %vm14563_vm6, %v4254_v38  ;;  %vm14571_vm6 = vmmov %vm14520_vm1 }
 0x1ec   : > { %8242 = vmatprep.mubr.msk.bf16.mxu0 %vm14565_vm2, %v4256_v61  ;;  %vm14573_vm2 = vmmov %vm14520_vm1 }
 0x1ee   : > { %8205 = vmatmul.mubr.msk.bf16.gmra.mxu1 %vm14562_vm5, %v2513_v10  ;;  %vm14570_vm5 = vmmov %vm14520_vm1 }
 0x1ef   : > { %8208 = vmatprep.mubr.msk.bf16.mxu1 %vm14564_vm3, %v2515_v16  ;;  %vm14572_vm3 = vmmov %vm14520_vm1 }
 0x1f3   : > { %8243 = vmatmul.mubr.msk.bf16.gmra.mxu0 %vm14567_vm10, %v4258_v54  ;;  %vm14576_vm10 = vmmov %vm14520_vm1 }
 0x1f4   : > { %8246 = vmatprep.mubr.msk.bf16.mxu0 %vm14520_vm1, %v4260_v53 }
 0x1f6   : > { %8209 = vmatmul.mubr.msk.bf16.gmra.mxu1 %vm14566_vm7, %v2517_v22  ;;  %vm14575_vm7 = vmmov %vm14520_vm1 }
 0x1f7   : > { %8212 = vmatprep.mubr.msk.bf16.mxu1 %vm14568_vm9, %v2519_v49  ;;  %vm14577_vm9 = vmmov %vm14520_vm1 }
 0x1fb   : > { %8247 = vmatmul.mubr.msk.bf16.gmra.mxu0 %vm14570_vm5, %v4262_v27  ;;  %vm14580_vm5 = vmmov %vm14520_vm1 }
 0x1fc   : > { %8286 = vmatprep.mubr.msk.bf16.mxu0 %vm14572_vm3, %v4232_v44  ;;  %vm14582_vm3 = vmmov %vm14520_vm1 }
 0x1fe   : > { %8213 = vmatmul.mubr.msk.bf16.gmra.mxu1 %vm14569_vm8, %v2521_v55  ;;  %vm14579_vm8 = vmmov %vm14520_vm1 }
 0x1ff   : > { %8252 = vmatprep.mubr.msk.bf16.mxu1 %vm14571_vm6, %v4232_v44  ;;  %vm14581_vm6 = vmmov %vm14520_vm1 }
 0x203   : > { %8287 = vmatmul.mubr.msk.bf16.vlgmr.msra.gmra.mxu0 %vm14574_vm14, %v4234_v1  ;;  %vm14584_vm14 = vmmov %vm14520_vm1 }
 0x204   : > { %8290 = vmatprep.mubr.msk.bf16.mxu0 %vm14576_vm10, %v4236_v8  ;;  %vm14586_vm10 = vcmask 1043456  }
 0x205   : > { %v5168_v46 = vsel %vm14586_vm10, %v5118_v31, 0 }
 0x206   : > { %8253 = vmatmul.mubr.msk.bf16.vlgmr.msra.gmra.mxu1 %vm14573_vm2, %v4234_v1  ;;  %vm14583_vm2 = vmmov %vm14520_vm1 }
 0x207   : > { %8256 = vmatprep.mubr.msk.bf16.mxu1 %vm14575_vm7, %v4236_v8  ;;  %vm14585_vm7 = vmmov %vm14520_vm1 }
 0x20b   : > { %8291 = vmatmul.mubr.msk.bf16.gmra.mxu0 %vm14520_vm1, %v4238_v36 }
 0x20c   : > { %8294 = vmatprep.mubr.msk.bf16.mxu0 %vm14579_vm8, %v4240_v24  ;;  %vm14590_vm8 = vmmov %vm14583_vm2 }
 0x20e   : > { %8257 = vmatmul.mubr.msk.bf16.gmra.mxu1 %vm14577_vm9, %v4238_v36  ;;  %vm14588_vm9 = vmmov %vm14520_vm1 }
 0x20f   : > { %8260 = vmatprep.mubr.msk.bf16.mxu1 %vm14578_vm15, %v4240_v24  ;;  %vm14587_vm15 = vmmov %vm14520_vm1 }
 0x210   : > { %vm14589_vm1 = vmmov %vm14586_vm10 }
 0x211   : > { %8532 = vmatprep.subr.msk.bf16.mxu1 %vm14589_vm1, %v5118_v31  ;;  %vm14596_vm10 = vmmov %vm14583_vm2 }
 0x212   : > { %8319 = vmatpush3.bf16.msra.mxu1 %v5168_v46  ;;  %vm14599_vm1 = vmmov %vm14583_vm2 }
 0x213   : > { %8295 = vmatmul.mubr.msk.bf16.gmra.mxu0 %vm14581_vm6, %v4242_v32  ;;  %vm14592_vm6 = vmmov %vm14583_vm2 }
 0x214   : > { %8298 = vmatprep.mubr.msk.bf16.mxu0 %vm14583_vm2, %v4244_v19 }
 0x216   : > { %8261 = vmatmul.mubr.msk.bf16.gmra.mxu1 %vm14580_vm5, %v4242_v32  ;;  %vm14591_vm5 = vmmov %vm14583_vm2 }
 0x217   : > { %8264 = vmatprep.mubr.msk.bf16.mxu1 %vm14582_vm3, %v4244_v19  ;;  %vm14593_vm3 = vmmov %vm14583_vm2 }
 0x21b   : > { %8299 = vmatmul.mubr.msk.bf16.gmra.mxu0 %vm14585_vm7, %v4246_v0  ;;  %vm14595_vm7 = vmmov %vm14583_vm2 }
 0x21c   : > { %8302 = vmatprep.mubr.msk.bf16.mxu0 %vm14588_vm9, %v4248_v58  ;;  %vm14598_vm9 = vmmov %vm14583_vm2 }
 0x21e   : > { %8265 = vmatmul.mubr.msk.bf16.gmra.mxu1 %vm14584_vm14, %v4246_v0  ;;  %vm14594_vm14 = vmmov %vm14583_vm2 }
 0x21f   : > { %8268 = vmatprep.mubr.msk.bf16.mxu1 %vm14587_vm15, %v4248_v58  ;;  %vm14597_vm15 = vmmov %vm14583_vm2 }
 0x223   : > { %8303 = vmatmul.mubr.msk.bf16.gmra.mxu0 %vm14591_vm5, %v4250_v29  ;;  %vm14601_vm5 = vmmov %vm14599_vm1 }
 0x224   : > { %8306 = vmatprep.mubr.msk.bf16.mxu0 %vm14593_vm3, %v4252_v17  ;;  %vm14603_vm3 = vcmp.lt.s32.totalorder %v8713_v23, 1 }
 0x226   : > { %8269 = vmatmul.mubr.msk.bf16.gmra.mxu1 %vm14590_vm8, %v4250_v29  ;;  %vm14600_vm8 = vmmov %vm14599_vm1  ;;  %v7771_v29 = vld [vmem:[%s13739_s7 + $0x4] sm:$0xf] }
 0x227   : > { %8272 = vmatprep.mubr.msk.bf16.mxu1 %vm14592_vm6, %v4252_v17  ;;  %vm14602_vm6 = vmmov %vm14599_vm1 }
 0x22b   : > { %8307 = vmatmul.mubr.msk.bf16.gmra.mxu0 %vm14594_vm14, %v4254_v38 }
 0x22c   : > { %8310 = vmatprep.mubr.msk.bf16.mxu0 %vm14596_vm10, %v4256_v61 }
 0x22e   : > { %8273 = vmatmul.mubr.msk.bf16.gmra.mxu1 %vm14583_vm2, %v4254_v38  ;;  %vm14605_vm2 = vmmov %vm14603_vm3 }
 0x22f   : > { %8276 = vmatprep.mubr.msk.bf16.mxu1 %vm14595_vm7, %v4256_v61  ;;  %vm14608_vm14 = vmmov %vm14605_vm2  ;;  %vm14610_vm7 = vnez %v14609_v40 }
 0x230   : > { %vm14612_vm10 = vmmov %vm14605_vm2 }
 0x233   : > { %8311 = vmatmul.mubr.msk.bf16.gmra.mxu0 %vm14598_vm9, %v4258_v54  ;;  %vm14615_vm9 = vmmov %vm14605_vm2 }
 0x234   : > { %8314 = vmatprep.mubr.msk.bf16.mxu0 %vm14600_vm8, %v4260_v53  ;;  %vm14618_vm8 = vmmov %vm14605_vm2 }
 0x236   : > { %8277 = vmatmul.mubr.msk.bf16.gmra.mxu1 %vm14597_vm15, %v4258_v54  ;;  %vm14613_vm15 = vmmov %vm14605_vm2 }
 0x237   : > { %8280 = vmatprep.mubr.msk.bf16.mxu1 %vm14599_vm1, %v4260_v53  ;;  %vm14617_vm1 = vcmask 1043456  }
 0x238   : > { %8533 = vmatprep.subr.msk.bf16.mxu0 %vm14617_vm1, %v7771_v29 }
 0x23b   : > { %8315 = vmatmul.mubr.msk.bf16.gmra.mxu0 %vm14602_vm6, %v4262_v27  ;;  %vm14621_vm6 = vmmov %vm14617_vm1 }
 0x23e   : > { %8281 = vmatmul.mubr.msk.bf16.gmra.mxu1 %vm14601_vm5, %v4262_v27  ;;  %vm14619_vm5 = vmmov %vm14605_vm2 }
 0x243   : > { %v8152_v39 = vpop.f32.mrf.mxu0 }
 0x245   : > { %v10333_v45 = vpop.f32.mrf.mxu0 }
 0x246   : > { %v8118_v37 = vpop.f32.mrf.mxu1 }
 0x247   : > { %3558 = vrot.lane.b32.xlu0 %v8118_v37, %s8584_s15  ;;  %v8153_v13 = vpop.f32.mrf.mxu0  ;;  %v3069_v7 = vrot.slane %v8118_v37, 7 }
 0x248   : > { %v10331_v56 = vpop.f32.mrf.mxu1 }
 0x249   : > { %v10339_v60 = vpop.f32.mrf.mxu0 }
 0x24a   : > { %v8119_v5 = vpop.f32.mrf.mxu1 }
 0x24b   : > { %v3070_v42 = vrot.slane %v8119_v5, 7  ;;  %3560 = vrot.lane.b32.xlu1 %v8119_v5, %s8584_s15  ;;  %3718 = vrot.lane.b32.xlu0 %v8152_v39, %s8584_s15  ;;  %v8156_v4 = vpop.f32.mrf.mxu0 }
 0x24c   : > { %v10337_v25 = vpop.f32.mrf.mxu1 }
 0x24d   : > { %v3127_v59 = vsel %vm14603_vm3, %v3069_v7, %v3070_v42  ;;  %v13939_v62 = vrot.slane %v10337_v25, 7  ;;  %v2789_v52 = vpop.f32.mrf.mxu0  ;;  %vm14622_vm3 = vmmov %vm14617_vm1 }
 0x24e   : > { %v10344_v48 = vadd.f32 %v8153_v13, %v3127_v59  ;;  %v8122_v41 = vpop.f32.mrf.mxu1 }
 0x24f   : > { %v3128_v57 = vsel %vm14605_vm2, %v13939_v62, %v3069_v7  ;;  %3720 = vrot.lane.b32.xlu1 %v8153_v13, %s8584_s15  ;;  %3554 = vrot.lane.b32.xlu0 %v10331_v56, %s8584_s15  ;;  %v8157_v9 = vpop.f32.mrf.mxu0  ;;  %v3073_v47 = vrot.slane %v8122_v41, 7 }
 0x250   : > { %14604 = vst [vmem:[#allocation9_spill] sm:$0xff] %v10344_v48  ;;  %v3133_v2 = vsel %vm9624_vm4, %v3128_v57, 0.0  ;;  %v10357_v43 = vpop.f32.mrf.mxu1 }
 0x251   : > { %v10355_v14 = vadd.f32 %v8152_v39, %v3133_v2  ;;  %v13943_v51 = vrot.slane %v10357_v43, 7  ;;  %v10372_v15 = vpop.f32.mrf.mxu0  ;;  %v10448_v2 = vld [vmem:[%s13739_s7 + $0x8] sm:$0xf] }
 0x252   : > { %v8123_v3 = vpop.f32.mrf.mxu1  ;;  %8534 = vmatprep.subr.msk.bf16.mxu1 %vm14622_vm3, %v10448_v2  ;;  %vm14644_vm3 = vmmov %vm14605_vm2 }
 0x253   : > { %14607 = vst [vmem:[#allocation53_spill] sm:$0xff] %v10355_v14  ;;  %3556 = vrot.lane.b32.xlu1 %v10337_v25, %s8584_s15  ;;  %3714 = vrot.lane.b32.xlu0 %v10333_v45, %s8584_s15  ;;  %v3126_v50 = vsel %vm14608_vm14, %v3070_v42, %v13943_v51  ;;  %v3074_v20 = vrot.slane %v8123_v3, 7  ;;  %v8160_v55 = vpop.f32.mrf.mxu0  ;;  %v14689_v14 = vrot.slane %v10357_v43, 7 }
 0x254   : > { %v3135_v63 = vsel %vm14610_vm7, %v3126_v50, 0.0  ;;  %v10370_v6 = vpop.f32.mrf.mxu1 }
 0x255   : > { %v10374_v18 = vadd.f32 %v3135_v63, %v2789_v52  ;;  %v3123_v10 = vsel %vm14612_vm10, %v3073_v47, %v3074_v20  ;;  %v13944_v16 = vrot.slane %v10370_v6, 7  ;;  %v10390_v12 = vpop.f32.mrf.mxu0  ;;  %vm14627_vm10 = vmmov %vm14605_vm2 }
 0x256   : > { %v10382_v22 = vadd.f32 %v8157_v9, %v3123_v10  ;;  %v8126_v49 = vpop.f32.mrf.mxu1 }
 0x257   : > { %14611 = vst [vmem:[#allocation46_spill] sm:$0xff] %v10374_v18  ;;  %3716 = vrot.lane.b32.xlu1 %v10339_v60, %s8584_s15  ;;  %3566 = vrot.lane.b32.xlu0 %v8122_v41, %s8584_s15  ;;  %v3124_v44 = vsel %vm14613_vm15, %v13944_v16, %v3073_v47  ;;  %v8161_v32 = vpop.f32.mrf.mxu0  ;;  %v3077_v19 = vrot.slane %v8126_v49, 7  ;;  %vm14629_vm15 = vmmov %vm14605_vm2  ;;  %v14669_v18 = vld [vmem:[#allocation111_spill] sm:$0xff] }
 0x258   : > { %v10388_v33 = vpop.f32.mrf.mxu1  ;;  %v3137_v26 = vsel %vm9642_vm12, %v3124_v44, 0.0 }
 0x259   : > { %v13941_v8 = vrot.slane %v10388_v33, 7  ;;  %v10397_v36 = vadd.f32 %v8156_v4, %v3137_v26  ;;  %v10410_v54 = vpop.f32.mrf.mxu0 }
 0x25a   : > { %v8127_v24 = vpop.f32.mrf.mxu1 }
 0x25b   : > { %3568 = vrot.lane.b32.xlu1 %v8123_v3, %s8584_s15  ;;  %3726 = vrot.lane.b32.xlu0 %v8156_v4, %s8584_s15  ;;  %v3122_v0 = vsel %vm14615_vm9, %v3074_v20, %v13941_v8  ;;  %v3078_v58 = vrot.slane %v8127_v24, 7  ;;  %v10430_v5 = vpop.f32.mrf.mxu0  ;;  %v5334_v4 = vsel %vm14621_vm6, %v7771_v29, 0  ;;  %v14623_v20 = vld [vmem:[#allocation105_spill] sm:$0xff]  ;;  %vm14632_vm9 = vmmov %vm14605_vm2  ;;  %vm14642_vm6 = vnez %v14334_v30 }
 0x25c   : > { %v3139_v38 = vsel %vm9380_vm11, %v3122_v0, 0.0  ;;  %v10408_v61 = vpop.f32.mrf.mxu1  ;;  %8353 = vmatpush3.bf16.msra.mxu0 %v5334_v4  ;;  %vm14624_vm14 = vnez %v14623_v20  ;;  %v14645_v30 = vld [vmem:[#allocation109_spill] sm:$0xff] }
 0x25d   : > { %v10414_v53 = vadd.f32 %v3139_v38, %v10390_v12  ;;  %v3119_v27 = vsel %vm14618_vm8, %v3077_v19, %v3078_v58  ;;  %v13942_v31 = vrot.slane %v10408_v61, 7  ;;  %v10436_v59 = vpop.f32.mrf.mxu0  ;;  %vm14638_vm8 = vmmov %vm14605_vm2 }
 0x25e   : > { %v10422_v46 = vadd.f32 %v8161_v32, %v3119_v27  ;;  %v10428_v39 = vpop.f32.mrf.mxu1 }
 0x25f   : > { %3728 = vrot.lane.b32.xlu1 %v8157_v9, %s8584_s15  ;;  %3562 = vrot.lane.b32.xlu0 %v10357_v43, %s8584_s15  ;;  %v3120_v37 = vsel %vm14619_vm5, %v13942_v31, %v3077_v19  ;;  %v10452_v9 = vpop.f32.mrf.mxu0  ;;  %vm14640_vm5 = vmmov %vm14605_vm2 }
 0x260   : > { %v3141_v7 = vsel %vm9660_vm13, %v3120_v37, 0.0  ;;  %v10434_v42 = vpop.f32.mrf.mxu1 }
 0x261   : > { %v10441_v57 = vadd.f32 %v8160_v55, %v3141_v7  ;;  %v13937_v41 = vrot.slane %v10434_v42, 7  ;;  %v10466_v44 = vpop.f32.mrf.mxu0 }
 0x262   : > { %v10450_v3 = vpop.f32.mrf.mxu1  ;;  %14625 = vst [vmem:[#allocation10_spill] sm:$0xff] %v10466_v44 }
 0x263   : > { %3564 = vrot.lane.b32.xlu1 %v10370_v6, %s8584_s15  ;;  %3722 = vrot.lane.b32.xlu0 %v2789_v52, %s8584_s15  ;;  %v3081_v52 = vrot.slane %v10428_v39, 7  ;;  %v3118_v47 = vsel %vm14605_vm2, %v3078_v58, %v13937_v41  ;;  %v3082_v50 = vrot.slane %v10450_v3, 7  ;;  %v10482_v38 = vpop.f32.mrf.mxu0  ;;  %v14633_v41 = vld [vmem:[#allocation107_spill] sm:$0xff]  ;;  %vm14646_vm2 = vnez %v14645_v30 }
 0x264   : > { %v3143_v63 = vsel %vm14624_vm14, %v3118_v47, 0.0  ;;  %v10464_v10 = vpop.f32.mrf.mxu1  ;;  %vm14634_vm1 = vnez %v14633_v41 }
 0x265   : > { %v10472_v26 = vadd.f32 %v3143_v63, %v10436_v59  ;;  %v3115_v19 = vsel %vm14627_vm10, %v3081_v52, %v3082_v50  ;;  %v13938_v0 = vrot.slane %v10464_v10, 7  ;;  %v10490_v37 = vpop.f32.mrf.mxu0  ;;  %vm14650_vm10 = vmmov %vm14644_vm3 }
 0x266   : > { %v10478_v58 = vadd.f32 %v10452_v9, %v3115_v19  ;;  %v10480_v29 = vpop.f32.mrf.mxu1 }
 0x267   : > { %3724 = vrot.lane.b32.xlu1 %v10372_v15, %s8584_s15  ;;  %3574 = vrot.lane.b32.xlu0 %v8126_v49, %s8584_s15  ;;  %14626 = vst [vmem:[#allocation29_spill] sm:$0xff] %v10472_v26  ;;  %v3116_v49 = vsel %vm14629_vm15, %v13938_v0, %v3081_v52  ;;  %v10502_v19 = vpop.f32.mrf.mxu0  ;;  %v3085_v52 = vrot.slane %v10480_v29, 7  ;;  %vm14652_vm15 = vmmov %vm14644_vm3 }
 0x268   : > { %14628 = vst [vmem:[#allocation75_spill] sm:$0xff] %v10478_v58  ;;  %v10488_v27 = vpop.f32.mrf.mxu1  ;;  %v3145_v7 = vsel %vm9680_vm0, %v3116_v49, 0.0 }
 0x269   : > { %14630 = vst [vmem:[#allocation100_spill] sm:$0xff] %v10488_v27  ;;  %v13940_v4 = vrot.slane %v10488_v27, 7  ;;  %v10498_v47 = vadd.f32 %v10430_v5, %v3145_v7  ;;  %v10514_v7 = vpop.f32.mrf.mxu0 }
 0x26a   : > { %v10500_v63 = vpop.f32.mrf.mxu1  ;;  %14636 = vst [vmem:[#allocation89_spill] sm:$0xff] %v10514_v7 }
 0x26b   : > { %3576 = vrot.lane.b32.xlu1 %v8127_v24, %s8584_s15  ;;  %3734 = vrot.lane.b32.xlu0 %v8160_v55, %s8584_s15  ;;  %14631 = vst [vmem:[#allocation38_spill] sm:$0xff] %v10498_v47  ;;  %v3114_v24 = vsel %vm14632_vm9, %v3082_v50, %v13940_v4  ;;  %v3086_v55 = vrot.slane %v10500_v63, 7  ;;  %v10530_v31 = vpop.f32.mrf.mxu0 }
 0x26c   : > { %v3147_v49 = vsel %vm14634_vm1, %v3114_v24, 0.0  ;;  %v10512_v0 = vpop.f32.mrf.mxu1 }
 0x26d   : > { %14635 = vst [vmem:[#allocation64_spill] sm:$0xff] %v10512_v0  ;;  %v10520_v62 = vadd.f32 %v3147_v49, %v10490_v37  ;;  %v3111_v50 = vsel %vm14638_vm8, %v3085_v52, %v3086_v55  ;;  %v13945_v4 = vrot.slane %v10512_v0, 7  ;;  %v10538_v49 = vpop.f32.mrf.mxu0  ;;  %vm14657_vm8 = vmmov %vm14644_vm3 }
 0x26e   : > { %v10526_v8 = vadd.f32 %v10502_v19, %v3111_v50  ;;  %v10528_v24 = vpop.f32.mrf.mxu1 }
 0x26f   : > { %3736 = vrot.lane.b32.xlu1 %v8161_v32, %s8584_s15  ;;  %3570 = vrot.lane.b32.xlu0 %v10388_v33, %s8584_s15  ;;  %14637 = vst [vmem:[#allocation11_spill] sm:$0xff] %v10520_v62  ;;  %v3112_v32 = vsel %vm14640_vm5, %v13945_v4, %v3085_v52  ;;  %v10552_v52 = vpop.f32.mrf.mxu0  ;;  %v3089_v4 = vrot.slane %v10528_v24, 7 }
 0x270   : > { %14639 = vst [vmem:[#allocation54_spill] sm:$0xff] %v10526_v8  ;;  %v10536_v51 = vpop.f32.mrf.mxu1  ;;  %v3149_v50 = vsel %vm14642_vm6, %v3112_v32, 0.0 }
 0x271   : > { %14641 = vst [vmem:[#allocation83_spill] sm:$0xff] %v10536_v51  ;;  %v13948_v16 = vrot.slane %v10536_v51, 7  ;;  %v10548_v8 = vadd.f32 %v10482_v38, %v3149_v50  ;;  %v10564_v50 = vpop.f32.mrf.mxu0 }
 0x272   : > { %v10550_v62 = vpop.f32.mrf.mxu1  ;;  %14648 = vst [vmem:[#allocation36_spill] sm:$0xff] %v10564_v50 }
 0x273   : > { %3572 = vrot.lane.b32.xlu1 %v10408_v61, %s8584_s15  ;;  %3730 = vrot.lane.b32.xlu0 %v10390_v12, %s8584_s15  ;;  %14643 = vst [vmem:[#allocation37_spill] sm:$0xff] %v10548_v8  ;;  %v3110_v58 = vsel %vm14644_vm3, %v3086_v55, %v13948_v16  ;;  %v3090_v12 = vrot.slane %v10550_v62, 7  ;;  %v10581_v34 = vpop.f32.mrf.mxu0 }
 0x274   : > { %v3151_v32 = vsel %vm14646_vm2, %v3110_v58, 0.0  ;;  %v10562_v41 = vpop.f32.mrf.mxu1 }
 0x275   : > { %14647 = vst [vmem:[#allocation50_spill] sm:$0xff] %v10562_v41  ;;  %v10571_v8 = vadd.f32 %v3151_v32, %v10538_v49  ;;  %v3107_v55 = vsel %vm14650_vm10, %v3089_v4, %v3090_v12  ;;  %v13951_v16 = vrot.slane %v10562_v41, 7  ;;  %v10589_v32 = vpop.f32.mrf.mxu0  ;;  %vm14664_vm10 = vmmov %vm14644_vm3 }
 0x276   : > { %v10577_v58 = vadd.f32 %v10552_v52, %v3107_v55  ;;  %v10579_v30 = vpop.f32.mrf.mxu1  ;;  %v14654_v55 = vld [vmem:[#allocation47_spill] sm:$0xff] }
 0x277   : > { %3732 = vrot.lane.b32.xlu1 %v10410_v54, %s8584_s15  ;;  %3582 = vrot.lane.b32.xlu0 %v10428_v39, %s8584_s15  ;;  %14649 = vst [vmem:[#allocation66_spill] sm:$0xff] %v10571_v8  ;;  %v3108_v39 = vsel %vm14652_vm15, %v13951_v16, %v3089_v4  ;;  %vm14655_vm9 = vnez %v14654_v55  ;;  %v10603_v4 = vpop.f32.mrf.mxu0  ;;  %v3093_v16 = vrot.slane %v10579_v30, 7  ;;  %v14658_v55 = vld [vmem:[#allocation110_spill] sm:$0xff]  ;;  %vm14666_vm15 = vnez %v14382_v35 }
 0x278   : > { %14651 = vst [vmem:[#allocation63_spill] sm:$0xff] %v10577_v58  ;;  %v10587_v26 = vpop.f32.mrf.mxu1  ;;  %v3153_v58 = vsel %vm14655_vm9, %v3108_v39, 0.0  ;;  %vm14659_vm5 = vnez %v14658_v55 }
 0x279   : > { %14653 = vst [vmem:[#allocation78_spill] sm:$0xff] %v10587_v26  ;;  %v13952_v8 = vrot.slane %v10587_v26, 7  ;;  %v10599_v47 = vadd.f32 %v10530_v31, %v3153_v58  ;;  %v10615_v58 = vpop.f32.mrf.mxu0 }
 0x27a   : > { %v10601_v20 = vpop.f32.mrf.mxu1  ;;  %14661 = vst [vmem:[#allocation62_spill] sm:$0xff] %v10615_v58 }
 0x27b   : > { %3742 = vrot.lane.b32.xlu0 %v10430_v5, %s8584_s15  ;;  %3584 = vrot.lane.b32.xlu1 %v10450_v3, %s8584_s15  ;;  %14656 = vst [vmem:[#allocation34_spill] sm:$0xff] %v10599_v47  ;;  %v3106_v5 = vsel %vm14657_vm8, %v3090_v12, %v13952_v8  ;;  %v3094_v3 = vrot.slane %v10601_v20, 7  ;;  %v10630_v17 = vpop.f32.mrf.mxu0  ;;  %vm14668_vm8 = vmmov %vm14644_vm3 }
 0x27c   : > { %v3155_v39 = vsel %vm14659_vm5, %v3106_v5, 0.0  ;;  %v10613_v13 = vpop.f32.mrf.mxu1 }
 0x27d   : > { %14660 = vst [vmem:[#allocation30_spill] sm:$0xff] %v10613_v13  ;;  %v10622_v47 = vadd.f32 %v3155_v39, %v10589_v32  ;;  %v3103_v12 = vsel %vm14644_vm3, %v3093_v16, %v3094_v3  ;;  %v13953_v8 = vrot.slane %v10613_v13, 7  ;;  %v10638_v39 = vpop.f32.mrf.mxu0  ;;  %vm14670_vm3 = vnez %v14669_v18 }
 0x27e   : > { %v10628_v5 = vadd.f32 %v10603_v4, %v3103_v12  ;;  %v8146_v55 = vpop.f32.mrf.mxu1 }
 0x27f   : > { %3578 = vrot.lane.b32.xlu0 %v10434_v42, %s8584_s15  ;;  %3744 = vrot.lane.b32.xlu1 %v10452_v9, %s8584_s15  ;;  %14662 = vst [vmem:[#allocation88_spill] sm:$0xff] %v10622_v47  ;;  %v3104_v40 = vsel %vm14664_vm10, %v13953_v8, %v3093_v16  ;;  %v10650_v16 = vpop.f32.mrf.mxu0  ;;  %v13959_v8 = vrot.slane %v10331_v56, 7  ;;  %v3097_v11 = vrot.slane %v8146_v55, 7  ;;  %vm14674_vm10 = vmmov %vm14668_vm8 }
 0x280   : > { %14663 = vst [vmem:[#allocation57_spill] sm:$0xff] %v10628_v5  ;;  %v10636_v9 = vpop.f32.mrf.mxu1  ;;  %v3157_v12 = vsel %vm14666_vm15, %v3104_v40, 0.0 }
 0x281   : > { %14665 = vst [vmem:[#allocation91_spill] sm:$0xff] %v10636_v9  ;;  %v13958_v5 = vrot.slane %v10636_v9, 7  ;;  %v10648_v47 = vadd.f32 %v10581_v34, %v3157_v12  ;;  %v10661_v48 = vpop.f32.mrf.mxu0 }
 0x282   : > { %v8147_v1 = vpop.f32.mrf.mxu1  ;;  %14672 = vst [vmem:[#allocation19_spill] sm:$0xff] %v10661_v48 }
 0x283   : > { %3738 = vrot.lane.b32.xlu0 %v10436_v59, %s8584_s15  ;;  %3580 = vrot.lane.b32.xlu1 %v10464_v10, %s8584_s15  ;;  %14667 = vst [vmem:[#allocation101_spill] sm:$0xff] %v10648_v47  ;;  %v3102_v59 = vsel %vm14668_vm8, %v3094_v3, %v13958_v5  ;;  %v3098_v28 = vrot.slane %v8147_v1, 7 }
 0x284   : > { %v3159_v40 = vsel %vm14670_vm3, %v3102_v59, 0.0  ;;  %v10659_v35 = vpop.f32.mrf.mxu1  ;;  %vm14677_vm3 = vmmov %vm14668_vm8 }
 0x285   : > { %14671 = vst [vmem:[#allocation15_spill] sm:$0xff] %v10659_v35  ;;  %v10668_v55 = vadd.f32 %v3159_v40, %v10638_v39  ;;  %v10674_v1 = vsel %vm14674_vm10, %v3098_v28, %v13959_v8  ;;  %v3099_v3 = vsel %vm14668_vm8, %v3097_v11, %v3098_v28  ;;  %v13960_v12 = vrot.slane %v10659_v35, 7  ;;  %vm14686_vm8 = vmmov %vm14677_vm3 }
 0x286   : > { %v10680_v59 = vadd.f32 %v10650_v16, %v3099_v3  ;;  %v10682_v5 = vpop.f32.mrf.mxu1  ;;  %vm14679_vm10 = vnez %v14387_v21 }
 0x287   : > { %3740 = vrot.lane.b32.xlu1 %v10466_v44, %s8584_s15  ;;  %3590 = vrot.lane.b32.xlu0 %v10480_v29, %s8584_s15  ;;  %14673 = vst [vmem:[#allocation23_spill] sm:$0xff] %v10668_v55  ;;  %v10684_v29 = vpop.f32.mrf.mxu0  ;;  %v3100_v40 = vsel %vm14677_vm3, %v13960_v12, %v3097_v11 }
 0x288   : > { %14675 = vst [vmem:[#allocation40_spill] sm:$0xff] %v10680_v59  ;;  %14676 = vst [vmem:[#allocation45_spill] sm:$0xff] %v10684_v29  ;;  %v10690_v55 = vpop.f32.mrf.mxu1  ;;  %v3161_v28 = vsel %vm14679_vm10, %v3100_v40, 0.0  ;;  %v13962_v11 = vrot.slane %v10684_v29, 7  ;;  %vm14690_vm10 = vcmp.lt.s32.totalorder %v8713_v23, 7 }
 0x289   : > { %v10692_v8 = vpop.f32.mrf.mxu0  ;;  %v10701_v3 = vadd.f32 %v10630_v17, %v3161_v28 }
 0x28a   : > { %14678 = vst [vmem:[#allocation65_spill] sm:$0xff] %v10692_v8  ;;  %v10703_v47 = vpop.f32.mrf.mxu1 }
 0x28b   : > { %3750 = vrot.lane.b32.xlu0 %v10482_v38, %s8584_s15  ;;  %3592 = vrot.lane.b32.xlu1 %v10500_v63, %s8584_s15  ;;  %14680 = vst [vmem:[#allocation13_spill] sm:$0xff] %v10701_v3  ;;  %v8221_v18 = vpop.f32.mrf.mxu0 }
 0x28c   : > { %v4810_v12 = vrot.slane %v8221_v18, 7  ;;  %v10706_v59 = vpop.f32.mrf.mxu1 }
 0x28d   : > { %v10708_v44 = vpop.f32.mrf.mxu0 }
 0x28e   : > { %v10718_v38 = vsel %vm14677_vm3, %v13962_v11, %v4810_v12  ;;  %v10720_v63 = vpop.f32.mrf.mxu1 }
 0x28f   : > { %3586 = vrot.lane.b32.xlu0 %v10488_v27, %s8584_s15  ;;  %3752 = vrot.lane.b32.xlu1 %v10502_v19, %s8584_s15  ;;  %14681 = vst [vmem:[#allocation14_spill] sm:$0xff] %v10718_v38  ;;  %14682 = vst [vmem:[#allocation73_spill] sm:$0xff] %v10720_v63  ;;  %v10722_v40 = vpop.f32.mrf.mxu0  ;;  %v3201_v21 = vrot.slane %v10720_v63, 1 }
 0x290   : > { %14683 = vst [vmem:[#allocation16_spill] sm:$0xff] %v10722_v40  ;;  %v10724_v18 = vpop.f32.mrf.mxu1 }
 0x291   : > { %v10726_v28 = vpop.f32.mrf.mxu0 }
 0x292   : > { %14684 = vst [vmem:[#allocation24_spill] sm:$0xff] %v10726_v28  ;;  %v13972_v19 = vrot.slane %v10726_v28, 7  ;;  %v10733_v3 = vpop.f32.mrf.mxu1  ;;  %v14692_v28 = vrot.slane %v10722_v40, 7 }
 0x293   : > { %3746 = vrot.lane.b32.xlu0 %v10490_v37, %s8584_s15  ;;  %3588 = vrot.lane.b32.xlu1 %v10512_v0, %s8584_s15  ;;  %14685 = vst [vmem:[#allocation32_spill] sm:$0xff] %v10733_v3  ;;  %v8225_v11 = vpop.f32.mrf.mxu0  ;;  %v3202_v38 = vrot.slane %v10733_v3, 1 }
 0x294   : > { %v4814_v29 = vrot.slane %v8225_v11, 7  ;;  %v10738_v8 = vpop.f32.mrf.mxu1  ;;  %v10750_v37 = vsel %vm14686_vm8, %v4810_v12, %v13972_v19  ;;  %v14688_v11 = vrot.slane %v10370_v6, 7  ;;  %vm14693_vm8 = vmmov %vm14677_vm3 }
 0x295   : > { %v10740_v27 = vpop.f32.mrf.mxu0  ;;  %14687 = vst [vmem:[#allocation60_spill] sm:$0xff] %v10750_v37  ;;  %v3251_v63 = vsel %vm14690_vm10, %v3201_v21, %v3202_v38 }
 0x296   : > { %v3125_v3 = vsel %vm14677_vm3, %v14689_v14, %v14688_v11  ;;  %v10761_v0 = vpop.f32.mrf.mxu1  ;;  %v10769_v12 = vsel %vm14693_vm8, %v14692_v28, %v4814_v29  ;;  %v10772_v43 = vadd.f32 %v3251_v63, %v10397_v36  ;;  %vm14695_vm3 = vmmov %vm14690_vm10  ;;  %v14696_v11 = vld [vmem:[#allocation28_spill] sm:$0xff] }
 0x297   : > { %3748 = vrot.lane.b32.xlu1 %v10514_v7, %s8584_s15  ;;  %3598 = vrot.lane.b32.xlu0 %v10528_v24, %s8584_s15  ;;  %v13975_v7 = vrot.slane %v10738_v8, 1  ;;  %14691 = vst [vmem:[#allocation55_spill] sm:$0xff] %v10761_v0  ;;  %v10763_v24 = vpop.f32.mrf.mxu0  ;;  %14694 = vst [vmem:[#allocation26_spill] sm:$0xff] %v10769_v12  ;;  %v3168_v6 = vadd.f32 %v3125_v3, %v10372_v15  ;;  %vm14697_vm10 = vnez %v14696_v11 }
 0x298   : > { %v10781_v37 = vpop.f32.mrf.mxu1  ;;  %vm14700_vm8 = vmmov %vm14695_vm3 }
 0x299   : > { %v3252_v14 = vsel %vm14695_vm3, %v13975_v7, %v3201_v21  ;;  %14698 = vst [vmem:[#allocation80_spill] sm:$0xff] %v10781_v37  ;;  %v10783_v40 = vpop.f32.mrf.mxu0  ;;  %v3203_v36 = vrot.slane %v10781_v37, 1  ;;  %v3205_v21 = vrot.slane %v10761_v0, 1  ;;  %vm14701_vm3 = vcmp.lt.s32.totalorder %v8713_v23, 1  ;;  %v14702_v37 = vld [vmem:[#allocation114_spill] sm:$0xff] }
 0x29a   : > { %v3264_v19 = vsel %vm14697_vm10, %v3252_v14, 0.0  ;;  %v13978_v63 = vrot.slane %v10783_v40, 7  ;;  %v10792_v15 = vpop.f32.mrf.mxu1  ;;  %vm14703_vm15 = vnez %v14702_v37 }
 0x29b   : > { %3758 = vrot.lane.b32.xlu0 %v10530_v31, %s8584_s15  ;;  %3600 = vrot.lane.b32.xlu1 %v10550_v62, %s8584_s15  ;;  %14699 = vst [vmem:[#allocation87_spill] sm:$0xff] %v10792_v15  ;;  %v8229_v3 = vpop.f32.mrf.mxu0  ;;  %v10794_v28 = vadd.f32 %v3264_v19, %v3168_v6  ;;  %v3250_v14 = vsel %vm14700_vm8, %v3202_v38, %v3203_v36  ;;  %v3206_v7 = vrot.slane %v10792_v15, 1  ;;  %v14705_v38 = vrot.slane %v10408_v61, 7  ;;  %vm14707_vm8 = vmmov %vm14701_vm3 }
 0x29c   : > { %v4818_v31 = vrot.slane %v8229_v3, 7  ;;  %v10803_v62 = vsel %vm14701_vm3, %v4814_v29, %v13978_v63  ;;  %v3266_v11 = vsel %vm14703_vm15, %v3250_v14, 0.0  ;;  %v10808_v0 = vpop.f32.mrf.mxu1  ;;  %v14706_v29 = vrot.slane %v10388_v33, 7  ;;  %vm14711_vm5 = vmmov %vm14707_vm8 }
 0x29d   : > { %14704 = vst [vmem:[#allocation106_spill] sm:$0xff] %v10808_v0  ;;  %v10810_v19 = vpop.f32.mrf.mxu0  ;;  %v10823_v3 = vadd.f32 %v3266_v11, %v10382_v22  ;;  %vm14708_vm3 = vcmp.lt.s32.totalorder %v8713_v23, 7  ;;  %v3204_v63 = vrot.slane %v10808_v0, 1 }
 0x29e   : > { %v3121_v6 = vsel %vm14707_vm8, %v14706_v29, %v14705_v38  ;;  %v3247_v14 = vsel %vm14708_vm3, %v3205_v21, %v3206_v7  ;;  %v10828_v12 = vpop.f32.mrf.mxu1  ;;  %vm14712_vm8 = vmmov %vm14708_vm3  ;;  %v14713_v29 = vld [vmem:[#allocation61_spill] sm:$0xff] }
 0x29f   : > { %3594 = vrot.lane.b32.xlu0 %v10536_v51, %s8584_s15  ;;  %3760 = vrot.lane.b32.xlu1 %v10552_v52, %s8584_s15  ;;  %14709 = vst [vmem:[#allocation44_spill] sm:$0xff] %v10828_v12  ;;  %v10830_v51 = vpop.f32.mrf.mxu0  ;;  %v14710_v52 = vrot.slane %v10763_v24, 7  ;;  %v10839_v61 = vadd.f32 %v3247_v14, %v10441_v57  ;;  %v3248_v22 = vsel %vm14712_vm8, %v3204_v63, %v3205_v21  ;;  %vm14714_vm9 = vnez %v14713_v29 }
 0x2a0   : > { %v3249_v11 = vsel %vm14708_vm3, %v3203_v36, %v3204_v63  ;;  %v3172_v38 = vadd.f32 %v3121_v6, %v10410_v54  ;;  %v3268_v0 = vsel %vm14714_vm9, %v3248_v22, 0.0  ;;  %v10851_v15 = vpop.f32.mrf.mxu1  ;;  %vm14716_vm8 = vcmp.lt.s32.totalorder %v8713_v23, 1  ;;  %v14717_v22 = vld [vmem:[#allocation115_spill] sm:$0xff] }
 0x2a1   : > { %v10836_v33 = vsel %vm14711_vm5, %v14710_v52, %v4818_v31  ;;  %v10849_v37 = vadd.f32 %v3249_v11, %v10414_v53  ;;  %v10853_v52 = vpop.f32.mrf.mxu0  ;;  %v13984_v57 = vrot.slane %v10851_v15, 1  ;;  %vm14715_vm5 = vmmov %vm14708_vm3  ;;  %v13985_v14 = vrot.slane %v10830_v51, 7 }
 0x2a2   : > { %v13983_v54 = vrot.slane %v10853_v52, 7  ;;  %v10861_v36 = vpop.f32.mrf.mxu1  ;;  %v10863_v21 = vadd.f32 %v3268_v0, %v3172_v38  ;;  %vm14718_vm3 = vnez %v14717_v22 }
 0x2a3   : > { %3754 = vrot.lane.b32.xlu0 %v10538_v49, %s8584_s15  ;;  %3596 = vrot.lane.b32.xlu1 %v10562_v41, %s8584_s15  ;;  %v8233_v63 = vpop.f32.mrf.mxu0  ;;  %v3246_v53 = vsel %vm14715_vm5, %v3206_v7, %v13984_v57  ;;  %vm14721_vm5 = vmmov %vm14716_vm8 }
 0x2a4   : > { %v4822_v6 = vrot.slane %v8233_v63, 7  ;;  %v10873_v49 = vsel %vm14716_vm8, %v4818_v31, %v13983_v54  ;;  %v3270_v11 = vsel %vm14718_vm3, %v3246_v53, 0.0  ;;  %v10878_v41 = vpop.f32.mrf.mxu1  ;;  %vm14724_vm8 = vmmov %vm14721_vm5 }
 0x2a5   : > { %14719 = vst [vmem:[#allocation82_spill] sm:$0xff] %v10878_v41  ;;  %v10880_v0 = vpop.f32.mrf.mxu0  ;;  %v10887_v7 = vadd.f32 %v3270_v11, %v10422_v46  ;;  %vm14759_vm2 = vmmov %vm14721_vm5 }
 0x2a6   : > { %v10889_v31 = vpop.f32.mrf.mxu1  ;;  %v10897_v63 = vsel %vm14721_vm5, %v13985_v14, %v4822_v6 }
 0x2a7   : > { %3756 = vrot.lane.b32.xlu1 %v10564_v50, %s8584_s15  ;;  %3606 = vrot.lane.b32.xlu0 %v10579_v30, %s8584_s15  ;;  %v10891_v38 = vpop.f32.mrf.mxu0  ;;  %14722 = vst [vmem:[#allocation48_spill] sm:$0xff] %v10897_v63 }
 0x2a8   : > { %14720 = vst [vmem:[#allocation31_spill] sm:$0xff] %v10891_v38  ;;  %v10899_v53 = vpop.f32.mrf.mxu1  ;;  %v13993_v50 = vrot.slane %v10891_v38, 7 }
 0x2a9   : > { %v10901_v54 = vpop.f32.mrf.mxu0 }
 0x2aa   : > { %14723 = vst [vmem:[#allocation76_spill] sm:$0xff] %v10901_v54  ;;  %v13987_v30 = vrot.slane %v10901_v54, 7  ;;  %v10908_v46 = vpop.f32.mrf.mxu1 }
 0x2ab   : > { %3766 = vrot.lane.b32.xlu0 %v10581_v34, %s8584_s15  ;;  %3608 = vrot.lane.b32.xlu1 %v10601_v20, %s8584_s15  ;;  %v8237_v11 = vpop.f32.mrf.mxu0 }
 0x2ac   : > { %v4826_v57 = vrot.slane %v8237_v11, 7  ;;  %v10914_v14 = vsel %vm14724_vm8, %v4822_v6, %v13987_v30  ;;  %v10917_v63 = vpop.f32.mrf.mxu1  ;;  %vm14735_vm8 = vmmov %vm14721_vm5 }
 0x2ad   : > { %14725 = vst [vmem:[#allocation58_spill] sm:$0xff] %v10914_v14  ;;  %14726 = vst [vmem:[#allocation94_spill] sm:$0xff] %v10917_v63  ;;  %v10919_v34 = vpop.f32.mrf.mxu0 }
 0x2ae   : > { %14727 = vst [vmem:[#allocation99_spill] sm:$0xff] %v10919_v34  ;;  %v10925_v20 = vpop.f32.mrf.mxu1  ;;  %v10933_v6 = vsel %vm14721_vm5, %v13993_v50, %v4826_v57  ;;  %v3208_v34 = vrot.slane %v10878_v41, 1 }
 0x2af   : > { %3602 = vrot.lane.b32.xlu0 %v10587_v26, %s8584_s15  ;;  %3768 = vrot.lane.b32.xlu1 %v10603_v4, %s8584_s15  ;;  %14728 = vst [vmem:[#allocation84_spill] sm:$0xff] %v10925_v20  ;;  %v10927_v11 = vpop.f32.mrf.mxu0  ;;  %14730 = vst [vmem:[#allocation17_spill] sm:$0xff] %v10933_v6  ;;  %v10944_v26 = vpop.permute.xlu0 %4034 }
 0x2b0   : > { %14729 = vst [vmem:[#allocation39_spill] sm:$0xff] %v10927_v11  ;;  %v10935_v30 = vpop.f32.mrf.mxu1  ;;  %14733 = vst [vmem:[#allocation90_spill] sm:$0xff] %v10944_v26  ;;  %v14002_v6 = vrot.slane %v10927_v11, 7  ;;  %v10963_v26 = vpop.permute.xlu1 %7359 }
 0x2b1   : > { %14731 = vst [vmem:[#allocation20_spill] sm:$0xff] %v10935_v30  ;;  %v10937_v54 = vpop.f32.mrf.mxu0  ;;  %14739 = vst [vmem:[#allocation52_spill] sm:$0xff] %v10963_v26  ;;  %v3196_v26 = vrot.slane %v10706_v59, 1  ;;  %v3198_v59 = vrot.slane %v10703_v47, 1 }
 0x2b2   : > { %14732 = vst [vmem:[#allocation69_spill] sm:$0xff] %v10937_v54  ;;  %v13997_v4 = vrot.slane %v10937_v54, 7  ;;  %v10946_v20 = vpop.f32.mrf.mxu1 }
 0x2b3   : > { %3762 = vrot.lane.b32.xlu0 %v10589_v32, %s8584_s15  ;;  %3604 = vrot.lane.b32.xlu1 %v10613_v13, %s8584_s15  ;;  %14734 = vst [vmem:[#allocation22_spill] sm:$0xff] %v10946_v20  ;;  %v8241_v38 = vpop.f32.mrf.mxu0  ;;  %v3199_v20 = vrot.slane %v10724_v18, 1 }
 0x2b4   : > { %v4830_v63 = vrot.slane %v8241_v38, 7  ;;  %v10952_v50 = vsel %vm14735_vm8, %v4826_v57, %v13997_v4  ;;  %v10955_v32 = vpop.f32.mrf.mxu1  ;;  %vm14749_vm8 = vmmov %vm14721_vm5 }
 0x2b5   : > { %14736 = vst [vmem:[#allocation70_spill] sm:$0xff] %v10952_v50  ;;  %14737 = vst [vmem:[#allocation35_spill] sm:$0xff] %v10955_v32  ;;  %v10957_v30 = vpop.f32.mrf.mxu0 }
 0x2b6   : > { %14738 = vst [vmem:[#allocation71_spill] sm:$0xff] %v10957_v30  ;;  %v10965_v38 = vpop.f32.mrf.mxu1  ;;  %v10973_v57 = vsel %vm14721_vm5, %v14002_v6, %v4830_v63 }
 0x2b7   : > { %3764 = vrot.lane.b32.xlu1 %v10615_v58, %s8584_s15  ;;  %3774 = vrot.lane.b32.xlu0 %v10630_v17, %s8584_s15  ;;  %14740 = vst [vmem:[#allocation97_spill] sm:$0xff] %v10965_v38  ;;  %v10967_v13 = vpop.f32.mrf.mxu0  ;;  %14742 = vst [vmem:[#allocation95_spill] sm:$0xff] %v10973_v57 }
 0x2b8   : > { %14741 = vst [vmem:[#allocation67_spill] sm:$0xff] %v10967_v13  ;;  %v10977_v32 = vpop.f32.mrf.mxu1 }
 0x2b9   : > { %v10975_v4 = vpop.permute.xlu0 %3558  ;;  %14744 = vst [vmem:[#allocation21_spill] sm:$0xff] %v10977_v32  ;;  %v10979_v58 = vpop.f32.mrf.mxu0 }
 0x2ba   : > { %14743 = vst [vmem:[#allocation92_spill] sm:$0xff] %v10975_v4  ;;  %14745 = vst [vmem:[#allocation79_spill] sm:$0xff] %v10979_v58  ;;  %v14008_v17 = vrot.slane %v10979_v58, 7  ;;  %v10987_v38 = vpop.f32.mrf.mxu1 }
 0x2bb   : > { %3776 = vrot.lane.b32.xlu1 %v10650_v16, %s8584_s15  ;;  %3610 = vrot.lane.b32.xlu0 %v10636_v9, %s8584_s15  ;;  %14746 = vst [vmem:[#allocation102_spill] sm:$0xff] %v10987_v38  ;;  %v8245_v6 = vpop.f32.mrf.mxu0  ;;  %v3197_v9 = vrot.slane %v10682_v5, 1 }
 0x2bc   : > { %v4834_v4 = vrot.slane %v8245_v6, 7  ;;  %v10998_v16 = vsel %vm14749_vm8, %v4830_v63, %v14008_v17  ;;  %v11003_v54 = vpop.f32.mrf.mxu1  ;;  %v14753_v6 = vrot.slane %v10337_v25, 7  ;;  %v14754_v63 = vrot.slane %v10331_v56, 7 }
 0x2bd   : > { %v10990_v57 = vpop.permute.xlu1 %3560  ;;  %v10992_v32 = vpop.permute.xlu0 %3718  ;;  %14750 = vst [vmem:[#allocation112_spill] sm:$0xff] %v10998_v16  ;;  %14751 = vst [vmem:[#allocation18_spill] sm:$0xff] %v11003_v54  ;;  %vm14755_vm8 = vcmp.lt.s32.totalorder %v8713_v23, 7  ;;  %v14758_v54 = vrot.slane %v10967_v13, 7  ;;  %v3195_v25 = vrot.slane %v10690_v55, 1  ;;  %v14782_v13 = vld [vmem:[#allocation100_spill] sm:$0xff] }
 0x2be   : > { %14747 = vst [vmem:[#allocation77_spill] sm:$0xff] %v10990_v57  ;;  %14748 = vst [vmem:[#allocation124_spill] sm:$0xff] %v10992_v32  ;;  %v11005_v50 = vpop.f32.mrf.mxu0  ;;  %v3129_v17 = vsel %vm14721_vm5, %v14754_v63, %v14753_v6  ;;  %v3256_v38 = vsel %vm14755_vm8, %v3196_v26, %v3197_v9  ;;  %v11019_v32 = vpop.f32.mrf.mxu1  ;;  %v14764_v63 = vld [vmem:[#allocation7_spill] sm:$0xff] }
 0x2bf   : > { %14752 = vst [vmem:[#allocation43_spill] sm:$0xff] %v11005_v50  ;;  %3770 = vrot.lane.b32.xlu0 %v10638_v39, %s8584_s15  ;;  %3612 = vrot.lane.b32.xlu1 %v10659_v35, %s8584_s15  ;;  %14756 = vst [vmem:[#allocation117_spill] sm:$0xff] %v11019_v32  ;;  %v11027_v39 = vsel %vm14759_vm2, %v14758_v54, %v4834_v4  ;;  %vm14765_vm5 = vnez %v14764_v63  ;;  %v3164_v58 = vadd.f32 %v3129_v17, %v10339_v60 }
 0x2c0   : > { %v11021_v57 = vpop.f32.mrf.mxu0  ;;  %14760 = vst [vmem:[#allocation116_spill] sm:$0xff] %v11027_v39  ;;  %vm14761_vm6 = vmmov %vm14755_vm8  ;;  %v3131_v32 = vsel %vm14765_vm5, %v10674_v1, 0.0  ;;  %v11042_v54 = vpop.f32.mrf.mxu1  ;;  %v14771_v1 = vld [vmem:[#allocation12_spill] sm:$0xff]  ;;  %v4808_v17 = vrot.slane %v10708_v44, 7 }
 0x2c1   : > { %14757 = vst [vmem:[#allocation72_spill] sm:$0xff] %v11021_v57  ;;  %v3254_v56 = vsel %vm14761_vm6, %v3198_v59, %v3199_v20  ;;  %v11032_v35 = vpop.permute.xlu1 %3720  ;;  %v11034_v6 = vpop.permute.xlu0 %3554  ;;  %vm14766_vm8 = vmmov %vm14761_vm6  ;;  %vm14769_vm6 = vcmask 1043456   ;;  %vm14772_vm1 = vnez %v14771_v1  ;;  %v3163_v44 = vadd.f32 %v3131_v32, %v10333_v45  ;;  %v14843_v1 = vld [vmem:[#allocation14_spill] sm:$0xff] }
 0x2c2   : > { %14762 = vst [vmem:[#allocation41_spill] sm:$0xff] %v11032_v35  ;;  %14763 = vst [vmem:[#allocation25_spill] sm:$0xff] %v11034_v6  ;;  %v3255_v57 = vsel %vm14766_vm8, %v3197_v9, %v3198_v59  ;;  %v11044_v39 = vpop.f32.mrf.mxu0  ;;  %v11052_v55 = vsel %vm14769_vm6, %v10448_v2, 0  ;;  %v3260_v9 = vsel %vm14772_vm1, %v3256_v38, 0.0  ;;  %v14773_v6 = vrot.slane %v10464_v10, 7  ;;  %v14780_v38 = vld [vmem:[#allocation64_spill] sm:$0xff] }
 0x2c3   : > { %14767 = vst [vmem:[#allocation96_spill] sm:$0xff] %v11042_v54  ;;  %14768 = vst [vmem:[#allocation120_spill] sm:$0xff] %v11044_v39  ;;  %3772 = vrot.lane.b32.xlu1 %v10661_v48, %s8584_s15  ;;  %3878 = vrot.lane.b32.xlu0 %v10682_v5, %s8584_s15  ;;  %v14774_v35 = vrot.slane %v10434_v42, 7  ;;  %v14776_v48 = vld [vmem:[#allocation113_spill] sm:$0xff]  ;;  %v4812_v54 = vrot.slane %v10740_v27, 7  ;;  %v14781_v59 = vrot.slane %v14780_v38, 7 }
 0x2c4   : > { %vm14770_vm2 = vmmov %vm14766_vm8  ;;  %vm14775_vm8 = vcmp.lt.s32.totalorder %v8713_v23, 1  ;;  %vm14777_vm6 = vnez %v14776_v48  ;;  %v11071_v16 = vpop.f32.mrf.mxu0  ;;  %v14783_v10 = vrot.slane %v14782_v13, 7  ;;  %v14789_v45 = vrot.slane %v11044_v39, 7  ;;  %v14792_v13 = vld [vmem:[#allocation65_spill] sm:$0xff] }
 0x2c5   : > { %v3257_v60 = vsel %vm14770_vm2, %v3195_v25, %v3196_v26  ;;  %v3117_v5 = vsel %vm14775_vm8, %v14774_v35, %v14773_v6  ;;  %v3262_v2 = vsel %vm14777_vm6, %v3254_v56, 0.0  ;;  %v11069_v26 = vpop.f32.mrf.mxu1  ;;  %14779 = vst [vmem:[#allocation68_spill] sm:$0xff] %v11071_v16  ;;  %vm14784_vm2 = vmmov %vm14775_vm8  ;;  %v14785_v35 = vrot.slane %v10738_v8, 1  ;;  %v11085_v6 = vpop.permute.xlu1 %3556 }
 0x2c6   : > { %14778 = vst [vmem:[#allocation56_spill] sm:$0xff] %v11069_v26  ;;  %v3113_v42 = vsel %vm14784_vm2, %v14783_v10, %v14781_v59  ;;  %vm14786_vm8 = vcmp.lt.s32.totalorder %v8713_v23, 7  ;;  %14787 = vst [vmem:[#allocation98_spill] sm:$0xff] %v11085_v6  ;;  %v11087_v50 = vpop.permute.xlu0 %3714  ;;  %v4807_v38 = vrot.slane %v14792_v13, 7  ;;  %v3292_v59 = vadd.f32 %v3260_v9, %v3164_v58  ;;  %v11098_v11 = vpop.f32.mrf.mxu0  ;;  %v14800_v9 = vld [vmem:[#allocation45_spill] sm:$0xff] }
 0x2c7   : > { %v3253_v56 = vsel %vm14786_vm8, %v3199_v20, %v14785_v35  ;;  %14788 = vst [vmem:[#allocation123_spill] sm:$0xff] %v11087_v50  ;;  %vm14790_vm3 = vmmov %vm14784_vm2  ;;  %v11096_v10 = vpop.f32.mrf.mxu1  ;;  %3880 = vrot.lane.b32.xlu1 %v10703_v47, %s8584_s15  ;;  %v14795_v20 = vld [vmem:[#allocation73_spill] sm:$0xff]  ;;  %v3291_v6 = vadd.f32 %v3257_v60, %v3163_v44  ;;  %v14801_v13 = vrot.slane %v14800_v9, 7 }
 0x2c8   : > { %v11093_v32 = vsel %vm14790_vm3, %v4834_v4, %v14789_v45  ;;  %14793 = vst [vmem:[#allocation108_spill] sm:$0xff] %v11096_v10  ;;  %14794 = vst [vmem:[#allocation125_spill] sm:$0xff] %v11098_v11  ;;  %3886 = vrot.lane.b32.xlu0 %v14795_v20, %s8584_s15  ;;  %v14796_v35 = vld [vmem:[#allocation53_spill] sm:$0xff]  ;;  %v4816_v4 = vrot.slane %v10810_v19, 7  ;;  %v14798_v45 = vrot.slane %v11069_v26, 1  ;;  %v14802_v10 = vld [vmem:[#allocation46_spill] sm:$0xff]  ;;  %v8288_v19 = vpop.f32.mrf.mxu0 }
 0x2c9   : > { %14791 = vst [vmem:[#allocation81_spill] sm:$0xff] %v11093_v32  ;;  %v3293_v27 = vadd.f32 %v3255_v57, %v14796_v35  ;;  %v14797_v50 = vld [vmem:[#allocation9_spill] sm:$0xff]  ;;  %vm14799_vm3 = vmmov %vm14786_vm8  ;;  %v11115_v47 = vsel %vm14784_vm2, %v4808_v17, %v14801_v13  ;;  %v3295_v20 = vadd.f32 %v3253_v56, %v14802_v10  ;;  %v14803_v32 = vld [vmem:[#allocation86_spill] sm:$0xff]  ;;  %v8254_v60 = vpop.f32.mrf.mxu1 }
 0x2ca   : > { %v3294_v39 = vadd.f32 %v3262_v2, %v14797_v50  ;;  %v3258_v58 = vsel %vm14799_vm3, %v14798_v45, %v3195_v25  ;;  %vm14804_vm8 = vnez %v14803_v32  ;;  %v14805_v2 = vld [vmem:[#allocation16_spill] sm:$0xff]  ;;  %vm14807_vm9 = vmmov %vm14784_vm2  ;;  %v14808_v35 = vld [vmem:[#allocation10_spill] sm:$0xff]  ;;  %v11138_v50 = vpop.permute.xlu0 %3566 }
 0x2cb   : > { %v3290_v57 = vsel %vm14804_vm8, %v3258_v58, 0.0  ;;  %v14806_v44 = vrot.slane %v14805_v2, 7  ;;  %v11128_v45 = vadd.f32 %v3117_v5, %v14808_v35  ;;  %v14809_v9 = vld [vmem:[#allocation89_spill] sm:$0xff]  ;;  %v14811_v56 = vld [vmem:[#allocation40_spill] sm:$0xff]  ;;  %v11136_v58 = vpop.permute.xlu1 %3716  ;;  %14814 = vst [vmem:[#allocation65_spill] sm:$0xff] %v11138_v50  ;;  %vm14815_vm3 = vmmov %vm14784_vm2  ;;  %v4514_v32 = vpop.f32.mrf.mxu1  ;;  %v14864_v50 = vrot.slane %v10853_v52, 7 }
 0x2cc   : > { %v11131_v13 = vadd.f32 %v3113_v42, %v14809_v9  ;;  %v11134_v10 = vadd.f32 %v3290_v57, %v14811_v56  ;;  %14813 = vst [vmem:[#allocation100_spill] sm:$0xff] %v11136_v58  ;;  %v4869_v2 = vsel %vm14815_vm3, %v4807_v38, %v4808_v17  ;;  %v11145_v5 = vpop.f32.mrf.mxu0  ;;  %3882 = vrot.lane.b32.xlu0 %v10724_v18, %s8584_s15  ;;  %v14817_v42 = vld [vmem:[#allocation32_spill] sm:$0xff]  ;;  %v14818_v57 = vld [vmem:[#allocation33_spill] sm:$0xff]  ;;  %vm14827_vm3 = vmmov %vm14784_vm2 }
 0x2cd   : > { %v11125_v25 = vsel %vm14807_vm9, %v4812_v54, %v14806_v44  ;;  %v4873_v44 = vsel %vm9624_vm4, %v11115_v47, 0.0  ;;  %3888 = vrot.lane.b32.xlu1 %v14817_v42, %s8584_s15  ;;  %v3331_v35 = vadd.f32 %v14818_v57, %v3293_v27  ;;  %v3330_v9 = vadd.f32 %v14818_v57, %v3292_v59  ;;  %v14820_v47 = vld [vmem:[#allocation60_spill] sm:$0xff]  ;;  %vm14824_vm9 = vmmov %vm14784_vm2 }
 0x2ce   : > { %14810 = vst [vmem:[#allocation49_spill] sm:$0xff] %v11131_v13  ;;  %14812 = vst [vmem:[#allocation64_spill] sm:$0xff] %v11134_v10  ;;  %v3329_v56 = vadd.f32 %v14818_v57, %v3291_v6  ;;  %v14822_v10 = vld [vmem:[#allocation24_spill] sm:$0xff]  ;;  %v14825_v27 = vrot.slane %v10763_v24, 7  ;;  %v14826_v6 = vrot.slane %v11071_v16, 7  ;;  %v8255_v57 = vpop.f32.mrf.mxu1  ;;  %v8289_v26 = vpop.f32.mrf.mxu0 }
 0x2cf   : > { %v14823_v11 = vrot.slane %v14822_v10, 7  ;;  %v11179_v10 = vld [vmem:[%s13736_s4] ss:$0 sm:$0xff]  ;;  %v11194_v58 = vpop.permute.xlu0 %3726 }
 0x2d0   : > { %v11170_v59 = vsel %vm14784_vm2, %v4816_v4, %v14825_v27  ;;  %v4870_v42 = vsel %vm14827_vm3, %v14826_v6, %v4807_v38  ;;  %v11186_v24 = vadd.f32 %v11179_v10, %v10772_v43  ;;  %v3209_v27 = vrot.slane %v10828_v12, 1  ;;  %v11192_v6 = vpop.permute.xlu1 %3568  ;;  %14829 = vst [vmem:[#allocation53_spill] sm:$0xff] %v11194_v58  ;;  %v4517_v30 = vpop.f32.mrf.mxu1  ;;  %3397 = vrot.lane.b32.xlu0 %v3331_v35, %s8585_s28 }
 0x2d1   : > { %v11164_v18 = vsel %vm14824_vm9, %v14823_v11, %v4812_v54  ;;  %v11182_v11 = vadd.f32 %v11179_v10, %v3294_v39  ;;  %v11189_v54 = vadd.f32 %v11179_v10, %v3295_v20  ;;  %v4938_v38 = vrot.slane %v8289_v26, 1  ;;  %14828 = vst [vmem:[#allocation73_spill] sm:$0xff] %v11192_v6  ;;  %v4683_v20 = vpop.f32.mrf.mxu0  ;;  %3395 = vrot.lane.b32.xlu1 %v3330_v9, %s8585_s28  ;;  %vm14833_vm9 = vmmov %vm14784_vm2 }
 0x2d2   : > { %v11201_v39 = vadd.f32 %v11179_v10, %v10794_v28  ;;  %v14832_v6 = vrot.slane %v10783_v40, 7  ;;  %v11217_v28 = vadd.f32 %v11179_v10, %v10823_v3  ;;  %v4937_v43 = vrot.slane %v8288_v19, 1  ;;  %v8258_v14 = vpop.f32.mrf.mxu1 }
 0x2d3   : > { %v4871_v35 = vsel %vm14765_vm5, %v4870_v42, 0.0  ;;  %v14025_v9 = vrot.slane %v11145_v5, 1  ;;  %v4936_v12 = vrot.slane %v4683_v20, 1  ;;  %v8292_v40 = vpop.f32.mrf.mxu0  ;;  %v11229_v3 = vadd.f32 %v11179_v10, %v10849_v37 }
 0x2d4   : > { %v11213_v13 = vsel %vm14833_vm9, %v14832_v6, %v4816_v4  ;;  %v4903_v58 = vadd.f32 %v4871_v35, %v4514_v32  ;;  %v11225_v4 = vadd.f32 %v11179_v10, %v10839_v61  ;;  %vm14835_vm2 = vcmp.lt.s32.totalorder %v8713_v23, 7  ;;  %v11239_v20 = vpop.permute.xlu1 %3728  ;;  %v11241_v61 = vpop.permute.xlu0 %3562  ;;  %3393 = vrot.lane.b32.xlu0 %v3329_v56, %s8585_s28 }
 0x2d5   : > { %14834 = vst [vmem:[#allocation9_spill] sm:$0xff] %v11229_v3  ;;  %v4995_v19 = vsel %vm14835_vm2, %v4937_v43, %v4938_v38  ;;  %v4904_v42 = vadd.f32 %v4869_v2, %v4517_v30  ;;  %vm14836_vm3 = vmmov %vm14835_vm2  ;;  %v4905_v35 = vadd.f32 %v8254_v60, %v4873_v44  ;;  %v4530_v3 = vpop.f32.mrf.mxu1  ;;  %v4696_v41 = vpop.f32.mrf.mxu0  ;;  %3884 = vrot.lane.b32.xlu1 %v10738_v8, %s8584_s15  ;;  %v14841_v2 = vrot.slane %v10861_v36, 1 }
 0x2d6   : > { %v4996_v6 = vsel %vm14836_vm3, %v4936_v12, %v4937_v43  ;;  %vm14837_vm9 = vmmov %vm14835_vm2  ;;  %14838 = vst [vmem:[#allocation45_spill] sm:$0xff] %v11239_v20  ;;  %v4939_v43 = vrot.slane %v4696_v41, 1  ;;  %v11262_v56 = vadd.f32 %v11179_v10, %v10863_v21  ;;  %v4906_v20 = vadd.f32 %v8255_v57, %v14843_v1 }
 0x2d7   : > { %v4997_v32 = vsel %vm14837_vm9, %v14025_v9, %v4936_v12  ;;  %14839 = vst [vmem:[#allocation46_spill] sm:$0xff] %v11241_v61  ;;  %v5000_v37 = vsel %vm14772_vm1, %v4996_v6, 0.0  ;;  %v3243_v60 = vsel %vm14835_vm2, %v3209_v27, %v14841_v2  ;;  %vm14842_vm3 = vmmov %vm14835_vm2  ;;  %v4820_v6 = vrot.slane %v10880_v0, 7  ;;  %v8259_v9 = vpop.f32.mrf.mxu1  ;;  %v8293_v12 = vpop.f32.mrf.mxu0 }
 0x2d8   : > { %v5031_v63 = vadd.f32 %v4997_v32, %v4903_v58  ;;  %v11258_v58 = vld [vmem:[%s13738_s6] ss:$0 sm:$0xff]  ;;  %v5032_v44 = vadd.f32 %v5000_v37, %v4904_v42  ;;  %v11266_v8 = vsel %vm14842_vm3, %v3208_v34, %v3209_v27  ;;  %v5033_v32 = vadd.f32 %v4995_v19, %v4905_v35  ;;  %vm14844_vm9 = vmmov %vm14835_vm2  ;;  %v11273_v37 = vpop.permute.xlu1 %3564  ;;  %v11275_v21 = vpop.permute.xlu0 %3722 }
 0x2d9   : > { %v4994_v41 = vsel %vm14844_vm9, %v4938_v38, %v4939_v43  ;;  %v4942_v42 = vrot.slane %v8293_v12, 1  ;;  %14845 = vst [vmem:[#allocation16_spill] sm:$0xff] %v11273_v37  ;;  %14846 = vst [vmem:[#allocation10_spill] sm:$0xff] %v11275_v21  ;;  %v14847_v61 = vrot.slane %v10851_v15, 1  ;;  %v4533_v1 = vpop.f32.mrf.mxu1  ;;  %v4699_v57 = vpop.f32.mrf.mxu0  ;;  %3399 = vrot.lane.b32.xlu1 %v11182_v11, %s8585_s28  ;;  %v14848_v38 = vld [vmem:[#allocation55_spill] sm:$0xff]  ;;  %v14849_v35 = vld [vmem:[#allocation38_spill] sm:$0xff] }
 0x2da   : > { %v5070_v2 = vadd.f32 %v11258_v58, %v5031_v63  ;;  %v5071_v27 = vadd.f32 %v11258_v58, %v5032_v44  ;;  %v4941_v63 = vrot.slane %v8292_v40, 1  ;;  %v5002_v19 = vsel %vm14777_vm6, %v4994_v41, 0.0  ;;  %3894 = vrot.lane.b32.xlu0 %v14848_v38, %s8584_s15  ;;  %v14850_v44 = vld [vmem:[#allocation93_spill] sm:$0xff]  ;;  %vm14853_vm9 = vmmov %vm14835_vm2 }
 0x2db   : > { %v3245_v0 = vsel %vm14835_vm2, %v14847_v61, %v3208_v34  ;;  %v11289_v12 = vadd.f32 %v3243_v60, %v14849_v35  ;;  %vm14851_vm3 = vnez %v14850_v44  ;;  %v5034_v40 = vadd.f32 %v5002_v19, %v4906_v20  ;;  %v8262_v60 = vpop.f32.mrf.mxu1  ;;  %v8296_v35 = vpop.f32.mrf.mxu0  ;;  %vm14854_vm6 = vmmov %vm14835_vm2  ;;  %v14920_v44 = vld [vmem:[#allocation71_spill] sm:$0xff] }
 0x2dc   : > { %v3272_v37 = vsel %vm14851_vm3, %v11266_v8, 0.0  ;;  %v4940_v61 = vrot.slane %v4699_v57, 1  ;;  %v5072_v41 = vadd.f32 %v11258_v58, %v5033_v32  ;;  %v14852_v11 = vsel %vm14610_vm7, %v14820_v47, 0.0  ;;  %v11310_v19 = vpop.permute.xlu1 %3724  ;;  %v11312_v47 = vpop.permute.xlu0 %3574 }
 0x2dd   : > { %v4907_v48 = vadd.f32 %v14852_v11, %v4530_v3  ;;  %v4991_v38 = vsel %vm14853_vm9, %v4941_v63, %v4942_v42  ;;  %v11302_v21 = vpack.c.bf16 %v5071_v27, %v5070_v2  ;;  %v5073_v8 = vadd.f32 %v11258_v58, %v5034_v40  ;;  %v14861_v11 = vld [vmem:[#allocation80_spill] sm:$0xff] }
 0x2de   : > { %v4908_v34 = vadd.f32 %v11164_v18, %v4533_v1  ;;  %v4992_v20 = vsel %vm14835_vm2, %v4940_v61, %v4941_v63  ;;  %v4993_v32 = vsel %vm14854_vm6, %v4939_v43, %v4940_v61  ;;  %v14855_v3 = vsel %vm9642_vm12, %v11125_v25, 0.0  ;;  %v4546_v18 = vpop.f32.mrf.mxu1  ;;  %v4712_v43 = vpop.f32.mrf.mxu0  ;;  %3890 = vrot.lane.b32.xlu0 %v14861_v11, %s8584_s15 }
 0x2df   : > { %v4909_v2 = vadd.f32 %v8258_v14, %v14855_v3  ;;  %v5004_v57 = vsel %vm14697_vm10, %v4992_v20, 0.0  ;;  %v5035_v40 = vadd.f32 %v4993_v32, %v4907_v48  ;;  %vm14857_vm9 = vcmask 64512   ;;  %v14862_v20 = vld [vmem:[#allocation87_spill] sm:$0xff]  ;;  %v14863_v32 = vld [vmem:[#allocation29_spill] sm:$0xff] }
 0x2e0   : > { %8320 = vmatprep.mubr.msk.bf16.mxu1 %vm14857_vm9, %v11302_v21  ;;  %vm14858_vm2 = vmmov %vm14857_vm9  ;;  %v14859_v63 = vrot.slane %v10830_v51, 7  ;;  %vm14860_vm6 = vcmp.lt.s32.totalorder %v8713_v23, 1  ;;  %v14032_v14 = vrot.slane %v10899_v53, 1  ;;  %v11331_v25 = vpack.c.bf16 %v5073_v8, %v5072_v41  ;;  %3896 = vrot.lane.b32.xlu1 %v14862_v20, %s8584_s15  ;;  %v8263_v17 = vpop.f32.mrf.mxu1 }
 0x2e1   : > { %8354 = vmatprep.mubr.msk.bf16.mxu0 %vm14858_vm2, %v11302_v21  ;;  %v5036_v61 = vadd.f32 %v5004_v57, %v4908_v34  ;;  %v4943_v48 = vrot.slane %v4712_v43, 1  ;;  %v3303_v3 = vadd.f32 %v3245_v0, %v14863_v32  ;;  %v5037_v27 = vadd.f32 %v4991_v38, %v4909_v2  ;;  %vm14865_vm9 = vmmov %vm14860_vm6  ;;  %v14866_v34 = vld [vmem:[#allocation26_spill] sm:$0xff]  ;;  %v11352_v0 = vpop.permute.xlu1 %3576  ;;  %v11354_v38 = vpop.permute.xlu0 %3734 }
 0x2e2   : > { %v11328_v1 = vsel %vm14860_vm6, %v4820_v6, %v14859_v63  ;;  %v5074_v51 = vadd.f32 %v11258_v58, %v5035_v40  ;;  %v8297_v63 = vpop.f32.mrf.mxu0  ;;  %v11343_v41 = vsel %vm14865_vm9, %v14864_v50, %v4820_v6  ;;  %v4910_v8 = vadd.f32 %v8259_v9, %v14866_v34  ;;  %3405 = vrot.lane.b32.xlu0 %v11186_v24, %s8585_s28 }
 0x2e3   : > { %vm14867_vm2 = vcmp.lt.s32.totalorder %v8713_v23, 7  ;;  %v4946_v43 = vrot.slane %v8297_v63, 1  ;;  %vm14868_vm6 = vcmask 64512   ;;  %v5075_v52 = vadd.f32 %v11258_v58, %v5036_v61 }
 0x2e4   : > { %v4990_v57 = vsel %vm14867_vm2, %v4942_v42, %v4943_v48  ;;  %8321 = vmatmul.mubr.msk.bf16.vlgmr.msra.gmra.mxu1 %vm14868_vm6, %v11331_v25  ;;  %vm14869_vm10 = vmmov %vm14868_vm6  ;;  %v4945_v50 = vrot.slane %v8296_v35, 1  ;;  %v4549_v42 = vpop.f32.mrf.mxu1  ;;  %v4715_v2 = vpop.f32.mrf.mxu0  ;;  %v11365_v20 = vadd.f32 %v11179_v10, %v10887_v7  ;;  %v14872_v61 = vrot.slane %v10861_v36, 1  ;;  %3403 = vrot.lane.b32.xlu1 %v11201_v39, %s8585_s28 }
 0x2e5   : > { %8355 = vmatmul.mubr.msk.bf16.vlgmr.msra.gmra.mxu0 %vm14869_vm10, %v11331_v25  ;;  %v5006_v9 = vsel %vm14703_vm15, %v4990_v57, 0.0  ;;  %8387 = vmatpush3.bf16.msra.mxu1 %v11052_v55  ;;  %vm14873_vm10 = vmmov %vm14867_vm2  ;;  %v4944_v55 = vrot.slane %v4715_v2, 1  ;;  %v3304_v63 = vadd.f32 %v3272_v37, %v11128_v45  ;;  %v5076_v7 = vadd.f32 %v11258_v58, %v5037_v27  ;;  %v11395_v27 = vpop.permute.xlu1 %3736 }
 0x2e6   : > { %v11373_v35 = vsel %vm14873_vm10, %v14872_v61, %v14032_v14  ;;  %v5038_v32 = vadd.f32 %v5006_v9, %v4910_v8  ;;  %v14874_v34 = vsel %vm9380_vm11, %v10803_v62, 0.0  ;;  %vm14875_vm9 = vmmov %vm14867_vm2  ;;  %v8266_v8 = vpop.f32.mrf.mxu1  ;;  %v8300_v9 = vpop.f32.mrf.mxu0  ;;  %v11387_v2 = vpack.c.bf16 %v5075_v52, %v5074_v51  ;;  %14877 = vst [vmem:[#allocation89_spill] sm:$0xff] %v11395_v27  ;;  %3401 = vrot.lane.b32.xlu0 %v11189_v54, %s8585_s28 }
 0x2e7   : > { %v4911_v57 = vadd.f32 %v14874_v34, %v4546_v18  ;;  %v4987_v61 = vsel %vm14875_vm9, %v4945_v50, %v4946_v43  ;;  %v4912_v39 = vadd.f32 %v11213_v13, %v4549_v42  ;;  %v4988_v45 = vsel %vm14867_vm2, %v4944_v55, %v4945_v50  ;;  %vm14876_vm6 = vmmov %vm14867_vm2  ;;  %v11397_v62 = vpop.permute.xlu0 %3570  ;;  %v14882_v34 = vld [vmem:[#allocation106_spill] sm:$0xff] }
 0x2e8   : > { %v5077_v24 = vadd.f32 %v11258_v58, %v5038_v32  ;;  %v4989_v37 = vsel %vm14876_vm6, %v4943_v48, %v4944_v55  ;;  %v14878_v18 = vsel %vm9660_vm13, %v11170_v59, 0.0  ;;  %vm14879_vm10 = vnez %v14713_v29  ;;  %v4562_v13 = vpop.f32.mrf.mxu1  ;;  %v4728_v48 = vpop.f32.mrf.mxu0  ;;  %3892 = vrot.lane.b32.xlu1 %v14882_v34, %s8584_s15  ;;  %v14895_v29 = vld [vmem:[#allocation44_spill] sm:$0xff] }
 0x2e9   : > { %v4913_v51 = vadd.f32 %v8262_v60, %v14878_v18  ;;  %v5008_v52 = vsel %vm14879_vm10, %v4988_v45, 0.0  ;;  %v5039_v32 = vadd.f32 %v4989_v37, %v4911_v57  ;;  %vm14880_vm9 = vcmask 64512   ;;  %v14883_v57 = vld [vmem:[#allocation85_spill] sm:$0xff] }
 0x2ea   : > { %8324 = vmatprep.mubr.msk.bf16.mxu1 %vm14880_vm9, %v11387_v2  ;;  %vm14881_vm2 = vmmov %vm14880_vm9  ;;  %v11411_v50 = vadd.f32 %v11179_v10, %v11289_v12  ;;  %v14036_v42 = vrot.slane %v10908_v46, 1  ;;  %v11414_v59 = vpack.c.bf16 %v5077_v24, %v5076_v7  ;;  %v5040_v60 = vadd.f32 %v5008_v52, %v4912_v39  ;;  %v8267_v18 = vpop.f32.mrf.mxu1  ;;  %v8301_v14 = vpop.f32.mrf.mxu0  ;;  %3902 = vrot.lane.b32.xlu0 %v14895_v29, %s8584_s15 }
 0x2eb   : > { %8358 = vmatprep.mubr.msk.bf16.mxu0 %vm14881_vm2, %v11387_v2  ;;  %v4947_v55 = vrot.slane %v4728_v48, 1  ;;  %vm14884_vm6 = vnez %v14883_v57  ;;  %v5041_v37 = vadd.f32 %v4987_v61, %v4913_v51  ;;  %v5078_v12 = vadd.f32 %v11258_v58, %v5039_v32  ;;  %vm14886_vm10 = vmmov %vm14881_vm2  ;;  %v11436_v61 = vpop.permute.xlu0 %3730 }
 0x2ec   : > { %v3274_v45 = vsel %vm14884_vm6, %v11373_v35, 0.0  ;;  %v11425_v7 = vadd.f32 %v11179_v10, %v3303_v3  ;;  %v4914_v24 = vadd.f32 %v8263_v17, %v10836_v33  ;;  %vm14885_vm9 = vcmp.lt.s32.totalorder %v8713_v23, 7  ;;  %8325 = vmatmul.mubr.msk.bf16.gmra.mxu1 %vm14881_vm2, %v11414_v59  ;;  %v11434_v35 = vpop.permute.xlu1 %3572  ;;  %v4565_v17 = vpop.f32.mrf.mxu1  ;;  %3407 = vrot.lane.b32.xlu1 %v11217_v28, %s8585_s28 }
 0x2ed   : > { %v4986_v54 = vsel %vm14885_vm9, %v4946_v43, %v4947_v55  ;;  %v4950_v39 = vrot.slane %v8301_v14, 1  ;;  %8359 = vmatmul.mubr.msk.bf16.gmra.mxu0 %vm14886_vm10, %v11414_v59  ;;  %14887 = vst [vmem:[#allocation40_spill] sm:$0xff] %v11434_v35  ;;  %v5079_v51 = vadd.f32 %v11258_v58, %v5040_v60  ;;  %v4949_v3 = vrot.slane %v8300_v9, 1  ;;  %v4731_v52 = vpop.f32.mrf.mxu0  ;;  %v14889_v43 = vld [vmem:[#allocation58_spill] sm:$0xff]  ;;  %v14890_v14 = vld [vmem:[#allocation107_spill] sm:$0xff] }
 0x2ee   : > { %vm14888_vm15 = vnez %v14717_v22  ;;  %vm14891_vm9 = vnez %v14890_v14  ;;  %v11445_v48 = vadd.f32 %v11179_v10, %v3304_v63  ;;  %v14892_v34 = vrot.slane %v10889_v31, 1  ;;  %v14894_v9 = vld [vmem:[#allocation99_spill] sm:$0xff]  ;;  %3898 = vrot.lane.b32.xlu0 %v10851_v15, %s8584_s15 }
 0x2ef   : > { %v5010_v33 = vsel %vm14888_vm15, %v4986_v54, 0.0  ;;  %v4887_v32 = vsel %vm14891_vm9, %v14889_v43, 0.0  ;;  %vm14893_vm10 = vcmp.lt.s32.totalorder %v8713_v23, 7  ;;  %v4824_v11 = vrot.slane %v14894_v9, 7  ;;  %v14901_v9 = vld [vmem:[#allocation94_spill] sm:$0xff]  ;;  %v14983_v35 = vld [vmem:[#allocation79_spill] sm:$0xff] }
 0x2f0   : > { %v3239_v60 = vsel %vm14893_vm10, %v14892_v34, %v14036_v42  ;;  %v5042_v22 = vadd.f32 %v5010_v33, %v4914_v24  ;;  %v4948_v54 = vrot.slane %v4731_v52, 1  ;;  %v5080_v63 = vadd.f32 %v11258_v58, %v5041_v37  ;;  %vm14897_vm2 = vmmov %vm14893_vm10  ;;  %v11465_v42 = vpop.f32.mrf.mxu1  ;;  %v8304_v24 = vpop.f32.mrf.mxu0  ;;  %3904 = vrot.lane.b32.xlu1 %v10861_v36, %s8584_s15 }
 0x2f1   : > { %v14896_v43 = vsel %vm14624_vm14, %v10873_v49, 0.0  ;;  %v4983_v34 = vsel %vm14897_vm2, %v4949_v3, %v4950_v39  ;;  %v11467_v33 = vpack.c.bf16 %v5079_v51, %v5078_v12  ;;  %v4916_v52 = vadd.f32 %v11343_v41, %v4565_v17  ;;  %vm14898_vm10 = vmmov %vm14897_vm2  ;;  %v11475_v49 = vpop.permute.xlu1 %3732  ;;  %v14905_v17 = vld [vmem:[#allocation75_spill] sm:$0xff] }
 0x2f2   : > { %v4915_v6 = vadd.f32 %v14896_v43, %v4562_v13  ;;  %v5081_v28 = vadd.f32 %v11258_v58, %v5042_v22  ;;  %v4984_v29 = vsel %vm14898_vm10, %v4948_v54, %v4949_v3  ;;  %vm14899_vm15 = vmmov %vm14897_vm2  ;;  %v11477_v13 = vpop.permute.xlu0 %3582  ;;  %v3212_v43 = vrot.slane %v14901_v9, 1  ;;  %v4744_v3 = vpop.f32.mrf.mxu0  ;;  %3413 = vrot.lane.b32.xlu0 %v11225_v4, %s8585_s28 }
 0x2f3   : > { %v4985_v37 = vsel %vm14899_vm15, %v4947_v55, %v4948_v54  ;;  %14900 = vst [vmem:[#allocation32_spill] sm:$0xff] %v11477_v13  ;;  %v14902_v12 = vsel %vm9680_vm0, %v11328_v1, 0.0  ;;  %v5012_v22 = vsel %vm14851_vm3, %v4984_v29, 0.0  ;;  %vm14903_vm2 = vcmask 64512   ;;  %v4578_v55 = vpop.f32.mrf.mxu1  ;;  %v14906_v29 = vld [vmem:[#allocation31_spill] sm:$0xff] }
 0x2f4   : > { %v4917_v51 = vadd.f32 %v8266_v8, %v14902_v12  ;;  %v5043_v41 = vadd.f32 %v4985_v37, %v4915_v6  ;;  %8328 = vmatprep.mubr.msk.bf16.mxu1 %vm14903_vm2, %v11467_v33  ;;  %vm14904_vm15 = vmmov %vm14903_vm2  ;;  %v11491_v54 = vadd.f32 %v3274_v45, %v14905_v17  ;;  %v11493_v14 = vpack.c.bf16 %v5081_v28, %v5080_v63  ;;  %v8305_v17 = vpop.f32.mrf.mxu0  ;;  %v14909_v63 = vld [vmem:[#allocation37_spill] sm:$0xff] }
 0x2f5   : > { %8362 = vmatprep.mubr.msk.bf16.mxu0 %vm14904_vm15, %v11467_v33  ;;  %v5044_v40 = vadd.f32 %v5012_v22, %v4916_v52  ;;  %v4951_v1 = vrot.slane %v4744_v3, 1  ;;  %v14907_v37 = vrot.slane %v14906_v29, 7  ;;  %vm14908_vm10 = vcmp.lt.s32.totalorder %v8713_v23, 1  ;;  %v8271_v45 = vpop.f32.mrf.mxu1  ;;  %v14910_v52 = vld [vmem:[#allocation48_spill] sm:$0xff]  ;;  %vm14912_vm3 = vmmov %vm14904_vm15  ;;  %v11514_v15 = vpop.permute.xlu1 %3584  ;;  %3411 = vrot.lane.b32.xlu1 %v11262_v56, %s8585_s28 }
 0x2f6   : > { %v5045_v6 = vadd.f32 %v4983_v34, %v4917_v51  ;;  %v5082_v8 = vadd.f32 %v11258_v58, %v5043_v41  ;;  %v11505_v28 = vadd.f32 %v3239_v60, %v14909_v63  ;;  %v4918_v22 = vadd.f32 %v8267_v18, %v14910_v52  ;;  %8329 = vmatmul.mubr.msk.bf16.gmra.mxu1 %vm14904_vm15, %v11493_v14  ;;  %v11516_v34 = vpop.permute.xlu0 %3742  ;;  %v4747_v52 = vpop.f32.mrf.mxu0 }
 0x2f7   : > { %v4852_v12 = vsel %vm14908_vm10, %v4824_v11, %v14907_v37  ;;  %vm14911_vm2 = vcmp.lt.s32.totalorder %v8713_v23, 7  ;;  %v4954_v3 = vrot.slane %v8305_v17, 1  ;;  %8363 = vmatmul.mubr.msk.bf16.gmra.mxu0 %vm14912_vm3, %v11493_v14  ;;  %14913 = vst [vmem:[#allocation33_spill] sm:$0xff] %v11514_v15  ;;  %14914 = vst [vmem:[#allocation60_spill] sm:$0xff] %v11516_v34  ;;  %v5083_v51 = vadd.f32 %v11258_v58, %v5044_v40  ;;  %v4581_v29 = vpop.f32.mrf.mxu1  ;;  %v14917_v37 = vld [vmem:[#allocation76_spill] sm:$0xff]  ;;  %v14951_v34 = vld [vmem:[#allocation43_spill] sm:$0xff] }
 0x2f8   : > { %v4982_v36 = vsel %vm14911_vm2, %v4950_v39, %v4951_v1  ;;  %v14915_v60 = vrot.slane %v10889_v31, 1  ;;  %vm14916_vm10 = vmmov %vm14911_vm2  ;;  %v4953_v39 = vrot.slane %v8304_v24, 1  ;;  %v14918_v17 = vrot.slane %v14917_v37, 7  ;;  %v14921_v40 = vld [vmem:[#allocation4_spill] sm:$0xff]  ;;  %v8308_v37 = vpop.f32.mrf.mxu0 }
 0x2f9   : > { %v5014_v41 = vsel %vm14884_vm6, %v4982_v36, 0.0  ;;  %vm14919_vm3 = vcmp.lt.s32.totalorder %v8713_v23, 1  ;;  %v4828_v30 = vrot.slane %v14920_v44, 7  ;;  %vm14922_vm2 = vnez %v14921_v40  ;;  %vm14923_vm15 = vmmov %vm14916_vm10  ;;  %v11548_v4 = vpop.permute.xlu1 %3744 }
 0x2fa   : > { %v11523_v18 = vsel %vm14916_vm10, %v3212_v43, %v14915_v60  ;;  %v4853_v63 = vsel %vm14919_vm3, %v14918_v17, %v4824_v11  ;;  %v4889_v26 = vsel %vm14922_vm2, %v4852_v12, 0.0  ;;  %v5046_v16 = vadd.f32 %v5014_v41, %v4918_v22  ;;  %v8274_v60 = vpop.f32.mrf.mxu1  ;;  %vm14924_vm3 = vmmov %vm14916_vm10  ;;  %14925 = vst [vmem:[#allocation24_spill] sm:$0xff] %v11548_v4 }
 0x2fb   : > { %v4952_v15 = vrot.slane %v4747_v52, 1  ;;  %v5084_v24 = vadd.f32 %v11258_v58, %v5045_v6  ;;  %v4919_v36 = vadd.f32 %v4887_v32, %v4578_v55  ;;  %v4979_v11 = vsel %vm14923_vm15, %v4953_v39, %v4954_v3  ;;  %v11550_v6 = vpop.permute.xlu0 %3578  ;;  %vm14928_vm15 = vmmov %vm14924_vm3  ;;  %v14935_v52 = vld [vmem:[#allocation20_spill] sm:$0xff] }
 0x2fc   : > { %v11541_v44 = vpack.c.bf16 %v5083_v51, %v5082_v8  ;;  %v5085_v12 = vadd.f32 %v11258_v58, %v5046_v16  ;;  %v4920_v22 = vadd.f32 %v4853_v63, %v4581_v29  ;;  %14926 = vst [vmem:[#allocation14_spill] sm:$0xff] %v11550_v6  ;;  %v14927_v32 = vrot.slane %v10899_v53, 1  ;;  %v14929_v16 = vld [vmem:[#allocation118_spill] sm:$0xff]  ;;  %v14934_v63 = vld [vmem:[#allocation9_spill] sm:$0xff] }
 0x2fd   : > { %v4980_v41 = vsel %vm14916_vm10, %v4952_v15, %v4953_v39  ;;  %v4981_v56 = vsel %vm14924_vm3, %v4951_v1, %v4952_v15  ;;  %v4921_v8 = vadd.f32 %v11465_v42, %v4889_v26  ;;  %vm14930_vm6 = vnez %v14929_v16  ;;  %v4594_v1 = vpop.f32.mrf.mxu1  ;;  %v4760_v15 = vpop.f32.mrf.mxu0  ;;  %v14933_v42 = vld [vmem:[#allocation82_spill] sm:$0xff]  ;;  %3409 = vrot.lane.b32.xlu0 %v14934_v63, %s8585_s28 }
 0x2fe   : > { %v11556_v55 = vsel %vm14928_vm15, %v14927_v32, %v3212_v43  ;;  %v5016_v51 = vsel %vm14930_vm6, %v4980_v41, 0.0  ;;  %v5047_v29 = vadd.f32 %v4981_v56, %v4919_v36  ;;  %vm14931_vm10 = vcmask 64512   ;;  %3900 = vrot.lane.b32.xlu1 %v14933_v42, %s8584_s15  ;;  %v14936_v32 = vld [vmem:[#allocation39_spill] sm:$0xff] }
 0x2ff   : > { %8332 = vmatprep.mubr.msk.bf16.mxu1 %vm14931_vm10, %v11541_v44  ;;  %vm14932_vm3 = vmmov %vm14931_vm10  ;;  %v11568_v43 = vpack.c.bf16 %v5085_v12, %v5084_v24  ;;  %v5048_v17 = vadd.f32 %v5016_v51, %v4920_v22  ;;  %v4955_v26 = vrot.slane %v4760_v15, 1  ;;  %v5049_v41 = vadd.f32 %v4979_v11, %v4921_v8  ;;  %v8275_v24 = vpop.f32.mrf.mxu1  ;;  %v8309_v12 = vpop.f32.mrf.mxu0  ;;  %v14939_v22 = vld [vmem:[#allocation17_spill] sm:$0xff] }
 0x300   : > { %8366 = vmatprep.mubr.msk.bf16.mxu0 %vm14932_vm3, %v11541_v44  ;;  %v5086_v56 = vadd.f32 %v11258_v58, %v5047_v29  ;;  %v14937_v57 = vrot.slane %v14936_v32, 7  ;;  %vm14938_vm15 = vcmp.lt.s32.totalorder %v8713_v23, 1  ;;  %v4922_v51 = vadd.f32 %v8271_v45, %v14939_v22  ;;  %vm14941_vm1 = vmmov %vm14932_vm3  ;;  %v11588_v11 = vpop.permute.xlu1 %3580  ;;  %v11590_v8 = vpop.permute.xlu0 %3738  ;;  %v14943_v29 = vld [vmem:[#allocation70_spill] sm:$0xff]  ;;  %v14944_v32 = vld [vmem:[#allocation109_spill] sm:$0xff] }
 0x301   : > { %v5087_v15 = vadd.f32 %v11258_v58, %v5048_v17  ;;  %vm14940_vm10 = vcmp.lt.s32.totalorder %v8713_v23, 7  ;;  %v4958_v63 = vrot.slane %v8309_v12, 1  ;;  %8333 = vmatmul.mubr.msk.bf16.gmra.mxu1 %vm14932_vm3, %v11568_v43  ;;  %8367 = vmatmul.mubr.msk.bf16.gmra.mxu0 %vm14941_vm1, %v11568_v43  ;;  %14942 = vst [vmem:[#allocation55_spill] sm:$0xff] %v11588_v11  ;;  %v14946_v17 = vld [vmem:[#allocation119_spill] sm:$0xff]  ;;  %v14948_v12 = vld [vmem:[#allocation69_spill] sm:$0xff]  ;;  %v4763_v4 = vpop.f32.mrf.mxu0  ;;  %v4832_v6 = vrot.slane %v14951_v34, 7 }
 0x302   : > { %v4848_v39 = vsel %vm14938_vm15, %v4828_v30, %v14937_v57  ;;  %v4978_v42 = vsel %vm14940_vm10, %v4954_v3, %v4955_v26  ;;  %v4957_v57 = vrot.slane %v8308_v37, 1  ;;  %vm14945_vm15 = vnez %v14944_v32  ;;  %v4597_v3 = vpop.f32.mrf.mxu1  ;;  %v14952_v11 = vld [vmem:[#allocation47_spill] sm:$0xff]  ;;  %3415 = vrot.lane.b32.xlu1 %v11365_v20, %s8585_s28  ;;  %3910 = vrot.lane.b32.xlu0 %v10889_v31, %s8584_s15 }
 0x303   : > { %v4891_v45 = vsel %vm14945_vm15, %v14943_v29, 0.0  ;;  %vm14947_vm5 = vnez %v14946_v17  ;;  %v14949_v36 = vrot.slane %v14948_v12, 7  ;;  %vm14950_vm10 = vcmp.lt.s32.totalorder %v8713_v23, 1  ;;  %v8312_v34 = vpop.f32.mrf.mxu0 }
 0x304   : > { %v5018_v22 = vsel %vm14947_vm5, %v4978_v42, 0.0  ;;  %vm14953_vm1 = vnez %v14952_v11  ;;  %v4956_v27 = vrot.slane %v4763_v4, 1  ;;  %v5088_v42 = vadd.f32 %v11258_v58, %v5049_v41 }
 0x305   : > { %v4849_v40 = vsel %vm14950_vm10, %v14949_v36, %v4828_v30  ;;  %v4893_v13 = vsel %vm14953_vm1, %v4848_v39, 0.0  ;;  %v5050_v37 = vadd.f32 %v5018_v22, %v4922_v51  ;;  %v4923_v29 = vadd.f32 %v4891_v45, %v4594_v1  ;;  %v11611_v36 = vpop.f32.mrf.mxu1  ;;  %v11620_v51 = vpop.permute.xlu1 %3740  ;;  %v14959_v45 = vld [vmem:[#allocation121_spill] sm:$0xff] }
 0x306   : > { %vm14954_vm3 = vcmp.lt.s32.totalorder %v8713_v23, 7  ;;  %v11613_v12 = vpack.c.bf16 %v5087_v15, %v5086_v56  ;;  %v4924_v4 = vadd.f32 %v4849_v40, %v4597_v3  ;;  %14957 = vst [vmem:[#allocation38_spill] sm:$0xff] %v11620_v51  ;;  %v11622_v1 = vpop.permute.xlu0 %3590  ;;  %v4925_v41 = vadd.f32 %v8274_v60, %v4893_v13  ;;  %v4776_v56 = vpop.f32.mrf.mxu0  ;;  %v14963_v13 = vld [vmem:[#allocation67_spill] sm:$0xff]  ;;  %3912 = vrot.lane.b32.xlu1 %v10908_v46, %s8584_s15 }
 0x307   : > { %v4975_v30 = vsel %vm14954_vm3, %v4957_v57, %v4958_v63  ;;  %v5089_v39 = vadd.f32 %v11258_v58, %v5050_v37  ;;  %vm14955_vm10 = vmmov %vm14954_vm3  ;;  %14958 = vst [vmem:[#allocation80_spill] sm:$0xff] %v11622_v1  ;;  %vm14961_vm15 = vcmask 64512   ;;  %v4610_v40 = vpop.f32.mrf.mxu1  ;;  %v14964_v60 = vrot.slane %v14963_v13, 7  ;;  %3906 = vrot.lane.b32.xlu0 %v10899_v53, %s8584_s15  ;;  %v14971_v13 = vld [vmem:[#allocation95_spill] sm:$0xff] }
 0x308   : > { %v4976_v20 = vsel %vm14955_vm10, %v4956_v27, %v4957_v57  ;;  %vm14956_vm1 = vmmov %vm14954_vm3  ;;  %vm14960_vm3 = vnez %v14959_v45  ;;  %8336 = vmatprep.mubr.msk.bf16.mxu1 %vm14961_vm15, %v11613_v12  ;;  %v4959_v3 = vrot.slane %v4776_v56, 1  ;;  %v5053_v37 = vadd.f32 %v4975_v30, %v4925_v41 }
 0x309   : > { %v4977_v31 = vsel %vm14956_vm1, %v4955_v26, %v4956_v27  ;;  %v5020_v22 = vsel %vm14960_vm3, %v4976_v20, 0.0  ;;  %vm14962_vm2 = vmmov %vm14961_vm15  ;;  %v11632_v27 = vadd.f32 %v11179_v10, %v11491_v54  ;;  %v11634_v26 = vpack.c.bf16 %v5089_v39, %v5088_v42  ;;  %v14966_v54 = vld [vmem:[#allocation112_spill] sm:$0xff]  ;;  %v14967_v20 = vld [vmem:[#allocation110_spill] sm:$0xff]  ;;  %v8279_v39 = vpop.f32.mrf.mxu1  ;;  %v11663_v41 = vpop.permute.xlu1 %3592 }
 0x30a   : > { %v5051_v11 = vadd.f32 %v4977_v31, %v4923_v29  ;;  %8370 = vmatprep.mubr.msk.bf16.mxu0 %vm14962_vm2, %v11613_v12  ;;  %v5052_v15 = vadd.f32 %v5020_v22, %v4924_v4  ;;  %vm14965_vm1 = vcmp.lt.s32.totalorder %v8713_v23, 1  ;;  %vm14968_vm2 = vnez %v14967_v20  ;;  %v8313_v4 = vpop.f32.mrf.mxu0  ;;  %v14969_v31 = vld [vmem:[#allocation49_spill] sm:$0xff]  ;;  %vm14972_vm15 = vmmov %vm14955_vm10  ;;  %14975 = vst [vmem:[#allocation87_spill] sm:$0xff] %v11663_v41  ;;  %3419 = vrot.lane.b32.xlu1 %v11445_v48, %s8585_s28 }
 0x30b   : > { %v4844_v57 = vsel %vm14965_vm1, %v4832_v6, %v14964_v60  ;;  %v4895_v42 = vsel %vm14968_vm2, %v14966_v54, 0.0  ;;  %v14970_v22 = vsel %vm14930_vm6, %v11523_v18, 0.0  ;;  %v4926_v60 = vadd.f32 %v8275_v24, %v14971_v13  ;;  %v11665_v54 = vpop.permute.xlu0 %3750  ;;  %v14977_v18 = vld [vmem:[#allocation72_spill] sm:$0xff]  ;;  %v14980_v13 = vld [vmem:[#allocation122_spill] sm:$0xff]  ;;  %v14982_v20 = vld [vmem:[#allocation125_spill] sm:$0xff]  ;;  %3421 = vrot.lane.b32.xlu0 %v11411_v50, %s8585_s28 }
 0x30c   : > { %v5090_v29 = vadd.f32 %v11258_v58, %v5051_v11  ;;  %v11653_v56 = vadd.f32 %v14970_v22, %v14969_v31  ;;  %v5091_v53 = vadd.f32 %v11258_v58, %v5052_v15  ;;  %v4974_v11 = vsel %vm14972_vm15, %v4958_v63, %v4959_v3  ;;  %14976 = vst [vmem:[#allocation29_spill] sm:$0xff] %v11665_v54  ;;  %v14978_v22 = vld [vmem:[#allocation8_spill] sm:$0xff]  ;;  %v4779_v16 = vpop.f32.mrf.mxu0 }
 0x30d   : > { %v4962_v30 = vrot.slane %v8313_v4, 1  ;;  %vm14973_vm10 = vcmask 64512   ;;  %v4837_v31 = vrot.slane %v14977_v18, 7  ;;  %vm14979_vm6 = vnez %v14978_v22  ;;  %v4613_v4 = vpop.f32.mrf.mxu1  ;;  %v11691_v50 = vpop.permute.xlu1 %3752 }
 0x30e   : > { %8337 = vmatmul.mubr.msk.bf16.gmra.mxu1 %vm14973_vm10, %v11634_v26  ;;  %vm14974_vm1 = vmmov %vm14973_vm10  ;;  %v4897_v24 = vsel %vm14979_vm6, %v4844_v57, 0.0  ;;  %v4961_v15 = vrot.slane %v8312_v34, 1  ;;  %vm14981_vm2 = vnez %v14980_v13  ;;  %v4836_v32 = vrot.slane %v14982_v20, 7  ;;  %14989 = vst [vmem:[#allocation26_spill] sm:$0xff] %v11691_v50  ;;  %3908 = vrot.lane.b32.xlu1 %v14901_v9, %s8584_s15 }
 0x30f   : > { %8371 = vmatmul.mubr.msk.bf16.gmra.mxu0 %vm14974_vm1, %v11634_v26  ;;  %v5022_v63 = vsel %vm14981_vm2, %v4974_v11, 0.0  ;;  %v14984_v51 = vrot.slane %v14983_v35, 7  ;;  %vm14985_vm15 = vcmp.lt.s32.totalorder %v8713_v23, 1  ;;  %v4960_v54 = vrot.slane %v4779_v16, 1  ;;  %v8282_v20 = vpop.f32.mrf.mxu1  ;;  %3417 = vrot.lane.b32.xlu0 %v11425_v7, %s8585_s28 }
 0x310   : > { %v5054_v1 = vadd.f32 %v5022_v63, %v4926_v60  ;;  %v5092_v34 = vadd.f32 %v11258_v58, %v5053_v37  ;;  %v4927_v57 = vadd.f32 %v4895_v42, %v4610_v40  ;;  %vm14986_vm10 = vcmp.lt.s32.totalorder %v8713_v23, 7  ;;  %v8316_v60 = vpop.f32.mrf.mxu0  ;;  %v14994_v42 = vld [vmem:[#allocation6_spill] sm:$0xff] }
 0x311   : > { %v4845_v41 = vsel %vm14985_vm15, %v14984_v51, %v4832_v6  ;;  %v4971_v11 = vsel %vm14986_vm10, %v4961_v15, %v4962_v30  ;;  %v11684_v18 = vpack.c.bf16 %v5091_v53, %v5090_v29  ;;  %vm14987_vm1 = vmmov %vm14986_vm10  ;;  %v11693_v51 = vpop.permute.xlu0 %3586  ;;  %v14991_v40 = vrot.slane %v14935_v52, 1  ;;  %v11730_v7 = vpop.permute.xlu1 %3588 }
 0x312   : > { %v5093_v35 = vadd.f32 %v11258_v58, %v5054_v1  ;;  %v4928_v6 = vadd.f32 %v4845_v41, %v4613_v4  ;;  %v4972_v16 = vsel %vm14987_vm1, %v4960_v54, %v4961_v15  ;;  %vm14988_vm15 = vmmov %vm14987_vm1  ;;  %14990 = vst [vmem:[#allocation106_spill] sm:$0xff] %v11693_v51  ;;  %v14992_v37 = vrot.slane %v10908_v46, 1  ;;  %3423 = vrot.lane.b32.xlu1 %v11632_v27, %s8585_s28 }
 0x313   : > { %v4973_v48 = vsel %vm14988_vm15, %v4959_v3, %v4960_v54  ;;  %vm14993_vm10 = vmmov %vm14987_vm1  ;;  %v4929_v1 = vadd.f32 %v11611_v36, %v4897_v24  ;;  %vm14995_vm6 = vnez %v14994_v42  ;;  %vm14996_vm1 = vcmask 64512   ;;  %v4626_v3 = vpop.f32.mrf.mxu1  ;;  %v4792_v54 = vpop.f32.mrf.mxu0  ;;  %v14999_v36 = vld [vmem:[#allocation116_spill] sm:$0xff]  ;;  %15006 = vst [vmem:[#allocation58_spill] sm:$0xff] %v11730_v7  ;;  %v15082_v42 = vld [vmem:[#allocation91_spill] sm:$0xff] }
 0x314   : > { %v11701_v29 = vsel %vm14993_vm10, %v14992_v37, %v14991_v40  ;;  %v5024_v53 = vsel %vm14995_vm6, %v4972_v16, 0.0  ;;  %v5055_v41 = vadd.f32 %v4973_v48, %v4927_v57  ;;  %8340 = vmatprep.mubr.msk.bf16.mxu1 %vm14996_vm1, %v11684_v18  ;;  %vm14997_vm15 = vmmov %vm14996_vm1  ;;  %v11710_v15 = vpack.c.bf16 %v5093_v35, %v5092_v34  ;;  %v15000_v48 = vld [vmem:[#allocation81_spill] sm:$0xff]  ;;  %v15001_v40 = vld [vmem:[#allocation111_spill] sm:$0xff] }
 0x315   : > { %8374 = vmatprep.mubr.msk.bf16.mxu0 %vm14997_vm15, %v11684_v18  ;;  %v5056_v46 = vadd.f32 %v5024_v53, %v4928_v6  ;;  %vm14998_vm10 = vcmp.lt.s32.totalorder %v8713_v23, 1  ;;  %v4963_v4 = vrot.slane %v4792_v54, 1  ;;  %v4930_v24 = vadd.f32 %v8279_v39, %v14999_v36  ;;  %v8283_v35 = vpop.f32.mrf.mxu1  ;;  %v8317_v6 = vpop.f32.mrf.mxu0 }
 0x316   : > { %v4840_v63 = vsel %vm14998_vm10, %v4836_v32, %v4837_v31  ;;  %v5057_v57 = vadd.f32 %v4971_v11, %v4929_v1  ;;  %v5094_v16 = vadd.f32 %v11258_v58, %v5055_v41  ;;  %vm15002_vm1 = vnez %v15001_v40  ;;  %v11732_v39 = vpop.permute.xlu0 %3746  ;;  %v15007_v11 = vld [vmem:[#allocation59_spill] sm:$0xff]  ;;  %v15009_v41 = vld [vmem:[#allocation5_spill] sm:$0xff] }
 0x317   : > { %v4899_v34 = vsel %vm15002_vm1, %v15000_v48, 0.0  ;;  %v5095_v37 = vadd.f32 %v11258_v58, %v5056_v46  ;;  %v4965_v53 = vrot.slane %v8316_v60, 1  ;;  %vm15003_vm15 = vcmp.lt.s32.totalorder %v8713_v23, 7  ;;  %v15011_v46 = vld [vmem:[#allocation68_spill] sm:$0xff]  ;;  %v4629_v48 = vpop.f32.mrf.mxu1  ;;  %v4795_v50 = vpop.f32.mrf.mxu0 }
 0x318   : > { %v4970_v9 = vsel %vm15003_vm15, %v4962_v30, %v4963_v4  ;;  %v4966_v54 = vrot.slane %v8317_v6, 1  ;;  %vm15004_vm10 = vcmask 64512   ;;  %vm15008_vm1 = vnez %v15007_v11  ;;  %v15014_v6 = vld [vmem:[#allocation120_spill] sm:$0xff] }
 0x319   : > { %8341 = vmatmul.mubr.msk.bf16.gmra.mxu1 %vm15004_vm10, %v11710_v15  ;;  %vm15005_vm9 = vmmov %vm15004_vm10  ;;  %v4901_v1 = vsel %vm15008_vm1, %v4840_v63, 0.0  ;;  %vm15010_vm0 = vnez %v15009_v41  ;;  %v15012_v36 = vrot.slane %v15011_v46, 7  ;;  %vm15013_vm15 = vcmp.lt.s32.totalorder %v8713_v23, 1 }
 0x31a   : > { %8375 = vmatmul.mubr.msk.bf16.gmra.mxu0 %vm15005_vm9, %v11710_v15  ;;  %v5026_v60 = vsel %vm15010_vm0, %v4970_v9, 0.0  ;;  %v15015_v40 = vrot.slane %v15014_v6, 7  ;;  %vm15016_vm9 = vmmov %vm15013_vm15  ;;  %v4933_v7 = vadd.f32 %v8282_v20, %v4901_v1  ;;  %vm15017_vm10 = vcmp.lt.s32.totalorder %v8713_v23, 7  ;;  %v15021_v20 = vld [vmem:[#allocation84_spill] sm:$0xff] }
 0x31b   : > { %v4839_v30 = vsel %vm15013_vm15, %v4837_v31, %v15012_v36  ;;  %v5058_v51 = vadd.f32 %v5026_v60, %v4930_v24  ;;  %v4967_v63 = vsel %vm15017_vm10, %v4965_v53, %v4966_v54  ;;  %v15018_v11 = vrot.slane %v11145_v5, 1  ;;  %vm15019_vm1 = vmmov %vm15017_vm10  ;;  %3918 = vrot.lane.b32.xlu0 %v15021_v20, %s8584_s15 }
 0x31c   : > { %v4841_v22 = vsel %vm15016_vm9, %v15015_v40, %v4836_v32  ;;  %v5096_v31 = vadd.f32 %v11258_v58, %v5057_v57  ;;  %v4964_v32 = vrot.slane %v4795_v50, 1  ;;  %v11757_v40 = vpack.c.bf16 %v5095_v37, %v5094_v16  ;;  %vm15022_vm15 = vmmov %vm15019_vm1 }
 0x31d   : > { %v4998_v9 = vsel %vm15019_vm1, %v4966_v54, %v15018_v11  ;;  %v4931_v24 = vadd.f32 %v4899_v34, %v4626_v3  ;;  %v5097_v5 = vadd.f32 %v11258_v58, %v5058_v51  ;;  %v4934_v1 = vadd.f32 %v8283_v35, %v4839_v30  ;;  %v11762_v54 = vpop.permute.xlu1 %3748  ;;  %v11764_v11 = vpop.permute.xlu0 %3598  ;;  %v15025_v3 = vld [vmem:[#allocation42_spill] sm:$0xff] }
 0x31e   : > { %v5030_v36 = vsel %vm14804_vm8, %v4998_v9, 0.0  ;;  %v4932_v60 = vadd.f32 %v4841_v22, %v4629_v48  ;;  %v5061_v27 = vadd.f32 %v4967_v63, %v4933_v7  ;;  %v4968_v57 = vsel %vm15019_vm1, %v4964_v32, %v4965_v53  ;;  %v15027_v35 = vld [vmem:[#allocation22_spill] sm:$0xff]  ;;  %v15030_v48 = vld [vmem:[#allocation11_spill] sm:$0xff] }
 0x31f   : > { %v4969_v50 = vsel %vm15022_vm15, %v4963_v4, %v4964_v32  ;;  %vm15023_vm9 = vcmask 64512   ;;  %v11774_v51 = vpack.c.bf16 %v5097_v5, %v5096_v31  ;;  %v5062_v22 = vadd.f32 %v5030_v36, %v4934_v1  ;;  %3920 = vrot.lane.b32.xlu1 %v15027_v35, %s8584_s15  ;;  %3914 = vrot.lane.b32.xlu0 %v14935_v52, %s8584_s15  ;;  %v15031_v36 = vld [vmem:[#allocation35_spill] sm:$0xff] }
 0x320   : > { %8344 = vmatprep.mubr.msk.bf16.mxu1 %vm15023_vm9, %v11757_v40  ;;  %vm15024_vm10 = vmmov %vm15023_vm9  ;;  %vm15026_vm8 = vnez %v15025_v3  ;;  %v5059_v34 = vadd.f32 %v4969_v50, %v4931_v24  ;;  %v3346_v30 = vadd.f32 %v11179_v10, %v11653_v56  ;;  %v3307_v6 = vadd.f32 %v11556_v55, %v15030_v48  ;;  %v15036_v50 = vld [vmem:[#allocation50_spill] sm:$0xff] }
 0x321   : > { %8378 = vmatprep.mubr.msk.bf16.mxu0 %vm15024_vm10, %v11757_v40  ;;  %v5028_v16 = vsel %vm15026_vm8, %v4968_v57, 0.0  ;;  %vm15028_vm1 = vmmov %vm15023_vm9  ;;  %v11787_v53 = vpop.permute.xlu1 %3600  ;;  %v11789_v7 = vpop.permute.xlu0 %3758  ;;  %v3278_v63 = vsel %vm14947_vm5, %v11701_v29, 0.0  ;;  %v3347_v31 = vadd.f32 %v11179_v10, %v11505_v28  ;;  %v3216_v32 = vrot.slane %v15031_v36, 1  ;;  %v15032_v29 = vld [vmem:[#allocation54_spill] sm:$0xff] }
 0x322   : > { %v5060_v37 = vadd.f32 %v5028_v16, %v4932_v60  ;;  %v5098_v4 = vadd.f32 %v11258_v58, %v5059_v34  ;;  %8345 = vmatmul.mubr.msk.bf16.gmra.mxu1 %vm15028_vm1, %v11774_v51  ;;  %vm15029_vm15 = vmmov %vm15028_vm1  ;;  %v5100_v24 = vadd.f32 %v11258_v58, %v5061_v27  ;;  %v5101_v5 = vadd.f32 %v11258_v58, %v5062_v22  ;;  %v15038_v16 = vld [vmem:[#allocation83_spill] sm:$0xff] }
 0x323   : > { %8379 = vmatmul.mubr.msk.bf16.gmra.mxu0 %vm15029_vm15, %v11774_v51  ;;  %3427 = vrot.lane.b32.xlu1 %v3346_v30, %s8585_s28  ;;  %v3217_v55 = vrot.slane %v15021_v20, 1  ;;  %v3310_v1 = vadd.f32 %v3278_v63, %v15032_v29  ;;  %vm15033_vm9 = vmmov %vm15028_vm1  ;;  %v3218_v28 = vrot.slane %v15027_v35, 1  ;;  %v15037_v22 = vrot.slane %v15036_v50, 7 }
 0x324   : > { %v5099_v9 = vadd.f32 %v11258_v58, %v5060_v37  ;;  %3429 = vrot.lane.b32.xlu0 %v3347_v31, %s8585_s28  ;;  %vm15034_vm10 = vmmov %vm15028_vm1  ;;  %v3345_v58 = vadd.f32 %v11179_v10, %v3307_v6  ;;  %vm15035_vm1 = vcmp.lt.s32.totalorder %v8713_v23, 7  ;;  %v11822_v20 = vpack.c.bf16 %v5101_v5, %v5100_v24  ;;  %v15043_v6 = vld [vmem:[#allocation36_spill] sm:$0xff]  ;;  %v15045_v31 = vld [vmem:[#allocation21_spill] sm:$0xff] }
 0x325   : > { %v11810_v60 = vpop.permute.xlu1 %3760  ;;  %v11812_v57 = vpop.permute.xlu0 %3594  ;;  %v3236_v27 = vsel %vm15035_vm1, %v3216_v32, %v3217_v55  ;;  %v15039_v34 = vrot.slane %v15038_v16, 7  ;;  %vm15040_vm15 = vcmp.lt.s32.totalorder %v8713_v23, 1  ;;  %v3348_v30 = vadd.f32 %v11179_v10, %v3310_v1  ;;  %vm15042_vm1 = vmmov %vm15033_vm9  ;;  %v15046_v24 = vld [vmem:[#allocation97_spill] sm:$0xff] }
 0x326   : > { %v11805_v56 = vpack.c.bf16 %v5099_v9, %v5098_v4  ;;  %v3280_v48 = vsel %vm14960_vm3, %v3236_v27, 0.0 }
 0x327   : > { %3916 = vrot.lane.b32.xlu1 %v15031_v36, %s8584_s15  ;;  %v3109_v37 = vsel %vm15040_vm15, %v15039_v34, %v15037_v22  ;;  %vm15044_vm15 = vcmp.lt.s32.totalorder %v8713_v23, 7  ;;  %v3219_v36 = vrot.slane %v15045_v31, 1  ;;  %v15051_v22 = vld [vmem:[#allocation102_spill] sm:$0xff] }
 0x328   : > { %8348 = vmatprep.mubr.msk.bf16.mxu1 %vm15033_vm9, %v11805_v56  ;;  %8382 = vmatprep.mubr.msk.bf16.mxu0 %vm15034_vm10, %v11805_v56  ;;  %vm15041_vm10 = vmmov %vm15033_vm9  ;;  %v3184_v63 = vadd.f32 %v3109_v37, %v15043_v6  ;;  %v3235_v9 = vsel %vm15044_vm15, %v3217_v55, %v3218_v28  ;;  %v15052_v37 = vld [vmem:[#allocation66_spill] sm:$0xff] }
 0x329   : > { %3425 = vrot.lane.b32.xlu0 %v3345_v58, %s8585_s28  ;;  %v11837_v35 = vpop.permute.xlu1 %3596  ;;  %v11839_v4 = vpop.permute.xlu0 %3754  ;;  %v15047_v58 = vld [vmem:[#allocation34_spill] sm:$0xff] }
 0x32a   : > { %8349 = vmatmul.mubr.msk.bf16.gmra.mxu1 %vm15033_vm9, %v11822_v20  ;;  %v3312_v1 = vadd.f32 %v3280_v48, %v3184_v63  ;;  %v3313_v27 = vadd.f32 %v3235_v9, %v15047_v58  ;;  %vm15049_vm9 = vmmov %vm15044_vm15  ;;  %v15054_v48 = vld [vmem:[#allocation18_spill] sm:$0xff]  ;;  %v15055_v63 = vld [vmem:[#allocation63_spill] sm:$0xff] }
 0x32b   : > { %8383 = vmatmul.mubr.msk.bf16.gmra.mxu0 %vm15041_vm10, %v11822_v20  ;;  %8388 = vmatprep.mubr.msk.bf16.mxu1 %vm15042_vm1, %v11302_v21  ;;  %v15048_v21 = vrot.slane %v14935_v52, 1  ;;  %vm15050_vm10 = vmmov %vm15049_vm9  ;;  %v3220_v6 = vrot.slane %v15054_v48, 1 }
 0x32c   : > { %3431 = vrot.lane.b32.xlu1 %v3348_v30, %s8585_s28  ;;  %v3234_v55 = vsel %vm15050_vm10, %v3218_v28, %v3219_v36  ;;  %v3350_v52 = vadd.f32 %v11179_v10, %v3312_v1  ;;  %vm15053_vm15 = vmmov %vm15042_vm1  ;;  %v3351_v30 = vadd.f32 %v11179_v10, %v3313_v27  ;;  %vm15060_vm10 = vcmp.lt.s32.totalorder %v8713_v23, 1 }
 0x32d   : > { %3926 = vrot.lane.b32.xlu0 %v15046_v24, %s8584_s15  ;;  %v11853_v5 = vpop.permute.xlu1 %3756  ;;  %v11855_v29 = vpop.permute.xlu0 %3606  ;;  %v3237_v50 = vsel %vm15049_vm9, %v15048_v21, %v3216_v32  ;;  %v3282_v28 = vsel %vm14981_vm2, %v3234_v55, 0.0  ;;  %v15056_v21 = vld [vmem:[#allocation30_spill] sm:$0xff] }
 0x32e   : > { %v3311_v32 = vadd.f32 %v3237_v50, %v15052_v37  ;;  %v3314_v9 = vadd.f32 %v3282_v28, %v15055_v63  ;;  %v15057_v50 = vrot.slane %v15056_v21, 7  ;;  %v15058_v55 = vld [vmem:[#allocation78_spill] sm:$0xff] }
 0x330   : > { %3928 = vrot.lane.b32.xlu1 %v15051_v22, %s8584_s15  ;;  %v3349_v58 = vadd.f32 %v11179_v10, %v3311_v32  ;;  %v3352_v32 = vadd.f32 %v11179_v10, %v3314_v9 }
 0x331   : > { %3922 = vrot.lane.b32.xlu0 %v15045_v31, %s8584_s15  ;;  %v11870_v16 = vpop.permute.xlu1 %3608  ;;  %v11872_v34 = vpop.permute.xlu0 %3766 }
 0x332   : > { %8389 = vmatmul.mubr.msk.bf16.vlgmr.msra.gmra.mxu1 %vm15042_vm1, %v11331_v25  ;;  %v3221_v25 = vrot.slane %v15046_v24, 1  ;;  %v15059_v24 = vrot.slane %v15058_v55, 7 }
 0x333   : > { %8392 = vmatprep.mubr.msk.bf16.mxu1 %vm15053_vm15, %v11387_v2  ;;  %v3222_v2 = vrot.slane %v15051_v22, 1  ;;  %vm15061_vm15 = vmmov %vm15042_vm1 }
 0x334   : > { %3435 = vrot.lane.b32.xlu1 %v3350_v52, %s8585_s28  ;;  %v3232_v27 = vsel %vm15049_vm9, %v3220_v6, %v3221_v25  ;;  %v3105_v52 = vsel %vm15060_vm10, %v15059_v24, %v15057_v50  ;;  %vm15066_vm10 = vmmov %vm15049_vm9 }
 0x335   : > { %3437 = vrot.lane.b32.xlu0 %v3351_v30, %s8585_s28  ;;  %v11886_v31 = vpop.permute.xlu1 %3768  ;;  %v11888_v1 = vpop.permute.xlu0 %3602  ;;  %v3284_v28 = vsel %vm14995_vm6, %v3232_v27, 0.0  ;;  %v15062_v30 = vld [vmem:[#allocation62_spill] sm:$0xff]  ;;  %v3231_v63 = vsel %vm15049_vm9, %v3221_v25, %v3222_v2  ;;  %v15065_v27 = vld [vmem:[#allocation101_spill] sm:$0xff]  ;;  %v15068_v25 = vld [vmem:[#allocation56_spill] sm:$0xff] }
 0x336   : > { %v3317_v24 = vadd.f32 %v3231_v63, %v15065_v27  ;;  %v15069_v63 = vld [vmem:[#allocation88_spill] sm:$0xff] }
 0x338   : > { %3924 = vrot.lane.b32.xlu1 %v15054_v48, %s8584_s15  ;;  %v3188_v48 = vadd.f32 %v3105_v52, %v15062_v30 }
 0x339   : > { %3433 = vrot.lane.b32.xlu0 %v3349_v58, %s8585_s28  ;;  %v11905_v37 = vpop.permute.xlu1 %3604  ;;  %v11907_v22 = vpop.permute.xlu0 %3762  ;;  %v15063_v58 = vld [vmem:[#allocation96_spill] sm:$0xff] }
 0x33a   : > { %8393 = vmatmul.mubr.msk.bf16.gmra.mxu1 %vm15042_vm1, %v11414_v59  ;;  %v3223_v21 = vrot.slane %v15063_v58, 1  ;;  %v15064_v59 = vld [vmem:[#allocation117_spill] sm:$0xff]  ;;  %v3316_v55 = vadd.f32 %v3284_v28, %v3188_v48  ;;  %vm15067_vm1 = vmmov %vm15049_vm9 }
 0x33b   : > { %8396 = vmatprep.mubr.msk.bf16.mxu1 %vm15061_vm15, %v11467_v33  ;;  %v3233_v33 = vsel %vm15066_vm10, %v3219_v36, %v3220_v6  ;;  %vm15070_vm9 = vmmov %vm15061_vm15 }
 0x33c   : > { %3439 = vrot.lane.b32.xlu1 %v3352_v32, %s8585_s28  ;;  %v3230_v52 = vsel %vm15067_vm1, %v3222_v2, %v3223_v21  ;;  %v3225_v32 = vrot.slane %v15064_v59, 1  ;;  %v3354_v48 = vadd.f32 %v11179_v10, %v3316_v55  ;;  %v3315_v36 = vadd.f32 %v3233_v33, %v15069_v63  ;;  %vm15072_vm10 = vmmov %vm15067_vm1  ;;  %v15074_v55 = vld [vmem:[#allocation57_spill] sm:$0xff] }
 0x33d   : > { %3934 = vrot.lane.b32.xlu0 %v15064_v59, %s8584_s15  ;;  %v11921_v50 = vpop.permute.xlu1 %3764  ;;  %v3775_v9 = vpop.permute.xlu0 %3774  ;;  %v3286_v6 = vsel %vm15010_vm0, %v3230_v52, 0.0  ;;  %v3355_v2 = vadd.f32 %v11179_v10, %v3317_v24  ;;  %vm15076_vm1 = vcmask 1043456   ;;  %vm15084_vm0 = vcmp.lt.s32.totalorder %v8713_v23, 1 }
 0x33e   : > { %v3318_v33 = vadd.f32 %v3286_v6, %v15074_v55  ;;  %v3353_v24 = vadd.f32 %v11179_v10, %v3315_v36  ;;  %v15083_v10 = vrot.slane %v15082_v42, 7  ;;  %v7822_v42 = vld [vmem:[%s13741_s9 + $0x4] sm:$0xf] }
 0x340   : > { %3936 = vrot.lane.b32.xlu1 %v15068_v25, %s8584_s15 }
 0x341   : > { %3930 = vrot.lane.b32.xlu0 %v15063_v58, %s8584_s15  ;;  %v3777_v28 = vpop.permute.xlu1 %3776  ;;  %v3611_v30 = vpop.permute.xlu0 %3610  ;;  %v15071_v58 = vrot.slane %v15068_v25, 1  ;;  %v15075_v25 = vld [vmem:[#allocation13_spill] sm:$0xff] }
 0x342   : > { %8397 = vmatmul.mubr.msk.bf16.gmra.mxu1 %vm15061_vm15, %v11493_v14  ;;  %v15073_v14 = vld [vmem:[#allocation108_spill] sm:$0xff]  ;;  %vm15077_vm15 = vmmov %vm15076_vm1 }
 0x343   : > { %8400 = vmatprep.mubr.msk.bf16.mxu1 %vm15070_vm9, %v11541_v44  ;;  %v3227_v59 = vsel %vm15072_vm10, %v3225_v32, %v15071_v58  ;;  %v3224_v27 = vrot.slane %v15073_v14, 1  ;;  %v5846_v44 = vld [vmem:[%s13741_s9] sm:$0xf]  ;;  %vm15078_vm9 = vmmov %vm15072_vm10  ;;  %8536 = vmatprep.subr.msk.bf16.mxu1 %vm15077_vm15, %v7822_v42 }
 0x344   : > { %3443 = vrot.lane.b32.xlu1 %v3354_v48, %s8585_s28  ;;  %v3321_v41 = vadd.f32 %v3227_v59, %v15075_v25  ;;  %8535 = vmatprep.subr.msk.bf16.mxu0 %vm15076_vm1, %v5846_v44  ;;  %v5896_v58 = vsel %vm15077_vm15, %v5846_v44, 0  ;;  %vm15079_vm10 = vmmov %vm15078_vm9  ;;  %vm15085_vm1 = vcmask 64512   ;;  %v15086_v44 = vld [vmem:[#allocation23_spill] sm:$0xff] }
 0x345   : > { %3445 = vrot.lane.b32.xlu0 %v3355_v2, %s8585_s28  ;;  %v3613_v63 = vpop.permute.xlu1 %3612  ;;  %v11950_v52 = vpop.permute.xlu0 %3770  ;;  %v3228_v48 = vsel %vm15078_vm9, %v3224_v27, %v3225_v32  ;;  %v3229_v6 = vsel %vm15079_vm10, %v3223_v21, %v3224_v27  ;;  %8421 = vmatpush3.bf16.msra.mxu0 %v5896_v58  ;;  %v15080_v2 = vld [vmem:[#allocation15_spill] sm:$0xff]  ;;  %v8572_v21 = vld [vmem:[%s13736_s4] ss:$0 sm:$0xff]  ;;  %vm15088_vm9 = vmmov %vm15077_vm15 }
 0x346   : > { %v15081_v55 = vrot.slane %v15080_v2, 7  ;;  %v3288_v27 = vsel %vm15026_vm8, %v3228_v48, 0.0  ;;  %v6062_v25 = vsel %vm15088_vm9, %v7822_v42, 0  ;;  %v15089_v58 = vld [vmem:[#allocation19_spill] sm:$0xff]  ;;  %v15090_v48 = vld [vmem:[#allocation64_spill] sm:$0xff]  ;;  %v15092_v42 = vld [vmem:[#allocation90_spill] sm:$0xff] }
 0x347   : > { %8455 = vmatpush3.bf16.msra.mxu1 %v6062_v25  ;;  %v15093_v25 = vld [vmem:[#allocation100_spill] sm:$0xff] }
 0x348   : > { %3932 = vrot.lane.b32.xlu1 %v15073_v14, %s8584_s15  ;;  %v3101_v36 = vsel %vm15084_vm0, %v15083_v10, %v15081_v55  ;;  %v3356_v14 = vadd.f32 %v8572_v21, %v3318_v33  ;;  %vm15087_vm0 = vmmov %vm15085_vm1  ;;  %v3360_v10 = vadd.f32 %v8572_v21, %v15090_v48  ;;  %v15100_v48 = vld [vmem:[#allocation41_spill] sm:$0xff] }
 0x349   : > { %3441 = vrot.lane.b32.xlu0 %v3353_v24, %s8585_s28  ;;  %v11974_v32 = vpop.permute.xlu1 %3772  ;;  %v3879_v59 = vpop.permute.xlu0 %3878  ;;  %v3319_v24 = vadd.f32 %v3229_v6, %v15086_v44  ;;  %v3192_v2 = vadd.f32 %v3101_v36, %v15089_v58  ;;  %v3841_v44 = vadd.f32 %v3777_v28, %v3613_v63  ;;  %vm15091_vm10 = vmmov %vm15087_vm0  ;;  %v15096_v28 = vld [vmem:[#allocation123_spill] sm:$0xff] }
 0x34a   : > { %8401 = vmatmul.mubr.msk.bf16.gmra.mxu1 %vm15085_vm1, %v11568_v43  ;;  %v3359_v43 = vadd.f32 %v8572_v21, %v3321_v41  ;;  %vm15094_vm1 = vmmov %vm15087_vm0 }
 0x34b   : > { %8404 = vmatprep.mubr.msk.bf16.mxu1 %vm15087_vm0, %v11613_v12  ;;  %v3320_v6 = vadd.f32 %v3288_v27, %v3192_v2  ;;  %v3357_v3 = vadd.f32 %v8572_v21, %v3319_v24  ;;  %v3840_v12 = vadd.f32 %v3775_v9, %v3611_v30  ;;  %vm3489_vm0 = vcmask 195712   ;;  %v15098_v2 = vld [vmem:[#allocation10_spill] sm:$0xff]  ;;  %vm15101_vm15 = vmmov %vm15094_vm1 }
 0x34c   : > { %3447 = vrot.lane.b32.xlu1 %v3356_v14, %s8585_s28  ;;  %v4002_v30 = vadd.f32 %v3879_v59, %v15096_v28  ;;  %vm15102_vm9 = vmmov %vm15094_vm1 }
 0x34d   : > { %3453 = vrot.lane.b32.xlu0 %v3359_v43, %s8585_s28  ;;  %v3881_v33 = vpop.permute.xlu1 %3880  ;;  %v3887_v55 = vpop.permute.xlu0 %3886  ;;  %v3358_v14 = vadd.f32 %v8572_v21, %v3320_v6  ;;  %v4068_v43 = vadd.f32 %v15092_v42, %v3841_v44 }
 0x34e   : > { %v4003_v58 = vadd.f32 %v3881_v33, %v15093_v25  ;;  %v15099_v33 = vld [vmem:[#allocation98_spill] sm:$0xff]  ;;  %v4037_v59 = vadd.f32 %v15092_v42, %v4002_v30  ;;  %v15104_v25 = vld [vmem:[#allocation124_spill] sm:$0xff]  ;;  %v15106_v30 = vld [vmem:[#allocation73_spill] sm:$0xff] }
 0x350   : > { %3455 = vrot.lane.b32.xlu1 %v3360_v10, %s8585_s28  ;;  %v4038_v27 = vadd.f32 %v15092_v42, %v4003_v58  ;;  %v3813_v10 = vadd.f32 %v15100_v48, %v15099_v33 }
 0x351   : > { %3449 = vrot.lane.b32.xlu0 %v3357_v3, %s8585_s28  ;;  %v3889_v41 = vpop.permute.xlu1 %3888  ;;  %v3883_v36 = vpop.permute.xlu0 %3882  ;;  %v15095_v3 = vld [vmem:[#allocation77_spill] sm:$0xff] }
 0x352   : > { %8405 = vmatmul.mubr.msk.bf16.gmra.mxu1 %vm15091_vm10, %v11634_v26  ;;  %v3815_v9 = vadd.f32 %v11310_v19, %v15095_v3  ;;  %v4067_v26 = vadd.f32 %v15092_v42, %v3840_v12  ;;  %vm15107_vm10 = vmmov %vm15094_vm1 }
 0x353   : > { %8408 = vmatprep.mubr.msk.bf16.mxu1 %vm15094_vm1, %v11684_v18  ;;  %v15097_v18 = vld [vmem:[#allocation92_spill] sm:$0xff] }
 0x354   : > { %3451 = vrot.lane.b32.xlu1 %v3358_v14, %s8585_s28  ;;  %v4007_v24 = vadd.f32 %v3889_v41, %v3815_v9  ;;  %v3814_v19 = vadd.f32 %v15098_v2, %v15097_v18  ;;  %v15108_v18 = vld [vmem:[#allocation46_spill] sm:$0xff]  ;;  %v15109_v2 = vld [vmem:[#allocation53_spill] sm:$0xff]  ;;  %s8587_s28 = smov 32  }
 0x355   : > { %4163 = vrot.lane.b32.xlu0 %v4068_v43, %s8586_s20  ;;  %v3396_v63 = vpop.permute.xlu1 %3395  ;;  %v3398_v21 = vpop.permute.xlu0 %3397  ;;  %v15103_v43 = vld [vmem:[#allocation25_spill] sm:$0xff] }
 0x356   : > { %3491 = vst.msk [vmem:[%s9909_s23 + $0x8] sm:$0xff] %vm3489_vm0, %v3396_v63  ;;  %3492 = vst.msk [vmem:[%s9909_s23 + $0x10] sm:$0xff] %vm3489_vm0, %v3398_v21  ;;  %v4006_v6 = vadd.f32 %v3887_v55, %v3814_v19  ;;  %v4042_v41 = vadd.f32 %v15092_v42, %v4007_v24  ;;  %v3812_v58 = vadd.f32 %v15104_v25, %v15103_v43 }
 0x357   : > { %v3819_v63 = vadd.f32 %v11475_v49, %v15106_v30  ;;  %v3816_v19 = vadd.f32 %v15109_v2, %v15108_v18  ;;  %v3822_v43 = vadd.f32 %v11590_v8, %v11312_v47  ;;  %v15116_v18 = vld [vmem:[#allocation32_spill] sm:$0xff] }
 0x358   : > { %4161 = vrot.lane.b32.xlu1 %v4067_v26, %s8586_s20  ;;  %v4004_v3 = vadd.f32 %v3883_v36, %v3812_v58  ;;  %v3826_v2 = vadd.f32 %v11732_v39, %v15116_v18 }
 0x359   : > { %4103 = vrot.lane.b32.xlu0 %v4038_v27, %s8586_s20  ;;  %v3885_v44 = vpop.permute.xlu1 %3884  ;;  %v3394_v12 = vpop.permute.xlu0 %3393 }
 0x35a   : > { %8409 = vmatmul.mubr.msk.bf16.gmra.mxu1 %vm15101_vm15, %v11710_v15  ;;  %v4005_v14 = vadd.f32 %v3885_v44, %v3813_v10  ;;  %3490 = vst.msk [vmem:[%s9909_s23] sm:$0xff] %vm3489_vm0, %v3394_v12  ;;  %v4041_v15 = vadd.f32 %v15092_v42, %v4006_v6  ;;  %v4039_v21 = vadd.f32 %v15092_v42, %v4004_v3  ;;  %vm15112_vm15 = vmmov %vm15094_vm1  ;;  %v15113_v3 = vld [vmem:[#allocation38_spill] sm:$0xff] }
 0x35b   : > { %8412 = vmatprep.mubr.msk.bf16.mxu1 %vm15102_vm9, %v11757_v40  ;;  %v15105_v40 = vld [vmem:[#allocation65_spill] sm:$0xff]  ;;  %vm15128_vm9 = vcmask 1043456  }
 0x35c   : > { %4101 = vrot.lane.b32.xlu1 %v4037_v59, %s8586_s20  ;;  %v4040_v55 = vadd.f32 %v15092_v42, %v4005_v14  ;;  %v3818_v28 = vadd.f32 %v11436_v61, %v15105_v40 }
 0x35d   : > { %4111 = vrot.lane.b32.xlu0 %v4042_v41, %s8586_s20  ;;  %v3400_v9 = vpop.permute.xlu1 %3399  ;;  %v3895_v26 = vpop.permute.xlu0 %3894 }
 0x35e   : > { %3493 = vst.msk [vmem:[%s9909_s23 + $0x18] sm:$0xff] %vm3489_vm0, %v3400_v9  ;;  %v4010_v27 = vadd.f32 %v3895_v26, %v3818_v28  ;;  %v3823_v9 = vadd.f32 %v15113_v3, %v11352_v0  ;;  %v15114_v0 = vld [vmem:[#allocation40_spill] sm:$0xff] }
 0x360   : > { %4109 = vrot.lane.b32.xlu1 %v4041_v15, %s8586_s20  ;;  %v4045_v33 = vadd.f32 %v15092_v42, %v4010_v27 }
 0x361   : > { %4107 = vrot.lane.b32.xlu0 %v4040_v55, %s8586_s20  ;;  %v3897_v36 = vpop.permute.xlu1 %3896  ;;  %v3891_v24 = vpop.permute.xlu0 %3890 }
 0x362   : > { %8413 = vmatmul.mubr.msk.bf16.gmra.mxu1 %vm15107_vm10, %v11774_v51  ;;  %v4011_v61 = vadd.f32 %v3897_v36, %v3819_v63  ;;  %v4008_v48 = vadd.f32 %v3891_v24, %v3816_v19  ;;  %v15110_v51 = vld [vmem:[#allocation16_spill] sm:$0xff]  ;;  %vm4197_vm10 = vcmask 261312  }
 0x363   : > { %8416 = vmatprep.mubr.msk.bf16.mxu1 %vm15094_vm1, %v11805_v56  ;;  %v15111_v56 = vld [vmem:[#allocation45_spill] sm:$0xff] }
 0x364   : > { %4105 = vrot.lane.b32.xlu1 %v4039_v21, %s8586_s20  ;;  %v4046_v49 = vadd.f32 %v15092_v42, %v4011_v61  ;;  %v3817_v6 = vadd.f32 %v15111_v56, %v15110_v51  ;;  %v4043_v44 = vadd.f32 %v15092_v42, %v4008_v48  ;;  %v15119_v56 = vld [vmem:[#allocation33_spill] sm:$0xff] }
 0x365   : > { %v3404_v10 = vpop.permute.xlu1 %3403  ;;  %v3406_v59 = vpop.permute.xlu0 %3405 }
 0x366   : > { %3495 = vst.msk [vmem:[%s9909_s23 + $0x28] sm:$0xff] %vm3489_vm0, %v3404_v10  ;;  %3496 = vst.msk [vmem:[%s9909_s23 + $0x30] sm:$0xff] %vm3489_vm0, %v3406_v59  ;;  %4119 = vrot.lane.b32.xlu0 %v4046_v49, %s8586_s20  ;;  %v15117_v10 = vld [vmem:[#allocation14_spill] sm:$0xff]  ;;  %v15118_v59 = vld [vmem:[#allocation60_spill] sm:$0xff] }
 0x367   : > { %v3824_v51 = vadd.f32 %v15118_v59, %v15117_v10 }
 0x368   : > { %4117 = vrot.lane.b32.xlu1 %v4045_v33, %s8586_s20 }
 0x369   : > { %v3893_v12 = vpop.permute.xlu1 %3892  ;;  %v3402_v41 = vpop.permute.xlu0 %3401 }
 0x36a   : > { %8417 = vmatmul.mubr.msk.bf16.gmra.mxu1 %vm15112_vm15, %v11822_v20  ;;  %v4009_v14 = vadd.f32 %v3893_v12, %v3817_v6  ;;  %3494 = vst.msk [vmem:[%s9909_s23 + $0x20] sm:$0xff] %vm3489_vm0, %v3402_v41  ;;  %v3820_v20 = vadd.f32 %v11354_v38, %v11397_v62  ;;  %v15115_v38 = vld [vmem:[#allocation89_spill] sm:$0xff]  ;;  %v3827_v6 = vadd.f32 %v11762_v54, %v15119_v56  ;;  %v15120_v54 = vld [vmem:[#allocation55_spill] sm:$0xff]  ;;  %vm15142_vm15 = vmmov %vm15128_vm9 }
 0x36b   : > { %v3821_v62 = vadd.f32 %v15115_v38, %v15114_v0  ;;  %v15124_v0 = vld [vmem:[#allocation106_spill] sm:$0xff]  ;;  %v15125_v38 = vld [vmem:[#allocation29_spill] sm:$0xff] }
 0x36c   : > { %4113 = vrot.lane.b32.xlu1 %v4043_v44, %s8586_s20  ;;  %v4044_v25 = vadd.f32 %v15092_v42, %v4009_v14 }
 0x36d   : > { %v3408_v58 = vpop.permute.xlu1 %3407  ;;  %v3903_v55 = vpop.permute.xlu0 %3902 }
 0x36e   : > { %3497 = vst.msk [vmem:[%s9909_s23 + $0x38] sm:$0xff] %vm3489_vm0, %v3408_v58  ;;  %v4014_v15 = vadd.f32 %v3903_v55, %v3822_v43  ;;  %4115 = vrot.lane.b32.xlu0 %v4044_v25, %s8586_s20 }
 0x370   : > { %v4049_v26 = vadd.f32 %v15092_v42, %v4014_v15  ;;  %v15121_v15 = vld [vmem:[#allocation24_spill] sm:$0xff] }
 0x371   : > { %v3905_v47 = vpop.permute.xlu1 %3904  ;;  %v3899_v8 = vpop.permute.xlu0 %3898 }
 0x372   : > { %v4015_v40 = vadd.f32 %v3905_v47, %v3823_v9  ;;  %v4012_v28 = vadd.f32 %v3899_v8, %v3820_v20  ;;  %4125 = vrot.lane.b32.xlu1 %v4049_v26, %s8586_s20  ;;  %v3825_v20 = vadd.f32 %v15121_v15, %v15120_v54  ;;  %v15122_v8 = vld [vmem:[#allocation80_spill] sm:$0xff] }
 0x374   : > { %v4050_v30 = vadd.f32 %v15092_v42, %v4015_v40  ;;  %v4047_v63 = vadd.f32 %v15092_v42, %v4012_v28  ;;  %v3830_v40 = vadd.f32 %v11839_v4, %v15122_v8 }
 0x375   : > { %v3412_v21 = vpop.permute.xlu1 %3411  ;;  %v3414_v27 = vpop.permute.xlu0 %3413 }
 0x376   : > { %3499 = vst.msk [vmem:[%s9909_s23 + $0x48] sm:$0xff] %vm3489_vm0, %v3412_v21  ;;  %3500 = vst.msk [vmem:[%s9909_s23 + $0x50] sm:$0xff] %vm3489_vm0, %v3414_v27  ;;  %4127 = vrot.lane.b32.xlu0 %v4050_v30, %s8586_s20  ;;  %4121 = vrot.lane.b32.xlu1 %v4047_v63, %s8586_s20  ;;  %v15123_v21 = vld [vmem:[#allocation87_spill] sm:$0xff] }
 0x377   : > { %v3831_v27 = vadd.f32 %v11853_v5, %v15123_v21 }
 0x379   : > { %v3901_v36 = vpop.permute.xlu1 %3900  ;;  %v3410_v24 = vpop.permute.xlu0 %3409 }
 0x37a   : > { %v4013_v61 = vadd.f32 %v3901_v36, %v3821_v62  ;;  %3498 = vst.msk [vmem:[%s9909_s23 + $0x40] sm:$0xff] %vm3489_vm0, %v3410_v24  ;;  %v3828_v62 = vadd.f32 %v15125_v38, %v15124_v0 }
 0x37c   : > { %v4048_v19 = vadd.f32 %v15092_v42, %v4013_v61 }
 0x37d   : > { %v3416_v49 = vpop.permute.xlu1 %3415  ;;  %v3911_v33 = vpop.permute.xlu0 %3910 }
 0x37e   : > { %3501 = vst.msk [vmem:[%s9909_s23 + $0x58] sm:$0xff] %vm3489_vm0, %v3416_v49  ;;  %v4018_v48 = vadd.f32 %v3911_v33, %v3826_v2  ;;  %4123 = vrot.lane.b32.xlu0 %v4048_v19, %s8586_s20  ;;  %v15126_v33 = vld [vmem:[#allocation58_spill] sm:$0xff] }
 0x380   : > { %v4053_v44 = vadd.f32 %v15092_v42, %v4018_v48  ;;  %v15127_v48 = vld [vmem:[#allocation26_spill] sm:$0xff] }
 0x381   : > { %v3913_v39 = vpop.permute.xlu1 %3912  ;;  %v3907_v12 = vpop.permute.xlu0 %3906  ;;  %v3829_v10 = vadd.f32 %v15127_v48, %v15126_v33 }
 0x382   : > { %v4019_v41 = vadd.f32 %v3913_v39, %v3827_v6  ;;  %v4016_v14 = vadd.f32 %v3907_v12, %v3824_v51  ;;  %4133 = vrot.lane.b32.xlu1 %v4053_v44, %s8586_s20  ;;  %v3834_v44 = vadd.f32 %v11907_v22, %v11764_v11 }
 0x384   : > { %v4054_v43 = vadd.f32 %v15092_v42, %v4019_v41  ;;  %v4051_v25 = vadd.f32 %v15092_v42, %v4016_v14  ;;  %v3835_v14 = vadd.f32 %v11921_v50, %v11787_v53 }
 0x385   : > { %v3420_v58 = vpop.permute.xlu1 %3419  ;;  %v3422_v55 = vpop.permute.xlu0 %3421 }
 0x386   : > { %3503 = vst.msk [vmem:[%s9909_s23 + $0x68] sm:$0xff] %vm3489_vm0, %v3420_v58  ;;  %3504 = vst.msk [vmem:[%s9909_s23 + $0x70] sm:$0xff] %vm3489_vm0, %v3422_v55  ;;  %4135 = vrot.lane.b32.xlu0 %v4054_v43, %s8586_s20  ;;  %4129 = vrot.lane.b32.xlu1 %v4051_v25, %s8586_s20  ;;  %v3832_v43 = vadd.f32 %v11789_v7, %v11812_v57  ;;  %v3833_v7 = vadd.f32 %v11810_v60, %v11837_v35 }
 0x387   : > { %v3836_v60 = vadd.f32 %v11872_v34, %v11888_v1  ;;  %v3839_v35 = vadd.f32 %v11974_v32, %v11870_v16 }
 0x389   : > { %v3909_v3 = vpop.permute.xlu1 %3908  ;;  %v3418_v9 = vpop.permute.xlu0 %3417 }
 0x38a   : > { %v4017_v26 = vadd.f32 %v3909_v3, %v3825_v20  ;;  %3502 = vst.msk [vmem:[%s9909_s23 + $0x60] sm:$0xff] %vm3489_vm0, %v3418_v9 }
 0x38c   : > { %v4052_v47 = vadd.f32 %v15092_v42, %v4017_v26  ;;  %v3838_v26 = vadd.f32 %v11950_v52, %v11855_v29 }
 0x38d   : > { %v3424_v28 = vpop.permute.xlu1 %3423  ;;  %v3919_v30 = vpop.permute.xlu0 %3918 }
 0x38e   : > { %3505 = vst.msk [vmem:[%s9909_s23 + $0x78] sm:$0xff] %vm3489_vm0, %v3424_v28  ;;  %4131 = vrot.lane.b32.xlu0 %v4052_v47, %s8586_s20  ;;  %v4022_v63 = vadd.f32 %v3919_v30, %v3830_v40 }
 0x390   : > { %v4057_v36 = vadd.f32 %v15092_v42, %v4022_v63 }
 0x391   : > { %v3921_v24 = vpop.permute.xlu1 %3920  ;;  %v3915_v4 = vpop.permute.xlu0 %3914 }
 0x392   : > { %v4023_v61 = vadd.f32 %v3921_v24, %v3831_v27  ;;  %v4020_v18 = vadd.f32 %v3915_v4, %v3828_v62  ;;  %4141 = vrot.lane.b32.xlu1 %v4057_v36, %s8586_s20  ;;  %v12199_v4 = vld [vmem:[%s13741_s9 + $0x8] sm:$0xf] }
 0x393   : > { %8537 = vmatprep.subr.msk.bf16.mxu0 %vm15128_vm9, %v12199_v4 }
 0x394   : > { %v4058_v2 = vadd.f32 %v15092_v42, %v4023_v61  ;;  %v4055_v19 = vadd.f32 %v15092_v42, %v4020_v18  ;;  %v3837_v18 = vadd.f32 %v11886_v31, %v11905_v37 }
 0x395   : > { %v3428_v49 = vpop.permute.xlu1 %3427 }
 0x396   : > { %3507 = vst.msk [vmem:[%s9909_s23 + $0x88] sm:$0xff] %vm3489_vm0, %v3428_v49  ;;  %v3430_v5 = vpop.permute.xlu0 %3429  ;;  %4143 = vrot.lane.b32.xlu0 %v4058_v2, %s8586_s20  ;;  %4137 = vrot.lane.b32.xlu1 %v4055_v19, %s8586_s20 }
 0x397   : > { %3508 = vst.msk [vmem:[%s9909_s23 + $0x90] sm:$0xff] %vm3489_vm0, %v3430_v5 }
 0x399   : > { %v3917_v59 = vpop.permute.xlu1 %3916 }
 0x39a   : > { %v4021_v51 = vadd.f32 %v3917_v59, %v3829_v10 }
 0x39b   : > { %v3426_v56 = vpop.permute.xlu0 %3425 }
 0x39c   : > { %3506 = vst.msk [vmem:[%s9909_s23 + $0x80] sm:$0xff] %vm3489_vm0, %v3426_v56  ;;  %v4056_v6 = vadd.f32 %v15092_v42, %v4021_v51 }
 0x39e   : > { %v3432_v39 = vpop.permute.xlu1 %3431  ;;  %4139 = vrot.lane.b32.xlu0 %v4056_v6, %s8586_s20 }
 0x39f   : > { %3509 = vst.msk [vmem:[%s9909_s23 + $0x98] sm:$0xff] %vm3489_vm0, %v3432_v39  ;;  %v3927_v12 = vpop.permute.xlu0 %3926 }
 0x3a0   : > { %v4026_v41 = vadd.f32 %v3927_v12, %v3834_v44 }
 0x3a2   : > { %v4061_v25 = vadd.f32 %v15092_v42, %v4026_v41  ;;  %v3929_v58 = vpop.permute.xlu1 %3928 }
 0x3a3   : > { %v4027_v55 = vadd.f32 %v3929_v58, %v3835_v14  ;;  %v3923_v11 = vpop.permute.xlu0 %3922 }
 0x3a4   : > { %v4024_v22 = vadd.f32 %v3923_v11, %v3832_v43  ;;  %4149 = vrot.lane.b32.xlu1 %v4061_v25, %s8586_s20  ;;  %v12171_v30 = vpop.f32.mrf.mxu1 }
 0x3a5   : > { %v4062_v54 = vadd.f32 %v15092_v42, %v4027_v55  ;;  %v12173_v63 = vpop.f32.mrf.mxu0 }
 0x3a6   : > { %v4059_v15 = vadd.f32 %v15092_v42, %v4024_v22  ;;  %v3436_v20 = vpop.permute.xlu1 %3435  ;;  %v12175_v27 = vpop.f32.mrf.mxu1 }
 0x3a7   : > { %3511 = vst.msk [vmem:[%s9909_s23 + $0xa8] sm:$0xff] %vm3489_vm0, %v3436_v20  ;;  %v3438_v53 = vpop.permute.xlu0 %3437  ;;  %4151 = vrot.lane.b32.xlu0 %v4062_v54, %s8586_s20  ;;  %v12177_v0 = vpop.f32.mrf.mxu0 }
 0x3a8   : > { %3512 = vst.msk [vmem:[%s9909_s23 + $0xb0] sm:$0xff] %vm3489_vm0, %v3438_v53  ;;  %4145 = vrot.lane.b32.xlu1 %v4059_v15, %s8586_s20  ;;  %v12182_v1 = vpop.f32.mrf.mxu1 }
 0x3a9   : > { %v12184_v32 = vpop.f32.mrf.mxu0 }
 0x3aa   : > { %v3925_v57 = vpop.permute.xlu1 %3924  ;;  %v12188_v24 = vpop.f32.mrf.mxu1 }
 0x3ab   : > { %v4025_v50 = vadd.f32 %v3925_v57, %v3833_v7  ;;  %v3434_v3 = vpop.permute.xlu0 %3433  ;;  %v12190_v61 = vpop.f32.mrf.mxu0 }
 0x3ac   : > { %3510 = vst.msk [vmem:[%s9909_s23 + $0xa0] sm:$0xff] %vm3489_vm0, %v3434_v3  ;;  %v12205_v2 = vpop.f32.mrf.mxu1 }
 0x3ad   : > { %v4060_v9 = vadd.f32 %v15092_v42, %v4025_v50  ;;  %v12207_v19 = vpop.f32.mrf.mxu0 }
 0x3ae   : > { %v3440_v47 = vpop.permute.xlu1 %3439  ;;  %v12209_v48 = vpop.f32.mrf.mxu1 }
 0x3af   : > { %3513 = vst.msk [vmem:[%s9909_s23 + $0xb8] sm:$0xff] %vm3489_vm0, %v3440_v47  ;;  %v3935_v8 = vpop.permute.xlu0 %3934  ;;  %4147 = vrot.lane.b32.xlu0 %v4060_v9, %s8586_s20  ;;  %v12211_v10 = vpop.f32.mrf.mxu0 }
 0x3b0   : > { %v4030_v40 = vadd.f32 %v3935_v8, %v3838_v26  ;;  %v12216_v51 = vpop.f32.mrf.mxu1 }
 0x3b1   : > { %v12218_v31 = vpop.f32.mrf.mxu0 }
 0x3b2   : > { %v4065_v28 = vadd.f32 %v15092_v42, %v4030_v40  ;;  %v3937_v29 = vpop.permute.xlu1 %3936  ;;  %v12222_v6 = vpop.f32.mrf.mxu1 }
 0x3b3   : > { %v3931_v52 = vpop.permute.xlu0 %3930  ;;  %v4031_v21 = vadd.f32 %v3937_v29, %v3839_v35  ;;  %v12224_v44 = vpop.f32.mrf.mxu0 }
 0x3b4   : > { %v4028_v38 = vadd.f32 %v3931_v52, %v3836_v60  ;;  %4157 = vrot.lane.b32.xlu1 %v4065_v28, %s8586_s20 }
 0x3b5   : > { %v4066_v16 = vadd.f32 %v15092_v42, %v4031_v21 }
 0x3b6   : > { %v4063_v34 = vadd.f32 %v15092_v42, %v4028_v38  ;;  %v3444_v62 = vpop.permute.xlu1 %3443  ;;  %v12229_v39 = vpop.f32.mrf.mxu1 }
 0x3b7   : > { %v3446_v36 = vpop.permute.xlu0 %3445  ;;  %3515 = vst.msk [vmem:[%s9909_s23 + $0xc8] sm:$0xff] %vm3489_vm0, %v3444_v62  ;;  %4159 = vrot.lane.b32.xlu0 %v4066_v16, %s8586_s20 }
 0x3b8   : > { %3516 = vst.msk [vmem:[%s9909_s23 + $0xd0] sm:$0xff] %vm3489_vm0, %v3446_v36  ;;  %4153 = vrot.lane.b32.xlu1 %v4063_v34, %s8586_s20  ;;  %v12235_v14 = vpop.f32.mrf.mxu1 }
 0x3ba   : > { %v3933_v49 = vpop.permute.xlu1 %3932  ;;  %v12241_v25 = vpop.f32.mrf.mxu1 }
 0x3bb   : > { %v3442_v5 = vpop.permute.xlu0 %3441  ;;  %v4029_v33 = vadd.f32 %v3933_v49, %v3837_v18 }
 0x3bc   : > { %3514 = vst.msk [vmem:[%s9909_s23 + $0xc0] sm:$0xff] %vm3489_vm0, %v3442_v5  ;;  %v12247_v22 = vpop.f32.mrf.mxu1 }
 0x3bd   : > { %v4064_v59 = vadd.f32 %v15092_v42, %v4029_v33  ;;  %v12231_v42 = vpop.f32.mrf.mxu0 }
 0x3be   : > { %v3448_v37 = vpop.permute.xlu1 %3447 }
 0x3bf   : > { %v3454_v56 = vpop.permute.xlu0 %3453  ;;  %3517 = vst.msk [vmem:[%s9909_s23 + $0xd8] sm:$0xff] %vm3489_vm0, %v3448_v37  ;;  %4155 = vrot.lane.b32.xlu0 %v4064_v59, %s8586_s20  ;;  %v12237_v43 = vpop.f32.mrf.mxu0 }
 0x3c0   : > { %3520 = vst.msk [vmem:[%s9909_s23 + $0xf0] sm:$0xff] %vm3489_vm0, %v3454_v56 }
 0x3c1   : > { %v12243_v58 = vpop.f32.mrf.mxu0  ;;  %v12253_v15 = vpop.f32.mrf.mxu1 }
 0x3c2   : > { %v3456_v12 = vpop.permute.xlu1 %3455 }
 0x3c3   : > { %v3450_v41 = vpop.permute.xlu0 %3449  ;;  %3521 = vst.msk [vmem:[%s9909_s23 + $0xf8] sm:$0xff] %vm3489_vm0, %v3456_v12  ;;  %v12249_v54 = vpop.f32.mrf.mxu0 }
 0x3c4   : > { %3518 = vst.msk [vmem:[%s9909_s23 + $0xe0] sm:$0xff] %vm3489_vm0, %v3450_v41  ;;  %v12257_v57 = vpop.f32.mrf.mxu1 }
 0x3c5   : > { %v12255_v20 = vpop.f32.mrf.mxu0 }
 0x3c6   : > { %v3452_v55 = vpop.permute.xlu1 %3451  ;;  %v12265_v3 = vpop.f32.mrf.mxu1 }
 0x3c7   : > { %v4164_v11 = vpop.permute.xlu0 %4163  ;;  %3519 = vst.msk [vmem:[%s9909_s23 + $0xe8] sm:$0xff] %vm3489_vm0, %v3452_v55  ;;  %v12259_v50 = vpop.f32.mrf.mxu0  ;;  %vm15140_vm0 = vmmov %vm15094_vm1 }
 0x3c8   : > { %4229 = vst.msk [vmem:[%s9909_s23 + $0xf8] sm:$0xff] %vm4197_vm10, %v4164_v11  ;;  %v12269_v8 = vpop.f32.mrf.mxu1  ;;  %vm15141_vm1 = vmmov %vm15140_vm0 }
 0x3c9   : > { %v12267_v9 = vpop.f32.mrf.mxu0  ;;  %vm15143_vm9 = vmmov %vm15140_vm0 }
 0x3ca   : > { %v4162_v53 = vpop.permute.xlu1 %4161  ;;  %vm15175_vm8 = vmmov %vm15140_vm0 }
 0x3cb   : > { %v4104_v7 = vpop.permute.xlu0 %4103  ;;  %4228 = vst.msk [vmem:[%s9909_s23 + $0xf0] sm:$0xff] %vm4197_vm10, %v4162_v53  ;;  %v12271_v40 = vpop.f32.mrf.mxu0  ;;  %vm15176_vm6 = vmmov %vm15140_vm0 }
 0x3cc   : > { %4199 = vst.msk [vmem:[%s9909_s23 + $0x8] sm:$0xff] %vm4197_vm10, %v4104_v7  ;;  %vm15177_vm2 = vmmov %vm15140_vm0 }
 0x3cd   : > { %vm15189_vm3 = vmmov %vm15140_vm0 }
 0x3ce   : > { %v4102_v26 = vpop.permute.xlu1 %4101  ;;  %v12277_v60 = vpop.f32.mrf.mxu1 }
 0x3cf   : > { %v4112_v47 = vpop.permute.xlu0 %4111  ;;  %4198 = vst.msk [vmem:[%s9909_s23] sm:$0xff] %vm4197_vm10, %v4102_v26  ;;  %v12279_v35 = vpop.f32.mrf.mxu0 }
 0x3d0   : > { %4203 = vst.msk [vmem:[%s9909_s23 + $0x28] sm:$0xff] %vm4197_vm10, %v4112_v47  ;;  %v12281_v52 = vpop.f32.mrf.mxu1 }
 0x3d1   : > { %v12283_v21 = vpop.f32.mrf.mxu0 }
 0x3d2   : > { %v4110_v28 = vpop.permute.xlu1 %4109  ;;  %v12289_v38 = vpop.f32.mrf.mxu1 }
 0x3d3   : > { %v4108_v29 = vpop.permute.xlu0 %4107  ;;  %4202 = vst.msk [vmem:[%s9909_s23 + $0x20] sm:$0xff] %vm4197_vm10, %v4110_v28  ;;  %v12291_v16 = vpop.f32.mrf.mxu0 }
 0x3d4   : > { %4201 = vst.msk [vmem:[%s9909_s23 + $0x18] sm:$0xff] %vm4197_vm10, %v4108_v29  ;;  %v12293_v62 = vpop.f32.mrf.mxu1 }
 0x3d5   : > { %v12295_v36 = vpop.f32.mrf.mxu0 }
 0x3d6   : > { %v4106_v34 = vpop.permute.xlu1 %4105 }
 0x3d7   : > { %4200 = vst.msk [vmem:[%s9909_s23 + $0x10] sm:$0xff] %vm4197_vm10, %v4106_v34 }
 0x3d8   : > { %v4120_v18 = vpop.permute.xlu0 %4119 }
 0x3d9   : > { %v12299_v49 = vpop.f32.mrf.mxu1  ;;  %4207 = vst.msk [vmem:[%s9909_s23 + $0x48] sm:$0xff] %vm4197_vm10, %v4120_v18 }
 0x3da   : > { %v12301_v5 = vpop.f32.mrf.mxu0  ;;  %v4118_v33 = vpop.permute.xlu1 %4117 }
 0x3db   : > { %v12305_v59 = vpop.f32.mrf.mxu1  ;;  %4206 = vst.msk [vmem:[%s9909_s23 + $0x40] sm:$0xff] %vm4197_vm10, %v4118_v33 }
 0x3dc   : > { %v12307_v37 = vpop.f32.mrf.mxu0 }
 0x3dd   : > { %v12311_v56 = vpop.f32.mrf.mxu1 }
 0x3de   : > { %15129 = vst [vmem:[#allocation99_spill] sm:$0xff] %v12311_v56  ;;  %v12313_v12 = vpop.f32.mrf.mxu0  ;;  %v4114_v41 = vpop.permute.xlu1 %4113 }
 0x3df   : > { %15130 = vst [vmem:[#allocation44_spill] sm:$0xff] %v12313_v12  ;;  %v12315_v55 = vpop.f32.mrf.mxu1  ;;  %4204 = vst.msk [vmem:[%s9909_s23 + $0x30] sm:$0xff] %vm4197_vm10, %v4114_v41 }
 0x3e0   : > { %15131 = vst [vmem:[#allocation94_spill] sm:$0xff] %v12315_v55  ;;  %v12317_v11 = vpop.f32.mrf.mxu0  ;;  %v4116_v53 = vpop.permute.xlu0 %4115 }
 0x3e1   : > { %4205 = vst.msk [vmem:[%s9909_s23 + $0x38] sm:$0xff] %vm4197_vm10, %v4116_v53 }
 0x3e2   : > { %v12321_v7 = vpop.f32.mrf.mxu1 }
 0x3e3   : > { %15132 = vst [vmem:[#allocation75_spill] sm:$0xff] %v12321_v7  ;;  %v12323_v26 = vpop.f32.mrf.mxu0 }
 0x3e4   : > { %15133 = vst [vmem:[#allocation31_spill] sm:$0xff] %v12323_v26  ;;  %v12327_v47 = vpop.f32.mrf.mxu1  ;;  %v4126_v29 = vpop.permute.xlu1 %4125 }
 0x3e5   : > { %15134 = vst [vmem:[#allocation37_spill] sm:$0xff] %v12327_v47  ;;  %v12329_v28 = vpop.f32.mrf.mxu0  ;;  %4210 = vst.msk [vmem:[%s9909_s23 + $0x60] sm:$0xff] %vm4197_vm10, %v4126_v29  ;;  %v12350_v29 = vld [vmem:[%s13740_s8] ss:$0 sm:$0xff] }
 0x3e6   : > { %v12331_v34 = vpop.f32.mrf.mxu1 }
 0x3e7   : > { %15135 = vst [vmem:[#allocation48_spill] sm:$0xff] %v12331_v34  ;;  %v12333_v18 = vpop.f32.mrf.mxu0 }
 0x3e8   : > { %15136 = vst [vmem:[#allocation76_spill] sm:$0xff] %v12333_v18  ;;  %v12337_v33 = vpop.f32.mrf.mxu1  ;;  %v4122_v13 = vpop.permute.xlu1 %4121 }
 0x3e9   : > { %15137 = vst [vmem:[#allocation71_spill] sm:$0xff] %v12337_v33  ;;  %v12339_v41 = vpop.f32.mrf.mxu0  ;;  %v4128_v45 = vpop.permute.xlu0 %4127  ;;  %4208 = vst.msk [vmem:[%s9909_s23 + $0x50] sm:$0xff] %vm4197_vm10, %v4122_v13 }
 0x3ea   : > { %15138 = vst [vmem:[#allocation82_spill] sm:$0xff] %v12339_v41  ;;  %v8350_v17 = vpop.f32.mrf.mxu1  ;;  %4211 = vst.msk [vmem:[%s9909_s23 + $0x68] sm:$0xff] %vm4197_vm10, %v4128_v45 }
 0x3eb   : > { %v8384_v53 = vpop.f32.mrf.mxu0 }
 0x3ec   : > { %v5316_v46 = vpop.f32.mrf.mxu1 }
 0x3ed   : > { %v12345_v23 = vpop.f32.mrf.mxu0  ;;  %v5725_v18 = vadd.f32 %v8384_v53, %v5316_v46 }
 0x3ee   : > { %15139 = vst [vmem:[#allocation9_spill] sm:$0xff] %v12345_v23  ;;  %v8351_v34 = vpop.f32.mrf.mxu1 }
 0x3ef   : > { %v8385_v33 = vpop.f32.mrf.mxu0  ;;  %v5828_v45 = vadd.f32 %v12350_v29, %v5725_v18 }
 0x3f0   : > { %v5319_v26 = vpop.f32.mrf.mxu1  ;;  %v4124_v17 = vpop.permute.xlu0 %4123 }
 0x3f1   : > { %v5726_v47 = vadd.f32 %v8385_v33, %v5319_v26  ;;  %4209 = vst.msk [vmem:[%s9909_s23 + $0x58] sm:$0xff] %vm4197_vm10, %v4124_v17 }
 0x3f2   : > { %v8390_v7 = vpop.f32.mrf.mxu1 }
 0x3f3   : > { %v5829_v13 = vadd.f32 %v12350_v29, %v5726_v47  ;;  %v5759_v53 = vadd.f32 %v8390_v7, %v12177_v0  ;;  %v5699_v0 = vadd.f32 %v12171_v30, %v12211_v10  ;;  %v5698_v30 = vadd.f32 %v12184_v32, %v12188_v24 }
 0x3f4   : > { %v5536_v34 = vpop.f32.mrf.mxu1  ;;  %v4134_v23 = vpop.permute.xlu1 %4133 }
 0x3f5   : > { %v12356_v46 = vpack.c.bf16 %v5829_v13, %v5828_v45  ;;  %4214 = vst.msk [vmem:[%s9909_s23 + $0x80] sm:$0xff] %vm4197_vm10, %v4134_v23  ;;  %v5798_v17 = vadd.f32 %v12350_v29, %v5759_v53 }
 0x3f6   : > { %v8391_v12 = vpop.f32.mrf.mxu1 }
 0x3f7   : > { %v5760_v26 = vadd.f32 %v8391_v12, %v12190_v61  ;;  %v5697_v61 = vadd.f32 %v12173_v63, %v12175_v27  ;;  %v5700_v12 = vadd.f32 %v12182_v1, %v12224_v44 }
 0x3f8   : > { %v5539_v33 = vpop.f32.mrf.mxu1  ;;  %v4130_v18 = vpop.permute.xlu1 %4129 }
 0x3f9   : > { %v5799_v55 = vadd.f32 %v12350_v29, %v5760_v26  ;;  %v4136_v56 = vpop.permute.xlu0 %4135  ;;  %4212 = vst.msk [vmem:[%s9909_s23 + $0x70] sm:$0xff] %vm4197_vm10, %v4130_v18  ;;  %v5701_v26 = vadd.f32 %v12207_v19, %v12209_v48  ;;  %v5704_v33 = vadd.f32 %v12216_v51, %v12249_v54 }
 0x3fa   : > { %v8394_v41 = vpop.f32.mrf.mxu1  ;;  %4215 = vst.msk [vmem:[%s9909_s23 + $0x88] sm:$0xff] %vm4197_vm10, %v4136_v56 }
 0x3fb   : > { %v12370_v7 = vpack.c.bf16 %v5799_v55, %v5798_v17  ;;  %v5763_v47 = vadd.f32 %v8394_v41, %v5699_v0  ;;  %v5703_v41 = vadd.f32 %v12205_v2, %v12237_v43  ;;  %v6228_v2 = vsel %vm15142_vm15, %v12199_v4, 0  ;;  %vm15145_vm15 = vmmov %vm15140_vm0 }
 0x3fc   : > { %v5552_v23 = vpop.f32.mrf.mxu1  ;;  %v5702_v43 = vadd.f32 %v12218_v31, %v12222_v6 }
 0x3fd   : > { %8422 = vmatprep.mubr.msk.bf16.mxu0 %vm15140_vm0, %v12370_v7  ;;  %8456 = vmatprep.mubr.msk.bf16.mxu1 %vm15141_vm1, %v12370_v7  ;;  %v5761_v10 = vadd.f32 %v5697_v61, %v5552_v23  ;;  %v5802_v13 = vadd.f32 %v12350_v29, %v5763_v47  ;;  %vm15144_vm1 = vmmov %vm15140_vm0  ;;  %v5707_v47 = vadd.f32 %v12229_v39, %v12259_v50 }
 0x3fe   : > { %v8395_v56 = vpop.f32.mrf.mxu1  ;;  %v5706_v50 = vadd.f32 %v12243_v58, %v12247_v22 }
 0x3ff   : > { %v5764_v55 = vadd.f32 %v8395_v56, %v5700_v12  ;;  %v5800_v34 = vadd.f32 %v12350_v29, %v5761_v10 }
 0x400   : > { %v5555_v45 = vpop.f32.mrf.mxu1  ;;  %v4132_v1 = vpop.permute.xlu0 %4131 }
 0x401   : > { %v5803_v63 = vadd.f32 %v12350_v29, %v5764_v55  ;;  %v5762_v27 = vadd.f32 %v5698_v30, %v5555_v45  ;;  %4213 = vst.msk [vmem:[%s9909_s23 + $0x78] sm:$0xff] %vm4197_vm10, %v4132_v1  ;;  %v5705_v45 = vadd.f32 %v12231_v42, %v12235_v14 }
 0x402   : > { %v8398_v44 = vpop.f32.mrf.mxu1 }
 0x403   : > { %v12389_v53 = vpack.c.bf16 %v5803_v63, %v5802_v13  ;;  %v5801_v32 = vadd.f32 %v12350_v29, %v5762_v27  ;;  %v5767_v18 = vadd.f32 %v8398_v44, %v5703_v41  ;;  %v5708_v13 = vadd.f32 %v12241_v25, %v12271_v40 }
 0x404   : > { %v5568_v24 = vpop.f32.mrf.mxu1  ;;  %v4142_v23 = vpop.permute.xlu1 %4141  ;;  %v5711_v41 = vadd.f32 %v12253_v15, %v12283_v21  ;;  %v5710_v15 = vadd.f32 %v12267_v9, %v12269_v8 }
 0x405   : > { %v12396_v17 = vpack.c.bf16 %v5801_v32, %v5800_v34  ;;  %v5765_v61 = vadd.f32 %v5701_v26, %v5568_v24  ;;  %4218 = vst.msk [vmem:[%s9909_s23 + $0xa0] sm:$0xff] %vm4197_vm10, %v4142_v23  ;;  %v5806_v4 = vadd.f32 %v12350_v29, %v5767_v18  ;;  %v5712_v18 = vadd.f32 %v12265_v3, %v12295_v36 }
 0x406   : > { %v8399_v0 = vpop.f32.mrf.mxu1 }
 0x407   : > { %v5768_v12 = vadd.f32 %v8399_v0, %v5704_v33  ;;  %8423 = vmatmul.mubr.msk.bf16.vlgmr.msra.gmra.mxu0 %vm15143_vm9, %v12396_v17  ;;  %8457 = vmatmul.mubr.msk.bf16.vlgmr.msra.gmra.mxu1 %vm15140_vm0, %v12396_v17  ;;  %v5804_v56 = vadd.f32 %v12350_v29, %v5765_v61  ;;  %vm15146_vm9 = vmmov %vm15140_vm0  ;;  %v5709_v33 = vadd.f32 %v12255_v20, %v12257_v57 }
 0x408   : > { %v5571_v19 = vpop.f32.mrf.mxu1  ;;  %8426 = vmatprep.mubr.msk.bf16.mxu0 %vm15144_vm1, %v12389_v53  ;;  %8460 = vmatprep.mubr.msk.bf16.mxu1 %vm15145_vm15, %v12389_v53  ;;  %v4144_v31 = vpop.permute.xlu0 %4143  ;;  %vm15147_vm1 = vmmov %vm15140_vm0 }
 0x409   : > { %v5807_v48 = vadd.f32 %v12350_v29, %v5768_v12  ;;  %v5766_v51 = vadd.f32 %v5702_v43, %v5571_v19  ;;  %8489 = vmatpush3.bf16.msra.mxu0 %v6228_v2  ;;  %v4138_v54 = vpop.permute.xlu1 %4137  ;;  %4219 = vst.msk [vmem:[%s9909_s23 + $0xa8] sm:$0xff] %vm4197_vm10, %v4144_v31  ;;  %vm15148_vm15 = vmmov %vm15140_vm0  ;;  %v5715_v19 = vadd.f32 %v12277_v60, %v12307_v37 }
 0x40a   : > { %v8402_v6 = vpop.f32.mrf.mxu1  ;;  %4216 = vst.msk [vmem:[%s9909_s23 + $0x90] sm:$0xff] %vm4197_vm10, %v4138_v54  ;;  %v5716_v54 = vadd.f32 %v12289_v38, %v12317_v11  ;;  %v5714_v37 = vadd.f32 %v12291_v16, %v12293_v62 }
 0x40b   : > { %v12419_v30 = vpack.c.bf16 %v5807_v48, %v5806_v4  ;;  %v5805_v10 = vadd.f32 %v12350_v29, %v5766_v51  ;;  %v5771_v27 = vadd.f32 %v8402_v6, %v5707_v47  ;;  %v5713_v6 = vadd.f32 %v12279_v35, %v12281_v52 }
 0x40c   : > { %v5584_v55 = vpop.f32.mrf.mxu1 }
 0x40d   : > { %v12428_v63 = vpack.c.bf16 %v5805_v10, %v5804_v56  ;;  %v5769_v1 = vadd.f32 %v5705_v45, %v5584_v55  ;;  %v5810_v14 = vadd.f32 %v12350_v29, %v5771_v27  ;;  %v5719_v45 = vadd.f32 %v12299_v49, %v12329_v28  ;;  %v15157_v49 = vld [vmem:[#allocation94_spill] sm:$0xff]  ;;  %v15158_v28 = vld [vmem:[#allocation44_spill] sm:$0xff] }
 0x40e   : > { %v8403_v39 = vpop.f32.mrf.mxu1 }
 0x40f   : > { %v5772_v44 = vadd.f32 %v8403_v39, %v5708_v13  ;;  %8427 = vmatmul.mubr.msk.bf16.gmra.mxu0 %vm15146_vm9, %v12428_v63  ;;  %8461 = vmatmul.mubr.msk.bf16.gmra.mxu1 %vm15140_vm0, %v12428_v63  ;;  %v5808_v34 = vadd.f32 %v12350_v29, %v5769_v1  ;;  %vm15149_vm9 = vmmov %vm15140_vm0  ;;  %v5717_v1 = vadd.f32 %v12301_v5, %v12305_v59  ;;  %v5485_v59 = vpop.f32.mrf.mxu0 }
 0x410   : > { %v5587_v42 = vpop.f32.mrf.mxu1  ;;  %8430 = vmatprep.mubr.msk.bf16.mxu0 %vm15147_vm1, %v12419_v30  ;;  %8464 = vmatprep.mubr.msk.bf16.mxu1 %vm15148_vm15, %v12419_v30  ;;  %v4140_v22 = vpop.permute.xlu0 %4139  ;;  %vm15150_vm1 = vmmov %vm15140_vm0 }
 0x411   : > { %v5811_v25 = vadd.f32 %v12350_v29, %v5772_v44  ;;  %v5770_v58 = vadd.f32 %v5706_v50, %v5587_v42  ;;  %4217 = vst.msk [vmem:[%s9909_s23 + $0x98] sm:$0xff] %vm4197_vm10, %v4140_v22  ;;  %vm15151_vm15 = vmmov %vm15140_vm0  ;;  %v15155_v44 = vld [vmem:[#allocation82_spill] sm:$0xff]  ;;  %v15156_v42 = vld [vmem:[#allocation99_spill] sm:$0xff] }
 0x412   : > { %v8406_v40 = vpop.f32.mrf.mxu1 }
 0x413   : > { %v12447_v32 = vpack.c.bf16 %v5811_v25, %v5810_v14  ;;  %v5809_v24 = vadd.f32 %v12350_v29, %v5770_v58  ;;  %v5775_v23 = vadd.f32 %v8406_v40, %v5711_v41  ;;  %v5720_v14 = vadd.f32 %v15156_v42, %v15155_v44 }
 0x414   : > { %v5600_v26 = vpop.f32.mrf.mxu1  ;;  %v5718_v41 = vadd.f32 %v15158_v28, %v15157_v49 }
 0x415   : > { %v12454_v0 = vpack.c.bf16 %v5809_v24, %v5808_v34  ;;  %v5773_v21 = vadd.f32 %v5709_v33, %v5600_v26  ;;  %v5814_v57 = vadd.f32 %v12350_v29, %v5775_v23 }
 0x416   : > { %v8407_v2 = vpop.f32.mrf.mxu1  ;;  %v4150_v43 = vpop.permute.xlu1 %4149 }
 0x417   : > { %v5776_v61 = vadd.f32 %v8407_v2, %v5712_v18  ;;  %8431 = vmatmul.mubr.msk.bf16.gmra.mxu0 %vm15149_vm9, %v12454_v0  ;;  %8465 = vmatmul.mubr.msk.bf16.gmra.mxu1 %vm15140_vm0, %v12454_v0  ;;  %4222 = vst.msk [vmem:[%s9909_s23 + $0xc0] sm:$0xff] %vm4197_vm10, %v4150_v43  ;;  %v5812_v4 = vadd.f32 %v12350_v29, %v5773_v21  ;;  %vm15152_vm9 = vmmov %vm15140_vm0  ;;  %v15162_v43 = vld [vmem:[#allocation9_spill] sm:$0xff] }
 0x418   : > { %v5603_v20 = vpop.f32.mrf.mxu1  ;;  %8434 = vmatprep.mubr.msk.bf16.mxu0 %vm15150_vm1, %v12447_v32  ;;  %8468 = vmatprep.mubr.msk.bf16.mxu1 %vm15151_vm15, %v12447_v32  ;;  %vm15153_vm1 = vmmov %vm15140_vm0 }
 0x419   : > { %v5815_v3 = vadd.f32 %v12350_v29, %v5776_v61  ;;  %v5774_v9 = vadd.f32 %v5710_v15, %v5603_v20  ;;  %v4152_v8 = vpop.permute.xlu0 %4151  ;;  %vm15154_vm15 = vmmov %vm15140_vm0  ;;  %v15163_v15 = vld [vmem:[#allocation75_spill] sm:$0xff] }
 0x41a   : > { %v8410_v36 = vpop.f32.mrf.mxu1  ;;  %v4146_v12 = vpop.permute.xlu1 %4145  ;;  %4223 = vst.msk [vmem:[%s9909_s23 + $0xc8] sm:$0xff] %vm4197_vm10, %v4152_v8  ;;  %v5723_v21 = vadd.f32 %v15163_v15, %v15162_v43  ;;  %v15164_v8 = vld [vmem:[#allocation37_spill] sm:$0xff] }
 0x41b   : > { %v12475_v48 = vpack.c.bf16 %v5815_v3, %v5814_v57  ;;  %v5813_v51 = vadd.f32 %v12350_v29, %v5774_v9  ;;  %4220 = vst.msk [vmem:[%s9909_s23 + $0xb0] sm:$0xff] %vm4197_vm10, %v4146_v12  ;;  %v5779_v56 = vadd.f32 %v8410_v36, %v5715_v19  ;;  %v15165_v36 = vld [vmem:[#allocation31_spill] sm:$0xff]  ;;  %v15166_v19 = vld [vmem:[#allocation48_spill] sm:$0xff] }
 0x41c   : > { %v5616_v31 = vpop.f32.mrf.mxu1  ;;  %v5721_v12 = vadd.f32 %v15165_v36, %v15164_v8 }
 0x41d   : > { %v12484_v47 = vpack.c.bf16 %v5813_v51, %v5812_v4  ;;  %v5777_v10 = vadd.f32 %v5713_v6, %v5616_v31  ;;  %v5818_v52 = vadd.f32 %v12350_v29, %v5779_v56  ;;  %v5724_v4 = vadd.f32 %v15166_v19, %v5485_v59  ;;  %v15168_v56 = vld [vmem:[#allocation76_spill] sm:$0xff] }
 0x41e   : > { %v8411_v60 = vpop.f32.mrf.mxu1 }
 0x41f   : > { %v5780_v55 = vadd.f32 %v8411_v60, %v5716_v54  ;;  %8435 = vmatmul.mubr.msk.bf16.gmra.mxu0 %vm15152_vm9, %v12484_v47  ;;  %8469 = vmatmul.mubr.msk.bf16.gmra.mxu1 %vm15140_vm0, %v12484_v47  ;;  %v5816_v13 = vadd.f32 %v12350_v29, %v5777_v10  ;;  %vm15159_vm9 = vmmov %vm15140_vm0  ;;  %v15167_v54 = vld [vmem:[#allocation71_spill] sm:$0xff] }
 0x420   : > { %v5619_v35 = vpop.f32.mrf.mxu1  ;;  %8438 = vmatprep.mubr.msk.bf16.mxu0 %vm15153_vm1, %v12475_v48  ;;  %8472 = vmatprep.mubr.msk.bf16.mxu1 %vm15154_vm15, %v12475_v48  ;;  %vm15160_vm1 = vmmov %vm15140_vm0  ;;  %v5722_v60 = vadd.f32 %v15168_v56, %v15167_v54 }
 0x421   : > { %v5819_v38 = vadd.f32 %v12350_v29, %v5780_v55  ;;  %v5778_v16 = vadd.f32 %v5714_v37, %v5619_v35  ;;  %v4148_v62 = vpop.permute.xlu0 %4147  ;;  %vm15161_vm15 = vmmov %vm15140_vm0 }
 0x422   : > { %v8414_v11 = vpop.f32.mrf.mxu1  ;;  %4221 = vst.msk [vmem:[%s9909_s23 + $0xb8] sm:$0xff] %vm4197_vm10, %v4148_v62 }
 0x423   : > { %v12503_v27 = vpack.c.bf16 %v5819_v38, %v5818_v52  ;;  %v5817_v39 = vadd.f32 %v12350_v29, %v5778_v16  ;;  %v5783_v58 = vadd.f32 %v8414_v11, %v5719_v45 }
 0x424   : > { %v5632_v50 = vpop.f32.mrf.mxu1 }
 0x425   : > { %v12510_v25 = vpack.c.bf16 %v5817_v39, %v5816_v13  ;;  %v5781_v34 = vadd.f32 %v5717_v1, %v5632_v50  ;;  %v5822_v26 = vadd.f32 %v12350_v29, %v5783_v58 }
 0x426   : > { %v8415_v22 = vpop.f32.mrf.mxu1  ;;  %v4158_v40 = vpop.permute.xlu1 %4157 }
 0x427   : > { %v5784_v24 = vadd.f32 %v8415_v22, %v5720_v14  ;;  %8439 = vmatmul.mubr.msk.bf16.gmra.mxu0 %vm15159_vm9, %v12510_v25  ;;  %8473 = vmatmul.mubr.msk.bf16.gmra.mxu1 %vm15140_vm0, %v12510_v25  ;;  %4226 = vst.msk [vmem:[%s9909_s23 + $0xe0] sm:$0xff] %vm4197_vm10, %v4158_v40  ;;  %v5820_v61 = vadd.f32 %v12350_v29, %v5781_v34  ;;  %vm15169_vm9 = vmmov %vm15140_vm0 }
 0x428   : > { %v5635_v5 = vpop.f32.mrf.mxu1  ;;  %8442 = vmatprep.mubr.msk.bf16.mxu0 %vm15160_vm1, %v12503_v27  ;;  %8476 = vmatprep.mubr.msk.bf16.mxu1 %vm15161_vm15, %v12503_v27  ;;  %vm15170_vm1 = vmmov %vm15140_vm0 }
 0x429   : > { %v5823_v33 = vadd.f32 %v12350_v29, %v5784_v24  ;;  %v5782_v18 = vadd.f32 %v5718_v41, %v5635_v5  ;;  %v4160_v3 = vpop.permute.xlu0 %4159  ;;  %vm15171_vm15 = vmmov %vm15140_vm0 }
 0x42a   : > { %v8418_v23 = vpop.f32.mrf.mxu1  ;;  %v4154_v2 = vpop.permute.xlu1 %4153  ;;  %4227 = vst.msk [vmem:[%s9909_s23 + $0xe8] sm:$0xff] %vm4197_vm10, %v4160_v3 }
 0x42b   : > { %v5842_v20 = vpack.c.bf16 %v5823_v33, %v5822_v26  ;;  %v5821_v57 = vadd.f32 %v12350_v29, %v5782_v18  ;;  %4224 = vst.msk [vmem:[%s9909_s23 + $0xd0] sm:$0xff] %vm4197_vm10, %v4154_v2  ;;  %v5787_v31 = vadd.f32 %v8418_v23, %v5723_v21 }
 0x42c   : > { %v5648_v9 = vpop.f32.mrf.mxu1 }
 0x42d   : > { %v5841_v51 = vpack.c.bf16 %v5821_v57, %v5820_v61  ;;  %v5785_v37 = vadd.f32 %v5721_v12, %v5648_v9  ;;  %v5826_v35 = vadd.f32 %v12350_v29, %v5787_v31 }
 0x42e   : > { %v8419_v6 = vpop.f32.mrf.mxu1 }
 0x42f   : > { %v5788_v10 = vadd.f32 %v8419_v6, %v5724_v4  ;;  %8443 = vmatmul.mubr.msk.bf16.gmra.mxu0 %vm15169_vm9, %v5841_v51  ;;  %8477 = vmatmul.mubr.msk.bf16.gmra.mxu1 %vm15140_vm0, %v5841_v51  ;;  %v5824_v62 = vadd.f32 %v12350_v29, %v5785_v37  ;;  %vm15172_vm9 = vmmov %vm15140_vm0 }
 0x430   : > { %v5651_v55 = vpop.f32.mrf.mxu1  ;;  %8446 = vmatprep.mubr.msk.bf16.mxu0 %vm15170_vm1, %v5842_v20  ;;  %8480 = vmatprep.mubr.msk.bf16.mxu1 %vm15171_vm15, %v5842_v20  ;;  %vm15173_vm1 = vmmov %vm15140_vm0 }
 0x431   : > { %v5827_v52 = vadd.f32 %v12350_v29, %v5788_v10  ;;  %v5786_v38 = vadd.f32 %v5722_v60, %v5651_v55  ;;  %v4156_v16 = vpop.permute.xlu0 %4155  ;;  %vm15174_vm15 = vmmov %vm15140_vm0  ;;  %v15216_v55 = vld [vmem:[#allocation107_spill] sm:$0xff] }
 0x432   : > { %4225 = vst.msk [vmem:[%s9909_s23 + $0xd8] sm:$0xff] %vm4197_vm10, %v4156_v16  ;;  %vm15178_vm10 = vmmov %vm15140_vm0 }
 0x433   : > { %v5844_v11 = vpack.c.bf16 %v5827_v52, %v5826_v35  ;;  %v5825_v45 = vadd.f32 %v12350_v29, %v5786_v38 }
 0x435   : > { %v5843_v13 = vpack.c.bf16 %v5825_v45, %v5824_v62 }
 0x437   : > { %8447 = vmatmul.mubr.msk.bf16.gmra.mxu0 %vm15172_vm9, %v5843_v13  ;;  %8481 = vmatmul.mubr.msk.bf16.gmra.mxu1 %vm15140_vm0, %v5843_v13  ;;  %vm15179_vm9 = vmmov %vm15140_vm0 }
 0x438   : > { %8450 = vmatprep.mubr.msk.bf16.mxu0 %vm15173_vm1, %v5844_v11  ;;  %8484 = vmatprep.mubr.msk.bf16.mxu1 %vm15174_vm15, %v5844_v11  ;;  %vm15180_vm1 = vmmov %vm15140_vm0 }
 0x439   : > { %vm15184_vm15 = vmmov %vm15140_vm0 }
 0x43f   : > { %8451 = vmatmul.mubr.msk.bf16.gmra.mxu0 %vm15175_vm8, %v12356_v46  ;;  %8485 = vmatmul.mubr.msk.bf16.gmra.mxu1 %vm15176_vm6, %v12356_v46  ;;  %vm15181_vm8 = vmmov %vm15140_vm0 }
 0x440   : > { %8490 = vmatprep.mubr.msk.bf16.mxu0 %vm15177_vm2, %v12370_v7  ;;  %vm15182_vm6 = vmmov %vm15140_vm0 }
 0x441   : > { %vm15183_vm2 = vmmov %vm15140_vm0 }
 0x447   : > { %8491 = vmatmul.mubr.msk.bf16.vlgmr.msra.gmra.mxu0 %vm15178_vm10, %v12396_v17  ;;  %vm15185_vm10 = vmmov %vm15140_vm0 }
 0x448   : > { %8494 = vmatprep.mubr.msk.bf16.mxu0 %vm15179_vm9, %v12389_v53  ;;  %vm15186_vm9 = vmmov %vm15140_vm0 }
 0x44f   : > { %8495 = vmatmul.mubr.msk.bf16.gmra.mxu0 %vm15140_vm0, %v12428_v63 }
 0x450   : > { %8498 = vmatprep.mubr.msk.bf16.mxu0 %vm15180_vm1, %v12419_v30  ;;  %vm15187_vm1 = vmmov %vm15140_vm0 }
 0x457   : > { %8499 = vmatmul.mubr.msk.bf16.gmra.mxu0 %vm15181_vm8, %v12454_v0  ;;  %vm15188_vm8 = vmmov %vm15140_vm0 }
 0x458   : > { %8502 = vmatprep.mubr.msk.bf16.mxu0 %vm15182_vm6, %v12447_v32  ;;  %vm15190_vm6 = vmmov %vm15140_vm0 }
 0x45f   : > { %8503 = vmatmul.mubr.msk.bf16.gmra.mxu0 %vm15183_vm2, %v12484_v47 }
 0x460   : > { %8506 = vmatprep.mubr.msk.bf16.mxu0 %vm15184_vm15, %v12475_v48 }
 0x467   : > { %8507 = vmatmul.mubr.msk.bf16.gmra.mxu0 %vm15185_vm10, %v12510_v25 }
 0x468   : > { %8510 = vmatprep.mubr.msk.bf16.mxu0 %vm15186_vm9, %v12503_v27  ;;  %v15191_v27 = vld [vmem:[#allocation2_spill] sm:$0xff] }
 0x46f   : > { %8511 = vmatmul.mubr.msk.bf16.gmra.mxu0 %vm15140_vm0, %v5841_v51 }
 0x470   : > { %8514 = vmatprep.mubr.msk.bf16.mxu0 %vm15187_vm1, %v5842_v20 }
 0x477   : > { %8515 = vmatmul.mubr.msk.bf16.gmra.mxu0 %vm15188_vm8, %v5843_v13 }
 0x478   : > { %8518 = vmatprep.mubr.msk.bf16.mxu0 %vm15189_vm3, %v5844_v11  ;;  %vm15192_vm3 = vcmp.lt.s32.totalorder %v15191_v27, 1 }
 0x479   : > { %vm15193_vm2 = vmmov %vm15192_vm3 }
 0x47a   : > { %vm15194_vm15 = vmmov %vm15193_vm2 }
 0x47b   : > { %vm15196_vm10 = vmmov %vm15193_vm2 }
 0x47c   : > { %vm15199_vm9 = vmmov %vm15193_vm2 }
 0x47d   : > { %vm15200_vm0 = vmmov %vm15193_vm2 }
 0x47e   : > { %vm15206_vm1 = vmmov %vm15200_vm0 }
 0x47f   : > { %8519 = vmatmul.mubr.msk.bf16.gmra.mxu0 %vm15190_vm6, %v12356_v46  ;;  %vm15210_vm8 = vmmov %vm15200_vm0 }
 0x480   : > { %vm15212_vm6 = vmmov %vm15200_vm0 }
 0x4c7   : > { %v8424_v29 = vpop.f32.mrf.mxu0  ;;  %v8458_v7 = vpop.f32.mrf.mxu1 }
 0x4c8   : > { %6883 = vrot.lane.b32.xlu1 %v8424_v29, %s8584_s15  ;;  %v6394_v32 = vrot.slane %v8424_v29, 7 }
 0x4c9   : > { %v12586_v53 = vpop.f32.mrf.mxu0  ;;  %v12588_v17 = vpop.f32.mrf.mxu1 }
 0x4ca   : > { %v14064_v46 = vrot.slane %v12586_v53, 7 }
 0x4cb   : > { %v8425_v30 = vpop.f32.mrf.mxu0  ;;  %v8459_v63 = vpop.f32.mrf.mxu1 }
 0x4cc   : > { %v6395_v0 = vrot.slane %v8425_v30, 7  ;;  %6885 = vrot.lane.b32.xlu0 %v8425_v30, %s8584_s15  ;;  %7043 = vrot.lane.b32.xlu1 %v8458_v7, %s8584_s15 }
 0x4cd   : > { %v5935_v48 = vpop.f32.mrf.mxu0  ;;  %v6101_v47 = vpop.f32.mrf.mxu1 }
 0x4ce   : > { %v6452_v39 = vsel %vm15192_vm3, %v6394_v32, %v6395_v0  ;;  %v6393_v50 = vrot.slane %v5935_v48, 7 }
 0x4cf   : > { %v12595_v1 = vadd.f32 %v8459_v63, %v6452_v39  ;;  %v8428_v44 = vpop.f32.mrf.mxu0  ;;  %v8462_v42 = vpop.f32.mrf.mxu1 }
 0x4d0   : > { %v6453_v14 = vsel %vm15193_vm2, %v6393_v50, %v6394_v32  ;;  %v6454_v25 = vsel %vm15194_vm15, %v14064_v46, %v6393_v50  ;;  %7045 = vrot.lane.b32.xlu0 %v8459_v63, %s8584_s15  ;;  %6879 = vrot.lane.b32.xlu1 %v12586_v53, %s8584_s15  ;;  %v6398_v59 = vrot.slane %v8428_v44, 7  ;;  %vm15217_vm15 = vnez %v15216_v55 }
 0x4d1   : > { %v6458_v22 = vsel %vm9624_vm4, %v6453_v14, 0.0  ;;  %v12608_v40 = vadd.f32 %v6454_v25, %v6101_v47  ;;  %v5948_v49 = vpop.f32.mrf.mxu0  ;;  %v6114_v28 = vpop.f32.mrf.mxu1  ;;  %vm15198_vm4 = vmmov %vm15193_vm2 }
 0x4d2   : > { %v12610_v41 = vadd.f32 %v8458_v7, %v6458_v22  ;;  %v6396_v34 = vrot.slane %v5948_v49, 7  ;;  %vm15215_vm2 = vmmov %vm15200_vm0 }
 0x4d3   : > { %v8429_v24 = vpop.f32.mrf.mxu0  ;;  %v8463_v5 = vpop.f32.mrf.mxu1 }
 0x4d4   : > { %v6451_v26 = vsel %vm15196_vm10, %v6395_v0, %v6396_v34  ;;  %v6399_v33 = vrot.slane %v8429_v24, 7  ;;  %6881 = vrot.lane.b32.xlu0 %v5935_v48, %s8584_s15  ;;  %7039 = vrot.lane.b32.xlu1 %v12588_v17, %s8584_s15  ;;  %vm15218_vm10 = vmmov %vm15200_vm0 }
 0x4d5   : > { %v6460_v23 = vsel %vm14610_vm7, %v6451_v26, 0.0  ;;  %v5951_v2 = vpop.f32.mrf.mxu0  ;;  %v6117_v43 = vpop.f32.mrf.mxu1  ;;  %vm15202_vm7 = vmmov %vm15200_vm0 }
 0x4d6   : > { %v12619_v15 = vadd.f32 %v6460_v23, %v6114_v28  ;;  %v6448_v21 = vsel %vm15198_vm4, %v6398_v59, %v6399_v33  ;;  %v6397_v61 = vrot.slane %v5951_v2, 7  ;;  %vm15220_vm4 = vmmov %vm15200_vm0 }
 0x4d7   : > { %v12623_v20 = vadd.f32 %v8463_v5, %v6448_v21  ;;  %v8432_v57 = vpop.f32.mrf.mxu0  ;;  %v12625_v3 = vpop.f32.mrf.mxu1  ;;  %v15213_v21 = vld [vmem:[#allocation51_spill] sm:$0xff] }
 0x4d8   : > { %v6449_v9 = vsel %vm15199_vm9, %v6397_v61, %v6398_v59  ;;  %v6450_v8 = vsel %vm15200_vm0, %v6396_v34, %v6397_v61  ;;  %7041 = vrot.lane.b32.xlu0 %v6101_v47, %s8584_s15  ;;  %6891 = vrot.lane.b32.xlu1 %v8428_v44, %s8584_s15  ;;  %v6402_v60 = vrot.slane %v8432_v57, 7  ;;  %vm15214_vm3 = vnez %v15213_v21  ;;  %vm15221_vm9 = vmmov %vm15200_vm0 }
 0x4d9   : > { %v6462_v12 = vsel %vm9642_vm12, %v6449_v9, 0.0  ;;  %v12635_v19 = vadd.f32 %v6450_v8, %v6117_v43  ;;  %v12637_v4 = vpop.f32.mrf.mxu0  ;;  %v12639_v51 = vpop.f32.mrf.mxu1  ;;  %vm15204_vm12 = vmmov %vm15200_vm0 }
 0x4da   : > { %v12641_v31 = vadd.f32 %v8462_v42, %v6462_v12  ;;  %v6400_v6 = vrot.slane %v12637_v4, 7 }
 0x4db   : > { %v8433_v54 = vpop.f32.mrf.mxu0  ;;  %v12644_v56 = vpop.f32.mrf.mxu1 }
 0x4dc   : > { %v6447_v37 = vsel %vm15202_vm7, %v6399_v33, %v6400_v6  ;;  %v6403_v10 = vrot.slane %v8433_v54, 7  ;;  %6893 = vrot.lane.b32.xlu0 %v8429_v24, %s8584_s15  ;;  %7051 = vrot.lane.b32.xlu1 %v8462_v42, %s8584_s15  ;;  %vm15224_vm7 = vmmov %vm15206_vm1 }
 0x4dd   : > { %v6464_v35 = vsel %vm9380_vm11, %v6447_v37, 0.0  ;;  %v12652_v52 = vpop.f32.mrf.mxu0  ;;  %v12654_v38 = vpop.f32.mrf.mxu1  ;;  %vm15205_vm11 = vmmov %vm15200_vm0 }
 0x4de   : > { %v12657_v16 = vadd.f32 %v6464_v35, %v12639_v51  ;;  %v6444_v62 = vsel %vm15204_vm12, %v6402_v60, %v6403_v10  ;;  %v6401_v11 = vrot.slane %v12652_v52, 7 }
 0x4df   : > { %v12663_v45 = vadd.f32 %v12644_v56, %v6444_v62  ;;  %v12665_v13 = vpop.f32.mrf.mxu0  ;;  %v12667_v29 = vpop.f32.mrf.mxu1 }
 0x4e0   : > { %v6445_v7 = vsel %vm15205_vm11, %v6401_v11, %v6402_v60  ;;  %v6446_v30 = vsel %vm15206_vm1, %v6400_v6, %v6401_v11  ;;  %7053 = vrot.lane.b32.xlu0 %v8463_v5, %s8584_s15  ;;  %6887 = vrot.lane.b32.xlu1 %v5948_v49, %s8584_s15  ;;  %v6406_v14 = vrot.slane %v12665_v13, 7  ;;  %vm15228_vm11 = vmmov %vm15206_vm1 }
 0x4e1   : > { %v6466_v32 = vsel %vm9660_vm13, %v6445_v7, 0.0  ;;  %v12678_v0 = vadd.f32 %v6446_v30, %v12654_v38  ;;  %v12680_v48 = vpop.f32.mrf.mxu0  ;;  %v12682_v47 = vpop.f32.mrf.mxu1  ;;  %vm15208_vm13 = vmmov %vm15200_vm0 }
 0x4e2   : > { %v12685_v39 = vadd.f32 %v12625_v3, %v6466_v32  ;;  %v6404_v50 = vrot.slane %v12680_v48, 7 }
 0x4e3   : > { %v12688_v44 = vpop.f32.mrf.mxu0  ;;  %v12690_v42 = vpop.f32.mrf.mxu1 }
 0x4e4   : > { %v6443_v25 = vsel %vm15208_vm13, %v6403_v10, %v6404_v50  ;;  %v6407_v58 = vrot.slane %v12688_v44, 7  ;;  %6889 = vrot.lane.b32.xlu0 %v5951_v2, %s8584_s15  ;;  %7047 = vrot.lane.b32.xlu1 %v6114_v28, %s8584_s15  ;;  %vm15230_vm13 = vmmov %vm15206_vm1 }
 0x4e5   : > { %v6468_v49 = vsel %vm14624_vm14, %v6443_v25, 0.0  ;;  %v12700_v34 = vpop.f32.mrf.mxu0  ;;  %v12702_v24 = vpop.f32.mrf.mxu1  ;;  %vm15211_vm14 = vmmov %vm15200_vm0  ;;  %v15222_v25 = vld [vmem:[#allocation4_spill] sm:$0xff] }
 0x4e6   : > { %v12705_v5 = vadd.f32 %v6468_v49, %v12682_v47  ;;  %v6440_v59 = vsel %vm15210_vm8, %v6406_v14, %v6407_v58  ;;  %v6405_v26 = vrot.slane %v12700_v34, 7  ;;  %vm15223_vm0 = vnez %v15222_v25  ;;  %v15231_v25 = vld [vmem:[#allocation47_spill] sm:$0xff] }
 0x4e7   : > { %v12711_v33 = vadd.f32 %v12690_v42, %v6440_v59  ;;  %v12713_v18 = vpop.f32.mrf.mxu0  ;;  %v12715_v28 = vpop.f32.mrf.mxu1  ;;  %vm15232_vm8 = vnez %v15231_v25 }
 0x4e8   : > { %v6441_v23 = vsel %vm15211_vm14, %v6405_v26, %v6406_v14  ;;  %v6442_v2 = vsel %vm15212_vm6, %v6404_v50, %v6405_v26  ;;  %7049 = vrot.lane.b32.xlu0 %v6117_v43, %s8584_s15  ;;  %6899 = vrot.lane.b32.xlu1 %v8432_v57, %s8584_s15  ;;  %v6410_v57 = vrot.slane %v12713_v18, 7  ;;  %vm15235_vm14 = vmmov %vm15206_vm1 }
 0x4e9   : > { %v6470_v61 = vsel %vm15214_vm3, %v6441_v23, 0.0  ;;  %v12726_v9 = vadd.f32 %v6442_v2, %v12702_v24  ;;  %v12728_v8 = vpop.f32.mrf.mxu0  ;;  %v12730_v36 = vpop.f32.mrf.mxu1  ;;  %vm15239_vm3 = vmmov %vm15206_vm1 }
 0x4ea   : > { %v12733_v12 = vadd.f32 %v12667_v29, %v6470_v61  ;;  %v6408_v6 = vrot.slane %v12728_v8, 7 }
 0x4eb   : > { %v12736_v60 = vpop.f32.mrf.mxu0  ;;  %v12738_v43 = vpop.f32.mrf.mxu1 }
 0x4ec   : > { %v6439_v37 = vsel %vm15215_vm2, %v6407_v58, %v6408_v6  ;;  %v6411_v10 = vrot.slane %v12736_v60, 7  ;;  %6901 = vrot.lane.b32.xlu0 %v8433_v54, %s8584_s15  ;;  %7059 = vrot.lane.b32.xlu1 %v12625_v3, %s8584_s15  ;;  %vm15241_vm2 = vmmov %vm15206_vm1 }
 0x4ed   : > { %v6472_v35 = vsel %vm15217_vm15, %v6439_v37, 0.0  ;;  %v12749_v62 = vpop.f32.mrf.mxu0  ;;  %v12751_v11 = vpop.f32.mrf.mxu1  ;;  %vm15242_vm15 = vmmov %vm15206_vm1 }
 0x4ee   : > { %v12754_v7 = vadd.f32 %v6472_v35, %v12730_v36  ;;  %v6436_v30 = vsel %vm15218_vm10, %v6410_v57, %v6411_v10  ;;  %v6409_v63 = vrot.slane %v12749_v62, 7 }
 0x4ef   : > { %v12760_v54 = vadd.f32 %v12738_v43, %v6436_v30  ;;  %v12762_v32 = vpop.f32.mrf.mxu0  ;;  %v12764_v3 = vpop.f32.mrf.mxu1 }
 0x4f0   : > { %v6437_v50 = vsel %vm15220_vm4, %v6409_v63, %v6410_v57  ;;  %v6438_v14 = vsel %vm15221_vm9, %v6408_v6, %v6409_v63  ;;  %7061 = vrot.lane.b32.xlu0 %v12644_v56, %s8584_s15  ;;  %6895 = vrot.lane.b32.xlu1 %v12637_v4, %s8584_s15  ;;  %v6414_v4 = vrot.slane %v12762_v32, 7  ;;  %v15225_v6 = vld [vmem:[#allocation109_spill] sm:$0xff]  ;;  %vm15247_vm4 = vmmov %vm15206_vm1 }
 0x4f1   : > { %15219 = vst [vmem:[#allocation20_spill] sm:$0xff] %v12760_v54  ;;  %v6474_v58 = vsel %vm15223_vm0, %v6437_v50, 0.0  ;;  %v12777_v22 = vadd.f32 %v6438_v14, %v12751_v11  ;;  %v12779_v49 = vpop.f32.mrf.mxu0  ;;  %v12781_v59 = vpop.f32.mrf.mxu1  ;;  %vm15226_vm12 = vnez %v15225_v6  ;;  %vm15252_vm0 = vmmov %vm15206_vm1 }
 0x4f2   : > { %v12784_v26 = vadd.f32 %v12715_v28, %v6474_v58  ;;  %v6412_v23 = vrot.slane %v12779_v49, 7 }
 0x4f3   : > { %v12787_v2 = vpop.f32.mrf.mxu0  ;;  %v12789_v56 = vpop.f32.mrf.mxu1 }
 0x4f4   : > { %v6435_v21 = vsel %vm15224_vm7, %v6411_v10, %v6412_v23  ;;  %v6415_v61 = vrot.slane %v12787_v2, 7  ;;  %6897 = vrot.lane.b32.xlu0 %v12652_v52, %s8584_s15  ;;  %7055 = vrot.lane.b32.xlu1 %v12639_v51, %s8584_s15  ;;  %vm15253_vm7 = vmmov %vm15252_vm0 }
 0x4f5   : > { %v6476_v57 = vsel %vm15226_vm12, %v6435_v21, 0.0  ;;  %v12801_v37 = vpop.f32.mrf.mxu0  ;;  %v12803_v55 = vpop.f32.mrf.mxu1 }
 0x4f6   : > { %v12806_v35 = vadd.f32 %v6476_v57, %v12781_v59  ;;  %v6432_v10 = vsel %vm15228_vm11, %v6414_v4, %v6415_v61  ;;  %v6413_v30 = vrot.slane %v12801_v37, 7  ;;  %vm15256_vm11 = vmmov %vm15252_vm0 }
 0x4f7   : > { %v12812_v52 = vadd.f32 %v12789_v56, %v6432_v10  ;;  %v12814_v63 = vpop.f32.mrf.mxu0  ;;  %v12816_v51 = vpop.f32.mrf.mxu1 }
 0x4f8   : > { %15227 = vst [vmem:[#allocation39_spill] sm:$0xff] %v12806_v35  ;;  %v6433_v50 = vsel %vm15206_vm1, %v6413_v30, %v6414_v4  ;;  %v6434_v14 = vsel %vm15230_vm13, %v6412_v23, %v6413_v30  ;;  %7057 = vrot.lane.b32.xlu0 %v12654_v38, %s8584_s15  ;;  %6907 = vrot.lane.b32.xlu1 %v12665_v13, %s8584_s15  ;;  %v6418_v13 = vrot.slane %v12814_v63, 7  ;;  %vm15257_vm1 = vmmov %vm15252_vm0 }
 0x4f9   : > { %15229 = vst [vmem:[#allocation17_spill] sm:$0xff] %v12812_v52  ;;  %v6478_v58 = vsel %vm15232_vm8, %v6433_v50, 0.0  ;;  %v12829_v21 = vadd.f32 %v6434_v14, %v12803_v55  ;;  %v12831_v6 = vpop.f32.mrf.mxu0  ;;  %v12833_v57 = vpop.f32.mrf.mxu1  ;;  %v15236_v14 = vld [vmem:[#allocation110_spill] sm:$0xff]  ;;  %vm15268_vm8 = vcmp.lt.s32.totalorder %v15191_v27, 7 }
 0x4fa   : > { %v12836_v4 = vadd.f32 %v12764_v3, %v6478_v58  ;;  %v6416_v23 = vrot.slane %v12831_v6, 7  ;;  %vm15237_vm6 = vnez %v15236_v14 }
 0x4fb   : > { %15233 = vst [vmem:[#allocation70_spill] sm:$0xff] %v12829_v21  ;;  %v12839_v10 = vpop.f32.mrf.mxu0  ;;  %v12841_v38 = vpop.f32.mrf.mxu1 }
 0x4fc   : > { %15234 = vst [vmem:[#allocation69_spill] sm:$0xff] %v12836_v4  ;;  %v6431_v30 = vsel %vm15235_vm14, %v6415_v61, %v6416_v23  ;;  %v6419_v50 = vrot.slane %v12839_v10, 7  ;;  %6909 = vrot.lane.b32.xlu0 %v12688_v44, %s8584_s15  ;;  %7067 = vrot.lane.b32.xlu1 %v12667_v29, %s8584_s15  ;;  %vm15269_vm14 = vmmov %vm15268_vm8 }
 0x4fd   : > { %v6480_v25 = vsel %vm15237_vm6, %v6431_v30, 0.0  ;;  %v12853_v58 = vpop.f32.mrf.mxu0  ;;  %v12855_v46 = vpop.f32.mrf.mxu1  ;;  %vm15270_vm6 = vmmov %vm15268_vm8 }
 0x4fe   : > { %v12858_v52 = vadd.f32 %v6480_v25, %v12833_v57  ;;  %v6428_v61 = vsel %vm15239_vm3, %v6418_v13, %v6419_v50  ;;  %v6417_v35 = vrot.slane %v12853_v58, 7  ;;  %v15243_v25 = vld [vmem:[#allocation8_spill] sm:$0xff] }
 0x4ff   : > { %v12864_v44 = vadd.f32 %v12841_v38, %v6428_v61  ;;  %v8452_v21 = vpop.f32.mrf.mxu0  ;;  %v12866_v29 = vpop.f32.mrf.mxu1  ;;  %vm15244_vm10 = vnez %v15243_v25 }
 0x500   : > { %15238 = vst [vmem:[#allocation43_spill] sm:$0xff] %v12858_v52  ;;  %v6429_v30 = vsel %vm15241_vm2, %v6417_v35, %v6418_v13  ;;  %v6430_v14 = vsel %vm15242_vm15, %v6416_v23, %v6417_v35  ;;  %7069 = vrot.lane.b32.xlu0 %v12690_v42, %s8584_s15  ;;  %6903 = vrot.lane.b32.xlu1 %v12680_v48, %s8584_s15  ;;  %v6422_v42 = vrot.slane %v8452_v21, 7  ;;  %v15251_v21 = vrot.slane %v12586_v53, 7  ;;  %vm15275_vm15 = vmmov %vm15270_vm6 }
 0x501   : > { %15240 = vst [vmem:[#allocation67_spill] sm:$0xff] %v12864_v44  ;;  %v6482_v52 = vsel %vm15244_vm10, %v6429_v30, 0.0  ;;  %v12879_v61 = vadd.f32 %v6430_v14, %v12855_v46  ;;  %v12881_v44 = vpop.f32.mrf.mxu0  ;;  %v12883_v4 = vpop.f32.mrf.mxu1  ;;  %v15248_v30 = vld [vmem:[#allocation111_spill] sm:$0xff]  ;;  %vm15276_vm10 = vmmov %vm15270_vm6 }
 0x502   : > { %v12886_v13 = vadd.f32 %v12816_v51, %v6482_v52  ;;  %v6420_v35 = vrot.slane %v12881_v44, 7  ;;  %vm15249_vm9 = vnez %v15248_v30 }
 0x503   : > { %15245 = vst [vmem:[#allocation112_spill] sm:$0xff] %v12879_v61  ;;  %v8453_v23 = vpop.f32.mrf.mxu0  ;;  %v12891_v25 = vpop.f32.mrf.mxu1 }
 0x504   : > { %15246 = vst [vmem:[#allocation49_spill] sm:$0xff] %v12886_v13  ;;  %v6427_v48 = vsel %vm15247_vm4, %v6419_v50, %v6420_v35  ;;  %v6423_v54 = vrot.slane %v8453_v23, 7  ;;  %6905 = vrot.lane.b32.xlu0 %v12700_v34, %s8584_s15  ;;  %7063 = vrot.lane.b32.xlu1 %v12682_v47, %s8584_s15  ;;  %v15254_v13 = vld [vmem:[#allocation7_spill] sm:$0xff] }
 0x505   : > { %v6484_v52 = vsel %vm15249_vm9, %v6427_v48, 0.0  ;;  %v12899_v14 = vpop.f32.mrf.mxu0  ;;  %vm15255_vm12 = vnez %v15254_v13  ;;  %v15258_v13 = vld [vmem:[#allocation59_spill] sm:$0xff]  ;;  %vm15279_vm9 = vmmov %vm15270_vm6 }
 0x506   : > { %v12902_v61 = vadd.f32 %v6484_v52, %v12883_v4  ;;  %v6455_v50 = vsel %vm15252_vm0, %v6423_v54, %v15251_v21  ;;  %v6424_v23 = vsel %vm15253_vm7, %v6422_v42, %v6423_v54  ;;  %v6421_v34 = vrot.slane %v12899_v14, 7  ;;  %v12923_v21 = vpop.f32.mrf.mxu1  ;;  %vm15280_vm0 = vmmov %vm15270_vm6 }
 0x507   : > { %v6456_v47 = vsel %vm15255_vm12, %v6455_v50, 0.0  ;;  %v12914_v48 = vadd.f32 %v12891_v25, %v6424_v23  ;;  %v12916_v30 = vpop.f32.mrf.mxu0  ;;  %vm15259_vm13 = vnez %v15258_v13  ;;  %vm15283_vm12 = vmmov %vm15280_vm0 }
 0x508   : > { %15250 = vst [vmem:[#allocation95_spill] sm:$0xff] %v12902_v61  ;;  %v12919_v52 = vadd.f32 %v6456_v47, %v12588_v17  ;;  %v6425_v53 = vsel %vm15256_vm11, %v6421_v34, %v6422_v42  ;;  %v6426_v54 = vsel %vm15257_vm1, %v6420_v35, %v6421_v34  ;;  %7065 = vrot.lane.b32.xlu0 %v12702_v24, %s8584_s15  ;;  %vm15284_vm11 = vmmov %vm15280_vm0 }
 0x509   : > { %6915 = vrot.lane.b32.xlu1 %v12713_v18, %s8584_s15  ;;  %v6486_v50 = vsel %vm15259_vm13, %v6425_v53, 0.0  ;;  %v12934_v17 = vadd.f32 %v6426_v54, %v12923_v21  ;;  %v12936_v23 = vpop.f32.mrf.mxu0  ;;  %vm15287_vm13 = vmmov %vm15280_vm0 }
 0x50a   : > { %v12939_v42 = vadd.f32 %v12866_v29, %v6486_v50 }
 0x50b   : > { %15260 = vst [vmem:[#allocation72_spill] sm:$0xff] %v12934_v17  ;;  %v12941_v47 = vpop.f32.mrf.mxu0  ;;  %v15271_v17 = vld [vmem:[#allocation12_spill] sm:$0xff] }
 0x50c   : > { %15261 = vst [vmem:[#allocation125_spill] sm:$0xff] %v12939_v42  ;;  %6917 = vrot.lane.b32.xlu0 %v12736_v60, %s8584_s15  ;;  %vm15272_vm3 = vnez %v15271_v17  ;;  %v15273_v42 = vld [vmem:[#allocation86_spill] sm:$0xff] }
 0x50d   : > { %7075 = vrot.lane.b32.xlu1 %v12715_v28, %s8584_s15  ;;  %v12947_v24 = vpop.f32.mrf.mxu0  ;;  %vm15274_vm2 = vnez %v15273_v42 }
 0x50f   : > { %v12949_v18 = vpop.f32.mrf.mxu0 }
 0x510   : > { %7077 = vrot.lane.b32.xlu0 %v12738_v43, %s8584_s15 }
 0x511   : > { %6911 = vrot.lane.b32.xlu1 %v12728_v8, %s8584_s15  ;;  %v12955_v35 = vpop.f32.mrf.mxu0 }
 0x512   : > { %v15354_v27 = vld [vmem:[#allocation72_spill] sm:$0xff] }
 0x513   : > { %v12957_v34 = vpop.f32.mrf.mxu0 }
 0x514   : > { %6913 = vrot.lane.b32.xlu0 %v12749_v62, %s8584_s15 }
 0x515   : > { %7071 = vrot.lane.b32.xlu1 %v12730_v36, %s8584_s15  ;;  %v12963_v28 = vpop.f32.mrf.mxu0 }
 0x517   : > { %v12965_v60 = vpop.f32.mrf.mxu0 }
 0x518   : > { %7073 = vrot.lane.b32.xlu0 %v12751_v11, %s8584_s15 }
 0x519   : > { %6923 = vrot.lane.b32.xlu1 %v12762_v32, %s8584_s15  ;;  %v12971_v8 = vpop.f32.mrf.mxu0 }
 0x51b   : > { %v12973_v43 = vpop.f32.mrf.mxu0 }
 0x51c   : > { %6925 = vrot.lane.b32.xlu0 %v12787_v2, %s8584_s15 }
 0x51d   : > { %7083 = vrot.lane.b32.xlu1 %v12764_v3, %s8584_s15  ;;  %v12979_v36 = vpop.f32.mrf.mxu0 }
 0x51f   : > { %v12981_v62 = vpop.f32.mrf.mxu0 }
 0x520   : > { %7085 = vrot.lane.b32.xlu0 %v12789_v56, %s8584_s15 }
 0x521   : > { %6919 = vrot.lane.b32.xlu1 %v12779_v49, %s8584_s15  ;;  %v12987_v11 = vpop.f32.mrf.mxu0 }
 0x523   : > { %v12989_v32 = vpop.f32.mrf.mxu0 }
 0x524   : > { %6921 = vrot.lane.b32.xlu0 %v12801_v37, %s8584_s15 }
 0x525   : > { %7079 = vrot.lane.b32.xlu1 %v12781_v59, %s8584_s15  ;;  %v12995_v3 = vpop.f32.mrf.mxu0 }
 0x527   : > { %v12997_v2 = vpop.f32.mrf.mxu0 }
 0x528   : > { %7081 = vrot.lane.b32.xlu0 %v12803_v55, %s8584_s15 }
 0x529   : > { %6931 = vrot.lane.b32.xlu1 %v12814_v63, %s8584_s15  ;;  %v13003_v49 = vpop.f32.mrf.mxu0 }
 0x52b   : > { %v13005_v56 = vpop.f32.mrf.mxu0 }
 0x52c   : > { %6933 = vrot.lane.b32.xlu0 %v12839_v10, %s8584_s15 }
 0x52d   : > { %7091 = vrot.lane.b32.xlu1 %v12816_v51, %s8584_s15  ;;  %v13011_v59 = vpop.f32.mrf.mxu0 }
 0x52f   : > { %v13013_v37 = vpop.f32.mrf.mxu0 }
 0x530   : > { %7093 = vrot.lane.b32.xlu0 %v12841_v38, %s8584_s15 }
 0x531   : > { %6927 = vrot.lane.b32.xlu1 %v12831_v6, %s8584_s15  ;;  %v13019_v55 = vpop.f32.mrf.mxu0 }
 0x533   : > { %v13021_v63 = vpop.f32.mrf.mxu0 }
 0x534   : > { %6929 = vrot.lane.b32.xlu0 %v12853_v58, %s8584_s15 }
 0x535   : > { %7087 = vrot.lane.b32.xlu1 %v12833_v57, %s8584_s15  ;;  %v13027_v51 = vpop.f32.mrf.mxu0 }
 0x537   : > { %v13029_v10 = vpop.f32.mrf.mxu0 }
 0x538   : > { %7089 = vrot.lane.b32.xlu0 %v12855_v46, %s8584_s15 }
 0x539   : > { %7099 = vrot.lane.b32.xlu1 %v12866_v29, %s8584_s15  ;;  %v13035_v6 = vpop.f32.mrf.mxu0  ;;  %v6521_v29 = vrot.slane %v12947_v24, 1  ;;  %v6520_v24 = vrot.slane %v12936_v23, 1 }
 0x53a   : > { %v13037_v38 = vpop.permute.xlu1 %6883 }
 0x53b   : > { %15262 = vst [vmem:[#allocation79_spill] sm:$0xff] %v13037_v38  ;;  %v13039_v53 = vpop.f32.mrf.mxu0  ;;  %v6582_v42 = vsel %vm15275_vm15, %v6520_v24, %v6521_v29  ;;  %vm15295_vm15 = vmmov %vm15280_vm0 }
 0x53c   : > { %7101 = vrot.lane.b32.xlu0 %v12891_v25, %s8584_s15  ;;  %v6522_v25 = vrot.slane %v12916_v30, 1 }
 0x53d   : > { %6935 = vrot.lane.b32.xlu1 %v12881_v44, %s8584_s15  ;;  %v13045_v57 = vpop.f32.mrf.mxu0 }
 0x53e   : > { %v13047_v58 = vpop.permute.xlu1 %7043  ;;  %v13049_v46 = vpop.permute.xlu0 %6885 }
 0x53f   : > { %15263 = vst [vmem:[#allocation116_spill] sm:$0xff] %v13047_v58  ;;  %15264 = vst [vmem:[#allocation81_spill] sm:$0xff] %v13049_v46  ;;  %v13051_v54 = vpop.f32.mrf.mxu0  ;;  %v6523_v58 = vrot.slane %v12941_v47, 1 }
 0x540   : > { %6937 = vrot.lane.b32.xlu0 %v12899_v14, %s8584_s15 }
 0x541   : > { %7095 = vrot.lane.b32.xlu1 %v12883_v4, %s8584_s15  ;;  %v13058_v44 = vpop.f32.mrf.mxu0  ;;  %v6581_v4 = vsel %vm15268_vm8, %v6521_v29, %v6522_v25  ;;  %v6580_v23 = vsel %vm15270_vm6, %v6522_v25, %v6523_v58  ;;  %vm15288_vm8 = vmmov %vm15280_vm0 }
 0x542   : > { %v13061_v13 = vpop.permute.xlu1 %6879  ;;  %v13063_v50 = vpop.permute.xlu0 %7045  ;;  %v6585_v61 = vsel %vm15272_vm3, %v6581_v4, 0.0  ;;  %vm15291_vm6 = vmmov %vm15280_vm0 }
 0x543   : > { %15265 = vst [vmem:[#allocation68_spill] sm:$0xff] %v13061_v13  ;;  %15266 = vst [vmem:[#allocation120_spill] sm:$0xff] %v13063_v50  ;;  %v13066_v38 = vpop.f32.mrf.mxu0  ;;  %v6617_v25 = vadd.f32 %v6585_v61, %v12608_v40  ;;  %v13120_v61 = vld [vmem:[%s13742_s10] ss:$0 sm:$0xff] }
 0x544   : > { %15267 = vst [vmem:[#allocation84_spill] sm:$0xff] %v13066_v38  ;;  %v14067_v46 = vrot.slane %v13066_v38, 1  ;;  %7097 = vrot.lane.b32.xlu0 %v12923_v21, %s8584_s15  ;;  %v6524_v21 = vrot.slane %v12955_v35, 1  ;;  %vm15292_vm3 = vmmov %vm15280_vm0 }
 0x545   : > { %7203 = vrot.lane.b32.xlu1 %v12916_v30, %s8584_s15 }
 0x546   : > { %v6583_v14 = vsel %vm15269_vm14, %v14067_v46, %v6520_v24  ;;  %v13080_v50 = vpop.permute.xlu1 %7039  ;;  %v13082_v13 = vpop.permute.xlu0 %6881  ;;  %v6618_v46 = vadd.f32 %v6580_v23, %v12610_v41  ;;  %v6616_v41 = vadd.f32 %v6582_v42, %v12919_v52  ;;  %v15277_v24 = vld [vmem:[#allocation113_spill] sm:$0xff]  ;;  %v6526_v52 = vrot.slane %v12949_v18, 1 }
 0x547   : > { %v6615_v30 = vsel %vm15274_vm2, %v6583_v14, 0.0  ;;  %vm15278_vm4 = vnez %v15277_v24  ;;  %v6525_v14 = vrot.slane %v12963_v28, 1  ;;  %v6528_v24 = vrot.slane %v12971_v8, 1 }
 0x548   : > { %v13092_v38 = vadd.f32 %v6615_v30, %v12914_v48  ;;  %7205 = vrot.lane.b32.xlu0 %v12941_v47, %s8584_s15  ;;  %v6579_v48 = vsel %vm15276_vm10, %v6523_v58, %v6524_v21  ;;  %v6656_v29 = vadd.f32 %v13120_v61, %v6618_v46  ;;  %v6655_v58 = vadd.f32 %v13120_v61, %v6617_v25  ;;  %vm15296_vm10 = vmmov %vm15280_vm0 }
 0x549   : > { %7211 = vrot.lane.b32.xlu1 %v12949_v18, %s8584_s15  ;;  %v6654_v46 = vadd.f32 %v13120_v61, %v6616_v41  ;;  %v6527_v25 = vrot.slane %v12957_v34, 1  ;;  %v15281_v41 = vld [vmem:[#allocation28_spill] sm:$0xff] }
 0x54a   : > { %v13100_v17 = vpop.permute.xlu1 %6891  ;;  %v13102_v4 = vpop.permute.xlu0 %7041  ;;  %vm15282_vm7 = vnez %v15281_v41 }
 0x54c   : > { %7213 = vrot.lane.b32.xlu0 %v12957_v34, %s8584_s15 }
 0x54d   : > { %7207 = vrot.lane.b32.xlu1 %v12955_v35, %s8584_s15  ;;  %v6587_v35 = vsel %vm15278_vm4, %v6579_v48, 0.0  ;;  %v6577_v48 = vsel %vm15279_vm9, %v6525_v14, %v6526_v52  ;;  %vm15299_vm9 = vmmov %vm15280_vm0 }
 0x54e   : > { %v13113_v47 = vpop.permute.xlu1 %7051  ;;  %v13115_v40 = vpop.permute.xlu0 %6893  ;;  %v6619_v23 = vadd.f32 %v6587_v35, %v12595_v1  ;;  %v6589_v34 = vsel %vm15282_vm7, %v6577_v48, 0.0  ;;  %v6575_v48 = vsel %vm15284_vm11, %v6527_v25, %v6528_v24  ;;  %vm15303_vm11 = vmmov %vm15280_vm0 }
 0x54f   : > { %v6621_v35 = vadd.f32 %v6589_v34, %v12635_v19 }
 0x550   : > { %6720 = vrot.lane.b32.xlu0 %v6655_v58, %s8587_s28  ;;  %v6657_v1 = vadd.f32 %v13120_v61, %v6619_v23  ;;  %v6576_v58 = vsel %vm15280_vm0, %v6526_v52, %v6527_v25  ;;  %v6578_v52 = vsel %vm15283_vm12, %v6524_v21, %v6525_v14  ;;  %v15285_v21 = vld [vmem:[#allocation114_spill] sm:$0xff]  ;;  %v6529_v25 = vrot.slane %v12979_v36, 1  ;;  %vm15302_vm12 = vmmov %vm15280_vm0 }
 0x551   : > { %6722 = vrot.lane.b32.xlu1 %v6656_v29, %s8587_s28  ;;  %v6659_v41 = vadd.f32 %v13120_v61, %v6621_v35  ;;  %vm15286_vm1 = vnez %v15285_v21  ;;  %v6531_v35 = vrot.slane %v12973_v43, 1  ;;  %v6532_v21 = vrot.slane %v12987_v11, 1 }
 0x552   : > { %v13131_v30 = vpop.permute.xlu1 %6887  ;;  %v13133_v42 = vpop.permute.xlu0 %7053  ;;  %v6591_v14 = vsel %vm15286_vm1, %v6575_v48, 0.0 }
 0x554   : > { %7209 = vrot.lane.b32.xlu0 %v12963_v28, %s8584_s15  ;;  %v6622_v28 = vadd.f32 %v6576_v58, %v12641_v31  ;;  %v6620_v31 = vadd.f32 %v6578_v52, %v12619_v15  ;;  %v6623_v15 = vadd.f32 %v6591_v14, %v12623_v20 }
 0x555   : > { %6718 = vrot.lane.b32.xlu1 %v6654_v46, %s8587_s28 }
 0x556   : > { %v13142_v29 = vpop.permute.xlu1 %7047  ;;  %v13144_v18 = vpop.permute.xlu0 %6889  ;;  %v6660_v58 = vadd.f32 %v13120_v61, %v6622_v28  ;;  %v6658_v28 = vadd.f32 %v13120_v61, %v6620_v31  ;;  %v6661_v20 = vadd.f32 %v13120_v61, %v6623_v15  ;;  %v15289_v31 = vld [vmem:[#allocation61_spill] sm:$0xff] }
 0x557   : > { %vm15290_vm14 = vnez %v15289_v31 }
 0x558   : > { %6724 = vrot.lane.b32.xlu0 %v6657_v1, %s8587_s28 }
 0x559   : > { %7219 = vrot.lane.b32.xlu1 %v12965_v60, %s8584_s15 }
 0x55a   : > { %v13157_v46 = vpop.permute.xlu1 %6899  ;;  %v13159_v23 = vpop.permute.xlu0 %7049 }
 0x55c   : > { %7221 = vrot.lane.b32.xlu0 %v12973_v43, %s8584_s15 }
 0x55d   : > { %7215 = vrot.lane.b32.xlu1 %v12971_v8, %s8584_s15  ;;  %v6530_v8 = vrot.slane %v12965_v60, 1 }
 0x55e   : > { %v13170_v1 = vpop.permute.xlu1 %7059  ;;  %v13172_v19 = vpop.permute.xlu0 %6901 }
 0x55f   : > { %v6573_v48 = vsel %vm15287_vm13, %v6529_v25, %v6530_v8  ;;  %vm15306_vm13 = vmmov %vm15280_vm0 }
 0x560   : > { %6728 = vrot.lane.b32.xlu0 %v6659_v41, %s8587_s28  ;;  %v6572_v41 = vsel %vm15288_vm8, %v6530_v8, %v6531_v35  ;;  %v6593_v43 = vsel %vm15290_vm14, %v6573_v48, 0.0  ;;  %v6574_v8 = vsel %vm15291_vm6, %v6528_v24, %v6529_v25  ;;  %v6571_v48 = vsel %vm15292_vm3, %v6531_v35, %v6532_v21  ;;  %v15293_v24 = vld [vmem:[#allocation115_spill] sm:$0xff]  ;;  %vm15307_vm8 = vmmov %vm15280_vm0 }
 0x561   : > { %6730 = vrot.lane.b32.xlu1 %v6660_v58, %s8587_s28  ;;  %v6625_v14 = vadd.f32 %v6593_v43, %v12678_v0  ;;  %vm15294_vm2 = vnez %v15293_v24  ;;  %v6533_v35 = vrot.slane %v12995_v3, 1  ;;  %v6536_v24 = vrot.slane %v13003_v49, 1  ;;  %vm15314_vm14 = vmmov %vm15280_vm0 }
 0x562   : > { %v13183_v34 = vpop.permute.xlu1 %6895  ;;  %v13185_v52 = vpop.permute.xlu0 %7061  ;;  %v6595_v25 = vsel %vm15294_vm2, %v6571_v48, 0.0  ;;  %vm15320_vm3 = vmmov %vm15280_vm0 }
 0x563   : > { %v6663_v31 = vadd.f32 %v13120_v61, %v6625_v14  ;;  %v6535_v14 = vrot.slane %v12989_v32, 1  ;;  %vm15321_vm2 = vmmov %vm15280_vm0 }
 0x564   : > { %7217 = vrot.lane.b32.xlu0 %v12979_v36, %s8584_s15  ;;  %v6626_v36 = vadd.f32 %v6572_v41, %v12685_v39  ;;  %v6624_v39 = vadd.f32 %v6574_v8, %v12657_v16  ;;  %v6627_v16 = vadd.f32 %v6595_v25, %v12663_v45 }
 0x565   : > { %6726 = vrot.lane.b32.xlu1 %v6658_v28, %s8587_s28 }
 0x566   : > { %v13194_v58 = vpop.permute.xlu1 %7055  ;;  %v13196_v60 = vpop.permute.xlu0 %6897  ;;  %v6664_v41 = vadd.f32 %v13120_v61, %v6626_v36  ;;  %v6662_v36 = vadd.f32 %v13120_v61, %v6624_v39  ;;  %v6665_v45 = vadd.f32 %v13120_v61, %v6627_v16  ;;  %v15297_v39 = vld [vmem:[#allocation93_spill] sm:$0xff] }
 0x567   : > { %vm15298_vm4 = vnez %v15297_v39 }
 0x568   : > { %6732 = vrot.lane.b32.xlu0 %v6661_v20, %s8587_s28 }
 0x569   : > { %7227 = vrot.lane.b32.xlu1 %v12981_v62, %s8584_s15 }
 0x56a   : > { %v13209_v28 = vpop.permute.xlu1 %6907  ;;  %v13211_v15 = vpop.permute.xlu0 %7057 }
 0x56c   : > { %7229 = vrot.lane.b32.xlu0 %v12989_v32, %s8584_s15 }
 0x56d   : > { %7223 = vrot.lane.b32.xlu1 %v12987_v11, %s8584_s15  ;;  %v6534_v11 = vrot.slane %v12981_v62, 1 }
 0x56e   : > { %v13222_v20 = vpop.permute.xlu1 %7067  ;;  %v13224_v0 = vpop.permute.xlu0 %6909 }
 0x56f   : > { %v6569_v48 = vsel %vm15295_vm15, %v6533_v35, %v6534_v11 }
 0x570   : > { %6736 = vrot.lane.b32.xlu0 %v6663_v31, %s8587_s28  ;;  %v6568_v31 = vsel %vm15296_vm10, %v6534_v11, %v6535_v14  ;;  %v6597_v32 = vsel %vm15298_vm4, %v6569_v48, 0.0  ;;  %v6570_v11 = vsel %vm15299_vm9, %v6532_v21, %v6533_v35  ;;  %v6567_v48 = vsel %vm15280_vm0, %v6535_v14, %v6536_v24  ;;  %v15300_v21 = vld [vmem:[#allocation85_spill] sm:$0xff]  ;;  %vm15330_vm10 = vmmov %vm15280_vm0 }
 0x571   : > { %6738 = vrot.lane.b32.xlu1 %v6664_v41, %s8587_s28  ;;  %v6629_v25 = vadd.f32 %v6597_v32, %v12726_v9  ;;  %vm15301_vm7 = vnez %v15300_v21  ;;  %v6537_v14 = vrot.slane %v13011_v59, 1  ;;  %v6540_v21 = vrot.slane %v13019_v55, 1  ;;  %vm15332_vm4 = vmmov %vm15280_vm0 }
 0x572   : > { %v13235_v43 = vpop.permute.xlu1 %6903  ;;  %v13237_v8 = vpop.permute.xlu0 %7069  ;;  %v6599_v35 = vsel %vm15301_vm7, %v6567_v48, 0.0  ;;  %vm15339_vm7 = vmmov %vm15280_vm0 }
 0x573   : > { %v6667_v39 = vadd.f32 %v13120_v61, %v6629_v25  ;;  %v6539_v25 = vrot.slane %v13005_v56, 1 }
 0x574   : > { %7225 = vrot.lane.b32.xlu0 %v12995_v3, %s8584_s15  ;;  %v6630_v3 = vadd.f32 %v6568_v31, %v12733_v12  ;;  %v6628_v12 = vadd.f32 %v6570_v11, %v12705_v5  ;;  %v6631_v5 = vadd.f32 %v6599_v35, %v12711_v33 }
 0x575   : > { %6734 = vrot.lane.b32.xlu1 %v6662_v36, %s8587_s28 }
 0x576   : > { %v13246_v41 = vpop.permute.xlu1 %7063  ;;  %v13248_v62 = vpop.permute.xlu0 %6905  ;;  %v6668_v31 = vadd.f32 %v13120_v61, %v6630_v3  ;;  %v6666_v3 = vadd.f32 %v13120_v61, %v6628_v12  ;;  %v6669_v33 = vadd.f32 %v13120_v61, %v6631_v5  ;;  %v15304_v12 = vld [vmem:[#allocation118_spill] sm:$0xff] }
 0x577   : > { %vm15305_vm1 = vnez %v15304_v12 }
 0x578   : > { %6740 = vrot.lane.b32.xlu0 %v6665_v45, %s8587_s28 }
 0x579   : > { %7235 = vrot.lane.b32.xlu1 %v12997_v2, %s8584_s15 }
 0x57a   : > { %v13263_v16 = vpop.permute.xlu0 %7065 }
 0x57b   : > { %v13261_v36 = vpop.permute.xlu1 %6915 }
 0x57c   : > { %7237 = vrot.lane.b32.xlu0 %v13005_v56, %s8584_s15 }
 0x57d   : > { %7231 = vrot.lane.b32.xlu1 %v13003_v49, %s8584_s15  ;;  %v6538_v49 = vrot.slane %v12997_v2, 1 }
 0x57e   : > { %v13276_v9 = vpop.permute.xlu0 %6917 }
 0x57f   : > { %v13274_v45 = vpop.permute.xlu1 %7075  ;;  %v6565_v48 = vsel %vm15302_vm12, %v6537_v14, %v6538_v49 }
 0x580   : > { %6744 = vrot.lane.b32.xlu0 %v6667_v39, %s8587_s28  ;;  %v6564_v39 = vsel %vm15303_vm11, %v6538_v49, %v6539_v25  ;;  %v6601_v56 = vsel %vm15305_vm1, %v6565_v48, 0.0  ;;  %v6566_v49 = vsel %vm15306_vm13, %v6536_v24, %v6537_v14  ;;  %v6563_v48 = vsel %vm15307_vm8, %v6539_v25, %v6540_v21  ;;  %vm15346_vm11 = vmmov %vm15280_vm0 }
 0x581   : > { %6746 = vrot.lane.b32.xlu1 %v6668_v31, %s8587_s28  ;;  %v6633_v35 = vadd.f32 %v6601_v56, %v12777_v22  ;;  %v6603_v14 = vsel %vm14947_vm5, %v6563_v48, 0.0  ;;  %v6541_v25 = vrot.slane %v13027_v51, 1  ;;  %vm15312_vm5 = vmmov %vm15280_vm0 }
 0x582   : > { %v13289_v11 = vpop.permute.xlu0 %7077  ;;  %vm15349_vm1 = vmmov %vm15280_vm0 }
 0x583   : > { %v13287_v32 = vpop.permute.xlu1 %6911  ;;  %v6671_v12 = vadd.f32 %v13120_v61, %v6633_v35  ;;  %v6543_v35 = vrot.slane %v13021_v63, 1  ;;  %vm15350_vm13 = vmmov %vm15280_vm0 }
 0x584   : > { %7233 = vrot.lane.b32.xlu0 %v13011_v59, %s8584_s15  ;;  %v6634_v59 = vadd.f32 %v6564_v39, %v12784_v26  ;;  %v6632_v26 = vadd.f32 %v6566_v49, %v12754_v7  ;;  %v15310_v7 = vld [vmem:[#allocation20_spill] sm:$0xff] }
 0x585   : > { %6742 = vrot.lane.b32.xlu1 %v6666_v3, %s8587_s28  ;;  %v6635_v56 = vadd.f32 %v6603_v14, %v15310_v7  ;;  %v6544_v14 = vrot.slane %v13035_v6, 1 }
 0x586   : > { %v13300_v2 = vpop.permute.xlu0 %6913  ;;  %v6672_v39 = vadd.f32 %v13120_v61, %v6634_v59  ;;  %v6670_v59 = vadd.f32 %v13120_v61, %v6632_v26  ;;  %v15315_v26 = vld [vmem:[#allocation121_spill] sm:$0xff] }
 0x587   : > { %v13298_v31 = vpop.permute.xlu1 %7071  ;;  %vm15316_vm6 = vnez %v15315_v26 }
 0x588   : > { %6748 = vrot.lane.b32.xlu0 %v6669_v33, %s8587_s28 }
 0x589   : > { %7243 = vrot.lane.b32.xlu1 %v13013_v37, %s8584_s15 }
 0x58a   : > { %v13315_v5 = vpop.permute.xlu0 %7073 }
 0x58b   : > { %v13313_v3 = vpop.permute.xlu1 %6923 }
 0x58c   : > { %7245 = vrot.lane.b32.xlu0 %v13021_v63, %s8584_s15 }
 0x58d   : > { %7239 = vrot.lane.b32.xlu1 %v13019_v55, %s8584_s15  ;;  %v6542_v55 = vrot.slane %v13013_v37, 1 }
 0x58e   : > { %v13328_v22 = vpop.permute.xlu0 %6925 }
 0x58f   : > { %v13326_v33 = vpop.permute.xlu1 %7083  ;;  %15308 = vst [vmem:[#allocation22_spill] sm:$0xff] %v13328_v22  ;;  %v6561_v48 = vsel %vm15312_vm5, %v6541_v25, %v6542_v55  ;;  %v6560_v24 = vsel %vm15314_vm14, %v6542_v55, %v6543_v35  ;;  %v6562_v55 = vsel %vm15320_vm3, %v6540_v21, %v6541_v25  ;;  %v15325_v21 = vld [vmem:[#allocation122_spill] sm:$0xff]  ;;  %vm6814_vm5 = vcmask 326912  }
 0x590   : > { %6752 = vrot.lane.b32.xlu0 %v6671_v12, %s8587_s28  ;;  %v6673_v12 = vadd.f32 %v13120_v61, %v6635_v56  ;;  %v6605_v63 = vsel %vm15316_vm6, %v6561_v48, 0.0  ;;  %v6559_v48 = vsel %vm15321_vm2, %v6543_v35, %v6544_v14  ;;  %vm15326_vm15 = vnez %v15325_v21 }
 0x591   : > { %6754 = vrot.lane.b32.xlu1 %v6672_v39, %s8587_s28  ;;  %v6607_v25 = vsel %vm15326_vm15, %v6559_v48, 0.0  ;;  %v6545_v35 = vrot.slane %v13045_v57, 1  ;;  %vm7522_vm14 = vcmask 392512  }
 0x592   : > { %v13341_v22 = vpop.permute.xlu0 %7085 }
 0x593   : > { %v13339_v49 = vpop.permute.xlu1 %6919  ;;  %15311 = vst [vmem:[#allocation11_spill] sm:$0xff] %v13341_v22 }
 0x594   : > { %7241 = vrot.lane.b32.xlu0 %v13027_v51, %s8584_s15  ;;  %v15317_v51 = vld [vmem:[#allocation69_spill] sm:$0xff] }
 0x595   : > { %6750 = vrot.lane.b32.xlu1 %v6670_v59, %s8587_s28  ;;  %v6638_v7 = vadd.f32 %v6560_v24, %v15317_v51  ;;  %v15318_v59 = vld [vmem:[#allocation70_spill] sm:$0xff] }
 0x596   : > { %v13352_v37 = vpop.permute.xlu0 %6921  ;;  %v6637_v22 = vadd.f32 %v6605_v63, %v15318_v59 }
 0x597   : > { %v13350_v39 = vpop.permute.xlu1 %7079  ;;  %15313 = vst [vmem:[#allocation35_spill] sm:$0xff] %v13352_v37  ;;  %v6676_v51 = vadd.f32 %v13120_v61, %v6638_v7 }
 0x598   : > { %6756 = vrot.lane.b32.xlu0 %v6673_v12, %s8587_s28  ;;  %v15322_v12 = vld [vmem:[#allocation39_spill] sm:$0xff]  ;;  %v6675_v59 = vadd.f32 %v13120_v61, %v6637_v22  ;;  %v6547_v22 = vrot.slane %v13039_v53, 1 }
 0x599   : > { %7251 = vrot.lane.b32.xlu1 %v13029_v10, %s8584_s15  ;;  %v6636_v24 = vadd.f32 %v6562_v55, %v15322_v12  ;;  %v15327_v55 = vld [vmem:[#allocation17_spill] sm:$0xff] }
 0x59a   : > { %v13367_v56 = vpop.permute.xlu0 %7081  ;;  %v6639_v12 = vadd.f32 %v6607_v25, %v15327_v55  ;;  %v6548_v25 = vrot.slane %v13058_v44, 1 }
 0x59b   : > { %v13365_v37 = vpop.permute.xlu1 %6931  ;;  %v6674_v7 = vadd.f32 %v13120_v61, %v6636_v24  ;;  %v15333_v24 = vld [vmem:[#allocation6_spill] sm:$0xff] }
 0x59c   : > { %15319 = vst [vmem:[#allocation54_spill] sm:$0xff] %v13365_v37  ;;  %7253 = vrot.lane.b32.xlu0 %v13039_v53, %s8584_s15  ;;  %vm15334_vm9 = vnez %v15333_v24  ;;  %v6379_v24 = vpop.f32.mrf.mxu0 }
 0x59d   : > { %7247 = vrot.lane.b32.xlu1 %v13035_v6, %s8584_s15  ;;  %v6546_v6 = vrot.slane %v13029_v10, 1 }
 0x59e   : > { %v13380_v63 = vpop.permute.xlu0 %6933 }
 0x59f   : > { %v13378_v26 = vpop.permute.xlu1 %7091  ;;  %15324 = vst [vmem:[#allocation83_spill] sm:$0xff] %v13380_v63  ;;  %v6557_v48 = vsel %vm15330_vm10, %v6545_v35, %v6546_v6  ;;  %v6556_v21 = vsel %vm15332_vm4, %v6546_v6, %v6547_v22  ;;  %v6558_v6 = vsel %vm15280_vm0, %v6544_v14, %v6545_v35 }
 0x5a0   : > { %15323 = vst [vmem:[#allocation50_spill] sm:$0xff] %v13378_v26  ;;  %6760 = vrot.lane.b32.xlu0 %v6675_v59, %s8587_s28  ;;  %v6677_v59 = vadd.f32 %v13120_v61, %v6639_v12  ;;  %v6609_v53 = vsel %vm15334_vm9, %v6557_v48, 0.0  ;;  %v6555_v48 = vsel %vm15339_vm7, %v6547_v22, %v6548_v25  ;;  %v15343_v22 = vld [vmem:[#allocation5_spill] sm:$0xff] }
 0x5a1   : > { %6762 = vrot.lane.b32.xlu1 %v6676_v51, %s8587_s28  ;;  %vm15344_vm12 = vnez %v15343_v22 }
 0x5a2   : > { %v13393_v63 = vpop.permute.xlu0 %7093 }
 0x5a3   : > { %v13391_v26 = vpop.permute.xlu1 %6927  ;;  %15329 = vst [vmem:[#allocation21_spill] sm:$0xff] %v13393_v63 }
 0x5a4   : > { %15328 = vst [vmem:[#allocation36_spill] sm:$0xff] %v13391_v26  ;;  %7249 = vrot.lane.b32.xlu0 %v13045_v57, %s8584_s15  ;;  %v15335_v57 = vld [vmem:[#allocation49_spill] sm:$0xff]  ;;  %v6611_v26 = vsel %vm15344_vm12, %v6555_v48, 0.0 }
 0x5a5   : > { %6758 = vrot.lane.b32.xlu1 %v6674_v7, %s8587_s28  ;;  %v6642_v55 = vadd.f32 %v6556_v21, %v15335_v57  ;;  %v15336_v7 = vld [vmem:[#allocation112_spill] sm:$0xff]  ;;  %v6550_v21 = vrot.slane %v13051_v54, 1 }
 0x5a6   : > { %v13404_v10 = vpop.permute.xlu0 %6929  ;;  %v6641_v63 = vadd.f32 %v6609_v53, %v15336_v7  ;;  %v15341_v53 = vld [vmem:[#allocation43_spill] sm:$0xff] }
 0x5a7   : > { %v13402_v51 = vpop.permute.xlu1 %7087  ;;  %15331 = vst [vmem:[#allocation97_spill] sm:$0xff] %v13404_v10  ;;  %v6640_v57 = vadd.f32 %v6558_v6, %v15341_v53  ;;  %v6680_v14 = vadd.f32 %v13120_v61, %v6642_v55  ;;  %v15348_v53 = vld [vmem:[#allocation125_spill] sm:$0xff] }
 0x5a8   : > { %6764 = vrot.lane.b32.xlu0 %v6677_v59, %s8587_s28  ;;  %v15340_v59 = vld [vmem:[#allocation84_spill] sm:$0xff]  ;;  %v6679_v35 = vadd.f32 %v13120_v61, %v6641_v63 }
 0x5a9   : > { %7259 = vrot.lane.b32.xlu1 %v13051_v54, %s8584_s15  ;;  %v15347_v54 = vld [vmem:[#allocation67_spill] sm:$0xff]  ;;  %v6678_v48 = vadd.f32 %v13120_v61, %v6640_v57  ;;  %v15352_v57 = vld [vmem:[#allocation42_spill] sm:$0xff] }
 0x5aa   : > { %v13419_v12 = vpop.permute.xlu0 %7089  ;;  %v6643_v6 = vadd.f32 %v6611_v26, %v15347_v54  ;;  %vm15353_vm8 = vnez %v15352_v57 }
 0x5ab   : > { %v13417_v10 = vpop.permute.xlu1 %7099  ;;  %15338 = vst [vmem:[#allocation102_spill] sm:$0xff] %v13419_v12  ;;  %v6549_v12 = vrot.slane %v6379_v24, 1 }
 0x5ac   : > { %15337 = vst [vmem:[#allocation34_spill] sm:$0xff] %v13417_v10  ;;  %7261 = vrot.lane.b32.xlu0 %v15340_v59, %s8584_s15  ;;  %v6681_v54 = vadd.f32 %v13120_v61, %v6643_v6  ;;  %v15355_v6 = vld [vmem:[#allocation81_spill] sm:$0xff] }
 0x5ad   : > { %7255 = vrot.lane.b32.xlu1 %v13058_v44, %s8584_s15  ;;  %v15345_v44 = vrot.slane %v15340_v59, 1  ;;  %v6554_v59 = vsel %vm15349_vm1, %v6548_v25, %v6549_v12  ;;  %v6553_v22 = vsel %vm15350_vm13, %v6549_v12, %v6550_v21 }
 0x5ae   : > { %v13433_v10 = vpop.permute.xlu0 %7101 }
 0x5af   : > { %v13431_v7 = vpop.permute.xlu1 %6935  ;;  %15342 = vst [vmem:[#allocation66_spill] sm:$0xff] %v13433_v10  ;;  %v6552_v37 = vsel %vm15346_vm11, %v6550_v21, %v15345_v44 }
 0x5b0   : > { %6768 = vrot.lane.b32.xlu0 %v6679_v35, %s8587_s28  ;;  %v6646_v10 = vadd.f32 %v6552_v37, %v15348_v53  ;;  %v6613_v53 = vsel %vm15353_vm8, %v6553_v22, 0.0  ;;  %v15356_v22 = vld [vmem:[#allocation52_spill] sm:$0xff] }
 0x5b1   : > { %6770 = vrot.lane.b32.xlu1 %v6680_v14, %s8587_s28  ;;  %v15351_v14 = vld [vmem:[#allocation95_spill] sm:$0xff]  ;;  %v6645_v25 = vadd.f32 %v6613_v53, %v15354_v27 }
 0x5b2   : > { %v13449_v63 = vpop.permute.xlu0 %6937  ;;  %v6644_v26 = vadd.f32 %v6554_v59, %v15351_v14  ;;  %v6684_v44 = vadd.f32 %v13120_v61, %v6646_v10  ;;  %v7140_v59 = vadd.f32 %v13159_v23, %v15355_v6  ;;  %v15357_v53 = vld [vmem:[#allocation79_spill] sm:$0xff] }
 0x5b3   : > { %v13447_v55 = vpop.permute.xlu1 %7095  ;;  %v6683_v57 = vadd.f32 %v13120_v61, %v6645_v25 }
 0x5b4   : > { %7257 = vrot.lane.b32.xlu0 %v6379_v24, %s8584_s15  ;;  %v6682_v21 = vadd.f32 %v13120_v61, %v6644_v26  ;;  %s8588_s15 = smov 40  }
 0x5b5   : > { %6766 = vrot.lane.b32.xlu1 %v6678_v48, %s8587_s28  ;;  %v6685_v48 = vadd.f32 %v13120_v61, %v13092_v38  ;;  %v15358_v61 = vld [vmem:[#allocation68_spill] sm:$0xff] }
 0x5b6   : > { %v13459_v37 = vpop.permute.xlu0 %7097 }
 0x5b7   : > { %v7204_v35 = vpop.permute.xlu1 %7203 }
 0x5b8   : > { %6772 = vrot.lane.b32.xlu0 %v6681_v54, %s8587_s28 }
 0x5b9   : > { %6778 = vrot.lane.b32.xlu1 %v6684_v44, %s8587_s28  ;;  %v7327_v44 = vadd.f32 %v7204_v35, %v13080_v50 }
 0x5ba   : > { %v7206_v24 = vpop.permute.xlu0 %7205 }
 0x5bb   : > { %v7212_v12 = vpop.permute.xlu1 %7211  ;;  %v7328_v10 = vadd.f32 %v7206_v24, %v13102_v4  ;;  %v7139_v4 = vadd.f32 %v13142_v29, %v15357_v53  ;;  %v7362_v50 = vadd.f32 %v15356_v22, %v7327_v44  ;;  %v15359_v29 = vld [vmem:[#allocation116_spill] sm:$0xff]  ;;  %v7143_v44 = vadd.f32 %v13194_v58, %v13100_v17 }
 0x5bc   : > { %6780 = vrot.lane.b32.xlu0 %v6685_v48, %s8587_s28  ;;  %v7137_v25 = vadd.f32 %v15359_v29, %v15358_v61  ;;  %v7144_v17 = vadd.f32 %v13211_v15, %v13115_v40 }
 0x5bd   : > { %6774 = vrot.lane.b32.xlu1 %v6682_v21, %s8587_s28  ;;  %v7363_v14 = vadd.f32 %v15356_v22, %v7328_v10  ;;  %v7331_v35 = vadd.f32 %v7212_v12, %v7139_v4  ;;  %v15360_v21 = vld [vmem:[#allocation120_spill] sm:$0xff] }
 0x5be   : > { %v7214_v26 = vpop.permute.xlu0 %7213  ;;  %v7138_v48 = vadd.f32 %v15360_v21, %v13082_v13 }
 0x5bf   : > { %v7208_v54 = vpop.permute.xlu1 %7207  ;;  %v7332_v38 = vadd.f32 %v7214_v26, %v7140_v59  ;;  %v7366_v10 = vadd.f32 %v15356_v22, %v7331_v35 }
 0x5c0   : > { %6776 = vrot.lane.b32.xlu0 %v6683_v57, %s8587_s28  ;;  %v7329_v12 = vadd.f32 %v7208_v54, %v7137_v25  ;;  %v7141_v54 = vadd.f32 %v13113_v47, %v13131_v30  ;;  %v7142_v47 = vadd.f32 %v13133_v42, %v13144_v18  ;;  %v7147_v25 = vadd.f32 %v13246_v41, %v13157_v46 }
 0x5c1   : > { %7428 = vrot.lane.b32.xlu1 %v7363_v14, %s8588_s15  ;;  %v7367_v23 = vadd.f32 %v15356_v22, %v7332_v38  ;;  %v7145_v42 = vadd.f32 %v13170_v1, %v13183_v34  ;;  %v7148_v18 = vadd.f32 %v13263_v16, %v13172_v19  ;;  %v7146_v1 = vadd.f32 %v13185_v52, %v13196_v60 }
 0x5c2   : > { %v6721_v24 = vpop.permute.xlu0 %6720  ;;  %v7364_v57 = vadd.f32 %v15356_v22, %v7329_v12  ;;  %v7149_v52 = vadd.f32 %v13222_v20, %v13235_v43  ;;  %v7152_v60 = vadd.f32 %v13315_v5, %v13224_v0  ;;  %v7150_v20 = vadd.f32 %v13237_v8, %v13248_v62 }
 0x5c3   : > { %v6723_v27 = vpop.permute.xlu1 %6722  ;;  %6816 = vst.msk [vmem:[%s9909_s23 + $0x8] sm:$0xff] %vm6814_vm5, %v6721_v24  ;;  %v7153_v8 = vadd.f32 %v13274_v45, %v13287_v32  ;;  %v7156_v62 = vadd.f32 %v13367_v56, %v13276_v9  ;;  %v7154_v45 = vadd.f32 %v13289_v11, %v13300_v2  ;;  %v7157_v11 = vadd.f32 %v13326_v33, %v13339_v49  ;;  %v15361_v2 = vld [vmem:[#allocation22_spill] sm:$0xff]  ;;  %v15363_v33 = vld [vmem:[#allocation35_spill] sm:$0xff] }
 0x5c4   : > { %6817 = vst.msk [vmem:[%s9909_s23 + $0x10] sm:$0xff] %vm6814_vm5, %v6723_v27  ;;  %7426 = vrot.lane.b32.xlu0 %v7362_v50, %s8588_s15  ;;  %v15364_v49 = vld [vmem:[#allocation11_spill] sm:$0xff] }
 0x5c5   : > { %7436 = vrot.lane.b32.xlu1 %v7367_v23, %s8588_s15 }
 0x5c6   : > { %v7210_v59 = vpop.permute.xlu0 %7209 }
 0x5c7   : > { %v6719_v6 = vpop.permute.xlu1 %6718  ;;  %v7330_v14 = vadd.f32 %v7210_v59, %v7138_v48 }
 0x5c8   : > { %6815 = vst.msk [vmem:[%s9909_s23] sm:$0xff] %vm6814_vm5, %v6719_v6  ;;  %7434 = vrot.lane.b32.xlu0 %v7366_v10, %s8588_s15 }
 0x5c9   : > { %v7365_v26 = vadd.f32 %v15356_v22, %v7330_v14 }
 0x5ca   : > { %v6725_v53 = vpop.permute.xlu0 %6724 }
 0x5cb   : > { %v7220_v38 = vpop.permute.xlu1 %7219  ;;  %6818 = vst.msk [vmem:[%s9909_s23 + $0x18] sm:$0xff] %vm6814_vm5, %v6725_v53  ;;  %7432 = vrot.lane.b32.xlu1 %v7365_v26, %s8588_s15  ;;  %v7151_v53 = vadd.f32 %v13298_v31, %v13209_v28 }
 0x5cc   : > { %v7335_v13 = vadd.f32 %v7220_v38, %v7143_v44  ;;  %7430 = vrot.lane.b32.xlu0 %v7364_v57, %s8588_s15 }
 0x5ce   : > { %v7370_v58 = vadd.f32 %v15356_v22, %v7335_v13  ;;  %v7222_v23 = vpop.permute.xlu0 %7221 }
 0x5cf   : > { %v7216_v4 = vpop.permute.xlu1 %7215  ;;  %v7336_v35 = vadd.f32 %v7222_v23, %v7144_v17 }
 0x5d0   : > { %v7333_v50 = vadd.f32 %v7216_v4, %v7141_v54  ;;  %7442 = vrot.lane.b32.xlu0 %v7370_v58, %s8588_s15 }
 0x5d1   : > { %v7371_v24 = vadd.f32 %v15356_v22, %v7336_v35 }
 0x5d2   : > { %v7368_v27 = vadd.f32 %v15356_v22, %v7333_v50  ;;  %v6729_v29 = vpop.permute.xlu0 %6728 }
 0x5d3   : > { %v6731_v61 = vpop.permute.xlu1 %6730  ;;  %6820 = vst.msk [vmem:[%s9909_s23 + $0x28] sm:$0xff] %vm6814_vm5, %v6729_v29  ;;  %7444 = vrot.lane.b32.xlu1 %v7371_v24, %s8588_s15  ;;  %v7155_v29 = vadd.f32 %v13350_v39, %v13261_v36 }
 0x5d4   : > { %6821 = vst.msk [vmem:[%s9909_s23 + $0x30] sm:$0xff] %vm6814_vm5, %v6731_v61  ;;  %7438 = vrot.lane.b32.xlu0 %v7368_v27, %s8588_s15 }
 0x5d6   : > { %v7218_v30 = vpop.permute.xlu0 %7217 }
 0x5d7   : > { %v6727_v40 = vpop.permute.xlu1 %6726  ;;  %v7334_v15 = vadd.f32 %v7218_v30, %v7142_v47 }
 0x5d8   : > { %6819 = vst.msk [vmem:[%s9909_s23 + $0x20] sm:$0xff] %vm6814_vm5, %v6727_v40 }
 0x5d9   : > { %v7369_v21 = vadd.f32 %v15356_v22, %v7334_v15 }
 0x5da   : > { %v6733_v10 = vpop.permute.xlu0 %6732 }
 0x5db   : > { %v7228_v48 = vpop.permute.xlu1 %7227  ;;  %6822 = vst.msk [vmem:[%s9909_s23 + $0x38] sm:$0xff] %vm6814_vm5, %v6733_v10  ;;  %7440 = vrot.lane.b32.xlu1 %v7369_v21, %s8588_s15 }
 0x5dc   : > { %v7339_v12 = vadd.f32 %v7228_v48, %v7147_v25 }
 0x5de   : > { %v7374_v6 = vadd.f32 %v15356_v22, %v7339_v12  ;;  %v7230_v41 = vpop.permute.xlu0 %7229 }
 0x5df   : > { %v7224_v46 = vpop.permute.xlu1 %7223  ;;  %v7340_v14 = vadd.f32 %v7230_v41, %v7148_v18 }
 0x5e0   : > { %v7337_v59 = vadd.f32 %v7224_v46, %v7145_v42  ;;  %7450 = vrot.lane.b32.xlu0 %v7374_v6, %s8588_s15  ;;  %v7159_v6 = vadd.f32 %v13402_v51, %v13313_v3 }
 0x5e1   : > { %v7375_v26 = vadd.f32 %v15356_v22, %v7340_v14 }
 0x5e2   : > { %v7372_v44 = vadd.f32 %v15356_v22, %v7337_v59  ;;  %v6737_v38 = vpop.permute.xlu0 %6736 }
 0x5e3   : > { %v6739_v57 = vpop.permute.xlu1 %6738  ;;  %6824 = vst.msk [vmem:[%s9909_s23 + $0x48] sm:$0xff] %vm6814_vm5, %v6737_v38  ;;  %7452 = vrot.lane.b32.xlu1 %v7375_v26, %s8588_s15 }
 0x5e4   : > { %6825 = vst.msk [vmem:[%s9909_s23 + $0x50] sm:$0xff] %vm6814_vm5, %v6739_v57  ;;  %7446 = vrot.lane.b32.xlu0 %v7372_v44, %s8588_s15  ;;  %v15362_v44 = vld [vmem:[#allocation102_spill] sm:$0xff] }
 0x5e5   : > { %v7160_v26 = vadd.f32 %v15362_v44, %v15361_v2 }
 0x5e6   : > { %v7226_v34 = vpop.permute.xlu0 %7225 }
 0x5e7   : > { %v6735_v19 = vpop.permute.xlu1 %6734  ;;  %v7338_v16 = vadd.f32 %v7226_v34, %v7146_v1 }
 0x5e8   : > { %6823 = vst.msk [vmem:[%s9909_s23 + $0x40] sm:$0xff] %vm6814_vm5, %v6735_v19 }
 0x5e9   : > { %v7373_v13 = vadd.f32 %v15356_v22, %v7338_v16 }
 0x5ea   : > { %v6741_v17 = vpop.permute.xlu0 %6740 }
 0x5eb   : > { %v7236_v54 = vpop.permute.xlu1 %7235  ;;  %6826 = vst.msk [vmem:[%s9909_s23 + $0x58] sm:$0xff] %vm6814_vm5, %v6741_v17  ;;  %7448 = vrot.lane.b32.xlu1 %v7373_v13, %s8588_s15  ;;  %v7158_v13 = vadd.f32 %v15364_v49, %v15363_v33 }
 0x5ec   : > { %v7343_v58 = vadd.f32 %v7236_v54, %v7151_v53 }
 0x5ee   : > { %v7378_v4 = vadd.f32 %v15356_v22, %v7343_v58  ;;  %v7238_v31 = vpop.permute.xlu0 %7237 }
 0x5ef   : > { %v7232_v28 = vpop.permute.xlu1 %7231  ;;  %v7344_v50 = vadd.f32 %v7238_v31, %v7152_v60 }
 0x5f0   : > { %v7341_v23 = vadd.f32 %v7232_v28, %v7149_v52  ;;  %7458 = vrot.lane.b32.xlu0 %v7378_v4, %s8588_s15  ;;  %v15365_v52 = vld [vmem:[#allocation54_spill] sm:$0xff] }
 0x5f1   : > { %v7379_v27 = vadd.f32 %v15356_v22, %v7344_v50  ;;  %v7163_v60 = vadd.f32 %v13447_v55, %v15365_v52  ;;  %v15366_v50 = vld [vmem:[#allocation36_spill] sm:$0xff] }
 0x5f2   : > { %v7376_v35 = vadd.f32 %v15356_v22, %v7341_v23  ;;  %v6745_v61 = vpop.permute.xlu0 %6744 }
 0x5f3   : > { %v6747_v24 = vpop.permute.xlu1 %6746  ;;  %6828 = vst.msk [vmem:[%s9909_s23 + $0x68] sm:$0xff] %vm6814_vm5, %v6745_v61  ;;  %7460 = vrot.lane.b32.xlu1 %v7379_v27, %s8588_s15 }
 0x5f4   : > { %6829 = vst.msk [vmem:[%s9909_s23 + $0x70] sm:$0xff] %vm6814_vm5, %v6747_v24  ;;  %7454 = vrot.lane.b32.xlu0 %v7376_v35, %s8588_s15  ;;  %v15367_v35 = vld [vmem:[#allocation50_spill] sm:$0xff]  ;;  %v15368_v24 = vld [vmem:[#allocation83_spill] sm:$0xff] }
 0x5f5   : > { %v7161_v27 = vadd.f32 %v15367_v35, %v15366_v50  ;;  %v7164_v61 = vadd.f32 %v13459_v37, %v15368_v24  ;;  %v15370_v37 = vld [vmem:[#allocation97_spill] sm:$0xff] }
 0x5f6   : > { %v7234_v43 = vpop.permute.xlu0 %7233 }
 0x5f7   : > { %v6743_v0 = vpop.permute.xlu1 %6742  ;;  %v7342_v5 = vadd.f32 %v7234_v43, %v7150_v20 }
 0x5f8   : > { %6827 = vst.msk [vmem:[%s9909_s23 + $0x60] sm:$0xff] %vm6814_vm5, %v6743_v0 }
 0x5f9   : > { %v7377_v47 = vadd.f32 %v15356_v22, %v7342_v5 }
 0x5fa   : > { %v6749_v30 = vpop.permute.xlu0 %6748 }
 0x5fb   : > { %v7244_v40 = vpop.permute.xlu1 %7243  ;;  %6830 = vst.msk [vmem:[%s9909_s23 + $0x78] sm:$0xff] %vm6814_vm5, %v6749_v30  ;;  %7456 = vrot.lane.b32.xlu1 %v7377_v47, %s8588_s15 }
 0x5fc   : > { %v7347_v15 = vadd.f32 %v7244_v40, %v7155_v29  ;;  %v15369_v29 = vld [vmem:[#allocation34_spill] sm:$0xff] }
 0x5fd   : > { %v7165_v47 = vadd.f32 %v15369_v29, %v13431_v7 }
 0x5fe   : > { %v7382_v25 = vadd.f32 %v15356_v22, %v7347_v15  ;;  %v7246_v39 = vpop.permute.xlu0 %7245 }
 0x5ff   : > { %v7240_v36 = vpop.permute.xlu1 %7239  ;;  %v7348_v48 = vadd.f32 %v7246_v39, %v7156_v62  ;;  %v15371_v62 = vld [vmem:[#allocation21_spill] sm:$0xff]  ;;  %v7392_v7 = vadd.f32 %v15356_v22, %v7165_v47 }
 0x600   : > { %v7345_v21 = vadd.f32 %v7240_v36, %v7153_v8  ;;  %7466 = vrot.lane.b32.xlu0 %v7382_v25, %s8588_s15  ;;  %v7162_v25 = vadd.f32 %v15371_v62, %v15370_v37 }
 0x601   : > { %v7383_v12 = vadd.f32 %v15356_v22, %v7348_v48  ;;  %v15372_v48 = vld [vmem:[#allocation66_spill] sm:$0xff] }
 0x602   : > { %v7380_v10 = vadd.f32 %v15356_v22, %v7345_v21  ;;  %v6753_v18 = vpop.permute.xlu0 %6752 }
 0x603   : > { %v6755_v42 = vpop.permute.xlu1 %6754  ;;  %6832 = vst.msk [vmem:[%s9909_s23 + $0x88] sm:$0xff] %vm6814_vm5, %v6753_v18  ;;  %7468 = vrot.lane.b32.xlu1 %v7383_v12, %s8588_s15 }
 0x604   : > { %6833 = vst.msk [vmem:[%s9909_s23 + $0x90] sm:$0xff] %vm6814_vm5, %v6755_v42  ;;  %7462 = vrot.lane.b32.xlu0 %v7380_v10, %s8588_s15  ;;  %v7166_v10 = vadd.f32 %v15372_v48, %v13449_v63 }
 0x606   : > { %v7242_v32 = vpop.permute.xlu0 %7241 }
 0x607   : > { %v6751_v9 = vpop.permute.xlu1 %6750  ;;  %v7346_v56 = vadd.f32 %v7242_v32, %v7154_v45  ;;  %v7393_v45 = vadd.f32 %v15356_v22, %v7166_v10 }
 0x608   : > { %6831 = vst.msk [vmem:[%s9909_s23 + $0x80] sm:$0xff] %vm6814_vm5, %v6751_v9 }
 0x609   : > { %v7381_v46 = vadd.f32 %v15356_v22, %v7346_v56 }
 0x60a   : > { %v6757_v59 = vpop.permute.xlu0 %6756 }
 0x60b   : > { %v7252_v41 = vpop.permute.xlu1 %7251  ;;  %6834 = vst.msk [vmem:[%s9909_s23 + $0x98] sm:$0xff] %vm6814_vm5, %v6757_v59  ;;  %7464 = vrot.lane.b32.xlu1 %v7381_v46, %s8588_s15 }
 0x60c   : > { %v7351_v14 = vadd.f32 %v7252_v41, %v7159_v6 }
 0x60e   : > { %v7386_v57 = vadd.f32 %v15356_v22, %v7351_v14  ;;  %v7254_v51 = vpop.permute.xlu0 %7253 }
 0x60f   : > { %v7248_v3 = vpop.permute.xlu1 %7247  ;;  %v7352_v1 = vadd.f32 %v7254_v51, %v7160_v26 }
 0x610   : > { %v7349_v38 = vadd.f32 %v7248_v3, %v7157_v11  ;;  %7474 = vrot.lane.b32.xlu0 %v7386_v57, %s8588_s15 }
 0x611   : > { %v7387_v34 = vadd.f32 %v15356_v22, %v7352_v1 }
 0x612   : > { %v7384_v19 = vadd.f32 %v15356_v22, %v7349_v38  ;;  %v6761_v53 = vpop.permute.xlu0 %6760 }
 0x613   : > { %v6763_v16 = vpop.permute.xlu1 %6762  ;;  %6836 = vst.msk [vmem:[%s9909_s23 + $0xa8] sm:$0xff] %vm6814_vm5, %v6761_v53  ;;  %7476 = vrot.lane.b32.xlu1 %v7387_v34, %s8588_s15 }
 0x614   : > { %6837 = vst.msk [vmem:[%s9909_s23 + $0xb0] sm:$0xff] %vm6814_vm5, %v6763_v16  ;;  %7470 = vrot.lane.b32.xlu0 %v7384_v19, %s8588_s15 }
 0x616   : > { %v7250_v17 = vpop.permute.xlu0 %7249 }
 0x617   : > { %v6759_v54 = vpop.permute.xlu1 %6758  ;;  %v7350_v58 = vadd.f32 %v7250_v17, %v7158_v13 }
 0x618   : > { %6835 = vst.msk [vmem:[%s9909_s23 + $0xa0] sm:$0xff] %vm6814_vm5, %v6759_v54 }
 0x619   : > { %v7385_v4 = vadd.f32 %v15356_v22, %v7350_v58 }
 0x61a   : > { %v6765_v31 = vpop.permute.xlu0 %6764 }
 0x61b   : > { %v7260_v28 = vpop.permute.xlu1 %7259  ;;  %6838 = vst.msk [vmem:[%s9909_s23 + $0xb8] sm:$0xff] %vm6814_vm5, %v6765_v31  ;;  %7472 = vrot.lane.b32.xlu1 %v7385_v4, %s8588_s15 }
 0x61c   : > { %v7355_v23 = vadd.f32 %v7260_v28, %v7163_v60 }
 0x61e   : > { %v7390_v20 = vadd.f32 %v15356_v22, %v7355_v23  ;;  %v7262_v0 = vpop.permute.xlu0 %7261 }
 0x61f   : > { %v7256_v55 = vpop.permute.xlu1 %7255  ;;  %v7356_v5 = vadd.f32 %v7262_v0, %v7164_v61 }
 0x620   : > { %v7353_v43 = vadd.f32 %v7256_v55, %v7161_v27  ;;  %7482 = vrot.lane.b32.xlu0 %v7390_v20, %s8588_s15 }
 0x621   : > { %v7391_v30 = vadd.f32 %v15356_v22, %v7356_v5 }
 0x622   : > { %v7388_v40 = vadd.f32 %v15356_v22, %v7353_v43  ;;  %v6769_v8 = vpop.permute.xlu0 %6768 }
 0x623   : > { %v6771_v15 = vpop.permute.xlu1 %6770  ;;  %6840 = vst.msk [vmem:[%s9909_s23 + $0xc8] sm:$0xff] %vm6814_vm5, %v6769_v8  ;;  %7484 = vrot.lane.b32.xlu1 %v7391_v30, %s8588_s15 }
 0x624   : > { %6841 = vst.msk [vmem:[%s9909_s23 + $0xd0] sm:$0xff] %vm6814_vm5, %v6771_v15  ;;  %7478 = vrot.lane.b32.xlu0 %v7388_v40, %s8588_s15 }
 0x626   : > { %v7258_v39 = vpop.permute.xlu0 %7257 }
 0x627   : > { %v6767_v36 = vpop.permute.xlu1 %6766  ;;  %v7354_v21 = vadd.f32 %v7258_v39, %v7162_v25 }
 0x628   : > { %6839 = vst.msk [vmem:[%s9909_s23 + $0xc0] sm:$0xff] %vm6814_vm5, %v6767_v36  ;;  %7486 = vrot.lane.b32.xlu0 %v7392_v7, %s8588_s15 }
 0x629   : > { %v7389_v12 = vadd.f32 %v15356_v22, %v7354_v21 }
 0x62a   : > { %v6773_v18 = vpop.permute.xlu0 %6772 }
 0x62b   : > { %v6779_v42 = vpop.permute.xlu1 %6778  ;;  %6842 = vst.msk [vmem:[%s9909_s23 + $0xd8] sm:$0xff] %vm6814_vm5, %v6773_v18  ;;  %7480 = vrot.lane.b32.xlu1 %v7389_v12, %s8588_s15 }
 0x62c   : > { %6845 = vst.msk [vmem:[%s9909_s23 + $0xf0] sm:$0xff] %vm6814_vm5, %v6779_v42 }
 0x62e   : > { %v6781_v32 = vpop.permute.xlu0 %6780 }
 0x62f   : > { %v6775_v9 = vpop.permute.xlu1 %6774  ;;  %6846 = vst.msk [vmem:[%s9909_s23 + $0xf8] sm:$0xff] %vm6814_vm5, %v6781_v32  ;;  %7488 = vrot.lane.b32.xlu1 %v7393_v45, %s8588_s15 }
 0x630   : > { %6843 = vst.msk [vmem:[%s9909_s23 + $0xe0] sm:$0xff] %vm6814_vm5, %v6775_v9 }
 0x632   : > { %v6777_v56 = vpop.permute.xlu0 %6776 }
 0x633   : > { %v7429_v63 = vpop.permute.xlu1 %7428  ;;  %6844 = vst.msk [vmem:[%s9909_s23 + $0xe8] sm:$0xff] %vm6814_vm5, %v6777_v56 }
 0x634   : > { %7524 = vst.msk [vmem:[%s9909_s23 + $0x8] sm:$0xff] %vm7522_vm14, %v7429_v63 }
 0x636   : > { %v7427_v6 = vpop.permute.xlu0 %7426 }
 0x637   : > { %v7437_v22 = vpop.permute.xlu1 %7436  ;;  %7523 = vst.msk [vmem:[%s9909_s23] sm:$0xff] %vm7522_vm14, %v7427_v6 }
 0x638   : > { %7528 = vst.msk [vmem:[%s9909_s23 + $0x28] sm:$0xff] %vm7522_vm14, %v7437_v22 }
 0x63a   : > { %v7435_v46 = vpop.permute.xlu0 %7434 }
 0x63b   : > { %7527 = vst.msk [vmem:[%s9909_s23 + $0x20] sm:$0xff] %vm7522_vm14, %v7435_v46 }
 0x63d   : > { %v7433_v41 = vpop.permute.xlu1 %7432 }
 0x63e   : > { %7526 = vst.msk [vmem:[%s9909_s23 + $0x18] sm:$0xff] %vm7522_vm14, %v7433_v41  ;;  %v7431_v59 = vpop.permute.xlu0 %7430 }
 0x63f   : > { %7525 = vst.msk [vmem:[%s9909_s23 + $0x10] sm:$0xff] %vm7522_vm14, %v7431_v59 }
 0x642   : > { %v7443_v14 = vpop.permute.xlu0 %7442 }
 0x643   : > { %7531 = vst.msk [vmem:[%s9909_s23 + $0x40] sm:$0xff] %vm7522_vm14, %v7443_v14 }
 0x645   : > { %v7445_v11 = vpop.permute.xlu1 %7444 }
 0x646   : > { %7532 = vst.msk [vmem:[%s9909_s23 + $0x48] sm:$0xff] %vm7522_vm14, %v7445_v11  ;;  %v7439_v2 = vpop.permute.xlu0 %7438 }
 0x647   : > { %7529 = vst.msk [vmem:[%s9909_s23 + $0x30] sm:$0xff] %vm7522_vm14, %v7439_v2 }
 0x64d   : > { %v7441_v44 = vpop.permute.xlu1 %7440 }
 0x64e   : > { %7530 = vst.msk [vmem:[%s9909_s23 + $0x38] sm:$0xff] %vm7522_vm14, %v7441_v44 }
 0x652   : > { %v7451_v26 = vpop.permute.xlu0 %7450 }
 0x653   : > { %7535 = vst.msk [vmem:[%s9909_s23 + $0x60] sm:$0xff] %vm7522_vm14, %v7451_v26 }
 0x655   : > { %v7453_v57 = vpop.permute.xlu1 %7452 }
 0x656   : > { %v7447_v3 = vpop.permute.xlu0 %7446  ;;  %7536 = vst.msk [vmem:[%s9909_s23 + $0x68] sm:$0xff] %vm7522_vm14, %v7453_v57 }
 0x657   : > { %7533 = vst.msk [vmem:[%s9909_s23 + $0x50] sm:$0xff] %vm7522_vm14, %v7447_v3 }
 0x65d   : > { %v7449_v51 = vpop.permute.xlu1 %7448 }
 0x65e   : > { %7534 = vst.msk [vmem:[%s9909_s23 + $0x58] sm:$0xff] %vm7522_vm14, %v7449_v51 }
 0x662   : > { %v7459_v38 = vpop.permute.xlu0 %7458 }
 0x663   : > { %7539 = vst.msk [vmem:[%s9909_s23 + $0x80] sm:$0xff] %vm7522_vm14, %v7459_v38 }
 0x665   : > { %v7461_v1 = vpop.permute.xlu1 %7460 }
 0x666   : > { %v7455_v19 = vpop.permute.xlu0 %7454  ;;  %7540 = vst.msk [vmem:[%s9909_s23 + $0x88] sm:$0xff] %vm7522_vm14, %v7461_v1 }
 0x667   : > { %7537 = vst.msk [vmem:[%s9909_s23 + $0x70] sm:$0xff] %vm7522_vm14, %v7455_v19 }
 0x66d   : > { %v7457_v34 = vpop.permute.xlu1 %7456 }
 0x66e   : > { %7538 = vst.msk [vmem:[%s9909_s23 + $0x78] sm:$0xff] %vm7522_vm14, %v7457_v34 }
 0x672   : > { %v7467_v16 = vpop.permute.xlu0 %7466 }
 0x673   : > { %7543 = vst.msk [vmem:[%s9909_s23 + $0xa0] sm:$0xff] %vm7522_vm14, %v7467_v16 }
 0x675   : > { %v7469_v53 = vpop.permute.xlu1 %7468 }
 0x676   : > { %v7463_v33 = vpop.permute.xlu0 %7462  ;;  %7544 = vst.msk [vmem:[%s9909_s23 + $0xa8] sm:$0xff] %vm7522_vm14, %v7469_v53 }
 0x677   : > { %7541 = vst.msk [vmem:[%s9909_s23 + $0x90] sm:$0xff] %vm7522_vm14, %v7463_v33 }
 0x67d   : > { %v7465_v49 = vpop.permute.xlu1 %7464 }
 0x67e   : > { %7542 = vst.msk [vmem:[%s9909_s23 + $0x98] sm:$0xff] %vm7522_vm14, %v7465_v49 }
 0x682   : > { %v7475_v13 = vpop.permute.xlu0 %7474 }
 0x683   : > { %7547 = vst.msk [vmem:[%s9909_s23 + $0xc0] sm:$0xff] %vm7522_vm14, %v7475_v13 }
 0x685   : > { %v7477_v54 = vpop.permute.xlu1 %7476 }
 0x686   : > { %v7471_v17 = vpop.permute.xlu0 %7470  ;;  %7548 = vst.msk [vmem:[%s9909_s23 + $0xc8] sm:$0xff] %vm7522_vm14, %v7477_v54 }
 0x687   : > { %7545 = vst.msk [vmem:[%s9909_s23 + $0xb0] sm:$0xff] %vm7522_vm14, %v7471_v17 }
 0x68d   : > { %v7473_v58 = vpop.permute.xlu1 %7472 }
 0x68e   : > { %7546 = vst.msk [vmem:[%s9909_s23 + $0xb8] sm:$0xff] %vm7522_vm14, %v7473_v58 }
 0x692   : > { %v7483_v52 = vpop.permute.xlu0 %7482 }
 0x693   : > { %7551 = vst.msk [vmem:[%s9909_s23 + $0xe0] sm:$0xff] %vm7522_vm14, %v7483_v52 }
 0x695   : > { %v7485_v60 = vpop.permute.xlu1 %7484 }
 0x696   : > { %v7479_v4 = vpop.permute.xlu0 %7478  ;;  %7552 = vst.msk [vmem:[%s9909_s23 + $0xe8] sm:$0xff] %vm7522_vm14, %v7485_v60 }
 0x697   : > { %7549 = vst.msk [vmem:[%s9909_s23 + $0xd0] sm:$0xff] %vm7522_vm14, %v7479_v4 }
 0x69a   : > { %v7487_v28 = vpop.permute.xlu0 %7486 }
 0x69b   : > { %7553 = vst.msk [vmem:[%s9909_s23 + $0xf0] sm:$0xff] %vm7522_vm14, %v7487_v28 }
 0x69d   : > { %v7481_v31 = vpop.permute.xlu1 %7480 }
 0x69e   : > { %7550 = vst.msk [vmem:[%s9909_s23 + $0xd8] sm:$0xff] %vm7522_vm14, %v7481_v31 }
 0x6a1   : > { %v7489_v23 = vpop.permute.xlu1 %7488 }
 0x6a2   : > { %7554 = vst.msk [vmem:[%s9909_s23 + $0xf8] sm:$0xff] %vm7522_vm14, %v7489_v23 }
 0x6a3 PF: > { %s21_s17 = sadd.s32 1, %s8580_s17  }
 0x6a4   : > { %p18_p4 = scmp.ge.s32.totalorder %s21_s17, 4  }
 0x6a6   :  { %20 = sbr.rel (!%p18_p4) target bundleno = 1 (0x1), region = 102 }

</bundles_post_ra>
